<compile_context>
chip_gen: v5e
topology: v5e:2x2
jax: 0.10.0
libtpu: 0.0.40
codegen_flags: <defaults>
</compile_context>

<pallas_src>
import jax
import jax.numpy as jnp
from jax.experimental import pallas as pl
from jax.experimental.pallas import tpu as pltpu


def _round_up(x, m):
    return ((x + m - 1) // m) * m


def _cdiv(a, b):
    return (a + b - 1) // b


def _has_two_tensorcores():
    # v7x has 2 TensorCores per chip; v5e/v6e have 1.
    try:
        kind = jax.devices()[0].device_kind.lower()
        return "v7" in kind
    except Exception:
        return False


def _prefer_merged_k():
    # v6e/v7x MXU is 2x256^2 (K=256 native) -> merge the two K=128 dots into one.
    # v5e MXU is 4x128^2 (K=128 native)     -> keep the split, skip the concat copy.
    try:
        kind = jax.devices()[0].device_kind.lower()
        return "v5" not in kind
    except Exception:
        return True


def _make_kernel(merge_k):
    def kernel(x1_ref, x2_ref, w1_ref, b1_ref, w2_ref, b2_ref, o_ref):
        # x1/x2: (TB, in_dim) bf16/f32   w1: (2*in_dim, H) bf16   b1: (1, H) f32
        # w2:    (1, H) bf16             b2: (1,) f32 in SMEM     o:  (1, 1, TB) f32
        in_dim = x1_ref.shape[1]
        x1 = x1_ref[...].astype(jnp.bfloat16)
        x2 = x2_ref[...].astype(jnp.bfloat16)

        if merge_k:
            # fc1 as ONE K=2*in_dim dot (v6e/v7x MXU is 256 deep in K); the concat
            # is a small VMEM-local copy, negligible vs. HBM traffic.
            xc = jnp.concatenate([x1, x2], axis=1)                # (TB, 2*in_dim) bf16
            h = jnp.dot(xc, w1_ref[...], preferred_element_type=jnp.float32)
        else:
            # v5e path: two native K=128 dots against static W1 slices (zero-cost
            # views; in_dim is required to be a multiple of 16 for bf16 packing).
            h = jnp.dot(x1, w1_ref[:in_dim, :], preferred_element_type=jnp.float32)
            h = h + jnp.dot(x2, w1_ref[in_dim:, :], preferred_element_type=jnp.float32)

        h = h + b1_ref[...]          # bias broadcast (1,H) over (TB,H), f32
        h = jnp.maximum(h, 0.0)      # ReLU
        # dropout(p=0.5): identity in eval mode (see TODO above for training mode).

        # fc2: contract over H with batch landing on the lane axis -> (1, TB).
        out = jax.lax.dot_general(
            w2_ref[...], h.astype(jnp.bfloat16),
            dimension_numbers=(((1,), (1,)), ((), ())),
            preferred_element_type=jnp.float32,
        )                            # (1, TB)
        o_ref[0] = (out + b2_ref[0]).astype(o_ref.dtype)

    return kernel


def mlp_paired(input1, input2, w1_t, b1, w2, b2, *, block_b=512,
               merge_k=None, multi_core=None):
    """input1/input2: (B, in_dim) bf16 or f32. w1_t: (2*in_dim, H) = fc1.weight^T.
    b1: (H,). w2: (1, H) = fc2.weight. b2: (1,). Returns (B,) f32."""
    B, in_dim = input1.shape
    H = w1_t.shape[1]
    assert w1_t.shape[0] == 2 * in_dim

    if multi_core is None:
        multi_core = _has_two_tensorcores()
    if merge_k is None:
        merge_k = _prefer_merged_k()
    # The split path slices W1 at row `in_dim`; keep those slices zero-cost views
    # (bf16 packs 16 rows per sublane tile) or fall back to the merged dot.
    if in_dim % 16 != 0:
        merge_k = True

    # Batch tile: >=128 (lane-dense, unmasked output stores), target 512-1024 to
    # amortize per-grid-step overhead. On dual-TC chips keep >=2 tiles so the
    # "parallel" batch axis is actually split across both TensorCores.
    TB = max(128, min(_round_up(block_b, 128), _round_up(B, 128)))
    if multi_core:
        TB = min(TB, max(128, _round_up(_cdiv(B, 2), 128)))
    num_tiles = _cdiv(B, TB)   # ragged tail handled by Pallas; no wrapper jnp.pad

    in_bytes = jnp.dtype(input1.dtype).itemsize
    w1 = w1_t if w1_t.dtype == jnp.bfloat16 else w1_t.astype(jnp.bfloat16)
    w2v = jnp.asarray(w2).reshape(1, H)
    w2v = w2v if w2v.dtype == jnp.bfloat16 else w2v.astype(jnp.bfloat16)
    b1_2d = jnp.asarray(b1).reshape(1, H).astype(jnp.float32)
    b2_1d = jnp.asarray(b2).reshape(1).astype(jnp.float32)

    flops = 2 * B * (2 * in_dim) * H + 2 * B * H
    bytes_accessed = (
        2 * B * in_dim * in_bytes                       # x1 + x2 (bf16 in HBM)
        + w1.size * 2 + b1_2d.size * 4 + w2v.size * 2 + 4
        + num_tiles * TB * 4                            # output
    )

    # VMEM budget: double-buffered input/output tiles + resident weights (worst
    # case 2 bufs) + the (TB,H) f32 h temporary, its bf16 copy and the concat.
    vmem_est = (
        2 * 2 * TB * in_dim * in_bytes
        + 2 * TB * 4
        + 2 * (w1.size * 2 + H * 4 + H * 2)
        + TB * H * 4 + TB * H * 2
        + TB * 2 * in_dim * 2
    )
    vmem_limit = int(min(max(2 * vmem_est, 32 * 1024 * 1024), 56 * 1024 * 1024))

    kernel = _make_kernel(merge_k)

    def build(weight_pm):
        const_map = lambda i: (0, 0)
        in_specs = [
            pl.BlockSpec((TB, in_dim), lambda i: (i, 0)),                  # input1 tile
            pl.BlockSpec((TB, in_dim), lambda i: (i, 0)),                  # input2 tile
            pl.BlockSpec((2 * in_dim, H), const_map, pipeline_mode=weight_pm),  # W1
            pl.BlockSpec((1, H), const_map, pipeline_mode=weight_pm),           # b1
            pl.BlockSpec((1, H), const_map, pipeline_mode=weight_pm),           # w2
            pl.BlockSpec(memory_space=pltpu.MemorySpace.SMEM),             # b2 scalar
        ]
        return pl.pallas_call(
            kernel,
            out_shape=jax.ShapeDtypeStruct((num_tiles, 1, TB), jnp.float32),
            grid_spec=pltpu.PrefetchScalarGridSpec(
                num_scalar_prefetch=0,
                grid=(num_tiles,),
                in_specs=in_specs,
                out_specs=pl.BlockSpec((1, 1, TB), lambda i: (i, 0, 0)),
            ),
            compiler_params=pltpu.CompilerParams(
                dimension_semantics=("parallel",),
                vmem_limit_bytes=vmem_limit,
            ),
            cost_estimate=pl.CostEstimate(
                flops=flops, transcendentals=0, bytes_accessed=bytes_accessed
            ),
        )

    args = (input1, input2, w1, b1_2d, w2v, b2_1d)
    try:
        # Weights have constant index_maps -> a second pipeline buffer is wasted VMEM.
        out = build(pl.Buffered(1))(*args)
    except Exception:
        out = build(None)(*args)   # fall back to default double-buffering
    return out.reshape(-1)[:B]


def init_params(key, in_dim, hidden_dim):
    """Deterministic init mimicking PyTorch's default Linear init (U[-1/sqrt(fan_in), ...])."""
    k1, k2, k3, k4 = jax.random.split(key, 4)
    fan1 = 2 * in_dim
    bound1 = 1.0 / jnp.sqrt(fan1)
    # fc1.weight is (hidden, 2*in_dim) in torch; store transposed (2*in_dim, hidden)
    w1_t = jax.random.uniform(k1, (fan1, hidden_dim), jnp.float32, -bound1, bound1)
    b1 = jax.random.uniform(k2, (hidden_dim,), jnp.float32, -bound1, bound1)
    bound2 = 1.0 / jnp.sqrt(hidden_dim)
    w2 = jax.random.uniform(k3, (1, hidden_dim), jnp.float32, -bound2, bound2)  # fc2.weight
    b2 = jax.random.uniform(k4, (1,), jnp.float32, -bound2, bound2)
    return w1_t, b1, w2, b2


if __name__ == "__main__":
    # Small shapes consistent with the module (hidden_dim = 4 * in_dim).
    B, IN_DIM = 512, 128
    HIDDEN = 4 * IN_DIM

    key = jax.random.PRNGKey(0)
    k_in1, k_in2, k_params = jax.random.split(key, 3)

    # bf16 activations straight from the producer (no standalone wrapper cast op).
    input1 = jax.random.normal(k_in1, (B, IN_DIM), jnp.bfloat16)
    input2 = jax.random.normal(k_in2, (B, IN_DIM), jnp.bfloat16)

    w1_t, b1, w2, b2 = init_params(k_params, IN_DIM, HIDDEN)   # f32 masters
    w1_bf = w1_t.astype(jnp.bfloat16)                          # one-time weight convert
    w2_bf = w2.astype(jnp.bfloat16)

    out = mlp_paired(input1, input2, w1_bf, b1, w2_bf, b2, block_b=512)
    out = jax.block_until_ready(out)

    # Pure-JAX reference using the same bf16-operand / f32-accumulation math.
    # (bf16 MXU operands => ~1e-2 relative error vs the true f32 PyTorch module.)
    xc = jnp.concatenate([input1, input2], axis=1).astype(jnp.bfloat16)
    h_ref = jnp.dot(xc, w1_bf, preferred_element_type=jnp.float32) + b1
    h_ref = jnp.maximum(h_ref, 0.0)
    ref = jnp.dot(h_ref.astype(jnp.bfloat16), w2_bf.reshape(-1),
                  preferred_element_type=jnp.float32) + b2[0]

    assert out.shape == (B,)
    max_err = float(jnp.max(jnp.abs(out - ref)))
    assert jnp.allclose(out, ref, atol=1e-2, rtol=1e-2), max_err

    print("KERNEL_OK")
</pallas_src>

<mosaic_0001>
module attributes {stable_mosaic.version = 11 : i64} {
  func.func @kernel(%arg0: i32, %arg1: memref<512x128xbf16, #tpu.memory_space<vmem>>, %arg2: memref<512x128xbf16, #tpu.memory_space<vmem>>, %arg3: memref<256x512xbf16, #tpu.memory_space<vmem>>, %arg4: memref<1x512xf32, #tpu.memory_space<vmem>>, %arg5: memref<1x512xbf16, #tpu.memory_space<vmem>>, %arg6: memref<1xf32, #tpu.memory_space<smem>>, %arg7: memref<1x1x512xf32, #tpu.memory_space<vmem>>) attributes {dimension_semantics = [#tpu.dimension_semantics<parallel>], iteration_bounds = array<i64: 1>, scalar_prefetch = 0 : i64, scratch_operands = 0 : i64, tpu.core_type = #tpu.core_type<tc>, window_params = [{transform_indices = @transform_0, window_bounds = array<i64: 512, 128>}, {transform_indices = @transform_1, window_bounds = array<i64: 512, 128>}, {pipeline_mode = #tpu.pipeline_mode<synchronous>, transform_indices = @transform_2, window_bounds = array<i64: 256, 512>}, {pipeline_mode = #tpu.pipeline_mode<synchronous>, transform_indices = @transform_3, window_bounds = array<i64: 1, 512>}, {pipeline_mode = #tpu.pipeline_mode<synchronous>, transform_indices = @transform_4, window_bounds = array<i64: 1, 512>}, {transform_indices = @transform_5, window_bounds = array<i64: 1>}, {transform_indices = @transform_6, window_bounds = array<i64: 1, 1, 512>}]} {
    %c0 = arith.constant 0 : index
    %c0_0 = arith.constant 0 : index
    %0 = vector.load %arg1[%c0, %c0_0] : memref<512x128xbf16, #tpu.memory_space<vmem>>, vector<512x128xbf16>
    %c0_1 = arith.constant 0 : index
    %c0_2 = arith.constant 0 : index
    %1 = vector.load %arg2[%c0_1, %c0_2] : memref<512x128xbf16, #tpu.memory_space<vmem>>, vector<512x128xbf16>
    %2 = tpu.concatenate %0, %1 in 1 : vector<512x128xbf16>, vector<512x128xbf16> -> vector<512x256xbf16>
    %c0_3 = arith.constant 0 : index
    %c0_4 = arith.constant 0 : index
    %3 = vector.load %arg3[%c0_3, %c0_4] : memref<256x512xbf16, #tpu.memory_space<vmem>>, vector<256x512xbf16>
    %cst = arith.constant dense<0.000000e+00> : vector<512x512xf32>
    %4 = tpu.matmul %2, %3, %cst {dimension_numbers = #tpu.dot_dimension_numbers<[1], [0], [0], [1], [0, 0, 1, 1], [], []>} : vector<512x256xbf16>, vector<256x512xbf16>, vector<512x512xf32> -> vector<512x512xf32>
    %c0_5 = arith.constant 0 : index
    %c0_6 = arith.constant 0 : index
    %5 = vector.load %arg4[%c0_5, %c0_6] : memref<1x512xf32, #tpu.memory_space<vmem>>, vector<1x512xf32>
    %6 = vector.broadcast %5 : vector<1x512xf32> to vector<512x512xf32>
    %7 = arith.addf %4, %6 : vector<512x512xf32>
    %cst_7 = arith.constant 0.000000e+00 : f32
    %8 = vector.broadcast %cst_7 : f32 to vector<512x512xf32>
    %9 = arith.maximumf %7, %8 : vector<512x512xf32>
    %c0_8 = arith.constant 0 : index
    %c0_9 = arith.constant 0 : index
    %10 = vector.load %arg5[%c0_8, %c0_9] : memref<1x512xbf16, #tpu.memory_space<vmem>>, vector<1x512xbf16>
    %11 = arith.truncf %9 : vector<512x512xf32> to vector<512x512xbf16>
    %cst_10 = arith.constant dense<0.000000e+00> : vector<1x512xf32>
    %12 = tpu.matmul %10, %11, %cst_10 {dimension_numbers = #tpu.dot_dimension_numbers<[1], [1], [0], [0], [0, 0, 1, 0], [], []>} : vector<1x512xbf16>, vector<512x512xbf16>, vector<1x512xf32> -> vector<1x512xf32>
    %c0_11 = arith.constant 0 : index
    %13 = memref.load %arg6[%c0_11] : memref<1xf32, #tpu.memory_space<smem>>
    %14 = vector.broadcast %13 : f32 to vector<1x512xf32>
    %15 = arith.addf %12, %14 : vector<1x512xf32>
    %c0_12 = arith.constant 0 : index
    %c0_13 = arith.constant 0 : index
    %c0_14 = arith.constant 0 : index
    %16 = vector.load %arg7[%c0_12, %c0_13, %c0_14] : memref<1x1x512xf32, #tpu.memory_space<vmem>>, vector<1x1x512xf32>
    %17 = vector.shape_cast %16 : vector<1x1x512xf32> to vector<1x512xf32>
    %18 = vector.shape_cast %15 : vector<1x512xf32> to vector<1x1x512xf32>
    tpu.vector_store %arg7[%c0_12, %c0_13, %c0_14], %18 {strides = array<i32>} : memref<1x1x512xf32, #tpu.memory_space<vmem>>, vector<1x1x512xf32>,
    return
  }
  func.func @transform_0(%arg0: i32) -> (i32, i32) {
    %c0_i32 = arith.constant 0 : i32
    %c0_i32_0 = arith.constant 0 : i32
    return %arg0, %c0_i32 : i32, i32
  }
  func.func @transform_1(%arg0: i32) -> (i32, i32) {
    %c0_i32 = arith.constant 0 : i32
    %c0_i32_0 = arith.constant 0 : i32
    return %arg0, %c0_i32 : i32, i32
  }
  func.func @transform_2(%arg0: i32) -> (i32, i32) {
    %c0_i32 = arith.constant 0 : i32
    %c0_i32_0 = arith.constant 0 : i32
    %c0_i32_1 = arith.constant 0 : i32
    return %c0_i32, %c0_i32_0 : i32, i32
  }
  func.func @transform_3(%arg0: i32) -> (i32, i32) {
    %c0_i32 = arith.constant 0 : i32
    %c0_i32_0 = arith.constant 0 : i32
    %c0_i32_1 = arith.constant 0 : i32
    return %c0_i32, %c0_i32_0 : i32, i32
  }
  func.func @transform_4(%arg0: i32) -> (i32, i32) {
    %c0_i32 = arith.constant 0 : i32
    %c0_i32_0 = arith.constant 0 : i32
    %c0_i32_1 = arith.constant 0 : i32
    return %c0_i32, %c0_i32_0 : i32, i32
  }
  func.func @transform_5(%arg0: i32) -> i32 {
    %c0_i32 = arith.constant 0 : i32
    %c0_i32_0 = arith.constant 0 : i32
    return %c0_i32 : i32
  }
  func.func @transform_6(%arg0: i32) -> (i32, i32, i32) {
    %c0_i32 = arith.constant 0 : i32
    %c0_i32_0 = arith.constant 0 : i32
    %c0_i32_1 = arith.constant 0 : i32
    return %arg0, %c0_i32, %c0_i32_0 : i32, i32, i32
  }
}

module attributes {stable_mosaic.version = 11 : i64} {
  func.func @kernel(%arg0: i32, %arg1: memref<512x128xbf16, #tpu.memory_space<vmem>>, %arg2: memref<512x128xbf16, #tpu.memory_space<vmem>>, %arg3: memref<256x512xbf16, #tpu.memory_space<vmem>>, %arg4: memref<1x512xf32, #tpu.memory_space<vmem>>, %arg5: memref<1x512xbf16, #tpu.memory_space<vmem>>, %arg6: memref<1xf32, #tpu.memory_space<smem>>, %arg7: memref<1x1x512xf32, #tpu.memory_space<vmem>>) attributes {dimension_semantics = [#tpu.dimension_semantics<parallel>], iteration_bounds = array<i64: 1>, scalar_prefetch = 0 : i64, scratch_operands = 0 : i64, tpu.core_type = #tpu.core_type<tc>, window_params = [{transform_indices = @transform_0, window_bounds = array<i64: 512, 128>}, {transform_indices = @transform_1, window_bounds = array<i64: 512, 128>}, {pipeline_mode = #tpu.pipeline_mode<synchronous>, transform_indices = @transform_2, window_bounds = array<i64: 256, 512>}, {pipeline_mode = #tpu.pipeline_mode<synchronous>, transform_indices = @transform_3, window_bounds = array<i64: 1, 512>}, {pipeline_mode = #tpu.pipeline_mode<synchronous>, transform_indices = @transform_4, window_bounds = array<i64: 1, 512>}, {transform_indices = @transform_5, window_bounds = array<i64: 1>}, {transform_indices = @transform_6, window_bounds = array<i64: 1, 1, 512>}]} {
    %c0 = arith.constant 0 : index
    %c0_0 = arith.constant 0 : index
    %0 = vector.load %arg1[%c0, %c0_0] : memref<512x128xbf16, #tpu.memory_space<vmem>>, vector<512x128xbf16>
    %c0_1 = arith.constant 0 : index
    %c0_2 = arith.constant 0 : index
    %1 = vector.load %arg2[%c0_1, %c0_2] : memref<512x128xbf16, #tpu.memory_space<vmem>>, vector<512x128xbf16>
    %2 = tpu.concatenate %0, %1 in 1 : vector<512x128xbf16>, vector<512x128xbf16> -> vector<512x256xbf16>
    %c0_3 = arith.constant 0 : index
    %c0_4 = arith.constant 0 : index
    %3 = vector.load %arg3[%c0_3, %c0_4] : memref<256x512xbf16, #tpu.memory_space<vmem>>, vector<256x512xbf16>
    %cst = arith.constant dense<0.000000e+00> : vector<512x512xf32>
    %4 = tpu.matmul %2, %3, %cst {dimension_numbers = #tpu.dot_dimension_numbers<[1], [0], [0], [1], [0, 0, 1, 1], [], []>} : vector<512x256xbf16>, vector<256x512xbf16>, vector<512x512xf32> -> vector<512x512xf32>
    %c0_5 = arith.constant 0 : index
    %c0_6 = arith.constant 0 : index
    %5 = vector.load %arg4[%c0_5, %c0_6] : memref<1x512xf32, #tpu.memory_space<vmem>>, vector<1x512xf32>
    %6 = vector.broadcast %5 : vector<1x512xf32> to vector<512x512xf32>
    %7 = arith.addf %4, %6 : vector<512x512xf32>
    %cst_7 = arith.constant 0.000000e+00 : f32
    %8 = vector.broadcast %cst_7 : f32 to vector<512x512xf32>
    %9 = arith.maximumf %7, %8 : vector<512x512xf32>
    %c0_8 = arith.constant 0 : index
    %c0_9 = arith.constant 0 : index
    %10 = vector.load %arg5[%c0_8, %c0_9] : memref<1x512xbf16, #tpu.memory_space<vmem>>, vector<1x512xbf16>
    %11 = arith.truncf %9 : vector<512x512xf32> to vector<512x512xbf16>
    %cst_10 = arith.constant dense<0.000000e+00> : vector<1x512xf32>
    %12 = tpu.matmul %10, %11, %cst_10 {dimension_numbers = #tpu.dot_dimension_numbers<[1], [1], [0], [0], [0, 0, 1, 0], [], []>} : vector<1x512xbf16>, vector<512x512xbf16>, vector<1x512xf32> -> vector<1x512xf32>
    %c0_11 = arith.constant 0 : index
    %13 = memref.load %arg6[%c0_11] : memref<1xf32, #tpu.memory_space<smem>>
    %14 = vector.broadcast %13 : f32 to vector<1x512xf32>
    %15 = arith.addf %12, %14 : vector<1x512xf32>
    %c0_12 = arith.constant 0 : index
    %c0_13 = arith.constant 0 : index
    %c0_14 = arith.constant 0 : index
    %16 = vector.load %arg7[%c0_12, %c0_13, %c0_14] : memref<1x1x512xf32, #tpu.memory_space<vmem>>, vector<1x1x512xf32>
    %17 = vector.shape_cast %16 : vector<1x1x512xf32> to vector<1x512xf32>
    %18 = vector.shape_cast %15 : vector<1x512xf32> to vector<1x1x512xf32>
    tpu.vector_store %arg7[%c0_12, %c0_13, %c0_14], %18 {strides = array<i32>} : memref<1x1x512xf32, #tpu.memory_space<vmem>>, vector<1x1x512xf32>,
    return
  }
  func.func @transform_0(%arg0: i32) -> (i32, i32) {
    %c0_i32 = arith.constant 0 : i32
    %c0_i32_0 = arith.constant 0 : i32
    return %arg0, %c0_i32 : i32, i32
  }
  func.func @transform_1(%arg0: i32) -> (i32, i32) {
    %c0_i32 = arith.constant 0 : i32
    %c0_i32_0 = arith.constant 0 : i32
    return %arg0, %c0_i32 : i32, i32
  }
  func.func @transform_2(%arg0: i32) -> (i32, i32) {
    %c0_i32 = arith.constant 0 : i32
    %c0_i32_0 = arith.constant 0 : i32
    %c0_i32_1 = arith.constant 0 : i32
    return %c0_i32, %c0_i32_0 : i32, i32
  }
  func.func @transform_3(%arg0: i32) -> (i32, i32) {
    %c0_i32 = arith.constant 0 : i32
    %c0_i32_0 = arith.constant 0 : i32
    %c0_i32_1 = arith.constant 0 : i32
    return %c0_i32, %c0_i32_0 : i32, i32
  }
  func.func @transform_4(%arg0: i32) -> (i32, i32) {
    %c0_i32 = arith.constant 0 : i32
    %c0_i32_0 = arith.constant 0 : i32
    %c0_i32_1 = arith.constant 0 : i32
    return %c0_i32, %c0_i32_0 : i32, i32
  }
  func.func @transform_5(%arg0: i32) -> i32 {
    %c0_i32 = arith.constant 0 : i32
    %c0_i32_0 = arith.constant 0 : i32
    return %c0_i32 : i32
  }
  func.func @transform_6(%arg0: i32) -> (i32, i32, i32) {
    %c0_i32 = arith.constant 0 : i32
    %c0_i32_0 = arith.constant 0 : i32
    %c0_i32_1 = arith.constant 0 : i32
    return %arg0, %c0_i32, %c0_i32_0 : i32, i32, i32
  }
}

</mosaic_0001>

<bundles_post_ra>
// kernel: tpu_custom_call.1
= control target key start
LH: loop header
LB: loop body
LE: loop exit
PB: predicated region body
PF: predicated region fallthrough
CT: control target
= control target key end

     0   :  { %12 = vsyncpa [#allocation4], 0  ;;  %s4584_s0 = inlined_call_operand.hbm [shape: bf16[512,128], index: 0, kind: input, shape index: {}]   ;;  %s4585_s1 = inlined_call_operand.hbm [shape: bf16[512,128], index: 1, kind: input, shape index: {}]   ;;  %s4586_s2 = inlined_call_operand.hbm [shape: bf16[256,512], index: 2, kind: input, shape index: {}]   ;;  %s4587_s3 = inlined_call_operand.vmem [shape: f32[1,512], index: 3, kind: input, shape index: {}]   ;;  %s4588_s4 = inlined_call_operand.hbm [shape: bf16[1,512], index: 4, kind: input, shape index: {}]   ;;  %s4589_s5 = inlined_call_operand.<no memory space> [shape: f32[1], index: 5, kind: input, shape index: {}]   ;;  %s4590_s6 = inlined_call_operand.hbm [shape: f32[1,1,512], index: 6, kind: output, shape index: {}]  }
   0x1   :  { %13 = vsyncpa [#allocation7], 0 }
   0x2   :  { %14 = vsyncpa [#allocation10], 0 }
   0x3   :  { %15 = vsyncpa [#allocation5], 0  ;;  %s33_s23 = sshll.u32 %s4585_s1, 4  ;;  %s3829_s24 = smov [#allocation6]   ;;  %s34_s23 = int_to_ptr.hbm [resolvable:$true] %s33_s23 }
   0x4   :  { %s35_s25 = sshll.u32 %s3829_s24, 4  ;;  %s20_s28 = sshll.u32 %s4584_s0, 4  ;;  %s36_s25 = int_to_ptr.vmem [resolvable:$true] %s35_s25  ;;  %s21_s28 = int_to_ptr.hbm [resolvable:$true] %s20_s28 }
   0x5   :  { %s3830_s29 = smov 64   ;;  %s3831_s30 = smov 4  }
   0x6   :  { %41 = dma.hbm_to_vmem [thread:$0]  %s34_s23, 4096, %s36_s25, [#allocation7], %s3830_s29, %s3830_s29, %s3831_s30  }
   0x7   :  { %s3832_s7 = smov [#allocation3]   ;;  %s46_s11 = sshll.u32 %s4586_s2, 4  ;;  %s47_s11 = int_to_ptr.hbm [resolvable:$true] %s46_s11 }
   0x8   :  { %s22_s8 = sshll.u32 %s3832_s7, 4  ;;  %s3833_s1 = smov [#allocation8]   ;;  %s23_s8 = int_to_ptr.vmem [resolvable:$true] %s22_s8 }
   0x9   :  { %28 = dma.hbm_to_vmem [thread:$0]  %s21_s28, 4096, %s23_s8, [#allocation4], %s3830_s29, %s3830_s29, %s3831_s30  }
   0xa   :  { %s48_s12 = sshll.u32 %s3833_s1, 4  ;;  %s62_s0 = sshll.u32 %s4588_s4, 4  ;;  %s49_s12 = int_to_ptr.vmem [resolvable:$true] %s48_s12  ;;  %s63_s0 = int_to_ptr.hbm [resolvable:$true] %s62_s0 }
   0xb   :  { %s3834_s15 = smov 256   ;;  %s3835_s16 = smov 16  }
   0xc   :  { %54 = dma.hbm_to_vmem [thread:$0]  %s47_s11, 8192, %s49_s12, [#allocation7], %s3834_s15, %s3834_s15, %s3835_s16  }
   0xd   :  { %s3836_s17 = smov [#allocation9]  }
   0xe   :  { %s64_s18 = sshll.u32 %s3836_s17, 4  ;;  %s65_s18 = int_to_ptr.vmem [resolvable:$true] %s64_s18 }
   0xf   :  { %67 = dma.hbm_to_vmem [thread:$0]  %s63_s0, 64, %s65_s18, [#allocation10]  }
  0x10   :  { %3821 = dma.done.wait [#allocation4], 4096  }
  0x11   :  { %3822 = vsyncadd [#allocation4], 4294963200 }
  0x12   :  { %3823 = dma.done.wait [#allocation7], 12288  }
  0x13   :  { %3824 = vsyncadd [#allocation7], 4294955008 }
  0x14   :  { %3825 = dma.done.wait [#allocation10], 64  }
  0x15   :  { %3826 = vsyncadd [#allocation10], 4294967232  ;;  %v3357_v0 = vld [vmem:[#allocation8 + $0xe0] sm:$0xf]  ;;  %v3593_v1 = vld [vmem:[#allocation8 + $0xec] sm:$0xf0] }
  0x16   :  { %v3485_v2 = vld [vmem:[#allocation8 + $0x1e0] sm:$0xf]  ;;  %v3358_v3 = vor.u32 %v3593_v1, %v3357_v0  ;;  %v3625_v4 = vld [vmem:[#allocation8 + $0x1ec] sm:$0xf0]  ;;  %v3591_v5 = vld [vmem:[#allocation8 + $0xe4] sm:$0xf] }
  0x17   :  { %v3359_v6 = vld [vmem:[#allocation8 + $0xf0] sm:$0xf0]  ;;  %v3486_v7 = vor.u32 %v3625_v4, %v3485_v2  ;;  %v3623_v9 = vld [vmem:[#allocation8 + $0x1e4] sm:$0xf]  ;;  %v3341_v11 = vld [vmem:[#allocation8 + $0xc0] sm:$0xf] }
  0x18   :  { %v3362_v8 = vor.u32 %v3591_v5, %v3359_v6  ;;  %v3487_v10 = vld [vmem:[#allocation8 + $0x1f0] sm:$0xf0]  ;;  %992 = vmatpush.bf16.msra.mxu0 %v3358_v3  ;;  %v3589_v13 = vld [vmem:[#allocation8 + $0xcc] sm:$0xf0]  ;;  %v3469_v14 = vld [vmem:[#allocation8 + $0x1c0] sm:$0xf] }
  0x19   :  { %v3490_v12 = vor.u32 %v3623_v9, %v3487_v10  ;;  %v3621_v15 = vld [vmem:[#allocation8 + $0x1cc] sm:$0xf0]  ;;  %1161 = vmatpush.bf16.msra.mxu1 %v3486_v7  ;;  %v3342_v16 = vor.u32 %v3589_v13, %v3341_v11  ;;  %v3587_v18 = vld [vmem:[#allocation8 + $0xc4] sm:$0xf]  ;;  %v3343_v19 = vld [vmem:[#allocation8 + $0xd0] sm:$0xf0] }
  0x1a   :  { %1330 = vmatpush.bf16.msra.mxu2 %v3362_v8  ;;  %v3470_v17 = vor.u32 %v3621_v15, %v3469_v14  ;;  %v3619_v20 = vld [vmem:[#allocation8 + $0x1c4] sm:$0xf]  ;;  %v3346_v21 = vor.u32 %v3587_v18, %v3343_v19  ;;  %v3471_v22 = vld [vmem:[#allocation8 + $0x1d0] sm:$0xf0]  ;;  %v3325_v23 = vld [vmem:[#allocation8 + $0xa0] sm:$0xf] }
  0x1b   :  { %1499 = vmatpush.bf16.msra.mxu3 %v3490_v12  ;;  %v3585_v24 = vld [vmem:[#allocation8 + $0xac] sm:$0xf0]  ;;  %v3474_v25 = vor.u32 %v3619_v20, %v3471_v22  ;;  %v3453_v26 = vld [vmem:[#allocation8 + $0x1a0] sm:$0xf]  ;;  %v3583_v28 = vld [vmem:[#allocation8 + $0xa4] sm:$0xf] }
  0x1c   :  { %v3617_v27 = vld [vmem:[#allocation8 + $0x1ac] sm:$0xf0]  ;;  %993 = vmatpush.bf16.msra.mxu0 %v3342_v16  ;;  %v3326_v29 = vor.u32 %v3585_v24, %v3325_v23  ;;  %v3327_v30 = vld [vmem:[#allocation8 + $0xb0] sm:$0xf0]  ;;  %v3615_v31 = vld [vmem:[#allocation8 + $0x1a4] sm:$0xf] }
  0x1d   :  { %v3455_v32 = vld [vmem:[#allocation8 + $0x1b0] sm:$0xf0]  ;;  %1162 = vmatpush.bf16.msra.mxu1 %v3470_v17  ;;  %v3454_v33 = vor.u32 %v3617_v27, %v3453_v26  ;;  %v3330_v34 = vor.u32 %v3583_v28, %v3327_v30  ;;  %v3309_v35 = vld [vmem:[#allocation8 + $0x80] sm:$0xf]  ;;  %v3581_v36 = vld [vmem:[#allocation8 + $0x8c] sm:$0xf0] }
  0x1e   :  { %1331 = vmatpush.bf16.msra.mxu2 %v3346_v21  ;;  %v3437_v37 = vld [vmem:[#allocation8 + $0x180] sm:$0xf]  ;;  %v3458_v38 = vor.u32 %v3615_v31, %v3455_v32  ;;  %v3613_v39 = vld [vmem:[#allocation8 + $0x18c] sm:$0xf0]  ;;  %v3579_v40 = vld [vmem:[#allocation8 + $0x84] sm:$0xf]  ;;  %v3310_v44 = vor.u32 %v3581_v36, %v3309_v35 }
  0x1f   :  { %1500 = vmatpush.bf16.msra.mxu3 %v3474_v25  ;;  %v3311_v41 = vld [vmem:[#allocation8 + $0x90] sm:$0xf0]  ;;  %v3611_v42 = vld [vmem:[#allocation8 + $0x184] sm:$0xf]  ;;  %v3438_v45 = vor.u32 %v3613_v39, %v3437_v37  ;;  %v3293_v47 = vld [vmem:[#allocation8 + $0x60] sm:$0xf] }
  0x20   :  { %v3439_v43 = vld [vmem:[#allocation8 + $0x190] sm:$0xf0]  ;;  %994 = vmatpush.bf16.msra.mxu0 %v3326_v29  ;;  %v3314_v46 = vor.u32 %v3579_v40, %v3311_v41  ;;  %v3577_v48 = vld [vmem:[#allocation8 + $0x6c] sm:$0xf0]  ;;  %v3421_v49 = vld [vmem:[#allocation8 + $0x160] sm:$0xf] }
  0x21   :  { %1163 = vmatpush.bf16.msra.mxu1 %v3454_v33  ;;  %v3442_v50 = vor.u32 %v3611_v42, %v3439_v43  ;;  %v3609_v51 = vld [vmem:[#allocation8 + $0x16c] sm:$0xf0]  ;;  %v3575_v52 = vld [vmem:[#allocation8 + $0x64] sm:$0xf]  ;;  %v3295_v53 = vld [vmem:[#allocation8 + $0x70] sm:$0xf0]  ;;  %v3294_v56 = vor.u32 %v3577_v48, %v3293_v47 }
  0x22   :  { %1332 = vmatpush.bf16.msra.mxu2 %v3330_v34  ;;  %v3607_v54 = vld [vmem:[#allocation8 + $0x164] sm:$0xf]  ;;  %v3423_v55 = vld [vmem:[#allocation8 + $0x170] sm:$0xf0]  ;;  %v3422_v57 = vor.u32 %v3609_v51, %v3421_v49  ;;  %v3298_v58 = vor.u32 %v3575_v52, %v3295_v53  ;;  %v3277_v59 = vld [vmem:[#allocation8 + $0x40] sm:$0xf] }
  0x23   :  { %1501 = vmatpush.bf16.msra.mxu3 %v3458_v38  ;;  %v3573_v60 = vld [vmem:[#allocation8 + $0x4c] sm:$0xf0]  ;;  %v3405_v61 = vld [vmem:[#allocation8 + $0x140] sm:$0xf]  ;;  %v3426_v62 = vor.u32 %v3607_v54, %v3423_v55  ;;  %v3571_v0 = vld [vmem:[#allocation8 + $0x44] sm:$0xf] }
  0x24   :  { %995 = vmatpush.bf16.msra.mxu0 %v3310_v44  ;;  %v3605_v63 = vld [vmem:[#allocation8 + $0x14c] sm:$0xf0]  ;;  %v3279_v1 = vld [vmem:[#allocation8 + $0x50] sm:$0xf0]  ;;  %v3603_v2 = vld [vmem:[#allocation8 + $0x144] sm:$0xf]  ;;  %v3278_v4 = vor.u32 %v3573_v60, %v3277_v59 }
  0x25   :  { %1164 = vmatpush.bf16.msra.mxu1 %v3438_v45  ;;  %v3407_v3 = vld [vmem:[#allocation8 + $0x150] sm:$0xf0]  ;;  %v3406_v5 = vor.u32 %v3605_v63, %v3405_v61  ;;  %v3282_v6 = vor.u32 %v3571_v0, %v3279_v1  ;;  %v3261_v7 = vld [vmem:[#allocation8 + $0x20] sm:$0xf]  ;;  %v3569_v8 = vld [vmem:[#allocation8 + $0x2c] sm:$0xf0] }
  0x26   :  { %1333 = vmatpush.bf16.msra.mxu2 %v3314_v46  ;;  %v3389_v9 = vld [vmem:[#allocation8 + $0x120] sm:$0xf]  ;;  %v3410_v10 = vor.u32 %v3603_v2, %v3407_v3  ;;  %v3601_v11 = vld [vmem:[#allocation8 + $0x12c] sm:$0xf0]  ;;  %v3567_v12 = vld [vmem:[#allocation8 + $0x24] sm:$0xf]  ;;  %v3262_v16 = vor.u32 %v3569_v8, %v3261_v7 }
  0x27   :  { %1502 = vmatpush.bf16.msra.mxu3 %v3442_v50  ;;  %v3263_v13 = vld [vmem:[#allocation8 + $0x30] sm:$0xf0]  ;;  %v3599_v14 = vld [vmem:[#allocation8 + $0x124] sm:$0xf]  ;;  %v3390_v17 = vor.u32 %v3601_v11, %v3389_v9  ;;  %v3245_v19 = vld [vmem:[#allocation8] sm:$0xf] }
  0x28   :  { %996 = vmatpush.bf16.msra.mxu0 %v3294_v56  ;;  %v3391_v15 = vld [vmem:[#allocation8 + $0x130] sm:$0xf0]  ;;  %v3266_v18 = vor.u32 %v3567_v12, %v3263_v13  ;;  %v3565_v20 = vld [vmem:[#allocation8 + $0xc] sm:$0xf0]  ;;  %v3373_v21 = vld [vmem:[#allocation8 + $0x100] sm:$0xf] }
  0x29   :  { %1165 = vmatpush.bf16.msra.mxu1 %v3422_v57  ;;  %v3394_v22 = vor.u32 %v3599_v14, %v3391_v15  ;;  %v3597_v23 = vld [vmem:[#allocation8 + $0x10c] sm:$0xf0]  ;;  %v3563_v24 = vld [vmem:[#allocation8 + $0x4] sm:$0xf]  ;;  %v3247_v25 = vld [vmem:[#allocation8 + $0x10] sm:$0xf0]  ;;  %v3246_v28 = vor.u32 %v3565_v20, %v3245_v19 }
  0x2a   :  { %1334 = vmatpush.bf16.msra.mxu2 %v3298_v58  ;;  %v3595_v26 = vld [vmem:[#allocation8 + $0x104] sm:$0xf]  ;;  %v3375_v27 = vld [vmem:[#allocation8 + $0x110] sm:$0xf0]  ;;  %v3374_v29 = vor.u32 %v3597_v23, %v3373_v21  ;;  %v3250_v30 = vor.u32 %v3563_v24, %v3247_v25  ;;  %v3500_v34 = vld [vmem:[#allocation3 + $0x8] sm:$0xff]  ;;  %vm2956_vm0 = vcmask 1040384  }
  0x2b   :  { %1503 = vmatpush.bf16.msra.mxu3 %v3426_v62  ;;  %v3378_v31 = vor.u32 %v3595_v26, %v3375_v27  ;;  %v3499_v32 = vld [vmem:[#allocation3] sm:$0xff]  ;;  %v3532_v35 = vld [vmem:[#allocation6 + $0x8] sm:$0xff]  ;;  %v3501_v36 = vld [vmem:[#allocation3 + $0x10] sm:$0xff]  ;;  %vm2958_vm1 = vcmask 1042434   ;;  %s2975_s25 = sshll.u32 %s4590_s6, 4  ;;  %vm2960_vm2 = vcmask 1041408   ;;  %s2976_s25 = int_to_ptr.hbm [resolvable:$true] %s2975_s25 }
  0x2c   :  { %997 = vmatpush.bf16.msra.mxu0 %v3278_v4  ;;  %v3531_v33 = vld [vmem:[#allocation6] sm:$0xff]  ;;  %v3533_v37 = vld [vmem:[#allocation6 + $0x10] sm:$0xff]  ;;  %v3502_v38 = vld [vmem:[#allocation3 + $0x18] sm:$0xff] }
  0x2d   :  { %1166 = vmatpush.bf16.msra.mxu1 %v3406_v5  ;;  %v3534_v39 = vld [vmem:[#allocation6 + $0x18] sm:$0xff]  ;;  %v3503_v40 = vld [vmem:[#allocation3 + $0x20] sm:$0xff]  ;;  %v3504_v42 = vld [vmem:[#allocation3 + $0x28] sm:$0xff] }
  0x2e   :  { %1335 = vmatpush.bf16.msra.mxu2 %v3282_v6  ;;  %v3535_v41 = vld [vmem:[#allocation6 + $0x20] sm:$0xff]  ;;  %v3536_v43 = vld [vmem:[#allocation6 + $0x28] sm:$0xff]  ;;  %v3505_v44 = vld [vmem:[#allocation3 + $0x30] sm:$0xff] }
  0x2f   :  { %1504 = vmatpush.bf16.msra.mxu3 %v3410_v10  ;;  %v3537_v45 = vld [vmem:[#allocation6 + $0x30] sm:$0xff]  ;;  %v3506_v46 = vld [vmem:[#allocation3 + $0x38] sm:$0xff]  ;;  %v3592_v48 = vld [vmem:[#allocation8 + $0xec] sm:$0xf] }
  0x30   :  { %998 = vmatpush.bf16.msra.mxu0 %v3262_v16  ;;  %v3538_v47 = vld [vmem:[#allocation6 + $0x38] sm:$0xff]  ;;  %v3624_v50 = vld [vmem:[#allocation8 + $0x1ec] sm:$0xf]  ;;  %v3365_v55 = vld [vmem:[#allocation8 + $0xe8] sm:$0xf] }
  0x31   :  { %1167 = vmatpush.bf16.msra.mxu1 %v3390_v17  ;;  %v3367_v49 = vld [vmem:[#allocation8 + $0xf8] sm:$0xf0]  ;;  %v662_v54 = vld [vmem:[%s4587_s3] sm:$0xf]  ;;  %v3493_v59 = vld [vmem:[#allocation8 + $0x1e8] sm:$0xf] }
  0x32   :  { %1336 = vmatpush.bf16.msra.mxu2 %v3266_v18  ;;  %v3370_v51 = vor.u32 %v3592_v48, %v3367_v49  ;;  %v3495_v52 = vld [vmem:[#allocation8 + $0x1f8] sm:$0xf0]  ;;  %v3594_v56 = vld [vmem:[#allocation8 + $0xf4] sm:$0xf0]  ;;  %v3888_v57 = vperm.slane %v662_v54, 0  ;;  %v3507_v62 = vld [vmem:[#allocation3 + $0x40] sm:$0xff] }
  0x33   :  { %1505 = vmatpush.bf16.msra.mxu3 %v3394_v22  ;;  %v3498_v53 = vor.u32 %v3624_v50, %v3495_v52  ;;  %v3366_v58 = vor.u32 %v3594_v56, %v3365_v55  ;;  %v3626_v60 = vld [vmem:[#allocation8 + $0x1f4] sm:$0xf0]  ;;  %v3539_v0 = vld [vmem:[#allocation6 + $0x40] sm:$0xff]  ;;  %v3891_v4 = vperm.slane %v662_v54, 1  ;;  %v3508_v16 = vld [vmem:[#allocation3 + $0x48] sm:$0xff] }
  0x34   :  { %999 = vmatpush.bf16.msra.mxu0 %v3246_v28  ;;  %v3494_v61 = vor.u32 %v3626_v60, %v3493_v59  ;;  %v3540_v21 = vld [vmem:[#allocation6 + $0x48] sm:$0xff] }
  0x35   :  { %1168 = vmatpush.bf16.msra.mxu1 %v3374_v29 }
  0x36   :  { %1337 = vmatpush.bf16.msra.mxu2 %v3250_v30 }
  0x37   :  { %1506 = vmatpush.bf16.msra.mxu3 %v3378_v31  ;;  %1000 = vmatmul.bf16.vlgmr.msra.gmra.mxu0 %v3499_v32 }
  0x38   :  { %1169 = vmatmul.bf16.vlgmr.msra.gmra.mxu1 %v3531_v33  ;;  %1668 = vmatpush.bf16.msrb.mxu0 %v3366_v58 }
  0x39   :  { %1338 = vmatmul.bf16.vlgmr.msra.gmra.mxu2 %v3499_v32  ;;  %1837 = vmatpush.bf16.msrb.mxu1 %v3494_v61 }
  0x3a   :  { %1507 = vmatmul.bf16.vlgmr.msra.gmra.mxu3 %v3531_v33  ;;  %2006 = vmatpush.bf16.msrb.mxu2 %v3370_v51 }
  0x3b   :  { %2175 = vmatpush.bf16.msrb.mxu3 %v3498_v53 }
  0x47   :  { %1005 = vmatmul.bf16.gmra.mxu0 %v3500_v34 }
  0x48   :  { %1174 = vmatmul.bf16.gmra.mxu1 %v3532_v35 }
  0x49   :  { %1343 = vmatmul.bf16.gmra.mxu2 %v3500_v34 }
  0x4a   :  { %1512 = vmatmul.bf16.gmra.mxu3 %v3532_v35 }
  0x57   :  { %1010 = vmatmul.bf16.gmra.mxu0 %v3501_v36 }
  0x58   :  { %1179 = vmatmul.bf16.gmra.mxu1 %v3533_v37 }
  0x59   :  { %1348 = vmatmul.bf16.gmra.mxu2 %v3501_v36 }
  0x5a   :  { %1517 = vmatmul.bf16.gmra.mxu3 %v3533_v37 }
  0x67   :  { %1015 = vmatmul.bf16.gmra.mxu0 %v3502_v38 }
  0x68   :  { %1184 = vmatmul.bf16.gmra.mxu1 %v3534_v39 }
  0x69   :  { %1353 = vmatmul.bf16.gmra.mxu2 %v3502_v38 }
  0x6a   :  { %1522 = vmatmul.bf16.gmra.mxu3 %v3534_v39 }
  0x77   :  { %1020 = vmatmul.bf16.gmra.mxu0 %v3503_v40 }
  0x78   :  { %1189 = vmatmul.bf16.gmra.mxu1 %v3535_v41 }
  0x79   :  { %1358 = vmatmul.bf16.gmra.mxu2 %v3503_v40  ;;  %v3509_v40 = vld [vmem:[#allocation3 + $0x50] sm:$0xff] }
  0x7a   :  { %1527 = vmatmul.bf16.gmra.mxu3 %v3535_v41 }
  0x87   :  { %1025 = vmatmul.bf16.gmra.mxu0 %v3504_v42 }
  0x88   :  { %1194 = vmatmul.bf16.gmra.mxu1 %v3536_v43 }
  0x89   :  { %1363 = vmatmul.bf16.gmra.mxu2 %v3504_v42 }
  0x8a   :  { %1532 = vmatmul.bf16.gmra.mxu3 %v3536_v43 }
  0x97   :  { %1030 = vmatmul.bf16.gmra.mxu0 %v3505_v44 }
  0x98   :  { %1199 = vmatmul.bf16.gmra.mxu1 %v3537_v45 }
  0x99   :  { %1368 = vmatmul.bf16.gmra.mxu2 %v3505_v44 }
  0x9a   :  { %1537 = vmatmul.bf16.gmra.mxu3 %v3537_v45  ;;  %v3541_v45 = vld [vmem:[#allocation6 + $0x50] sm:$0xff] }
  0xa7   :  { %1035 = vmatmul.bf16.gmra.mxu0 %v3506_v46 }
  0xa8   :  { %1204 = vmatmul.bf16.gmra.mxu1 %v3538_v47 }
  0xa9   :  { %1373 = vmatmul.bf16.gmra.mxu2 %v3506_v46 }
  0xaa   :  { %1542 = vmatmul.bf16.gmra.mxu3 %v3538_v47 }
  0xb4   :  { %v1001_v63 = vpop.f32.mrf.mxu0 }
  0xb5   :  { %v1002_v1 = vadd.f32 %v1001_v63, %v3888_v57  ;;  %v1170_v2 = vpop.f32.mrf.mxu1 }
  0xb7   :  { %v1171_v3 = vadd.f32 %v1170_v2, %v1002_v1  ;;  %1040 = vmatmul.bf16.gmra.mxu0 %v3507_v62  ;;  %v3510_v1 = vld [vmem:[#allocation3 + $0x58] sm:$0xff] }
  0xb8   :  { %1209 = vmatmul.bf16.gmra.mxu1 %v3539_v0 }
  0xb9   :  { %1378 = vmatmul.bf16.gmra.mxu2 %v3507_v62  ;;  %v2344_v13 = vmax.f32 %v1171_v3, 0.0 }
  0xba   :  { %1547 = vmatmul.bf16.gmra.mxu3 %v3539_v0 }
  0xbc   :  { %v1339_v5 = vpop.f32.mrf.mxu2  ;;  %v1003_v8 = vpop.f32.mrf.mxu0 }
  0xbd   :  { %v1340_v6 = vadd.f32 %v1339_v5, %v3891_v4  ;;  %v1508_v7 = vpop.f32.mrf.mxu3  ;;  %v1004_v9 = vadd.f32 %v1003_v8, %v3888_v57  ;;  %v1172_v10 = vpop.f32.mrf.mxu1 }
  0xbf   :  { %v1509_v11 = vadd.f32 %v1508_v7, %v1340_v6  ;;  %v1173_v12 = vadd.f32 %v1172_v10, %v1004_v9  ;;  %v3542_v7 = vld [vmem:[#allocation6 + $0x58] sm:$0xff] }
  0xc1   :  { %v2348_v14 = vmax.f32 %v1173_v12, 0.0  ;;  %v2345_v26 = vmax.f32 %v1509_v11, 0.0 }
  0xc3   :  { %v3895_v17 = vpack.c.bf16 %v2348_v14, %v2344_v13  ;;  %v3588_v14 = vld [vmem:[#allocation8 + $0xcc] sm:$0xf] }
  0xc4   :  { %v1341_v15 = vpop.f32.mrf.mxu2  ;;  %v1006_v20 = vpop.f32.mrf.mxu0 }
  0xc5   :  { %v1342_v18 = vadd.f32 %v1341_v15, %v3891_v4  ;;  %v1510_v19 = vpop.f32.mrf.mxu3  ;;  %v1007_v22 = vadd.f32 %v1006_v20, %v3888_v57  ;;  %v1175_v23 = vpop.f32.mrf.mxu1  ;;  %v3351_v15 = vld [vmem:[#allocation8 + $0xd8] sm:$0xf0] }
  0xc7   :  { %v1511_v24 = vadd.f32 %v1510_v19, %v1342_v18  ;;  %v1176_v25 = vadd.f32 %v1175_v23, %v1007_v22  ;;  %1045 = vmatmul.bf16.gmra.mxu0 %v3508_v16  ;;  %v3620_v18 = vld [vmem:[#allocation8 + $0x1cc] sm:$0xf]  ;;  %v3479_v19 = vld [vmem:[#allocation8 + $0x1d8] sm:$0xf0] }
  0xc8   :  { %1214 = vmatmul.bf16.gmra.mxu1 %v3540_v21  ;;  %v3482_v22 = vor.u32 %v3620_v18, %v3479_v19  ;;  %v3461_v19 = vld [vmem:[#allocation8 + $0x1a8] sm:$0xf] }
  0xc9   :  { %v2349_v27 = vmax.f32 %v1511_v24, 0.0  ;;  %1383 = vmatmul.bf16.gmra.mxu2 %v3508_v16  ;;  %v2352_v37 = vmax.f32 %v1176_v25, 0.0  ;;  %v3354_v16 = vor.u32 %v3588_v14, %v3351_v15  ;;  %v3544_v15 = vld [vmem:[#allocation6 + $0x68] sm:$0xff] }
  0xca   :  { %1552 = vmatmul.bf16.gmra.mxu3 %v3540_v21 }
  0xcb   :  { %v3899_v28 = vpack.c.bf16 %v2349_v27, %v2345_v26  ;;  %2007 = vmatpush.bf16.msrb.mxu2 %v3354_v16  ;;  %2176 = vmatpush.bf16.msrb.mxu3 %v3482_v22 }
  0xcc   :  { %v1344_v29 = vpop.f32.mrf.mxu2  ;;  %v1008_v32 = vpop.f32.mrf.mxu0 }
  0xcd   :  { %v1345_v30 = vadd.f32 %v1344_v29, %v3891_v4  ;;  %v1513_v31 = vpop.f32.mrf.mxu3  ;;  %v1009_v33 = vadd.f32 %v1008_v32, %v3888_v57  ;;  %v1177_v34 = vpop.f32.mrf.mxu1  ;;  %v3590_v32 = vld [vmem:[#allocation8 + $0xd4] sm:$0xf0] }
  0xcf   :  { %v1514_v35 = vadd.f32 %v1513_v31, %v1345_v30  ;;  %v1178_v36 = vadd.f32 %v1177_v34, %v1009_v33  ;;  %v3349_v31 = vld [vmem:[#allocation8 + $0xc8] sm:$0xf] }
  0xd1   :  { %v2356_v38 = vmax.f32 %v1178_v36, 0.0  ;;  %v2353_v50 = vmax.f32 %v1514_v35, 0.0  ;;  %v3350_v35 = vor.u32 %v3590_v32, %v3349_v31  ;;  %v3477_v36 = vld [vmem:[#allocation8 + $0x1c8] sm:$0xf]  ;;  %v3614_v31 = vld [vmem:[#allocation8 + $0x194] sm:$0xf0] }
  0xd3   :  { %v3903_v41 = vpack.c.bf16 %v2356_v38, %v2352_v37  ;;  %v3622_v37 = vld [vmem:[#allocation8 + $0x1d4] sm:$0xf0]  ;;  %1669 = vmatpush.bf16.msrb.mxu0 %v3350_v35  ;;  %v3285_v35 = vld [vmem:[#allocation8 + $0x48] sm:$0xf] }
  0xd4   :  { %v1346_v39 = vpop.f32.mrf.mxu2  ;;  %v1011_v44 = vpop.f32.mrf.mxu0  ;;  %v3478_v38 = vor.u32 %v3622_v37, %v3477_v36  ;;  %v3574_v36 = vld [vmem:[#allocation8 + $0x54] sm:$0xf0] }
  0xd5   :  { %v1347_v42 = vadd.f32 %v1346_v39, %v3891_v4  ;;  %v1515_v43 = vpop.f32.mrf.mxu3  ;;  %v1012_v46 = vadd.f32 %v1011_v44, %v3888_v57  ;;  %v1180_v47 = vpop.f32.mrf.mxu1 }
  0xd6   :  { %1838 = vmatpush.bf16.msrb.mxu1 %v3478_v38 }
  0xd7   :  { %v1516_v48 = vadd.f32 %v1515_v43, %v1347_v42  ;;  %v1181_v49 = vadd.f32 %v1180_v47, %v1012_v46  ;;  %1050 = vmatmul.bf16.gmra.mxu0 %v3509_v40  ;;  %v3543_v46 = vld [vmem:[#allocation6 + $0x60] sm:$0xff] }
  0xd8   :  { %1219 = vmatmul.bf16.gmra.mxu1 %v3541_v45 }
  0xd9   :  { %v2357_v51 = vmax.f32 %v1516_v48, 0.0  ;;  %1388 = vmatmul.bf16.gmra.mxu2 %v3509_v40  ;;  %v2360_v62 = vmax.f32 %v1181_v49, 0.0  ;;  %v3511_v40 = vld [vmem:[#allocation3 + $0x60] sm:$0xff] }
  0xda   :  { %1557 = vmatmul.bf16.gmra.mxu3 %v3541_v45 }
  0xdb   :  { %v3907_v52 = vpack.c.bf16 %v2357_v51, %v2353_v50 }
  0xdc   :  { %v1349_v53 = vpop.f32.mrf.mxu2  ;;  %v1013_v56 = vpop.f32.mrf.mxu0 }
  0xdd   :  { %v1350_v54 = vadd.f32 %v1349_v53, %v3891_v4  ;;  %v1518_v55 = vpop.f32.mrf.mxu3  ;;  %v1014_v58 = vadd.f32 %v1013_v56, %v3888_v57  ;;  %v1182_v59 = vpop.f32.mrf.mxu1 }
  0xdf   :  { %v1519_v60 = vadd.f32 %v1518_v55, %v1350_v54  ;;  %v1183_v61 = vadd.f32 %v1182_v59, %v1014_v58 }
  0xe1   :  { %v2364_v63 = vmax.f32 %v1183_v61, 0.0  ;;  %v2361_v12 = vmax.f32 %v1519_v60, 0.0 }
  0xe3   :  { %v3911_v2 = vpack.c.bf16 %v2364_v63, %v2360_v62 }
  0xe4   :  { %v1351_v0 = vpop.f32.mrf.mxu2  ;;  %v1016_v6 = vpop.f32.mrf.mxu0 }
  0xe5   :  { %v1352_v3 = vadd.f32 %v1351_v0, %v3891_v4  ;;  %v1520_v5 = vpop.f32.mrf.mxu3  ;;  %v1017_v8 = vadd.f32 %v1016_v6, %v3888_v57  ;;  %v1185_v9 = vpop.f32.mrf.mxu1  ;;  %v3333_v0 = vld [vmem:[#allocation8 + $0xa8] sm:$0xf] }
  0xe7   :  { %v1521_v10 = vadd.f32 %v1520_v5, %v1352_v3  ;;  %v1186_v11 = vadd.f32 %v1185_v9, %v1017_v8  ;;  %1055 = vmatmul.bf16.gmra.mxu0 %v3510_v1  ;;  %v3512_v8 = vld [vmem:[#allocation3 + $0x68] sm:$0xff] }
  0xe8   :  { %1224 = vmatmul.bf16.gmra.mxu1 %v3542_v7  ;;  %v3317_v9 = vld [vmem:[#allocation8 + $0x88] sm:$0xf] }
  0xe9   :  { %v2365_v13 = vmax.f32 %v1521_v10, 0.0  ;;  %1393 = vmatmul.bf16.gmra.mxu2 %v3510_v1  ;;  %v2368_v33 = vmax.f32 %v1186_v11, 0.0  ;;  %v3586_v1 = vld [vmem:[#allocation8 + $0xb4] sm:$0xf0] }
  0xea   :  { %1562 = vmatmul.bf16.gmra.mxu3 %v3542_v7  ;;  %v3334_v3 = vor.u32 %v3586_v1, %v3333_v0  ;;  %v3582_v10 = vld [vmem:[#allocation8 + $0x94] sm:$0xf0]  ;;  %v3397_v0 = vld [vmem:[#allocation8 + $0x128] sm:$0xf] }
  0xeb   :  { %v3915_v20 = vpack.c.bf16 %v2365_v13, %v2361_v12  ;;  %v3318_v16 = vor.u32 %v3582_v10, %v3317_v9  ;;  %v3602_v1 = vld [vmem:[#allocation8 + $0x134] sm:$0xf0] }
  0xec   :  { %v1354_v21 = vpop.f32.mrf.mxu2  ;;  %v1018_v25 = vpop.f32.mrf.mxu0  ;;  %1670 = vmatpush.bf16.msrb.mxu0 %v3334_v3  ;;  %v3398_v3 = vor.u32 %v3602_v1, %v3397_v0  ;;  %v3547_v1 = vld [vmem:[#allocation6 + $0x80] sm:$0xff] }
  0xed   :  { %v1355_v23 = vadd.f32 %v1354_v21, %v3891_v4  ;;  %v1523_v24 = vpop.f32.mrf.mxu3  ;;  %v1019_v26 = vadd.f32 %v1018_v25, %v3888_v57  ;;  %v1187_v27 = vpop.f32.mrf.mxu1  ;;  %v3618_v21 = vld [vmem:[#allocation8 + $0x1b4] sm:$0xf0] }
  0xef   :  { %v1524_v29 = vadd.f32 %v1523_v24, %v1355_v23  ;;  %v1188_v30 = vadd.f32 %v1187_v27, %v1019_v26  ;;  %v3462_v23 = vor.u32 %v3618_v21, %v3461_v19  ;;  %v3301_v24 = vld [vmem:[#allocation8 + $0x68] sm:$0xf]  ;;  %v3578_v27 = vld [vmem:[#allocation8 + $0x74] sm:$0xf0] }
  0xf0   :  { %1671 = vmatpush.bf16.msrb.mxu0 %v3318_v16  ;;  %v3546_v21 = vld [vmem:[#allocation6 + $0x78] sm:$0xff] }
  0xf1   :  { %v2372_v34 = vmax.f32 %v1188_v30, 0.0  ;;  %v2369_v51 = vmax.f32 %v1524_v29, 0.0  ;;  %1839 = vmatpush.bf16.msrb.mxu1 %v3462_v23  ;;  %v3302_v29 = vor.u32 %v3578_v27, %v3301_v24  ;;  %v3445_v30 = vld [vmem:[#allocation8 + $0x188] sm:$0xf]  ;;  %v3584_v24 = vld [vmem:[#allocation8 + $0xac] sm:$0xf] }
  0xf2   :  { %v3446_v32 = vor.u32 %v3614_v31, %v3445_v30  ;;  %v3616_v27 = vld [vmem:[#allocation8 + $0x1ac] sm:$0xf] }
  0xf3   :  { %v3919_v42 = vpack.c.bf16 %v2372_v34, %v2368_v33 }
  0xf4   :  { %v1356_v39 = vpop.f32.mrf.mxu2  ;;  %v1021_v45 = vpop.f32.mrf.mxu0  ;;  %1672 = vmatpush.bf16.msrb.mxu0 %v3302_v29  ;;  %v3463_v29 = vld [vmem:[#allocation8 + $0x1b8] sm:$0xf0] }
  0xf5   :  { %v1357_v43 = vadd.f32 %v1356_v39, %v3891_v4  ;;  %v1525_v44 = vpop.f32.mrf.mxu3  ;;  %v1022_v47 = vadd.f32 %v1021_v45, %v3888_v57  ;;  %v1190_v48 = vpop.f32.mrf.mxu1  ;;  %v3286_v39 = vor.u32 %v3574_v36, %v3285_v35  ;;  %1840 = vmatpush.bf16.msrb.mxu1 %v3446_v32  ;;  %v3466_v31 = vor.u32 %v3616_v27, %v3463_v29 }
  0xf7   :  { %v1526_v49 = vadd.f32 %v1525_v44, %v1357_v43  ;;  %v1191_v50 = vadd.f32 %v1190_v48, %v1022_v47  ;;  %1060 = vmatmul.bf16.gmra.mxu0 %v3511_v40  ;;  %v3429_v43 = vld [vmem:[#allocation8 + $0x168] sm:$0xf]  ;;  %v3610_v44 = vld [vmem:[#allocation8 + $0x174] sm:$0xf0]  ;;  %2177 = vmatpush.bf16.msrb.mxu3 %v3466_v31 }
  0xf8   :  { %1229 = vmatmul.bf16.gmra.mxu1 %v3543_v46  ;;  %v3430_v45 = vor.u32 %v3610_v44, %v3429_v43  ;;  %1673 = vmatpush.bf16.msrb.mxu0 %v3286_v39  ;;  %v3570_v47 = vld [vmem:[#allocation8 + $0x34] sm:$0xf0] }
  0xf9   :  { %v2373_v53 = vmax.f32 %v1526_v49, 0.0  ;;  %1398 = vmatmul.bf16.gmra.mxu2 %v3511_v40  ;;  %v2376_v5 = vmax.f32 %v1191_v50, 0.0  ;;  %v3413_v49 = vld [vmem:[#allocation8 + $0x148] sm:$0xf]  ;;  %v3606_v50 = vld [vmem:[#allocation8 + $0x154] sm:$0xf0] }
  0xfa   :  { %1567 = vmatmul.bf16.gmra.mxu3 %v3543_v46  ;;  %v3269_v46 = vld [vmem:[#allocation8 + $0x28] sm:$0xf]  ;;  %1841 = vmatpush.bf16.msrb.mxu1 %v3430_v45 }
  0xfb   :  { %v3923_v54 = vpack.c.bf16 %v2373_v53, %v2369_v51  ;;  %v3270_v48 = vor.u32 %v3570_v47, %v3269_v46  ;;  %v3414_v51 = vor.u32 %v3606_v50, %v3413_v49 }
  0xfc   :  { %v1359_v55 = vpop.f32.mrf.mxu2  ;;  %v1023_v59 = vpop.f32.mrf.mxu0 }
  0xfd   :  { %v1360_v56 = vadd.f32 %v1359_v55, %v3891_v4  ;;  %v1528_v58 = vpop.f32.mrf.mxu3  ;;  %v1024_v60 = vadd.f32 %v1023_v59, %v3888_v57  ;;  %v1192_v61 = vpop.f32.mrf.mxu1  ;;  %v3513_v55 = vld [vmem:[#allocation3 + $0x70] sm:$0xff]  ;;  %1674 = vmatpush.bf16.msrb.mxu0 %v3270_v48 }
  0xfe   :  { %1842 = vmatpush.bf16.msrb.mxu1 %v3414_v51 }
  0xff   :  { %v1529_v62 = vadd.f32 %v1528_v58, %v1360_v56  ;;  %v1193_v63 = vadd.f32 %v1192_v61, %v1024_v60  ;;  %v3253_v56 = vld [vmem:[#allocation8 + $0x8] sm:$0xf]  ;;  %v3566_v58 = vld [vmem:[#allocation8 + $0x14] sm:$0xf0]  ;;  %v3545_v61 = vld [vmem:[#allocation6 + $0x70] sm:$0xff] }
 0x101   :  { %v2380_v6 = vmax.f32 %v1193_v63, 0.0  ;;  %v2377_v25 = vmax.f32 %v1529_v62, 0.0  ;;  %v3254_v63 = vor.u32 %v3566_v58, %v3253_v56  ;;  %v3515_v56 = vld [vmem:[#allocation3 + $0x80] sm:$0xff] }
 0x102   :  { %1843 = vmatpush.bf16.msrb.mxu1 %v3398_v3 }
 0x103   :  { %v3927_v11 = vpack.c.bf16 %v2380_v6, %v2376_v5  ;;  %1675 = vmatpush.bf16.msrb.mxu0 %v3254_v63  ;;  %v3381_v5 = vld [vmem:[#allocation8 + $0x108] sm:$0xf]  ;;  %v3598_v6 = vld [vmem:[#allocation8 + $0x114] sm:$0xf0] }
 0x104   :  { %v1361_v7 = vpop.f32.mrf.mxu2  ;;  %v3930_v14 = vpop.f32.mrf.mxu0 }
 0x105   :  { %v1362_v12 = vadd.f32 %v1361_v7, %v3891_v4  ;;  %v1530_v13 = vpop.f32.mrf.mxu3  ;;  %v3932_v18 = vpop.f32.mrf.mxu1  ;;  %v3382_v7 = vor.u32 %v3598_v6, %v3381_v5 }
 0x107   :  { %v1531_v22 = vadd.f32 %v1530_v13, %v1362_v12  ;;  %1065 = vmatmul.bf16.gmra.mxu0 %v3512_v8  ;;  %1844 = vmatpush.bf16.msrb.mxu1 %v3382_v7 }
 0x108   :  { %1234 = vmatmul.bf16.gmra.mxu1 %v3544_v15 }
 0x109   :  { %v2381_v26 = vmax.f32 %v1531_v22, 0.0  ;;  %1403 = vmatmul.bf16.gmra.mxu2 %v3512_v8 }
 0x10a   :  { %1572 = vmatmul.bf16.gmra.mxu3 %v3544_v15  ;;  %v3514_v15 = vld [vmem:[#allocation3 + $0x78] sm:$0xff] }
 0x10b   :  { %v3934_v33 = vpack.c.bf16 %v2381_v26, %v2377_v25  ;;  %v3335_v25 = vld [vmem:[#allocation8 + $0xb8] sm:$0xf0] }
 0x10c   :  { %v3936_v34 = vpop.f32.mrf.mxu2  ;;  %v3940_v38 = vpop.f32.mrf.mxu0  ;;  %v3338_v26 = vor.u32 %v3584_v24, %v3335_v25 }
 0x10d   :  { %v3938_v37 = vpop.f32.mrf.mxu3  ;;  %v3942_v40 = vpop.f32.mrf.mxu1 }
 0x10e   :  { %2008 = vmatpush.bf16.msrb.mxu2 %v3338_v26 }
 0x114   :  { %v3944_v53 = vpop.f32.mrf.mxu2  ;;  %v1031_v60 = vpop.f32.mrf.mxu0 }
 0x115   :  { %v3946_v59 = vpop.f32.mrf.mxu3  ;;  %v1200_v62 = vpop.f32.mrf.mxu1  ;;  %v1032_v47 = vadd.f32 %v1031_v60, %v3888_v57 }
 0x117   :  { %1070 = vmatmul.bf16.gmra.mxu0 %v3513_v55  ;;  %v1201_v3 = vadd.f32 %v1200_v62, %v1032_v47  ;;  %v1027_v62 = vadd.f32 %v3930_v14, %v3888_v57 }
 0x118   :  { %1239 = vmatmul.bf16.gmra.mxu1 %v3545_v61 }
 0x119   :  { %1408 = vmatmul.bf16.gmra.mxu2 %v3513_v55  ;;  %v1196_v31 = vadd.f32 %v3932_v18, %v1027_v62 }
 0x11a   :  { %1577 = vmatmul.bf16.gmra.mxu3 %v3545_v61 }
 0x11c   :  { %v1369_v8 = vpop.f32.mrf.mxu2  ;;  %v1033_v10 = vpop.f32.mrf.mxu0 }
 0x11d   :  { %v3948_v9 = vpop.f32.mrf.mxu3  ;;  %v1202_v12 = vpop.f32.mrf.mxu1  ;;  %v1034_v44 = vadd.f32 %v1033_v10, %v3888_v57  ;;  %v1029_v10 = vadd.f32 %v3940_v38, %v3888_v57 }
 0x11f   :  { %v1203_v50 = vadd.f32 %v1202_v12, %v1034_v44  ;;  %v1198_v25 = vadd.f32 %v3942_v40, %v1029_v10  ;;  %v2384_v44 = vmax.f32 %v1196_v31, 0.0 }
 0x121   :  { %v2396_v12 = vmax.f32 %v1203_v50, 0.0  ;;  %v3516_v50 = vld [vmem:[#allocation3 + $0x88] sm:$0xff] }
 0x124   :  { %v1371_v13 = vpop.f32.mrf.mxu2  ;;  %v1036_v19 = vpop.f32.mrf.mxu0 }
 0x125   :  { %v1540_v16 = vpop.f32.mrf.mxu3  ;;  %v1205_v22 = vpop.f32.mrf.mxu1  ;;  %v1037_v23 = vadd.f32 %v1036_v19, %v3888_v57  ;;  %v1372_v7 = vadd.f32 %v1371_v13, %v3891_v4  ;;  %v1370_v19 = vadd.f32 %v1369_v8, %v3891_v4 }
 0x127   :  { %1075 = vmatmul.bf16.gmra.mxu0 %v3514_v15  ;;  %v1206_v36 = vadd.f32 %v1205_v22, %v1037_v23  ;;  %v2392_v23 = vmax.f32 %v1201_v3, 0.0  ;;  %v1541_v24 = vadd.f32 %v1540_v16, %v1372_v7  ;;  %v1539_v27 = vadd.f32 %v3948_v9, %v1370_v19 }
 0x128   :  { %1244 = vmatmul.bf16.gmra.mxu1 %v3546_v21  ;;  %v1367_v16 = vadd.f32 %v3944_v53, %v3891_v4  ;;  %v1365_v9 = vadd.f32 %v3936_v34, %v3891_v4  ;;  %v3548_v34 = vld [vmem:[#allocation6 + $0x88] sm:$0xff] }
 0x129   :  { %1413 = vmatmul.bf16.gmra.mxu2 %v3514_v15  ;;  %v2400_v48 = vmax.f32 %v1206_v36, 0.0  ;;  %v2625_v38 = vpack.c.bf16 %v2396_v12, %v2392_v23  ;;  %v2388_v36 = vmax.f32 %v1198_v25, 0.0  ;;  %v3517_v25 = vld [vmem:[#allocation3 + $0x90] sm:$0xff] }
 0x12a   :  { %1582 = vmatmul.bf16.gmra.mxu3 %v3546_v21  ;;  %v1536_v18 = vadd.f32 %v3946_v59, %v1367_v16  ;;  %v1534_v53 = vadd.f32 %v3938_v37, %v1365_v9 }
 0x12c   :  { %v1374_v30 = vpop.f32.mrf.mxu2  ;;  %v1038_v35 = vpop.f32.mrf.mxu0  ;;  %v2385_v3 = vmax.f32 %v1534_v53, 0.0  ;;  %v3550_v53 = vld [vmem:[#allocation6 + $0x98] sm:$0xff] }
 0x12d   :  { %v1543_v32 = vpop.f32.mrf.mxu3  ;;  %v1039_v39 = vadd.f32 %v1038_v35, %v3888_v57  ;;  %v1207_v43 = vpop.f32.mrf.mxu1  ;;  %v1375_v46 = vadd.f32 %v1374_v30, %v3891_v4  ;;  %v2397_v35 = vmax.f32 %v1541_v24, 0.0 }
 0x12f   :  { %v1208_v45 = vadd.f32 %v1207_v43, %v1039_v39  ;;  %v1544_v58 = vadd.f32 %v1543_v32, %v1375_v46  ;;  %v2393_v43 = vmax.f32 %v1539_v27, 0.0 }
 0x131   :  { %v2404_v49 = vmax.f32 %v1208_v45, 0.0  ;;  %v2401_v21 = vmax.f32 %v1544_v58, 0.0  ;;  %v2626_v47 = vpack.c.bf16 %v2397_v35, %v2393_v43 }
 0x133   :  { %v2629_v51 = vpack.c.bf16 %v2404_v49, %v2400_v48  ;;  %v2621_v49 = vpack.c.bf16 %v2388_v36, %v2384_v44 }
 0x134   :  { %v1376_v55 = vpop.f32.mrf.mxu2  ;;  %v1041_v0 = vpop.f32.mrf.mxu0 }
 0x135   :  { %v1377_v61 = vadd.f32 %v1376_v55, %v3891_v4  ;;  %v1545_v63 = vpop.f32.mrf.mxu3  ;;  %v1042_v5 = vadd.f32 %v1041_v0, %v3888_v57  ;;  %v1210_v6 = vpop.f32.mrf.mxu1  ;;  %2741 = vmatpush.bf16.xpose.msra.mxu0 %v2629_v51  ;;  %v2389_v0 = vmax.f32 %v1536_v18, 0.0 }
 0x137   :  { %v1546_v60 = vadd.f32 %v1545_v63, %v1377_v61  ;;  %v1211_v15 = vadd.f32 %v1210_v6, %v1042_v5  ;;  %1080 = vmatmul.bf16.gmra.mxu0 %v3515_v56  ;;  %v2622_v37 = vpack.c.bf16 %v2389_v0, %v2385_v3  ;;  %v3319_v0 = vld [vmem:[#allocation8 + $0x98] sm:$0xf0] }
 0x138   :  { %1249 = vmatmul.bf16.gmra.mxu1 %v3547_v1 }
 0x139   :  { %v2405_v22 = vmax.f32 %v1546_v60, 0.0  ;;  %1418 = vmatmul.bf16.gmra.mxu2 %v3515_v56  ;;  %v2408_v45 = vmax.f32 %v1211_v15, 0.0 }
 0x13a   :  { %1587 = vmatmul.bf16.gmra.mxu3 %v3547_v1 }
 0x13b   :  { %v2630_v13 = vpack.c.bf16 %v2405_v22, %v2401_v21 }
 0x13c   :  { %v1379_v26 = vpop.f32.mrf.mxu2  ;;  %v1043_v30 = vpop.f32.mrf.mxu0 }
 0x13d   :  { %v1380_v29 = vadd.f32 %v1379_v26, %v3891_v4  ;;  %v1548_v8 = vpop.f32.mrf.mxu3  ;;  %2754 = vmatpush.bf16.xpose.msra.mxu1 %v2630_v13  ;;  %v1044_v32 = vadd.f32 %v1043_v30, %v3888_v57  ;;  %v1212_v14 = vpop.f32.mrf.mxu1  ;;  %2742 = vmatpush.bf16.xpose.msra.mxu0 %v2625_v38 }
 0x13f   :  { %v1549_v40 = vadd.f32 %v1548_v8, %v1380_v29  ;;  %v1213_v39 = vadd.f32 %v1212_v14, %v1044_v32  ;;  %v3549_v8 = vld [vmem:[#allocation6 + $0x90] sm:$0xff] }
 0x141   :  { %v2412_v46 = vmax.f32 %v1213_v39, 0.0  ;;  %v2409_v5 = vmax.f32 %v1549_v40, 0.0 }
 0x143   :  { %v3973_v51 = vpack.c.bf16 %v2412_v46, %v2408_v45 }
 0x144   :  { %v1381_v48 = vpop.f32.mrf.mxu2  ;;  %v1046_v58 = vpop.f32.mrf.mxu0 }
 0x145   :  { %v1382_v55 = vadd.f32 %v1381_v48, %v3891_v4  ;;  %v1550_v56 = vpop.f32.mrf.mxu3  ;;  %2755 = vmatpush.bf16.xpose.msra.mxu1 %v2626_v47  ;;  %v1047_v61 = vadd.f32 %v1046_v58, %v3888_v57  ;;  %v1215_v63 = vpop.f32.mrf.mxu1  ;;  %2743 = vmatpush.bf16.xpose.msra.mxu0 %v2621_v49  ;;  %v3518_v47 = vld [vmem:[#allocation3 + $0x98] sm:$0xff] }
 0x147   :  { %v1551_v59 = vadd.f32 %v1550_v56, %v1382_v55  ;;  %v1216_v1 = vadd.f32 %v1215_v63, %v1047_v61  ;;  %1085 = vmatmul.bf16.gmra.mxu0 %v3516_v50  ;;  %v3580_v63 = vld [vmem:[#allocation8 + $0x8c] sm:$0xf] }
 0x148   :  { %1254 = vmatmul.bf16.gmra.mxu1 %v3548_v34 }
 0x149   :  { %v2413_v6 = vmax.f32 %v1551_v59, 0.0  ;;  %1423 = vmatmul.bf16.gmra.mxu2 %v3516_v50  ;;  %v2416_v23 = vmax.f32 %v1216_v1, 0.0  ;;  %v3322_v59 = vor.u32 %v3580_v63, %v3319_v0  ;;  %v3612_v1 = vld [vmem:[#allocation8 + $0x18c] sm:$0xf] }
 0x14a   :  { %1592 = vmatmul.bf16.gmra.mxu3 %v3548_v34 }
 0x14b   :  { %v3978_v7 = vpack.c.bf16 %v2413_v6, %v2409_v5  ;;  %2009 = vmatpush.bf16.msrb.mxu2 %v3322_v59 }
 0x14c   :  { %v1384_v60 = vpop.f32.mrf.mxu2  ;;  %v1048_v15 = vpop.f32.mrf.mxu0 }
 0x14d   :  { %v1385_v10 = vadd.f32 %v1384_v60, %v3891_v4  ;;  %v1553_v12 = vpop.f32.mrf.mxu3  ;;  %2756 = vmatpush.bf16.xpose.msra.mxu1 %v2622_v37  ;;  %v1049_v19 = vadd.f32 %v1048_v15, %v3888_v57  ;;  %v1217_v21 = vpop.f32.mrf.mxu1  ;;  %2744 = vmatpush.bf16.xpose.msra.mxu0 %v3927_v11 }
 0x14f   :  { %v1554_v22 = vadd.f32 %v1553_v12, %v1385_v10  ;;  %v1218_v62 = vadd.f32 %v1217_v21, %v1049_v19 }
 0x151   :  { %v2420_v24 = vmax.f32 %v1218_v62, 0.0  ;;  %v2417_v14 = vmax.f32 %v1554_v22, 0.0 }
 0x153   :  { %v3983_v26 = vpack.c.bf16 %v2420_v24, %v2416_v23  ;;  %v3519_v23 = vld [vmem:[#allocation3 + $0xa0] sm:$0xff] }
 0x154   :  { %v1386_v13 = vpop.f32.mrf.mxu2  ;;  %v1051_v29 = vpop.f32.mrf.mxu0 }
 0x155   :  { %v1387_v38 = vadd.f32 %v1386_v13, %v3891_v4  ;;  %v1555_v27 = vpop.f32.mrf.mxu3  ;;  %2757 = vmatpush.bf16.xpose.msra.mxu1 %v3934_v33  ;;  %v1052_v30 = vadd.f32 %v1051_v29, %v3888_v57  ;;  %v1220_v31 = vpop.f32.mrf.mxu1  ;;  %2745 = vmatpush.bf16.xpose.msra.mxu0 %v3919_v42 }
 0x157   :  { %v1556_v11 = vadd.f32 %v1555_v27, %v1387_v38  ;;  %v1221_v32 = vadd.f32 %v1220_v31, %v1052_v30  ;;  %1090 = vmatmul.bf16.gmra.mxu0 %v3517_v25  ;;  %v3551_v38 = vld [vmem:[#allocation6 + $0xa0] sm:$0xff] }
 0x158   :  { %1259 = vmatmul.bf16.gmra.mxu1 %v3549_v8 }
 0x159   :  { %v2421_v16 = vmax.f32 %v1556_v11, 0.0  ;;  %1428 = vmatmul.bf16.gmra.mxu2 %v3517_v25  ;;  %v2424_v45 = vmax.f32 %v1221_v32, 0.0 }
 0x15a   :  { %1597 = vmatmul.bf16.gmra.mxu3 %v3549_v8 }
 0x15b   :  { %v3989_v35 = vpack.c.bf16 %v2421_v16, %v2417_v14 }
 0x15c   :  { %v1389_v40 = vpop.f32.mrf.mxu2  ;;  %v1053_v39 = vpop.f32.mrf.mxu0 }
 0x15d   :  { %v1390_v33 = vadd.f32 %v1389_v40, %v3891_v4  ;;  %v1558_v36 = vpop.f32.mrf.mxu3  ;;  %2758 = vmatpush.bf16.xpose.msra.mxu1 %v3923_v54  ;;  %v1054_v9 = vadd.f32 %v1053_v39, %v3888_v57  ;;  %v1222_v42 = vpop.f32.mrf.mxu1  ;;  %2746 = vmatpush.bf16.xpose.msra.mxu0 %v3911_v2 }
 0x15f   :  { %v1559_v43 = vadd.f32 %v1558_v36, %v1390_v33  ;;  %v1223_v44 = vadd.f32 %v1222_v42, %v1054_v9 }
 0x161   :  { %v2428_v46 = vmax.f32 %v1223_v44, 0.0  ;;  %v2425_v34 = vmax.f32 %v1559_v43, 0.0  ;;  %v3520_v44 = vld [vmem:[#allocation3 + $0xa8] sm:$0xff] }
 0x163   :  { %v3995_v48 = vpack.c.bf16 %v2428_v46, %v2424_v45 }
 0x164   :  { %v1391_v18 = vpop.f32.mrf.mxu2  ;;  %v1056_v54 = vpop.f32.mrf.mxu0 }
 0x165   :  { %v1392_v49 = vadd.f32 %v1391_v18, %v3891_v4  ;;  %v1560_v50 = vpop.f32.mrf.mxu3  ;;  %2759 = vmatpush.bf16.xpose.msra.mxu1 %v3915_v20  ;;  %v1057_v55 = vadd.f32 %v1056_v54, %v3888_v57  ;;  %v1225_v56 = vpop.f32.mrf.mxu1  ;;  %2747 = vmatpush.bf16.xpose.msra.mxu0 %v3903_v41  ;;  %v3447_v20 = vld [vmem:[#allocation8 + $0x198] sm:$0xf0] }
 0x166   :  { %v3450_v6 = vor.u32 %v3612_v1, %v3447_v20 }
 0x167   :  { %v1561_v2 = vadd.f32 %v1560_v50, %v1392_v49  ;;  %v1226_v58 = vadd.f32 %v1225_v56, %v1057_v55  ;;  %1095 = vmatmul.bf16.gmra.mxu0 %v3518_v47  ;;  %v3552_v49 = vld [vmem:[#allocation6 + $0xa8] sm:$0xff] }
 0x168   :  { %1264 = vmatmul.bf16.gmra.mxu1 %v3550_v53  ;;  %2178 = vmatpush.bf16.msrb.mxu3 %v3450_v6 }
 0x169   :  { %v2429_v61 = vmax.f32 %v1561_v2, 0.0  ;;  %1433 = vmatmul.bf16.gmra.mxu2 %v3518_v47  ;;  %v2432_v21 = vmax.f32 %v1226_v58, 0.0 }
 0x16a   :  { %1602 = vmatmul.bf16.gmra.mxu3 %v3550_v53 }
 0x16b   :  { %v4001_v3 = vpack.c.bf16 %v2429_v61, %v2425_v34 }
 0x16c   :  { %v1394_v5 = vpop.f32.mrf.mxu2  ;;  %v1058_v60 = vpop.f32.mrf.mxu0 }
 0x16d   :  { %v1395_v37 = vadd.f32 %v1394_v5, %v3891_v4  ;;  %v1563_v41 = vpop.f32.mrf.mxu3  ;;  %2760 = vmatpush.bf16.xpose.msra.mxu1 %v3907_v52  ;;  %v1059_v10 = vadd.f32 %v1058_v60, %v3888_v57  ;;  %v1227_v12 = vpop.f32.mrf.mxu1  ;;  %2748 = vmatpush.bf16.xpose.msra.mxu0 %v3895_v17  ;;  %v3521_v60 = vld [vmem:[#allocation3 + $0xb0] sm:$0xff] }
 0x16f   :  { %v1564_v15 = vadd.f32 %v1563_v41, %v1395_v37  ;;  %v1228_v19 = vadd.f32 %v1227_v12, %v1059_v10 }
 0x171   :  { %v2436_v22 = vmax.f32 %v1228_v19, 0.0  ;;  %v2433_v30 = vmax.f32 %v1564_v15, 0.0 }
 0x173   :  { %v4007_v24 = vpack.c.bf16 %v2436_v22, %v2432_v21  ;;  %v3553_v21 = vld [vmem:[#allocation6 + $0xb0] sm:$0xff] }
 0x174   :  { %v1396_v62 = vpop.f32.mrf.mxu2  ;;  %v1061_v52 = vpop.f32.mrf.mxu0 }
 0x175   :  { %v1397_v13 = vadd.f32 %v1396_v62, %v3891_v4  ;;  %v1565_v25 = vpop.f32.mrf.mxu3  ;;  %2761 = vmatpush.bf16.xpose.msra.mxu1 %v3899_v28  ;;  %v1062_v27 = vadd.f32 %v1061_v52, %v3888_v57  ;;  %v1230_v29 = vpop.f32.mrf.mxu1 }
 0x177   :  { %v1566_v17 = vadd.f32 %v1565_v25, %v1397_v13  ;;  %v1231_v8 = vadd.f32 %v1230_v29, %v1062_v27  ;;  %1100 = vmatmul.bf16.gmra.mxu0 %v3519_v23 }
 0x178   :  { %1269 = vmatmul.bf16.gmra.mxu1 %v3551_v38 }
 0x179   :  { %v2437_v31 = vmax.f32 %v1566_v17, 0.0  ;;  %1438 = vmatmul.bf16.gmra.mxu2 %v3519_v23  ;;  %v2440_v9 = vmax.f32 %v1231_v8, 0.0 }
 0x17a   :  { %1607 = vmatmul.bf16.gmra.mxu3 %v3551_v38 }
 0x17b   :  { %v4012_v11 = vpack.c.bf16 %v2437_v31, %v2433_v30 }
 0x17c   :  { %v1399_v32 = vpop.f32.mrf.mxu2  ;;  %v1063_v28 = vpop.f32.mrf.mxu0 }
 0x17d   :  { %v1400_v14 = vadd.f32 %v1399_v32, %v3891_v4  ;;  %v1568_v16 = vpop.f32.mrf.mxu3  ;;  %v1064_v40 = vadd.f32 %v1063_v28, %v3888_v57  ;;  %v1232_v33 = vpop.f32.mrf.mxu1 }
 0x17f   :  { %v1569_v36 = vadd.f32 %v1568_v16, %v1400_v14  ;;  %v1233_v39 = vadd.f32 %v1232_v33, %v1064_v40  ;;  %v3522_v33 = vld [vmem:[#allocation3 + $0xb8] sm:$0xff] }
 0x181   :  { %v2444_v42 = vmax.f32 %v1233_v39, 0.0  ;;  %v2441_v56 = vmax.f32 %v1569_v36, 0.0 }
 0x183   :  { %v4016_v45 = vpack.c.bf16 %v2444_v42, %v2440_v9 }
 0x184   :  { %v1401_v43 = vpop.f32.mrf.mxu2  ;;  %v1066_v47 = vpop.f32.mrf.mxu0 }
 0x185   :  { %v1402_v46 = vadd.f32 %v1401_v43, %v3891_v4  ;;  %v1570_v18 = vpop.f32.mrf.mxu3  ;;  %v1067_v50 = vadd.f32 %v1066_v47, %v3888_v57  ;;  %v1235_v54 = vpop.f32.mrf.mxu1  ;;  %v3554_v43 = vld [vmem:[#allocation6 + $0xb8] sm:$0xff] }
 0x187   :  { %v1571_v53 = vadd.f32 %v1570_v18, %v1402_v46  ;;  %v1236_v55 = vadd.f32 %v1235_v54, %v1067_v50  ;;  %1105 = vmatmul.bf16.gmra.mxu0 %v3520_v44  ;;  %v3576_v54 = vld [vmem:[#allocation8 + $0x6c] sm:$0xf] }
 0x188   :  { %1274 = vmatmul.bf16.gmra.mxu1 %v3552_v49 }
 0x189   :  { %v2445_v2 = vmax.f32 %v1571_v53, 0.0  ;;  %1443 = vmatmul.bf16.gmra.mxu2 %v3520_v44  ;;  %v2448_v6 = vmax.f32 %v1236_v55, 0.0  ;;  %v3303_v53 = vld [vmem:[#allocation8 + $0x78] sm:$0xf0] }
 0x18a   :  { %1612 = vmatmul.bf16.gmra.mxu3 %v3552_v49  ;;  %v3306_v55 = vor.u32 %v3576_v54, %v3303_v53 }
 0x18b   :  { %v4020_v58 = vpack.c.bf16 %v2445_v2, %v2441_v56  ;;  %v3608_v56 = vld [vmem:[#allocation8 + $0x16c] sm:$0xf]  ;;  %v3431_v2 = vld [vmem:[#allocation8 + $0x178] sm:$0xf0] }
 0x18c   :  { %v1404_v34 = vpop.f32.mrf.mxu2  ;;  %v1068_v0 = vpop.f32.mrf.mxu0  ;;  %2010 = vmatpush.bf16.msrb.mxu2 %v3306_v55 }
 0x18d   :  { %v1405_v61 = vadd.f32 %v1404_v34, %v3891_v4  ;;  %v1573_v63 = vpop.f32.mrf.mxu3  ;;  %v1069_v59 = vadd.f32 %v1068_v0, %v3888_v57  ;;  %v1237_v1 = vpop.f32.mrf.mxu1 }
 0x18f   :  { %v1574_v20 = vadd.f32 %v1573_v63, %v1405_v61  ;;  %v1238_v5 = vadd.f32 %v1237_v1, %v1069_v59  ;;  %v3434_v63 = vor.u32 %v3608_v56, %v3431_v2 }
 0x191   :  { %v2452_v37 = vmax.f32 %v1238_v5, 0.0  ;;  %v2449_v25 = vmax.f32 %v1574_v20, 0.0  ;;  %2179 = vmatpush.bf16.msrb.mxu3 %v3434_v63 }
 0x193   :  { %v4024_v10 = vpack.c.bf16 %v2452_v37, %v2448_v6 }
 0x194   :  { %v1406_v41 = vpop.f32.mrf.mxu2  ;;  %v1071_v19 = vpop.f32.mrf.mxu0 }
 0x195   :  { %v1407_v12 = vadd.f32 %v1406_v41, %v3891_v4  ;;  %v1575_v15 = vpop.f32.mrf.mxu3  ;;  %v1072_v22 = vadd.f32 %v1071_v19, %v3888_v57  ;;  %v1240_v62 = vpop.f32.mrf.mxu1  ;;  %v3523_v19 = vld [vmem:[#allocation3 + $0xc0] sm:$0xff] }
 0x197   :  { %v1576_v23 = vadd.f32 %v1575_v15, %v1407_v12  ;;  %v1241_v13 = vadd.f32 %v1240_v62, %v1072_v22  ;;  %1110 = vmatmul.bf16.gmra.mxu0 %v3521_v60 }
 0x198   :  { %1279 = vmatmul.bf16.gmra.mxu1 %v3553_v21 }
 0x199   :  { %v2453_v52 = vmax.f32 %v1576_v23, 0.0  ;;  %1448 = vmatmul.bf16.gmra.mxu2 %v3521_v60  ;;  %v2456_v16 = vmax.f32 %v1241_v13, 0.0  ;;  %v3555_v23 = vld [vmem:[#allocation6 + $0xc0] sm:$0xff] }
 0x19a   :  { %1617 = vmatmul.bf16.gmra.mxu3 %v3553_v21 }
 0x19b   :  { %v4028_v38 = vpack.c.bf16 %v2453_v52, %v2449_v25 }
 0x19c   :  { %v1409_v27 = vpop.f32.mrf.mxu2  ;;  %v1073_v8 = vpop.f32.mrf.mxu0 }
 0x19d   :  { %v1410_v29 = vadd.f32 %v1409_v27, %v3891_v4  ;;  %v1578_v17 = vpop.f32.mrf.mxu3  ;;  %v1074_v30 = vadd.f32 %v1073_v8, %v3888_v57  ;;  %v1242_v31 = vpop.f32.mrf.mxu1 }
 0x19f   :  { %v1579_v32 = vadd.f32 %v1578_v17, %v1410_v29  ;;  %v1243_v14 = vadd.f32 %v1242_v31, %v1074_v30 }
 0x1a1   :  { %v2460_v28 = vmax.f32 %v1243_v14, 0.0  ;;  %v2457_v49 = vmax.f32 %v1579_v32, 0.0 }
 0x1a3   :  { %v4032_v36 = vpack.c.bf16 %v2460_v28, %v2456_v16 }
 0x1a4   :  { %v1411_v40 = vpop.f32.mrf.mxu2  ;;  %v1076_v42 = vpop.f32.mrf.mxu0 }
 0x1a5   :  { %v1412_v39 = vadd.f32 %v1411_v40, %v3891_v4  ;;  %v1580_v9 = vpop.f32.mrf.mxu3  ;;  %v1077_v44 = vadd.f32 %v1076_v42, %v3888_v57  ;;  %v1245_v46 = vpop.f32.mrf.mxu1 }
 0x1a7   :  { %v1581_v18 = vadd.f32 %v1580_v9, %v1412_v39  ;;  %v1246_v47 = vadd.f32 %v1245_v46, %v1077_v44  ;;  %1115 = vmatmul.bf16.gmra.mxu0 %v3522_v33 }
 0x1a8   :  { %1284 = vmatmul.bf16.gmra.mxu1 %v3554_v43 }
 0x1a9   :  { %v2461_v50 = vmax.f32 %v1581_v18, 0.0  ;;  %1453 = vmatmul.bf16.gmra.mxu2 %v3522_v33  ;;  %v2464_v41 = vmax.f32 %v1246_v47, 0.0 }
 0x1aa   :  { %1622 = vmatmul.bf16.gmra.mxu3 %v3554_v43  ;;  %v3524_v43 = vld [vmem:[#allocation3 + $0xc8] sm:$0xff] }
 0x1ab   :  { %v4036_v34 = vpack.c.bf16 %v2461_v50, %v2457_v49  ;;  %v3556_v49 = vld [vmem:[#allocation6 + $0xc8] sm:$0xff] }
 0x1ac   :  { %v1414_v61 = vpop.f32.mrf.mxu2  ;;  %v1078_v1 = vpop.f32.mrf.mxu0 }
 0x1ad   :  { %v1415_v0 = vadd.f32 %v1414_v61, %v3891_v4  ;;  %v1583_v59 = vpop.f32.mrf.mxu3  ;;  %v1079_v20 = vadd.f32 %v1078_v1, %v3888_v57  ;;  %v1247_v5 = vpop.f32.mrf.mxu1 }
 0x1af   :  { %v1584_v6 = vadd.f32 %v1583_v59, %v1415_v0  ;;  %v1248_v37 = vadd.f32 %v1247_v5, %v1079_v20 }
 0x1b1   :  { %v2468_v60 = vmax.f32 %v1248_v37, 0.0  ;;  %v2465_v29 = vmax.f32 %v1584_v6, 0.0 }
 0x1b3   :  { %v4040_v12 = vpack.c.bf16 %v2468_v60, %v2464_v41 }
 0x1b4   :  { %v1416_v15 = vpop.f32.mrf.mxu2  ;;  %v1081_v62 = vpop.f32.mrf.mxu0 }
 0x1b5   :  { %v1417_v21 = vadd.f32 %v1416_v15, %v3891_v4  ;;  %v1585_v22 = vpop.f32.mrf.mxu3  ;;  %v1082_v13 = vadd.f32 %v1081_v62, %v3888_v57  ;;  %v1250_v25 = vpop.f32.mrf.mxu1 }
 0x1b7   :  { %v1586_v52 = vadd.f32 %v1585_v22, %v1417_v21  ;;  %v1251_v27 = vadd.f32 %v1250_v25, %v1082_v13  ;;  %1120 = vmatmul.bf16.gmra.mxu0 %v3523_v19  ;;  %v3557_v13 = vld [vmem:[#allocation6 + $0xd0] sm:$0xff] }
 0x1b8   :  { %1289 = vmatmul.bf16.gmra.mxu1 %v3555_v23 }
 0x1b9   :  { %v2469_v17 = vmax.f32 %v1586_v52, 0.0  ;;  %1458 = vmatmul.bf16.gmra.mxu2 %v3523_v19  ;;  %v2472_v39 = vmax.f32 %v1251_v27, 0.0  ;;  %v3525_v19 = vld [vmem:[#allocation3 + $0xd0] sm:$0xff] }
 0x1ba   :  { %1627 = vmatmul.bf16.gmra.mxu3 %v3555_v23 }
 0x1bb   :  { %v4044_v8 = vpack.c.bf16 %v2469_v17, %v2465_v29 }
 0x1bc   :  { %v1419_v30 = vpop.f32.mrf.mxu2  ;;  %v1083_v14 = vpop.f32.mrf.mxu0 }
 0x1bd   :  { %v1420_v31 = vadd.f32 %v1419_v30, %v3891_v4  ;;  %v1588_v32 = vpop.f32.mrf.mxu3  ;;  %v1084_v16 = vadd.f32 %v1083_v14, %v3888_v57  ;;  %v1252_v28 = vpop.f32.mrf.mxu1 }
 0x1bf   :  { %v1589_v40 = vadd.f32 %v1588_v32, %v1420_v31  ;;  %v1253_v33 = vadd.f32 %v1252_v28, %v1084_v16 }
 0x1c1   :  { %v2476_v9 = vmax.f32 %v1253_v33, 0.0  ;;  %v2473_v56 = vmax.f32 %v1589_v40, 0.0 }
 0x1c3   :  { %v4048_v44 = vpack.c.bf16 %v2476_v9, %v2472_v39 }
 0x1c4   :  { %v1421_v42 = vpop.f32.mrf.mxu2  ;;  %v1086_v47 = vpop.f32.mrf.mxu0 }
 0x1c5   :  { %v1422_v46 = vadd.f32 %v1421_v42, %v3891_v4  ;;  %v1590_v18 = vpop.f32.mrf.mxu3  ;;  %v1087_v50 = vadd.f32 %v1086_v47, %v3888_v57  ;;  %v1255_v54 = vpop.f32.mrf.mxu1 }
 0x1c7   :  { %v1591_v53 = vadd.f32 %v1590_v18, %v1422_v46  ;;  %v1256_v55 = vadd.f32 %v1255_v54, %v1087_v50  ;;  %1125 = vmatmul.bf16.gmra.mxu0 %v3524_v43  ;;  %v3526_v18 = vld [vmem:[#allocation3 + $0xd8] sm:$0xff] }
 0x1c8   :  { %1294 = vmatmul.bf16.gmra.mxu1 %v3556_v49 }
 0x1c9   :  { %v2477_v2 = vmax.f32 %v1591_v53, 0.0  ;;  %1463 = vmatmul.bf16.gmra.mxu2 %v3524_v43  ;;  %v2480_v41 = vmax.f32 %v1256_v55, 0.0  ;;  %v3558_v53 = vld [vmem:[#allocation6 + $0xd8] sm:$0xff] }
 0x1ca   :  { %1632 = vmatmul.bf16.gmra.mxu3 %v3556_v49 }
 0x1cb   :  { %v4052_v61 = vpack.c.bf16 %v2477_v2, %v2473_v56 }
 0x1cc   :  { %v1424_v63 = vpop.f32.mrf.mxu2  ;;  %v1088_v1 = vpop.f32.mrf.mxu0 }
 0x1cd   :  { %v1425_v0 = vadd.f32 %v1424_v63, %v3891_v4  ;;  %v1593_v59 = vpop.f32.mrf.mxu3  ;;  %v1089_v20 = vadd.f32 %v1088_v1, %v3888_v57  ;;  %v1257_v5 = vpop.f32.mrf.mxu1  ;;  %v3572_v1 = vld [vmem:[#allocation8 + $0x4c] sm:$0xf] }
 0x1cf   :  { %v1594_v6 = vadd.f32 %v1593_v59, %v1425_v0  ;;  %v1258_v37 = vadd.f32 %v1257_v5, %v1089_v20  ;;  %v3287_v20 = vld [vmem:[#allocation8 + $0x58] sm:$0xf0] }
 0x1d0   :  { %v3290_v5 = vor.u32 %v3572_v1, %v3287_v20  ;;  %v3528_v20 = vld [vmem:[#allocation3 + $0xe8] sm:$0xff] }
 0x1d1   :  { %v2484_v60 = vmax.f32 %v1258_v37, 0.0  ;;  %v2481_v17 = vmax.f32 %v1594_v6, 0.0  ;;  %v3604_v6 = vld [vmem:[#allocation8 + $0x14c] sm:$0xf]  ;;  %v3415_v37 = vld [vmem:[#allocation8 + $0x158] sm:$0xf0] }
 0x1d2   :  { %2011 = vmatpush.bf16.msrb.mxu2 %v3290_v5 }
 0x1d3   :  { %v4056_v21 = vpack.c.bf16 %v2484_v60, %v2480_v41 }
 0x1d4   :  { %v1426_v15 = vpop.f32.mrf.mxu2  ;;  %v1091_v23 = vpop.f32.mrf.mxu0 }
 0x1d5   :  { %v1427_v22 = vadd.f32 %v1426_v15, %v3891_v4  ;;  %v1595_v62 = vpop.f32.mrf.mxu3  ;;  %v1092_v25 = vadd.f32 %v1091_v23, %v3888_v57  ;;  %v1260_v52 = vpop.f32.mrf.mxu1  ;;  %v3418_v15 = vor.u32 %v3604_v6, %v3415_v37 }
 0x1d7   :  { %v1596_v27 = vadd.f32 %v1595_v62, %v1427_v22  ;;  %v1261_v29 = vadd.f32 %v1260_v52, %v1092_v25  ;;  %1130 = vmatmul.bf16.gmra.mxu0 %v3525_v19  ;;  %2180 = vmatpush.bf16.msrb.mxu3 %v3418_v15  ;;  %v3560_v15 = vld [vmem:[#allocation6 + $0xe8] sm:$0xff] }
 0x1d8   :  { %1299 = vmatmul.bf16.gmra.mxu1 %v3557_v13 }
 0x1d9   :  { %v2485_v30 = vmax.f32 %v1596_v27, 0.0  ;;  %1468 = vmatmul.bf16.gmra.mxu2 %v3525_v19  ;;  %v2488_v42 = vmax.f32 %v1261_v29, 0.0 }
 0x1da   :  { %1637 = vmatmul.bf16.gmra.mxu3 %v3557_v13 }
 0x1db   :  { %v4060_v31 = vpack.c.bf16 %v2485_v30, %v2481_v17  ;;  %v3527_v30 = vld [vmem:[#allocation3 + $0xe0] sm:$0xff] }
 0x1dc   :  { %v1429_v32 = vpop.f32.mrf.mxu2  ;;  %v1093_v28 = vpop.f32.mrf.mxu0 }
 0x1dd   :  { %v1430_v14 = vadd.f32 %v1429_v32, %v3891_v4  ;;  %v1598_v16 = vpop.f32.mrf.mxu3  ;;  %v1094_v40 = vadd.f32 %v1093_v28, %v3888_v57  ;;  %v1262_v33 = vpop.f32.mrf.mxu1 }
 0x1df   :  { %v1599_v39 = vadd.f32 %v1598_v16, %v1430_v14  ;;  %v1263_v9 = vadd.f32 %v1262_v33, %v1094_v40  ;;  %v3559_v40 = vld [vmem:[#allocation6 + $0xe0] sm:$0xff] }
 0x1e1   :  { %v2492_v43 = vmax.f32 %v1263_v9, 0.0  ;;  %v2489_v0 = vmax.f32 %v1599_v39, 0.0 }
 0x1e3   :  { %v4064_v47 = vpack.c.bf16 %v2492_v43, %v2488_v42 }
 0x1e4   :  { %v1431_v46 = vpop.f32.mrf.mxu2  ;;  %v1096_v54 = vpop.f32.mrf.mxu0 }
 0x1e5   :  { %v1432_v49 = vadd.f32 %v1431_v46, %v3891_v4  ;;  %v1600_v50 = vpop.f32.mrf.mxu3  ;;  %v1097_v55 = vadd.f32 %v1096_v54, %v3888_v57  ;;  %v1265_v56 = vpop.f32.mrf.mxu1 }
 0x1e7   :  { %v1601_v2 = vadd.f32 %v1600_v50, %v1432_v49  ;;  %v1266_v63 = vadd.f32 %v1265_v56, %v1097_v55  ;;  %1135 = vmatmul.bf16.gmra.mxu0 %v3526_v18 }
 0x1e8   :  { %1304 = vmatmul.bf16.gmra.mxu1 %v3558_v53 }
 0x1e9   :  { %v2493_v59 = vmax.f32 %v1601_v2, 0.0  ;;  %1473 = vmatmul.bf16.gmra.mxu2 %v3526_v18  ;;  %v2496_v27 = vmax.f32 %v1266_v63, 0.0 }
 0x1ea   :  { %1642 = vmatmul.bf16.gmra.mxu3 %v3558_v53 }
 0x1eb   :  { %v4068_v41 = vpack.c.bf16 %v2493_v59, %v2489_v0 }
 0x1ec   :  { %v1434_v60 = vpop.f32.mrf.mxu2  ;;  %v1098_v62 = vpop.f32.mrf.mxu0 }
 0x1ed   :  { %v1435_v19 = vadd.f32 %v1434_v60, %v3891_v4  ;;  %v1603_v22 = vpop.f32.mrf.mxu3  ;;  %v1099_v23 = vadd.f32 %v1098_v62, %v3888_v57  ;;  %v1267_v13 = vpop.f32.mrf.mxu1 }
 0x1ef   :  { %v1604_v25 = vadd.f32 %v1603_v22, %v1435_v19  ;;  %v1268_v52 = vadd.f32 %v1267_v13, %v1099_v23 }
 0x1f1   :  { %v2500_v29 = vmax.f32 %v1268_v52, 0.0  ;;  %v2497_v43 = vmax.f32 %v1604_v25, 0.0 }
 0x1f3   :  { %v4072_v32 = vpack.c.bf16 %v2500_v29, %v2496_v27 }
 0x1f4   :  { %v1436_v17 = vpop.f32.mrf.mxu2  ;;  %v1101_v28 = vpop.f32.mrf.mxu0 }
 0x1f5   :  { %v1437_v14 = vadd.f32 %v1436_v17, %v3891_v4  ;;  %v1605_v16 = vpop.f32.mrf.mxu3  ;;  %v1102_v33 = vadd.f32 %v1101_v28, %v3888_v57  ;;  %v1270_v39 = vpop.f32.mrf.mxu1 }
 0x1f7   :  { %v1606_v9 = vadd.f32 %v1605_v16, %v1437_v14  ;;  %v1271_v42 = vadd.f32 %v1270_v39, %v1102_v33  ;;  %1140 = vmatmul.bf16.gmra.mxu0 %v3527_v30  ;;  %v3568_v33 = vld [vmem:[#allocation8 + $0x2c] sm:$0xf]  ;;  %v3271_v39 = vld [vmem:[#allocation8 + $0x38] sm:$0xf0] }
 0x1f8   :  { %1309 = vmatmul.bf16.gmra.mxu1 %v3559_v40 }
 0x1f9   :  { %v2501_v46 = vmax.f32 %v1606_v9, 0.0  ;;  %1478 = vmatmul.bf16.gmra.mxu2 %v3527_v30  ;;  %v2504_v0 = vmax.f32 %v1271_v42, 0.0  ;;  %v3600_v9 = vld [vmem:[#allocation8 + $0x12c] sm:$0xf]  ;;  %v3274_v42 = vor.u32 %v3568_v33, %v3271_v39 }
 0x1fa   :  { %1647 = vmatmul.bf16.gmra.mxu3 %v3559_v40 }
 0x1fb   :  { %v4076_v18 = vpack.c.bf16 %v2501_v46, %v2497_v43  ;;  %v3399_v43 = vld [vmem:[#allocation8 + $0x138] sm:$0xf0]  ;;  %2012 = vmatpush.bf16.msrb.mxu2 %v3274_v42 }
 0x1fc   :  { %v1439_v49 = vpop.f32.mrf.mxu2  ;;  %v1103_v53 = vpop.f32.mrf.mxu0 }
 0x1fd   :  { %v1440_v50 = vadd.f32 %v1439_v49, %v3891_v4  ;;  %v1608_v54 = vpop.f32.mrf.mxu3  ;;  %v1104_v55 = vadd.f32 %v1103_v53, %v3888_v57  ;;  %v1272_v56 = vpop.f32.mrf.mxu1 }
 0x1ff   :  { %v1609_v2 = vadd.f32 %v1608_v54, %v1440_v50  ;;  %v1273_v63 = vadd.f32 %v1272_v56, %v1104_v55  ;;  %v3402_v50 = vor.u32 %v3600_v9, %v3399_v43  ;;  %v3529_v54 = vld [vmem:[#allocation3 + $0xf0] sm:$0xff]  ;;  %v3564_v55 = vld [vmem:[#allocation8 + $0xc] sm:$0xf]  ;;  %v3255_v56 = vld [vmem:[#allocation8 + $0x18] sm:$0xf0] }
 0x201   :  { %v2508_v59 = vmax.f32 %v1273_v63, 0.0  ;;  %v2505_v13 = vmax.f32 %v1609_v2, 0.0  ;;  %2181 = vmatpush.bf16.msrb.mxu3 %v3402_v50  ;;  %v3596_v2 = vld [vmem:[#allocation8 + $0x10c] sm:$0xf] }
 0x203   :  { %v4080_v5 = vpack.c.bf16 %v2508_v59, %v2504_v0 }
 0x204   :  { %v1441_v1 = vpop.f32.mrf.mxu2  ;;  %v1106_v60 = vpop.f32.mrf.mxu0 }
 0x205   :  { %v1442_v6 = vadd.f32 %v1441_v1, %v3891_v4  ;;  %v1610_v37 = vpop.f32.mrf.mxu3  ;;  %v1107_v19 = vadd.f32 %v1106_v60, %v3888_v57  ;;  %v1275_v22 = vpop.f32.mrf.mxu1 }
 0x207   :  { %v1611_v62 = vadd.f32 %v1610_v37, %v1442_v6  ;;  %v1276_v23 = vadd.f32 %v1275_v22, %v1107_v19  ;;  %1145 = vmatmul.bf16.gmra.mxu0 %v3528_v20  ;;  %v3258_v6 = vor.u32 %v3564_v55, %v3255_v56  ;;  %v3383_v37 = vld [vmem:[#allocation8 + $0x118] sm:$0xf0] }
 0x208   :  { %1314 = vmatmul.bf16.gmra.mxu1 %v3560_v15  ;;  %v3386_v19 = vor.u32 %v3596_v2, %v3383_v37 }
 0x209   :  { %v2509_v25 = vmax.f32 %v1611_v62, 0.0  ;;  %1483 = vmatmul.bf16.gmra.mxu2 %v3528_v20  ;;  %v2512_v46 = vmax.f32 %v1276_v23, 0.0  ;;  %v3561_v20 = vld [vmem:[#allocation6 + $0xf0] sm:$0xff] }
 0x20a   :  { %1652 = vmatmul.bf16.gmra.mxu3 %v3560_v15  ;;  %2013 = vmatpush.bf16.msrb.mxu2 %v3258_v6 }
 0x20b   :  { %v4084_v52 = vpack.c.bf16 %v2509_v25, %v2505_v13  ;;  %2182 = vmatpush.bf16.msrb.mxu3 %v3386_v19 }
 0x20c   :  { %v1444_v27 = vpop.f32.mrf.mxu2  ;;  %v1108_v30 = vpop.f32.mrf.mxu0 }
 0x20d   :  { %v1445_v29 = vadd.f32 %v1444_v27, %v3891_v4  ;;  %v1613_v17 = vpop.f32.mrf.mxu3  ;;  %v1109_v14 = vadd.f32 %v1108_v30, %v3888_v57  ;;  %v1277_v16 = vpop.f32.mrf.mxu1 }
 0x20f   :  { %v1614_v28 = vadd.f32 %v1613_v17, %v1445_v29  ;;  %v1278_v40 = vadd.f32 %v1277_v16, %v1109_v14 }
 0x211   :  { %v2516_v49 = vmax.f32 %v1278_v40, 0.0  ;;  %v2513_v23 = vmax.f32 %v1614_v28, 0.0  ;;  %v3530_v28 = vld [vmem:[#allocation3 + $0xf8] sm:$0xff] }
 0x213   :  { %v4088_v63 = vpack.c.bf16 %v2516_v49, %v2512_v46 }
 0x214   :  { %v1446_v53 = vpop.f32.mrf.mxu2  ;;  %v1111_v1 = vpop.f32.mrf.mxu0 }
 0x215   :  { %v1447_v0 = vadd.f32 %v1446_v53, %v3891_v4  ;;  %v1615_v59 = vpop.f32.mrf.mxu3  ;;  %v1112_v60 = vadd.f32 %v1111_v1, %v3888_v57  ;;  %v1280_v15 = vpop.f32.mrf.mxu1 }
 0x217   :  { %v1616_v22 = vadd.f32 %v1615_v59, %v1447_v0  ;;  %v1281_v62 = vadd.f32 %v1280_v15, %v1112_v60  ;;  %1150 = vmatmul.bf16.gmra.mxu0 %v3529_v54 }
 0x218   :  { %1319 = vmatmul.bf16.gmra.mxu1 %v3561_v20 }
 0x219   :  { %v2517_v13 = vmax.f32 %v1616_v22, 0.0  ;;  %1488 = vmatmul.bf16.gmra.mxu2 %v3529_v54  ;;  %v2520_v39 = vmax.f32 %v1281_v62, 0.0  ;;  %v3562_v54 = vld [vmem:[#allocation6 + $0xf8] sm:$0xff] }
 0x21a   :  { %1657 = vmatmul.bf16.gmra.mxu3 %v3561_v20 }
 0x21b   :  { %v4092_v25 = vpack.c.bf16 %v2517_v13, %v2513_v23 }
 0x21c   :  { %v1449_v27 = vpop.f32.mrf.mxu2  ;;  %v1113_v30 = vpop.f32.mrf.mxu0 }
 0x21d   :  { %v1450_v29 = vadd.f32 %v1449_v27, %v3891_v4  ;;  %v1618_v17 = vpop.f32.mrf.mxu3  ;;  %v1114_v14 = vadd.f32 %v1113_v30, %v3888_v57  ;;  %v1282_v16 = vpop.f32.mrf.mxu1 }
 0x21f   :  { %v1619_v40 = vadd.f32 %v1618_v17, %v1450_v29  ;;  %v1283_v33 = vadd.f32 %v1282_v16, %v1114_v14 }
 0x221   :  { %v2524_v9 = vmax.f32 %v1283_v33, 0.0  ;;  %v2521_v0 = vmax.f32 %v1619_v40, 0.0 }
 0x223   :  { %v4096_v43 = vpack.c.bf16 %v2524_v9, %v2520_v39  ;;  %v3636_v9 = vld [vmem:[#allocation3] sm:$0xff] }
 0x224   :  { %v1451_v42 = vpop.f32.mrf.mxu2  ;;  %v1116_v50 = vpop.f32.mrf.mxu0 }
 0x225   :  { %v1452_v46 = vadd.f32 %v1451_v42, %v3891_v4  ;;  %v1620_v49 = vpop.f32.mrf.mxu3  ;;  %v1117_v53 = vadd.f32 %v1116_v50, %v3888_v57  ;;  %v1285_v55 = vpop.f32.mrf.mxu1 }
 0x227   :  { %v1621_v56 = vadd.f32 %v1620_v49, %v1452_v46  ;;  %v1286_v2 = vadd.f32 %v1285_v55, %v1117_v53  ;;  %1155 = vmatmul.bf16.gmra.mxu0 %v3530_v28  ;;  %v3637_v46 = vld [vmem:[#allocation6] sm:$0xff] }
 0x228   :  { %1324 = vmatmul.bf16.gmra.mxu1 %v3562_v54 }
 0x229   :  { %v2525_v59 = vmax.f32 %v1621_v56, 0.0  ;;  %1493 = vmatmul.bf16.gmra.mxu2 %v3530_v28  ;;  %v2528_v23 = vmax.f32 %v1286_v2, 0.0 }
 0x22a   :  { %1662 = vmatmul.bf16.gmra.mxu3 %v3562_v54 }
 0x22b   :  { %v4100_v1 = vpack.c.bf16 %v2525_v59, %v2521_v0 }
 0x22c   :  { %v1454_v20 = vpop.f32.mrf.mxu2  ;;  %v1118_v60 = vpop.f32.mrf.mxu0 }
 0x22d   :  { %v1455_v6 = vadd.f32 %v1454_v20, %v3891_v4  ;;  %v1623_v37 = vpop.f32.mrf.mxu3  ;;  %v1119_v15 = vadd.f32 %v1118_v60, %v3888_v57  ;;  %v1287_v19 = vpop.f32.mrf.mxu1 }
 0x22f   :  { %v1624_v22 = vadd.f32 %v1623_v37, %v1455_v6  ;;  %v1288_v62 = vadd.f32 %v1287_v19, %v1119_v15 }
 0x231   :  { %v2532_v13 = vmax.f32 %v1288_v62, 0.0  ;;  %v2529_v42 = vmax.f32 %v1624_v22, 0.0 }
 0x233   :  { %v4104_v27 = vpack.c.bf16 %v2532_v13, %v2528_v23  ;;  %v3638_v13 = vld [vmem:[#allocation3 + $0x8] sm:$0xff] }
 0x234   :  { %v1456_v29 = vpop.f32.mrf.mxu2  ;;  %v1121_v14 = vpop.f32.mrf.mxu0 }
 0x235   :  { %v1457_v17 = vadd.f32 %v1456_v29, %v3891_v4  ;;  %v1625_v30 = vpop.f32.mrf.mxu3  ;;  %v1122_v16 = vadd.f32 %v1121_v14, %v3888_v57  ;;  %v1290_v40 = vpop.f32.mrf.mxu1 }
 0x237   :  { %v1626_v33 = vadd.f32 %v1625_v30, %v1457_v17  ;;  %v1291_v39 = vadd.f32 %v1290_v40, %v1122_v16  ;;  %1676 = vmatmul.bf16.vlgmr.msrb.gmra.mxu0 %v3636_v9  ;;  %v3639_v30 = vld [vmem:[#allocation6 + $0x8] sm:$0xff] }
 0x238   :  { %1845 = vmatmul.bf16.vlgmr.msrb.gmra.mxu1 %v3637_v46  ;;  %2793 = vmatpush.bf16.xpose.msrb.mxu0 %v4040_v12 }
 0x239   :  { %v2533_v28 = vmax.f32 %v1626_v33, 0.0  ;;  %2014 = vmatmul.bf16.vlgmr.msrb.gmra.mxu2 %v3636_v9  ;;  %2806 = vmatpush.bf16.xpose.msrb.mxu1 %v4044_v8  ;;  %v2536_v20 = vmax.f32 %v1291_v39, 0.0 }
 0x23a   :  { %2183 = vmatmul.bf16.vlgmr.msrb.gmra.mxu3 %v3637_v46 }
 0x23b   :  { %v4109_v49 = vpack.c.bf16 %v2533_v28, %v2529_v42 }
 0x23c   :  { %v1459_v50 = vpop.f32.mrf.mxu2  ;;  %v1123_v55 = vpop.f32.mrf.mxu0 }
 0x23d   :  { %v1460_v54 = vadd.f32 %v1459_v50, %v3891_v4  ;;  %v1628_v53 = vpop.f32.mrf.mxu3  ;;  %v1124_v56 = vadd.f32 %v1123_v55, %v3888_v57  ;;  %v1292_v2 = vpop.f32.mrf.mxu1 }
 0x23f   :  { %v1629_v0 = vadd.f32 %v1628_v53, %v1460_v54  ;;  %v1293_v59 = vadd.f32 %v1292_v2, %v1124_v56 }
 0x240   :  { %2794 = vmatpush.bf16.xpose.msrb.mxu0 %v4032_v36 }
 0x241   :  { %v2540_v6 = vmax.f32 %v1293_v59, 0.0  ;;  %2807 = vmatpush.bf16.xpose.msrb.mxu1 %v4036_v34  ;;  %v2537_v29 = vmax.f32 %v1629_v0, 0.0  ;;  %v3640_v59 = vld [vmem:[#allocation3 + $0x10] sm:$0xff] }
 0x243   :  { %v4116_v37 = vpack.c.bf16 %v2540_v6, %v2536_v20 }
 0x244   :  { %v1461_v12 = vpop.f32.mrf.mxu2  ;;  %v1126_v15 = vpop.f32.mrf.mxu0 }
 0x245   :  { %4591 = vst [vmem:[#allocation16_spill] sm:$0xff] %v4116_v37  ;;  %v1462_v8 = vadd.f32 %v1461_v12, %v3891_v4  ;;  %v1630_v60 = vpop.f32.mrf.mxu3  ;;  %v1127_v19 = vadd.f32 %v1126_v15, %v3888_v57  ;;  %v1295_v22 = vpop.f32.mrf.mxu1  ;;  %v3641_v12 = vld [vmem:[#allocation6 + $0x10] sm:$0xff]  ;;  %v3668_v37 = vld [vmem:[#allocation6 + $0x78] sm:$0xff] }
 0x247   :  { %v1631_v62 = vadd.f32 %v1630_v60, %v1462_v8  ;;  %v1296_v23 = vadd.f32 %v1295_v22, %v1127_v19  ;;  %1681 = vmatmul.bf16.gmra.mxu0 %v3638_v13 }
 0x248   :  { %1850 = vmatmul.bf16.gmra.mxu1 %v3639_v30  ;;  %2795 = vmatpush.bf16.xpose.msrb.mxu0 %v4024_v10 }
 0x249   :  { %v2541_v17 = vmax.f32 %v1631_v62, 0.0  ;;  %2019 = vmatmul.bf16.gmra.mxu2 %v3638_v13  ;;  %2808 = vmatpush.bf16.xpose.msrb.mxu1 %v4028_v38  ;;  %v2544_v28 = vmax.f32 %v1296_v23, 0.0 }
 0x24a   :  { %2188 = vmatmul.bf16.gmra.mxu3 %v3639_v30 }
 0x24b   :  { %v4122_v36 = vpack.c.bf16 %v2541_v17, %v2537_v29 }
 0x24c   :  { %v1464_v34 = vpop.f32.mrf.mxu2  ;;  %v1128_v40 = vpop.f32.mrf.mxu0 }
 0x24d   :  { %4592 = vst [vmem:[#allocation17_spill] sm:$0xff] %v4122_v36  ;;  %v1465_v14 = vadd.f32 %v1464_v34, %v3891_v4  ;;  %v1633_v16 = vpop.f32.mrf.mxu3  ;;  %v1129_v33 = vadd.f32 %v1128_v40, %v3888_v57  ;;  %v1297_v39 = vpop.f32.mrf.mxu1  ;;  %v3667_v36 = vld [vmem:[#allocation3 + $0x78] sm:$0xff] }
 0x24f   :  { %v1634_v9 = vadd.f32 %v1633_v16, %v1465_v14  ;;  %v1298_v42 = vadd.f32 %v1297_v39, %v1129_v33  ;;  %v3642_v39 = vld [vmem:[#allocation3 + $0x18] sm:$0xff] }
 0x250   :  { %2796 = vmatpush.bf16.xpose.msrb.mxu0 %v4016_v45 }
 0x251   :  { %v2548_v46 = vmax.f32 %v1298_v42, 0.0  ;;  %2809 = vmatpush.bf16.xpose.msrb.mxu1 %v4020_v58  ;;  %v2545_v20 = vmax.f32 %v1634_v9, 0.0 }
 0x253   :  { %v4128_v38 = vpack.c.bf16 %v2548_v46, %v2544_v28  ;;  %v3643_v28 = vld [vmem:[#allocation6 + $0x18] sm:$0xff] }
 0x254   :  { %v1466_v10 = vpop.f32.mrf.mxu2  ;;  %v1131_v53 = vpop.f32.mrf.mxu0 }
 0x255   :  { %4593 = vst [vmem:[#allocation18_spill] sm:$0xff] %v4128_v38  ;;  %v1467_v50 = vadd.f32 %v1466_v10, %v3891_v4  ;;  %v1635_v54 = vpop.f32.mrf.mxu3  ;;  %v1132_v55 = vadd.f32 %v1131_v53, %v3888_v57  ;;  %v1300_v56 = vpop.f32.mrf.mxu1 }
 0x257   :  { %v1636_v2 = vadd.f32 %v1635_v54, %v1467_v50  ;;  %v1301_v0 = vadd.f32 %v1300_v56, %v1132_v55  ;;  %1686 = vmatmul.bf16.gmra.mxu0 %v3640_v59 }
 0x258   :  { %1855 = vmatmul.bf16.gmra.mxu1 %v3641_v12  ;;  %2797 = vmatpush.bf16.xpose.msrb.mxu0 %v4007_v24 }
 0x259   :  { %v2549_v6 = vmax.f32 %v1636_v2, 0.0  ;;  %2024 = vmatmul.bf16.gmra.mxu2 %v3640_v59  ;;  %2810 = vmatpush.bf16.xpose.msrb.mxu1 %v4012_v11  ;;  %v2552_v13 = vmax.f32 %v1301_v0, 0.0 }
 0x25a   :  { %2193 = vmatmul.bf16.gmra.mxu3 %v3641_v12 }
 0x25b   :  { %v4134_v45 = vpack.c.bf16 %v2549_v6, %v2545_v20 }
 0x25c   :  { %v1469_v58 = vpop.f32.mrf.mxu2  ;;  %v1133_v15 = vpop.f32.mrf.mxu0 }
 0x25d   :  { %4594 = vst [vmem:[#allocation19_spill] sm:$0xff] %v4134_v45  ;;  %v1470_v8 = vadd.f32 %v1469_v58, %v3891_v4  ;;  %v1638_v60 = vpop.f32.mrf.mxu3  ;;  %v1134_v19 = vadd.f32 %v1133_v15, %v3888_v57  ;;  %v1302_v22 = vpop.f32.mrf.mxu1  ;;  %v3644_v15 = vld [vmem:[#allocation3 + $0x20] sm:$0xff] }
 0x25f   :  { %v1639_v62 = vadd.f32 %v1638_v60, %v1470_v8  ;;  %v1303_v23 = vadd.f32 %v1302_v22, %v1134_v19 }
 0x260   :  { %2798 = vmatpush.bf16.xpose.msrb.mxu0 %v3995_v48 }
 0x261   :  { %v2556_v29 = vmax.f32 %v1303_v23, 0.0  ;;  %2811 = vmatpush.bf16.xpose.msrb.mxu1 %v4001_v3  ;;  %v2553_v9 = vmax.f32 %v1639_v62, 0.0  ;;  %v3645_v62 = vld [vmem:[#allocation6 + $0x20] sm:$0xff] }
 0x263   :  { %v4140_v11 = vpack.c.bf16 %v2556_v29, %v2552_v13 }
 0x264   :  { %v1471_v24 = vpop.f32.mrf.mxu2  ;;  %v1136_v34 = vpop.f32.mrf.mxu0 }
 0x265   :  { %4595 = vst [vmem:[#allocation20_spill] sm:$0xff] %v4140_v11  ;;  %v1472_v17 = vadd.f32 %v1471_v24, %v3891_v4  ;;  %v1640_v30 = vpop.f32.mrf.mxu3  ;;  %v1137_v14 = vadd.f32 %v1136_v34, %v3888_v57  ;;  %v1305_v16 = vpop.f32.mrf.mxu1 }
 0x267   :  { %v1641_v40 = vadd.f32 %v1640_v30, %v1472_v17  ;;  %v1306_v33 = vadd.f32 %v1305_v16, %v1137_v14  ;;  %1691 = vmatmul.bf16.gmra.mxu0 %v3642_v39 }
 0x268   :  { %1860 = vmatmul.bf16.gmra.mxu1 %v3643_v28  ;;  %2799 = vmatpush.bf16.xpose.msrb.mxu0 %v3983_v26 }
 0x269   :  { %v2557_v42 = vmax.f32 %v1641_v40, 0.0  ;;  %2029 = vmatmul.bf16.gmra.mxu2 %v3642_v39  ;;  %2812 = vmatpush.bf16.xpose.msrb.mxu1 %v3989_v35  ;;  %v2560_v2 = vmax.f32 %v1306_v33, 0.0 }
 0x26a   :  { %2198 = vmatmul.bf16.gmra.mxu3 %v3643_v28 }
 0x26b   :  { %v4146_v48 = vpack.c.bf16 %v2557_v42, %v2553_v9 }
 0x26c   :  { %v1474_v3 = vpop.f32.mrf.mxu2  ;;  %v1138_v50 = vpop.f32.mrf.mxu0 }
 0x26d   :  { %4596 = vst [vmem:[#allocation21_spill] sm:$0xff] %v4146_v48  ;;  %v1475_v46 = vadd.f32 %v1474_v3, %v3891_v4  ;;  %v1643_v10 = vpop.f32.mrf.mxu3  ;;  %v1139_v54 = vadd.f32 %v1138_v50, %v3888_v57  ;;  %v1307_v53 = vpop.f32.mrf.mxu1  ;;  %v3646_v50 = vld [vmem:[#allocation3 + $0x28] sm:$0xff] }
 0x26f   :  { %v1644_v55 = vadd.f32 %v1643_v10, %v1475_v46  ;;  %v1308_v56 = vadd.f32 %v1307_v53, %v1139_v54 }
 0x270   :  { %2800 = vmatpush.bf16.xpose.msrb.mxu0 %v3973_v51 }
 0x271   :  { %v2564_v0 = vmax.f32 %v1308_v56, 0.0  ;;  %2813 = vmatpush.bf16.xpose.msrb.mxu1 %v3978_v7  ;;  %v2561_v19 = vmax.f32 %v1644_v55, 0.0  ;;  %v3647_v55 = vld [vmem:[#allocation6 + $0x28] sm:$0xff] }
 0x273   :  { %v4152_v35 = vpack.c.bf16 %v2564_v0, %v2560_v2 }
 0x274   :  { %v1476_v26 = vpop.f32.mrf.mxu2  ;;  %v1141_v6 = vpop.f32.mrf.mxu0 }
 0x275   :  { %4597 = vst [vmem:[#allocation22_spill] sm:$0xff] %v4152_v35  ;;  %v1477_v59 = vadd.f32 %v1476_v26, %v3891_v4  ;;  %v1645_v20 = vpop.f32.mrf.mxu3  ;;  %v1142_v12 = vadd.f32 %v1141_v6, %v3888_v57  ;;  %v1310_v58 = vpop.f32.mrf.mxu1 }
 0x277   :  { %v1646_v8 = vadd.f32 %v1645_v20, %v1477_v59  ;;  %v1311_v60 = vadd.f32 %v1310_v58, %v1142_v12  ;;  %1696 = vmatmul.bf16.gmra.mxu0 %v3644_v15 }
 0x278   :  { %1865 = vmatmul.bf16.gmra.mxu1 %v3645_v62 }
 0x279   :  { %v2565_v22 = vmax.f32 %v1646_v8, 0.0  ;;  %2034 = vmatmul.bf16.gmra.mxu2 %v3644_v15  ;;  %v2568_v14 = vmax.f32 %v1311_v60, 0.0 }
 0x27a   :  { %2203 = vmatmul.bf16.gmra.mxu3 %v3645_v62 }
 0x27b   :  { %v4156_v51 = vpack.c.bf16 %v2565_v22, %v2561_v19 }
 0x27c   :  { %v1479_v7 = vpop.f32.mrf.mxu2  ;;  %v1143_v29 = vpop.f32.mrf.mxu0 }
 0x27d   :  { %4598 = vst [vmem:[#allocation23_spill] sm:$0xff] %v4156_v51  ;;  %v1480_v23 = vadd.f32 %v1479_v7, %v3891_v4  ;;  %v1648_v13 = vpop.f32.mrf.mxu3  ;;  %v1144_v24 = vadd.f32 %v1143_v29, %v3888_v57  ;;  %v1312_v17 = vpop.f32.mrf.mxu1 }
 0x27f   :  { %v1649_v30 = vadd.f32 %v1648_v13, %v1480_v23  ;;  %v1313_v34 = vadd.f32 %v1312_v17, %v1144_v24  ;;  %v3648_v17 = vld [vmem:[#allocation3 + $0x30] sm:$0xff] }
 0x281   :  { %v2572_v16 = vmax.f32 %v1313_v34, 0.0  ;;  %v2569_v54 = vmax.f32 %v1649_v30, 0.0 }
 0x283   :  { %v4160_v33 = vpack.c.bf16 %v2572_v16, %v2568_v14  ;;  %v3649_v14 = vld [vmem:[#allocation6 + $0x30] sm:$0xff] }
 0x284   :  { %v1481_v40 = vpop.f32.mrf.mxu2  ;;  %v1146_v42 = vpop.f32.mrf.mxu0 }
 0x285   :  { %4599 = vst [vmem:[#allocation24_spill] sm:$0xff] %v4160_v33  ;;  %v1482_v39 = vadd.f32 %v1481_v40, %v3891_v4  ;;  %v1650_v9 = vpop.f32.mrf.mxu3  ;;  %v1147_v28 = vadd.f32 %v1146_v42, %v3888_v57  ;;  %v1315_v3 = vpop.f32.mrf.mxu1 }
 0x287   :  { %v1651_v46 = vadd.f32 %v1650_v9, %v1482_v39  ;;  %v1316_v10 = vadd.f32 %v1315_v3, %v1147_v28  ;;  %1701 = vmatmul.bf16.gmra.mxu0 %v3646_v50 }
 0x288   :  { %1870 = vmatmul.bf16.gmra.mxu1 %v3647_v55 }
 0x289   :  { %v2573_v53 = vmax.f32 %v1651_v46, 0.0  ;;  %2039 = vmatmul.bf16.gmra.mxu2 %v3646_v50  ;;  %v2576_v8 = vmax.f32 %v1316_v10, 0.0 }
 0x28a   :  { %2208 = vmatmul.bf16.gmra.mxu3 %v3647_v55 }
 0x28b   :  { %v4164_v56 = vpack.c.bf16 %v2573_v53, %v2569_v54 }
 0x28c   :  { %v1484_v2 = vpop.f32.mrf.mxu2  ;;  %v1148_v59 = vpop.f32.mrf.mxu0 }
 0x28d   :  { %4600 = vst [vmem:[#allocation25_spill] sm:$0xff] %v4164_v56  ;;  %v1485_v0 = vadd.f32 %v1484_v2, %v3891_v4  ;;  %v1653_v26 = vpop.f32.mrf.mxu3  ;;  %v1149_v20 = vadd.f32 %v1148_v59, %v3888_v57  ;;  %v1317_v6 = vpop.f32.mrf.mxu1 }
 0x28f   :  { %v1654_v12 = vadd.f32 %v1653_v26, %v1485_v0  ;;  %v1318_v58 = vadd.f32 %v1317_v6, %v1149_v20 }
 0x291   :  { %v2580_v60 = vmax.f32 %v1318_v58, 0.0  ;;  %v2577_v30 = vmax.f32 %v1654_v12, 0.0  ;;  %v3650_v58 = vld [vmem:[#allocation3 + $0x38] sm:$0xff] }
 0x293   :  { %v4168_v19 = vpack.c.bf16 %v2580_v60, %v2576_v8 }
 0x294   :  { %v1486_v15 = vpop.f32.mrf.mxu2  ;;  %v1151_v7 = vpop.f32.mrf.mxu0 }
 0x295   :  { %4601 = vst [vmem:[#allocation26_spill] sm:$0xff] %v4168_v19  ;;  %v1487_v22 = vadd.f32 %v1486_v15, %v3891_v4  ;;  %v1655_v62 = vpop.f32.mrf.mxu3  ;;  %v1152_v23 = vadd.f32 %v1151_v7, %v3888_v57  ;;  %v1320_v13 = vpop.f32.mrf.mxu1  ;;  %v3651_v15 = vld [vmem:[#allocation6 + $0x38] sm:$0xff] }
 0x297   :  { %v1656_v29 = vadd.f32 %v1655_v62, %v1487_v22  ;;  %v1321_v24 = vadd.f32 %v1320_v13, %v1152_v23  ;;  %1706 = vmatmul.bf16.gmra.mxu0 %v3648_v17 }
 0x298   :  { %1875 = vmatmul.bf16.gmra.mxu1 %v3649_v14 }
 0x299   :  { %v2581_v34 = vmax.f32 %v1656_v29, 0.0  ;;  %2044 = vmatmul.bf16.gmra.mxu2 %v3648_v17  ;;  %v2584_v50 = vmax.f32 %v1321_v24, 0.0 }
 0x29a   :  { %2213 = vmatmul.bf16.gmra.mxu3 %v3649_v14 }
 0x29b   :  { %v4172_v16 = vpack.c.bf16 %v2581_v34, %v2577_v30 }
 0x29c   :  { %v1489_v40 = vpop.f32.mrf.mxu2  ;;  %v1153_v42 = vpop.f32.mrf.mxu0 }
 0x29d   :  { %4602 = vst [vmem:[#allocation27_spill] sm:$0xff] %v4172_v16  ;;  %v1490_v39 = vadd.f32 %v1489_v40, %v3891_v4  ;;  %v1658_v9 = vpop.f32.mrf.mxu3  ;;  %v1154_v28 = vadd.f32 %v1153_v42, %v3888_v57  ;;  %v1322_v3 = vpop.f32.mrf.mxu1  ;;  %v3652_v40 = vld [vmem:[%s4587_s3] sm:$0xf] }
 0x29f   :  { %v1659_v46 = vadd.f32 %v1658_v9, %v1490_v39  ;;  %v1323_v10 = vadd.f32 %v1322_v3, %v1154_v28  ;;  %v4187_v39 = vperm.slane %v3652_v40, 2 }
 0x2a1   :  { %v2588_v54 = vmax.f32 %v1323_v10, 0.0  ;;  %v2585_v8 = vmax.f32 %v1659_v46, 0.0 }
 0x2a3   :  { %v4176_v55 = vpack.c.bf16 %v2588_v54, %v2584_v50 }
 0x2a4   :  { %v1491_v53 = vpop.f32.mrf.mxu2  ;;  %v1156_v26 = vpop.f32.mrf.mxu0 }
 0x2a5   :  { %4603 = vst [vmem:[#allocation28_spill] sm:$0xff] %v4176_v55  ;;  %v1492_v2 = vadd.f32 %v1491_v53, %v3891_v4  ;;  %v1660_v0 = vpop.f32.mrf.mxu3  ;;  %v1157_v59 = vadd.f32 %v1156_v26, %v3888_v57  ;;  %v1325_v20 = vpop.f32.mrf.mxu1  ;;  %v3653_v53 = vld [vmem:[#allocation3 + $0x40] sm:$0xff] }
 0x2a6   :  { %v3654_v26 = vld [vmem:[#allocation6 + $0x40] sm:$0xff] }
 0x2a7   :  { %v1661_v6 = vadd.f32 %v1660_v0, %v1492_v2  ;;  %v1326_v12 = vadd.f32 %v1325_v20, %v1157_v59  ;;  %1711 = vmatmul.bf16.gmra.mxu0 %v3650_v58  ;;  %v4193_v59 = vperm.slane %v3652_v40, 3 }
 0x2a8   :  { %1880 = vmatmul.bf16.gmra.mxu1 %v3651_v15 }
 0x2a9   :  { %v2589_v60 = vmax.f32 %v1661_v6, 0.0  ;;  %2049 = vmatmul.bf16.gmra.mxu2 %v3650_v58  ;;  %v2592_v34 = vmax.f32 %v1326_v12, 0.0 }
 0x2aa   :  { %2218 = vmatmul.bf16.gmra.mxu3 %v3651_v15 }
 0x2ab   :  { %v4180_v22 = vpack.c.bf16 %v2589_v60, %v2585_v8 }
 0x2ac   :  { %v1494_v62 = vpop.f32.mrf.mxu2  ;;  %v1158_v13 = vpop.f32.mrf.mxu0 }
 0x2ad   :  { %4604 = vst [vmem:[#allocation29_spill] sm:$0xff] %v4180_v22  ;;  %v1495_v7 = vadd.f32 %v1494_v62, %v3891_v4  ;;  %v1663_v23 = vpop.f32.mrf.mxu3  ;;  %v1159_v29 = vadd.f32 %v1158_v13, %v3888_v57  ;;  %v1327_v24 = vpop.f32.mrf.mxu1 }
 0x2af   :  { %v1664_v17 = vadd.f32 %v1663_v23, %v1495_v7  ;;  %v1328_v30 = vadd.f32 %v1327_v24, %v1159_v29 }
 0x2b1   :  { %v2596_v14 = vmax.f32 %v1328_v30, 0.0  ;;  %v2593_v2 = vmax.f32 %v1664_v17, 0.0 }
 0x2b3   :  { %v4189_v9 = vpack.c.bf16 %v2596_v14, %v2592_v34 }
 0x2b4   :  { %v1496_v42 = vpop.f32.mrf.mxu2  ;;  %v1677_v46 = vpop.f32.mrf.mxu0 }
 0x2b5   :  { %4605 = vst [vmem:[#allocation30_spill] sm:$0xff] %v4189_v9  ;;  %v1497_v28 = vadd.f32 %v1496_v42, %v3891_v4  ;;  %v1665_v3 = vpop.f32.mrf.mxu3  ;;  %v1678_v57 = vadd.f32 %v1677_v46, %v4187_v39  ;;  %v1846_v10 = vpop.f32.mrf.mxu1 }
 0x2b7   :  { %v1666_v50 = vadd.f32 %v1665_v3, %v1497_v28  ;;  %v1847_v54 = vadd.f32 %v1846_v10, %v1678_v57  ;;  %1716 = vmatmul.bf16.gmra.mxu0 %v3653_v53  ;;  %v3655_v28 = vld [vmem:[#allocation3 + $0x48] sm:$0xff] }
 0x2b8   :  { %1885 = vmatmul.bf16.gmra.mxu1 %v3654_v26  ;;  %v3656_v57 = vld [vmem:[#allocation6 + $0x48] sm:$0xff] }
 0x2b9   :  { %v2597_v0 = vmax.f32 %v1666_v50, 0.0  ;;  %2054 = vmatmul.bf16.gmra.mxu2 %v3653_v53  ;;  %v2346_v7 = vmax.f32 %v1847_v54, 0.0 }
 0x2ba   :  { %2223 = vmatmul.bf16.gmra.mxu3 %v3654_v26 }
 0x2bb   :  { %v4195_v20 = vpack.c.bf16 %v2597_v0, %v2593_v2 }
 0x2bc   :  { %v2015_v4 = vpop.f32.mrf.mxu2  ;;  %v1679_v58 = vpop.f32.mrf.mxu0 }
 0x2bd   :  { %4606 = vst [vmem:[#allocation31_spill] sm:$0xff] %v4195_v20  ;;  %v2016_v6 = vadd.f32 %v2015_v4, %v4193_v59  ;;  %v2184_v12 = vpop.f32.mrf.mxu3  ;;  %v1680_v8 = vadd.f32 %v1679_v58, %v4187_v39  ;;  %v1848_v60 = vpop.f32.mrf.mxu1 }
 0x2bf   :  { %v2185_v15 = vadd.f32 %v2184_v12, %v2016_v6  ;;  %v1849_v62 = vadd.f32 %v1848_v60, %v1680_v8 }
 0x2c1   :  { %v2350_v23 = vmax.f32 %v1849_v62, 0.0  ;;  %v2347_v3 = vmax.f32 %v2185_v15, 0.0 }
 0x2c3   :  { %v4199_v29 = vpack.c.bf16 %v2350_v23, %v2346_v7 }
 0x2c4   :  { %v2017_v13 = vpop.f32.mrf.mxu2  ;;  %v1682_v30 = vpop.f32.mrf.mxu0 }
 0x2c5   :  { %v2018_v24 = vadd.f32 %v2017_v13, %v4193_v59  ;;  %v2186_v17 = vpop.f32.mrf.mxu3  ;;  %v1683_v34 = vadd.f32 %v1682_v30, %v4187_v39  ;;  %v1851_v14 = vpop.f32.mrf.mxu1  ;;  %v3657_v30 = vld [vmem:[#allocation3 + $0x50] sm:$0xff] }
 0x2c7   :  { %v2187_v40 = vadd.f32 %v2186_v17, %v2018_v24  ;;  %v1852_v42 = vadd.f32 %v1851_v14, %v1683_v34  ;;  %1721 = vmatmul.bf16.gmra.mxu0 %v3655_v28 }
 0x2c8   :  { %1890 = vmatmul.bf16.gmra.mxu1 %v3656_v57 }
 0x2c9   :  { %v2351_v46 = vmax.f32 %v2187_v40, 0.0  ;;  %2059 = vmatmul.bf16.gmra.mxu2 %v3655_v28  ;;  %v2354_v12 = vmax.f32 %v1852_v42, 0.0  ;;  %v3658_v40 = vld [vmem:[#allocation6 + $0x50] sm:$0xff] }
 0x2ca   :  { %2228 = vmatmul.bf16.gmra.mxu3 %v3656_v57 }
 0x2cb   :  { %v4203_v10 = vpack.c.bf16 %v2351_v46, %v2347_v3 }
 0x2cc   :  { %v2020_v50 = vpop.f32.mrf.mxu2  ;;  %v1684_v2 = vpop.f32.mrf.mxu0 }
 0x2cd   :  { %v2021_v54 = vadd.f32 %v2020_v50, %v4193_v59  ;;  %v2189_v53 = vpop.f32.mrf.mxu3  ;;  %v1685_v0 = vadd.f32 %v1684_v2, %v4187_v39  ;;  %v1853_v26 = vpop.f32.mrf.mxu1 }
 0x2cf   :  { %v2190_v4 = vadd.f32 %v2189_v53, %v2021_v54  ;;  %v1854_v6 = vadd.f32 %v1853_v26, %v1685_v0 }
 0x2d1   :  { %v2358_v58 = vmax.f32 %v1854_v6, 0.0  ;;  %v2355_v34 = vmax.f32 %v2190_v4, 0.0 }
 0x2d3   :  { %v4207_v60 = vpack.c.bf16 %v2358_v58, %v2354_v12 }
 0x2d4   :  { %v2022_v8 = vpop.f32.mrf.mxu2  ;;  %v1687_v7 = vpop.f32.mrf.mxu0 }
 0x2d5   :  { %v2023_v15 = vadd.f32 %v2022_v8, %v4193_v59  ;;  %v2191_v62 = vpop.f32.mrf.mxu3  ;;  %v1688_v23 = vadd.f32 %v1687_v7, %v4187_v39  ;;  %v1856_v13 = vpop.f32.mrf.mxu1 }
 0x2d7   :  { %v2192_v24 = vadd.f32 %v2191_v62, %v2023_v15  ;;  %v1857_v17 = vadd.f32 %v1856_v13, %v1688_v23  ;;  %1726 = vmatmul.bf16.gmra.mxu0 %v3657_v30  ;;  %v3659_v13 = vld [vmem:[#allocation3 + $0x58] sm:$0xff] }
 0x2d8   :  { %1895 = vmatmul.bf16.gmra.mxu1 %v3658_v40 }
 0x2d9   :  { %v2359_v14 = vmax.f32 %v2192_v24, 0.0  ;;  %2064 = vmatmul.bf16.gmra.mxu2 %v3657_v30  ;;  %v2362_v0 = vmax.f32 %v1857_v17, 0.0 }
 0x2da   :  { %2233 = vmatmul.bf16.gmra.mxu3 %v3658_v40 }
 0x2db   :  { %v4211_v42 = vpack.c.bf16 %v2359_v14, %v2355_v34  ;;  %v3660_v34 = vld [vmem:[#allocation6 + $0x58] sm:$0xff] }
 0x2dc   :  { %v2025_v28 = vpop.f32.mrf.mxu2  ;;  %v1689_v57 = vpop.f32.mrf.mxu0 }
 0x2dd   :  { %v2026_v3 = vadd.f32 %v2025_v28, %v4193_v59  ;;  %v2194_v46 = vpop.f32.mrf.mxu3  ;;  %v1690_v50 = vadd.f32 %v1689_v57, %v4187_v39  ;;  %v1858_v54 = vpop.f32.mrf.mxu1 }
 0x2df   :  { %v2195_v53 = vadd.f32 %v2194_v46, %v2026_v3  ;;  %v1859_v2 = vadd.f32 %v1858_v54, %v1690_v50 }
 0x2e1   :  { %v2366_v26 = vmax.f32 %v1859_v2, 0.0  ;;  %v2363_v24 = vmax.f32 %v2195_v53, 0.0 }
 0x2e3   :  { %v4215_v6 = vpack.c.bf16 %v2366_v26, %v2362_v0 }
 0x2e4   :  { %v2027_v4 = vpop.f32.mrf.mxu2  ;;  %v1692_v8 = vpop.f32.mrf.mxu0 }
 0x2e5   :  { %v2028_v12 = vadd.f32 %v2027_v4, %v4193_v59  ;;  %v2196_v58 = vpop.f32.mrf.mxu3  ;;  %v1693_v15 = vadd.f32 %v1692_v8, %v4187_v39  ;;  %v1861_v62 = vpop.f32.mrf.mxu1 }
 0x2e7   :  { %v2197_v7 = vadd.f32 %v2196_v58, %v2028_v12  ;;  %v1862_v23 = vadd.f32 %v1861_v62, %v1693_v15  ;;  %1731 = vmatmul.bf16.gmra.mxu0 %v3659_v13 }
 0x2e8   :  { %1900 = vmatmul.bf16.gmra.mxu1 %v3660_v34 }
 0x2e9   :  { %v2367_v30 = vmax.f32 %v2197_v7, 0.0  ;;  %2069 = vmatmul.bf16.gmra.mxu2 %v3659_v13  ;;  %v2370_v2 = vmax.f32 %v1862_v23, 0.0  ;;  %v3661_v13 = vld [vmem:[#allocation3 + $0x60] sm:$0xff] }
 0x2ea   :  { %2238 = vmatmul.bf16.gmra.mxu3 %v3660_v34  ;;  %v3662_v34 = vld [vmem:[#allocation6 + $0x60] sm:$0xff] }
 0x2eb   :  { %v4219_v17 = vpack.c.bf16 %v2367_v30, %v2363_v24 }
 0x2ec   :  { %v2030_v14 = vpop.f32.mrf.mxu2  ;;  %v1694_v3 = vpop.f32.mrf.mxu0 }
 0x2ed   :  { %v2031_v40 = vadd.f32 %v2030_v14, %v4193_v59  ;;  %v2199_v28 = vpop.f32.mrf.mxu3  ;;  %v1695_v46 = vadd.f32 %v1694_v3, %v4187_v39  ;;  %v1863_v57 = vpop.f32.mrf.mxu1 }
 0x2ef   :  { %v2200_v50 = vadd.f32 %v2199_v28, %v2031_v40  ;;  %v1864_v54 = vadd.f32 %v1863_v57, %v1695_v46 }
 0x2f1   :  { %v2374_v0 = vmax.f32 %v1864_v54, 0.0  ;;  %v2371_v24 = vmax.f32 %v2200_v50, 0.0 }
 0x2f3   :  { %v4223_v26 = vpack.c.bf16 %v2374_v0, %v2370_v2 }
 0x2f4   :  { %v2032_v53 = vpop.f32.mrf.mxu2  ;;  %v1697_v58 = vpop.f32.mrf.mxu0 }
 0x2f5   :  { %v2033_v4 = vadd.f32 %v2032_v53, %v4193_v59  ;;  %v2201_v12 = vpop.f32.mrf.mxu3  ;;  %v1698_v8 = vadd.f32 %v1697_v58, %v4187_v39  ;;  %v1866_v15 = vpop.f32.mrf.mxu1 }
 0x2f7   :  { %v2202_v62 = vadd.f32 %v2201_v12, %v2033_v4  ;;  %v1867_v7 = vadd.f32 %v1866_v15, %v1698_v8  ;;  %1736 = vmatmul.bf16.gmra.mxu0 %v3661_v13 }
 0x2f8   :  { %1905 = vmatmul.bf16.gmra.mxu1 %v3662_v34 }
 0x2f9   :  { %v2375_v30 = vmax.f32 %v2202_v62, 0.0  ;;  %2074 = vmatmul.bf16.gmra.mxu2 %v3661_v13  ;;  %v2378_v0 = vmax.f32 %v1867_v7, 0.0  ;;  %v3663_v13 = vld [vmem:[#allocation3 + $0x68] sm:$0xff] }
 0x2fa   :  { %2243 = vmatmul.bf16.gmra.mxu3 %v3662_v34  ;;  %v3664_v34 = vld [vmem:[#allocation6 + $0x68] sm:$0xff] }
 0x2fb   :  { %v4227_v23 = vpack.c.bf16 %v2375_v30, %v2371_v24 }
 0x2fc   :  { %v2035_v14 = vpop.f32.mrf.mxu2  ;;  %v1699_v3 = vpop.f32.mrf.mxu0 }
 0x2fd   :  { %v2036_v40 = vadd.f32 %v2035_v14, %v4193_v59  ;;  %v2204_v28 = vpop.f32.mrf.mxu3  ;;  %v1700_v46 = vadd.f32 %v1699_v3, %v4187_v39  ;;  %v1868_v57 = vpop.f32.mrf.mxu1 }
 0x2ff   :  { %v2205_v54 = vadd.f32 %v2204_v28, %v2036_v40  ;;  %v1869_v2 = vadd.f32 %v1868_v57, %v1700_v46 }
 0x301   :  { %v2382_v53 = vmax.f32 %v1869_v2, 0.0  ;;  %v2379_v24 = vmax.f32 %v2205_v54, 0.0 }
 0x303   :  { %v4231_v4 = vpack.c.bf16 %v2382_v53, %v2378_v0  ;;  %v3665_v0 = vld [vmem:[#allocation3 + $0x70] sm:$0xff] }
 0x304   :  { %v2037_v50 = vpop.f32.mrf.mxu2  ;;  %v4234_v8 = vpop.f32.mrf.mxu0  ;;  %v3666_v53 = vld [vmem:[#allocation6 + $0x70] sm:$0xff] }
 0x305   :  { %v2038_v12 = vadd.f32 %v2037_v50, %v4193_v59  ;;  %v2206_v58 = vpop.f32.mrf.mxu3  ;;  %v4236_v15 = vpop.f32.mrf.mxu1 }
 0x307   :  { %v2207_v62 = vadd.f32 %v2206_v58, %v2038_v12  ;;  %1741 = vmatmul.bf16.gmra.mxu0 %v3663_v13 }
 0x308   :  { %1910 = vmatmul.bf16.gmra.mxu1 %v3664_v34 }
 0x309   :  { %v2383_v30 = vmax.f32 %v2207_v62, 0.0  ;;  %2079 = vmatmul.bf16.gmra.mxu2 %v3663_v13 }
 0x30a   :  { %2248 = vmatmul.bf16.gmra.mxu3 %v3664_v34 }
 0x30b   :  { %v4238_v7 = vpack.c.bf16 %v2383_v30, %v2379_v24 }
 0x30c   :  { %v4240_v14 = vpop.f32.mrf.mxu2  ;;  %v1704_v28 = vpop.f32.mrf.mxu0 }
 0x30d   :  { %v4242_v40 = vpop.f32.mrf.mxu3  ;;  %v4244_v3 = vpop.f32.mrf.mxu1 }
 0x314   :  { %v4246_v46 = vpop.f32.mrf.mxu2  ;;  %v1707_v2 = vpop.f32.mrf.mxu0 }
 0x315   :  { %v4248_v57 = vpop.f32.mrf.mxu3  ;;  %v1876_v54 = vpop.f32.mrf.mxu1  ;;  %v1708_v16 = vadd.f32 %v1707_v2, %v4187_v39 }
 0x317   :  { %1746 = vmatmul.bf16.gmra.mxu0 %v3665_v0 }
 0x318   :  { %1915 = vmatmul.bf16.gmra.mxu1 %v3666_v53 }
 0x319   :  { %2084 = vmatmul.bf16.gmra.mxu2 %v3665_v0 }
 0x31a   :  { %2253 = vmatmul.bf16.gmra.mxu3 %v3666_v53 }
 0x31c   :  { %v2045_v50 = vpop.f32.mrf.mxu2  ;;  %v1709_v58 = vpop.f32.mrf.mxu0 }
 0x31d   :  { %v2214_v12 = vpop.f32.mrf.mxu3  ;;  %v1878_v62 = vpop.f32.mrf.mxu1  ;;  %v1710_v35 = vadd.f32 %v1709_v58, %v4187_v39 }
 0x324   :  { %v2047_v13 = vpop.f32.mrf.mxu2  ;;  %v1712_v30 = vpop.f32.mrf.mxu0 }
 0x325   :  { %v2216_v24 = vpop.f32.mrf.mxu3  ;;  %v1881_v34 = vpop.f32.mrf.mxu1  ;;  %v1713_v45 = vadd.f32 %v1712_v30, %v4187_v39 }
 0x327   :  { %1751 = vmatmul.bf16.gmra.mxu0 %v3667_v36  ;;  %v1882_v53 = vadd.f32 %v1881_v34, %v1713_v45  ;;  %v1877_v34 = vadd.f32 %v1876_v54, %v1708_v16  ;;  %v1703_v16 = vadd.f32 %v4234_v8, %v4187_v39 }
 0x328   :  { %1920 = vmatmul.bf16.gmra.mxu1 %v3668_v37 }
 0x329   :  { %2089 = vmatmul.bf16.gmra.mxu2 %v3667_v36  ;;  %v2402_v19 = vmax.f32 %v1882_v53, 0.0  ;;  %v1879_v36 = vadd.f32 %v1878_v62, %v1710_v35  ;;  %v3669_v35 = vld [vmem:[#allocation3 + $0x80] sm:$0xff] }
 0x32a   :  { %2258 = vmatmul.bf16.gmra.mxu3 %v3668_v37 }
 0x32b   :  { %v2398_v2 = vmax.f32 %v1879_v36, 0.0 }
 0x32c   :  { %v2050_v38 = vpop.f32.mrf.mxu2  ;;  %v1714_v0 = vpop.f32.mrf.mxu0 }
 0x32d   :  { %v2219_v48 = vpop.f32.mrf.mxu3  ;;  %v1715_v11 = vadd.f32 %v1714_v0, %v4187_v39  ;;  %v1883_v51 = vpop.f32.mrf.mxu1  ;;  %v2051_v33 = vadd.f32 %v2050_v38, %v4193_v59 }
 0x32f   :  { %v1884_v56 = vadd.f32 %v1883_v51, %v1715_v11  ;;  %v2220_v37 = vadd.f32 %v2219_v48, %v2051_v33  ;;  %v2048_v11 = vadd.f32 %v2047_v13, %v4193_v59  ;;  %v1705_v51 = vadd.f32 %v1704_v28, %v4187_v39 }
 0x330   :  { %v2046_v48 = vadd.f32 %v2045_v50, %v4193_v59 }
 0x331   :  { %v2406_v22 = vmax.f32 %v1884_v56, 0.0  ;;  %v2403_v33 = vmax.f32 %v2220_v37, 0.0  ;;  %v2217_v54 = vadd.f32 %v2216_v24, %v2048_v11  ;;  %v2043_v24 = vadd.f32 %v4246_v46, %v4193_v59 }
 0x332   :  { %v2215_v13 = vadd.f32 %v2214_v12, %v2046_v48  ;;  %v2041_v12 = vadd.f32 %v4240_v14, %v4193_v59 }
 0x333   :  { %v2631_v55 = vpack.c.bf16 %v2406_v22, %v2402_v19  ;;  %v3670_v22 = vld [vmem:[#allocation6 + $0x80] sm:$0xff] }
 0x334   :  { %v2052_v30 = vpop.f32.mrf.mxu2  ;;  %v1717_v45 = vpop.f32.mrf.mxu0  ;;  %v2210_v46 = vadd.f32 %v4242_v40, %v2041_v12 }
 0x335   :  { %v2053_v20 = vadd.f32 %v2052_v30, %v4193_v59  ;;  %v2221_v9 = vpop.f32.mrf.mxu3  ;;  %v1718_v0 = vadd.f32 %v1717_v45, %v4187_v39  ;;  %2767 = vmatpush.bf16.xpose.msra.mxu2 %v2631_v55  ;;  %v1886_v58 = vpop.f32.mrf.mxu1  ;;  %v2394_v55 = vmax.f32 %v1877_v34, 0.0  ;;  %v1872_v30 = vadd.f32 %v4236_v15, %v1703_v16 }
 0x336   :  { %v2399_v45 = vmax.f32 %v2217_v54, 0.0  ;;  %v2212_v15 = vadd.f32 %v4248_v57, %v2043_v24  ;;  %v3671_v57 = vld [vmem:[#allocation3 + $0x88] sm:$0xff] }
 0x337   :  { %v2222_v38 = vadd.f32 %v2221_v9, %v2053_v20  ;;  %v1887_v56 = vadd.f32 %v1886_v58, %v1718_v0  ;;  %1756 = vmatmul.bf16.gmra.mxu0 %v3669_v35  ;;  %v1874_v20 = vadd.f32 %v4244_v3, %v1705_v51  ;;  %v2627_v62 = vpack.c.bf16 %v2398_v2, %v2394_v55 }
 0x338   :  { %1925 = vmatmul.bf16.gmra.mxu1 %v3670_v22  ;;  %v2395_v58 = vmax.f32 %v2215_v13, 0.0  ;;  %v2386_v11 = vmax.f32 %v1872_v30, 0.0  ;;  %v3672_v13 = vld [vmem:[#allocation6 + $0x88] sm:$0xff] }
 0x339   :  { %v2407_v19 = vmax.f32 %v2222_v38, 0.0  ;;  %2094 = vmatmul.bf16.gmra.mxu2 %v3669_v35  ;;  %v2390_v3 = vmax.f32 %v1874_v20, 0.0  ;;  %v2410_v38 = vmax.f32 %v1887_v56, 0.0  ;;  %v2391_v56 = vmax.f32 %v2212_v15, 0.0 }
 0x33a   :  { %2263 = vmatmul.bf16.gmra.mxu3 %v3670_v22  ;;  %v2628_v2 = vpack.c.bf16 %v2399_v45, %v2395_v58  ;;  %v2387_v20 = vmax.f32 %v2210_v46, 0.0 }
 0x33b   :  { %v2632_v9 = vpack.c.bf16 %v2407_v19, %v2403_v33  ;;  %v2623_v48 = vpack.c.bf16 %v2390_v3, %v2386_v11 }
 0x33c   :  { %v2055_v28 = vpop.f32.mrf.mxu2  ;;  %v1719_v50 = vpop.f32.mrf.mxu0  ;;  %v2624_v40 = vpack.c.bf16 %v2391_v56, %v2387_v20 }
 0x33d   :  { %v2056_v53 = vadd.f32 %v2055_v28, %v4193_v59  ;;  %2780 = vmatpush.bf16.xpose.msra.mxu3 %v2632_v9  ;;  %v2224_v36 = vpop.f32.mrf.mxu3  ;;  %v1720_v37 = vadd.f32 %v1719_v50, %v4187_v39  ;;  %2768 = vmatpush.bf16.xpose.msra.mxu2 %v2627_v62  ;;  %v1888_v8 = vpop.f32.mrf.mxu1 }
 0x33f   :  { %v2225_v34 = vadd.f32 %v2224_v36, %v2056_v53  ;;  %v1889_v0 = vadd.f32 %v1888_v8, %v1720_v37 }
 0x341   :  { %v2414_v51 = vmax.f32 %v1889_v0, 0.0  ;;  %v2411_v28 = vmax.f32 %v2225_v34, 0.0 }
 0x343   :  { %v4271_v33 = vpack.c.bf16 %v2414_v51, %v2410_v38 }
 0x344   :  { %v2057_v35 = vpop.f32.mrf.mxu2  ;;  %v1722_v22 = vpop.f32.mrf.mxu0 }
 0x345   :  { %v2058_v19 = vadd.f32 %v2057_v35, %v4193_v59  ;;  %2781 = vmatpush.bf16.xpose.msra.mxu3 %v2628_v2  ;;  %v2226_v16 = vpop.f32.mrf.mxu3  ;;  %v1723_v14 = vadd.f32 %v1722_v22, %v4187_v39  ;;  %2769 = vmatpush.bf16.xpose.msra.mxu2 %v2623_v48  ;;  %v1891_v55 = vpop.f32.mrf.mxu1  ;;  %v3673_v48 = vld [vmem:[#allocation3 + $0x90] sm:$0xff] }
 0x346   :  { %v3674_v22 = vld [vmem:[#allocation6 + $0x90] sm:$0xff] }
 0x347   :  { %v2227_v54 = vadd.f32 %v2226_v16, %v2058_v19  ;;  %v1892_v9 = vadd.f32 %v1891_v55, %v1723_v14  ;;  %1761 = vmatmul.bf16.gmra.mxu0 %v3671_v57 }
 0x348   :  { %1930 = vmatmul.bf16.gmra.mxu1 %v3672_v13 }
 0x349   :  { %v2415_v62 = vmax.f32 %v2227_v54, 0.0  ;;  %2099 = vmatmul.bf16.gmra.mxu2 %v3671_v57  ;;  %v2418_v3 = vmax.f32 %v1892_v9, 0.0 }
 0x34a   :  { %2268 = vmatmul.bf16.gmra.mxu3 %v3672_v13 }
 0x34b   :  { %v4276_v53 = vpack.c.bf16 %v2415_v62, %v2411_v28 }
 0x34c   :  { %v2060_v50 = vpop.f32.mrf.mxu2  ;;  %v1724_v30 = vpop.f32.mrf.mxu0 }
 0x34d   :  { %v2061_v36 = vadd.f32 %v2060_v50, %v4193_v59  ;;  %2782 = vmatpush.bf16.xpose.msra.mxu3 %v2624_v40  ;;  %v2229_v37 = vpop.f32.mrf.mxu3  ;;  %v1725_v8 = vadd.f32 %v1724_v30, %v4187_v39  ;;  %2770 = vmatpush.bf16.xpose.msra.mxu2 %v4231_v4  ;;  %v1893_v24 = vpop.f32.mrf.mxu1 }
 0x34f   :  { %v2230_v45 = vadd.f32 %v2229_v37, %v2061_v36  ;;  %v1894_v34 = vadd.f32 %v1893_v24, %v1725_v8  ;;  %v3675_v8 = vld [vmem:[#allocation3 + $0x98] sm:$0xff] }
 0x351   :  { %v2422_v0 = vmax.f32 %v1894_v34, 0.0  ;;  %v2419_v46 = vmax.f32 %v2230_v45, 0.0  ;;  %v3676_v34 = vld [vmem:[#allocation6 + $0x98] sm:$0xff] }
 0x353   :  { %v4281_v58 = vpack.c.bf16 %v2422_v0, %v2418_v3 }
 0x354   :  { %v2062_v12 = vpop.f32.mrf.mxu2  ;;  %v1727_v38 = vpop.f32.mrf.mxu0 }
 0x355   :  { %v2063_v11 = vadd.f32 %v2062_v12, %v4193_v59  ;;  %2783 = vmatpush.bf16.xpose.msra.mxu3 %v4238_v7  ;;  %v2231_v51 = vpop.f32.mrf.mxu3  ;;  %v1728_v15 = vadd.f32 %v1727_v38, %v4187_v39  ;;  %2771 = vmatpush.bf16.xpose.msra.mxu2 %v4223_v26  ;;  %v1896_v2 = vpop.f32.mrf.mxu1 }
 0x357   :  { %v2232_v4 = vadd.f32 %v2231_v51, %v2063_v11  ;;  %v1897_v35 = vadd.f32 %v1896_v2, %v1728_v15  ;;  %1766 = vmatmul.bf16.gmra.mxu0 %v3673_v48 }
 0x358   :  { %1935 = vmatmul.bf16.gmra.mxu1 %v3674_v22 }
 0x359   :  { %v2423_v19 = vmax.f32 %v2232_v4, 0.0  ;;  %2104 = vmatmul.bf16.gmra.mxu2 %v3673_v48  ;;  %v2426_v20 = vmax.f32 %v1897_v35, 0.0 }
 0x35a   :  { %2273 = vmatmul.bf16.gmra.mxu3 %v3674_v22 }
 0x35b   :  { %v4287_v16 = vpack.c.bf16 %v2423_v19, %v2419_v46 }
 0x35c   :  { %v2065_v7 = vpop.f32.mrf.mxu2  ;;  %v1729_v55 = vpop.f32.mrf.mxu0 }
 0x35d   :  { %v2066_v14 = vadd.f32 %v2065_v7, %v4193_v59  ;;  %2784 = vmatpush.bf16.xpose.msra.mxu3 %v4227_v23  ;;  %v2234_v26 = vpop.f32.mrf.mxu3  ;;  %v1730_v56 = vadd.f32 %v1729_v55, %v4187_v39  ;;  %2772 = vmatpush.bf16.xpose.msra.mxu2 %v4215_v6  ;;  %v1898_v54 = vpop.f32.mrf.mxu1 }
 0x35f   :  { %v2235_v9 = vadd.f32 %v2234_v26, %v2066_v14  ;;  %v1899_v57 = vadd.f32 %v1898_v54, %v1730_v56  ;;  %v3678_v54 = vld [vmem:[#allocation6 + $0xa0] sm:$0xff] }
 0x361   :  { %v2430_v28 = vmax.f32 %v1899_v57, 0.0  ;;  %v2427_v24 = vmax.f32 %v2235_v9, 0.0 }
 0x363   :  { %v4293_v13 = vpack.c.bf16 %v2430_v28, %v2426_v20 }
 0x364   :  { %v2067_v62 = vpop.f32.mrf.mxu2  ;;  %v1732_v50 = vpop.f32.mrf.mxu0 }
 0x365   :  { %v2068_v40 = vadd.f32 %v2067_v62, %v4193_v59  ;;  %2785 = vmatpush.bf16.xpose.msra.mxu3 %v4219_v17  ;;  %v2236_v23 = vpop.f32.mrf.mxu3  ;;  %v1733_v36 = vadd.f32 %v1732_v50, %v4187_v39  ;;  %2773 = vmatpush.bf16.xpose.msra.mxu2 %v4207_v60  ;;  %v1901_v30 = vpop.f32.mrf.mxu1 }
 0x367   :  { %v2237_v6 = vadd.f32 %v2236_v23, %v2068_v40  ;;  %v1902_v37 = vadd.f32 %v1901_v30, %v1733_v36  ;;  %1771 = vmatmul.bf16.gmra.mxu0 %v3675_v8 }
 0x368   :  { %1940 = vmatmul.bf16.gmra.mxu1 %v3676_v34 }
 0x369   :  { %v2431_v45 = vmax.f32 %v2237_v6, 0.0  ;;  %2109 = vmatmul.bf16.gmra.mxu2 %v3675_v8  ;;  %v2434_v2 = vmax.f32 %v1902_v37, 0.0 }
 0x36a   :  { %2278 = vmatmul.bf16.gmra.mxu3 %v3676_v34 }
 0x36b   :  { %v4299_v3 = vpack.c.bf16 %v2431_v45, %v2427_v24 }
 0x36c   :  { %v2070_v17 = vpop.f32.mrf.mxu2  ;;  %v1734_v12 = vpop.f32.mrf.mxu0 }
 0x36d   :  { %v2071_v0 = vadd.f32 %v2070_v17, %v4193_v59  ;;  %2786 = vmatpush.bf16.xpose.msra.mxu3 %v4211_v42  ;;  %v2239_v60 = vpop.f32.mrf.mxu3  ;;  %v1735_v11 = vadd.f32 %v1734_v12, %v4187_v39  ;;  %2774 = vmatpush.bf16.xpose.msra.mxu2 %v4199_v29  ;;  %v1903_v38 = vpop.f32.mrf.mxu1  ;;  %v3677_v29 = vld [vmem:[#allocation3 + $0xa0] sm:$0xff] }
 0x36f   :  { %v2240_v51 = vadd.f32 %v2239_v60, %v2071_v0  ;;  %v1904_v15 = vadd.f32 %v1903_v38, %v1735_v11  ;;  %v3679_v0 = vld [vmem:[#allocation3 + $0xa8] sm:$0xff] }
 0x370   :  { %v3680_v11 = vld [vmem:[#allocation6 + $0xa8] sm:$0xff] }
 0x371   :  { %v2438_v4 = vmax.f32 %v1904_v15, 0.0  ;;  %v2435_v26 = vmax.f32 %v2240_v51, 0.0 }
 0x373   :  { %v4305_v48 = vpack.c.bf16 %v2438_v4, %v2434_v2 }
 0x374   :  { %v2072_v35 = vpop.f32.mrf.mxu2  ;;  %v1737_v19 = vpop.f32.mrf.mxu0 }
 0x375   :  { %v2073_v46 = vadd.f32 %v2072_v35, %v4193_v59  ;;  %2787 = vmatpush.bf16.xpose.msra.mxu3 %v4203_v10  ;;  %v2241_v42 = vpop.f32.mrf.mxu3  ;;  %v1738_v22 = vadd.f32 %v1737_v19, %v4187_v39  ;;  %v1906_v7 = vpop.f32.mrf.mxu1 }
 0x377   :  { %v2242_v14 = vadd.f32 %v2241_v42, %v2073_v46  ;;  %v1907_v55 = vadd.f32 %v1906_v7, %v1738_v22  ;;  %1776 = vmatmul.bf16.gmra.mxu0 %v3677_v29  ;;  %v3681_v22 = vld [vmem:[#allocation3 + $0xb0] sm:$0xff] }
 0x378   :  { %1945 = vmatmul.bf16.gmra.mxu1 %v3678_v54  ;;  %v3682_v7 = vld [vmem:[#allocation6 + $0xb0] sm:$0xff] }
 0x379   :  { %v2439_v56 = vmax.f32 %v2242_v14, 0.0  ;;  %2114 = vmatmul.bf16.gmra.mxu2 %v3677_v29  ;;  %v2442_v36 = vmax.f32 %v1907_v55, 0.0 }
 0x37a   :  { %2283 = vmatmul.bf16.gmra.mxu3 %v3678_v54 }
 0x37b   :  { %v4310_v9 = vpack.c.bf16 %v2439_v56, %v2435_v26 }
 0x37c   :  { %v2075_v57 = vpop.f32.mrf.mxu2  ;;  %v1739_v20 = vpop.f32.mrf.mxu0 }
 0x37d   :  { %v2076_v10 = vadd.f32 %v2075_v57, %v4193_v59  ;;  %v2244_v28 = vpop.f32.mrf.mxu3  ;;  %v1740_v62 = vadd.f32 %v1739_v20, %v4187_v39  ;;  %v1908_v40 = vpop.f32.mrf.mxu1  ;;  %v3683_v20 = vld [vmem:[#allocation3 + $0xb8] sm:$0xff] }
 0x37f   :  { %v2245_v50 = vadd.f32 %v2244_v28, %v2076_v10  ;;  %v1909_v23 = vadd.f32 %v1908_v40, %v1740_v62  ;;  %v3684_v28 = vld [vmem:[#allocation6 + $0xb8] sm:$0xff] }
 0x381   :  { %v2446_v30 = vmax.f32 %v1909_v23, 0.0  ;;  %v2443_v12 = vmax.f32 %v2245_v50, 0.0 }
 0x383   :  { %v4314_v37 = vpack.c.bf16 %v2446_v30, %v2442_v36 }
 0x384   :  { %v2077_v6 = vpop.f32.mrf.mxu2  ;;  %v4317_v24 = vpop.f32.mrf.mxu0 }
 0x385   :  { %v2078_v8 = vadd.f32 %v2077_v6, %v4193_v59  ;;  %v2246_v45 = vpop.f32.mrf.mxu3  ;;  %v4319_v34 = vpop.f32.mrf.mxu1 }
 0x387   :  { %v2247_v17 = vadd.f32 %v2246_v45, %v2078_v8  ;;  %1781 = vmatmul.bf16.gmra.mxu0 %v3679_v0 }
 0x388   :  { %1950 = vmatmul.bf16.gmra.mxu1 %v3680_v11 }
 0x389   :  { %v2447_v60 = vmax.f32 %v2247_v17, 0.0  ;;  %2119 = vmatmul.bf16.gmra.mxu2 %v3679_v0 }
 0x38a   :  { %2288 = vmatmul.bf16.gmra.mxu3 %v3680_v11 }
 0x38b   :  { %v4321_v38 = vpack.c.bf16 %v2447_v60, %v2443_v12 }
 0x38c   :  { %v4323_v51 = vpop.f32.mrf.mxu2  ;;  %v1744_v15 = vpop.f32.mrf.mxu0 }
 0x38d   :  { %v4325_v2 = vpop.f32.mrf.mxu3  ;;  %v4327_v4 = vpop.f32.mrf.mxu1 }
 0x394   :  { %v4329_v35 = vpop.f32.mrf.mxu2  ;;  %v1747_v46 = vpop.f32.mrf.mxu0 }
 0x395   :  { %v4331_v19 = vpop.f32.mrf.mxu3  ;;  %v1916_v42 = vpop.f32.mrf.mxu1  ;;  %v1748_v0 = vadd.f32 %v1747_v46, %v4187_v39  ;;  %v1745_v46 = vadd.f32 %v1744_v15, %v4187_v39 }
 0x397   :  { %1786 = vmatmul.bf16.gmra.mxu0 %v3681_v22  ;;  %v1914_v15 = vadd.f32 %v4327_v4, %v1745_v46 }
 0x398   :  { %1955 = vmatmul.bf16.gmra.mxu1 %v3682_v7 }
 0x399   :  { %2124 = vmatmul.bf16.gmra.mxu2 %v3681_v22  ;;  %v2454_v4 = vmax.f32 %v1914_v15, 0.0 }
 0x39a   :  { %2293 = vmatmul.bf16.gmra.mxu3 %v3682_v7 }
 0x39c   :  { %v2085_v14 = vpop.f32.mrf.mxu2  ;;  %v1749_v55 = vpop.f32.mrf.mxu0 }
 0x39d   :  { %v2254_v29 = vpop.f32.mrf.mxu3  ;;  %v1918_v26 = vpop.f32.mrf.mxu1  ;;  %v1750_v8 = vadd.f32 %v1749_v55, %v4187_v39 }
 0x39f   :  { %v1919_v11 = vadd.f32 %v1918_v26, %v1750_v8  ;;  %v3685_v26 = vld [vmem:[#allocation3 + $0xc0] sm:$0xff] }
 0x3a4   :  { %v2087_v56 = vpop.f32.mrf.mxu2  ;;  %v1752_v54 = vpop.f32.mrf.mxu0 }
 0x3a5   :  { %v2256_v57 = vpop.f32.mrf.mxu3  ;;  %v1921_v10 = vpop.f32.mrf.mxu1  ;;  %v1753_v62 = vadd.f32 %v1752_v54, %v4187_v39 }
 0x3a7   :  { %1791 = vmatmul.bf16.gmra.mxu0 %v3683_v20  ;;  %v1922_v36 = vadd.f32 %v1921_v10, %v1753_v62  ;;  %v1917_v62 = vadd.f32 %v1916_v42, %v1748_v0  ;;  %v1743_v42 = vadd.f32 %v4317_v24, %v4187_v39 }
 0x3a8   :  { %1960 = vmatmul.bf16.gmra.mxu1 %v3684_v28 }
 0x3a9   :  { %2129 = vmatmul.bf16.gmra.mxu2 %v3683_v20  ;;  %v2466_v12 = vmax.f32 %v1922_v36, 0.0  ;;  %v2462_v36 = vmax.f32 %v1919_v11, 0.0  ;;  %v2458_v0 = vmax.f32 %v1917_v62, 0.0 }
 0x3aa   :  { %2298 = vmatmul.bf16.gmra.mxu3 %v3684_v28 }
 0x3ab   :  { %v2659_v11 = vpack.c.bf16 %v2462_v36, %v2458_v0 }
 0x3ac   :  { %v2090_v40 = vpop.f32.mrf.mxu2  ;;  %v1754_v50 = vpop.f32.mrf.mxu0 }
 0x3ad   :  { %v2259_v23 = vpop.f32.mrf.mxu3  ;;  %v1755_v30 = vadd.f32 %v1754_v50, %v4187_v39  ;;  %v1923_v6 = vpop.f32.mrf.mxu1  ;;  %v2091_v17 = vadd.f32 %v2090_v40, %v4193_v59 }
 0x3af   :  { %v1924_v45 = vadd.f32 %v1923_v6, %v1755_v30  ;;  %v2260_v54 = vadd.f32 %v2259_v23, %v2091_v17  ;;  %v2088_v30 = vadd.f32 %v2087_v56, %v4193_v59  ;;  %v2086_v23 = vadd.f32 %v2085_v14, %v4193_v59  ;;  %v3686_v17 = vld [vmem:[#allocation6 + $0xc0] sm:$0xff] }
 0x3b1   :  { %v2470_v60 = vmax.f32 %v1924_v45, 0.0  ;;  %v2467_v8 = vmax.f32 %v2260_v54, 0.0  ;;  %v2257_v56 = vadd.f32 %v2256_v57, %v2088_v30  ;;  %v2083_v57 = vadd.f32 %v4329_v35, %v4193_v59 }
 0x3b3   :  { %v2663_v22 = vpack.c.bf16 %v2470_v60, %v2466_v12 }
 0x3b4   :  { %v2092_v7 = vpop.f32.mrf.mxu2  ;;  %v1757_v28 = vpop.f32.mrf.mxu0 }
 0x3b5   :  { %v2093_v20 = vadd.f32 %v2092_v7, %v4193_v59  ;;  %v2261_v10 = vpop.f32.mrf.mxu3  ;;  %v1758_v50 = vadd.f32 %v1757_v28, %v4187_v39  ;;  %2819 = vmatpush.bf16.xpose.msrb.mxu2 %v2663_v22  ;;  %v1926_v55 = vpop.f32.mrf.mxu1  ;;  %v2255_v22 = vadd.f32 %v2254_v29, %v2086_v23  ;;  %v2081_v29 = vadd.f32 %v4323_v51, %v4193_v59 }
 0x3b7   :  { %v2262_v40 = vadd.f32 %v2261_v10, %v2093_v20  ;;  %v1927_v6 = vadd.f32 %v1926_v55, %v1758_v50  ;;  %1796 = vmatmul.bf16.gmra.mxu0 %v3685_v26  ;;  %v1912_v20 = vadd.f32 %v4319_v34, %v1743_v42  ;;  %v2463_v10 = vmax.f32 %v2257_v56, 0.0 }
 0x3b8   :  { %1965 = vmatmul.bf16.gmra.mxu1 %v3686_v17  ;;  %v2459_v55 = vmax.f32 %v2255_v22, 0.0  ;;  %v2252_v34 = vadd.f32 %v4331_v19, %v2083_v57  ;;  %v2250_v35 = vadd.f32 %v4325_v2, %v2081_v29  ;;  %v3687_v19 = vld [vmem:[#allocation3 + $0xc8] sm:$0xff] }
 0x3b9   :  { %v2471_v45 = vmax.f32 %v2262_v40, 0.0  ;;  %2134 = vmatmul.bf16.gmra.mxu2 %v3685_v26  ;;  %v2450_v30 = vmax.f32 %v1912_v20, 0.0  ;;  %v2474_v40 = vmax.f32 %v1927_v6, 0.0  ;;  %v3688_v22 = vld [vmem:[#allocation6 + $0xc8] sm:$0xff] }
 0x3ba   :  { %2303 = vmatmul.bf16.gmra.mxu3 %v3686_v17  ;;  %v2660_v36 = vpack.c.bf16 %v2463_v10, %v2459_v55  ;;  %v2455_v6 = vmax.f32 %v2252_v34, 0.0  ;;  %v2451_v15 = vmax.f32 %v2250_v35, 0.0 }
 0x3bb   :  { %v2664_v12 = vpack.c.bf16 %v2471_v45, %v2467_v8  ;;  %v2655_v23 = vpack.c.bf16 %v2454_v4, %v2450_v30 }
 0x3bc   :  { %v2095_v60 = vpop.f32.mrf.mxu2  ;;  %v1759_v14 = vpop.f32.mrf.mxu0  ;;  %v2656_v2 = vpack.c.bf16 %v2455_v6, %v2451_v15 }
 0x3bd   :  { %v2096_v7 = vadd.f32 %v2095_v60, %v4193_v59  ;;  %2832 = vmatpush.bf16.xpose.msrb.mxu3 %v2664_v12  ;;  %v2264_v54 = vpop.f32.mrf.mxu3  ;;  %v1760_v28 = vadd.f32 %v1759_v14, %v4187_v39  ;;  %2820 = vmatpush.bf16.xpose.msrb.mxu2 %v2659_v11  ;;  %v1928_v24 = vpop.f32.mrf.mxu1 }
 0x3bf   :  { %v2265_v62 = vadd.f32 %v2264_v54, %v2096_v7  ;;  %v1929_v50 = vadd.f32 %v1928_v24, %v1760_v28 }
 0x3c1   :  { %v2478_v46 = vmax.f32 %v1929_v50, 0.0  ;;  %v2475_v60 = vmax.f32 %v2265_v62, 0.0 }
 0x3c3   :  { %v4354_v8 = vpack.c.bf16 %v2478_v46, %v2474_v40 }
 0x3c4   :  { %v2097_v26 = vpop.f32.mrf.mxu2  ;;  %v1762_v17 = vpop.f32.mrf.mxu0 }
 0x3c5   :  { %v2098_v45 = vadd.f32 %v2097_v26, %v4193_v59  ;;  %2833 = vmatpush.bf16.xpose.msrb.mxu3 %v2660_v36  ;;  %v2266_v42 = vpop.f32.mrf.mxu3  ;;  %v1763_v51 = vadd.f32 %v1762_v17, %v4187_v39  ;;  %2821 = vmatpush.bf16.xpose.msrb.mxu2 %v2655_v23  ;;  %v1931_v0 = vpop.f32.mrf.mxu1  ;;  %v3689_v23 = vld [vmem:[#allocation3 + $0xd0] sm:$0xff] }
 0x3c6   :  { %v3690_v17 = vld [vmem:[#allocation6 + $0xd0] sm:$0xff] }
 0x3c7   :  { %v2267_v56 = vadd.f32 %v2266_v42, %v2098_v45  ;;  %v1932_v12 = vadd.f32 %v1931_v0, %v1763_v51  ;;  %1801 = vmatmul.bf16.gmra.mxu0 %v3687_v19 }
 0x3c8   :  { %1970 = vmatmul.bf16.gmra.mxu1 %v3688_v22 }
 0x3c9   :  { %v2479_v11 = vmax.f32 %v2267_v56, 0.0  ;;  %2139 = vmatmul.bf16.gmra.mxu2 %v3687_v19  ;;  %v2482_v4 = vmax.f32 %v1932_v12, 0.0 }
 0x3ca   :  { %2308 = vmatmul.bf16.gmra.mxu3 %v3688_v22 }
 0x3cb   :  { %v4359_v7 = vpack.c.bf16 %v2479_v11, %v2475_v60 }
 0x3cc   :  { %v2100_v14 = vpop.f32.mrf.mxu2  ;;  %v1764_v20 = vpop.f32.mrf.mxu0 }
 0x3cd   :  { %4607 = vst [vmem:[#allocation32_spill] sm:$0xff] %v4359_v7  ;;  %v2101_v54 = vadd.f32 %v2100_v14, %v4193_v59  ;;  %2834 = vmatpush.bf16.xpose.msrb.mxu3 %v2656_v2  ;;  %v2269_v28 = vpop.f32.mrf.mxu3  ;;  %v1765_v24 = vadd.f32 %v1764_v20, %v4187_v39  ;;  %2822 = vmatpush.bf16.xpose.msrb.mxu2 %v4314_v37  ;;  %v1933_v57 = vpop.f32.mrf.mxu1 }
 0x3cf   :  { %v2270_v10 = vadd.f32 %v2269_v28, %v2101_v54  ;;  %v1934_v62 = vadd.f32 %v1933_v57, %v1765_v24  ;;  %v3691_v24 = vld [vmem:[#allocation3 + $0xd8] sm:$0xff] }
 0x3d1   :  { %v2486_v50 = vmax.f32 %v1934_v62, 0.0  ;;  %v2483_v35 = vmax.f32 %v2270_v10, 0.0  ;;  %v3692_v62 = vld [vmem:[#allocation6 + $0xd8] sm:$0xff] }
 0x3d3   :  { %v4364_v55 = vpack.c.bf16 %v2486_v50, %v2482_v4 }
 0x3d4   :  { %v2102_v29 = vpop.f32.mrf.mxu2  ;;  %v1767_v40 = vpop.f32.mrf.mxu0 }
 0x3d5   :  { %v2103_v30 = vadd.f32 %v2102_v29, %v4193_v59  ;;  %2835 = vmatpush.bf16.xpose.msrb.mxu3 %v4321_v38  ;;  %v2271_v46 = vpop.f32.mrf.mxu3  ;;  %v1768_v34 = vadd.f32 %v1767_v40, %v4187_v39  ;;  %2823 = vmatpush.bf16.xpose.msrb.mxu2 %v4305_v48  ;;  %v1936_v36 = vpop.f32.mrf.mxu1 }
 0x3d7   :  { %v2272_v37 = vadd.f32 %v2271_v46, %v2103_v30  ;;  %v1937_v26 = vadd.f32 %v1936_v36, %v1768_v34  ;;  %1806 = vmatmul.bf16.gmra.mxu0 %v3689_v23 }
 0x3d8   :  { %1975 = vmatmul.bf16.gmra.mxu1 %v3690_v17 }
 0x3d9   :  { %v2487_v45 = vmax.f32 %v2272_v37, 0.0  ;;  %2144 = vmatmul.bf16.gmra.mxu2 %v3689_v23  ;;  %v2490_v15 = vmax.f32 %v1937_v26, 0.0 }
 0x3da   :  { %2313 = vmatmul.bf16.gmra.mxu3 %v3690_v17 }
 0x3db   :  { %v4370_v42 = vpack.c.bf16 %v2487_v45, %v2483_v35 }
 0x3dc   :  { %v2105_v38 = vpop.f32.mrf.mxu2  ;;  %v1769_v0 = vpop.f32.mrf.mxu0 }
 0x3dd   :  { %v2106_v51 = vadd.f32 %v2105_v38, %v4193_v59  ;;  %2836 = vmatpush.bf16.xpose.msrb.mxu3 %v4310_v9  ;;  %v2274_v48 = vpop.f32.mrf.mxu3  ;;  %v1770_v6 = vadd.f32 %v1769_v0, %v4187_v39  ;;  %2824 = vmatpush.bf16.xpose.msrb.mxu2 %v4293_v13  ;;  %v1938_v56 = vpop.f32.mrf.mxu1 }
 0x3df   :  { %v2275_v12 = vadd.f32 %v2274_v48, %v2106_v51  ;;  %v1939_v19 = vadd.f32 %v1938_v56, %v1770_v6  ;;  %v3694_v56 = vld [vmem:[#allocation6 + $0xe0] sm:$0xff] }
 0x3e1   :  { %v2494_v60 = vmax.f32 %v1939_v19, 0.0  ;;  %v2491_v57 = vmax.f32 %v2275_v12, 0.0 }
 0x3e3   :  { %v4376_v22 = vpack.c.bf16 %v2494_v60, %v2490_v15 }
 0x3e4   :  { %v2107_v11 = vpop.f32.mrf.mxu2  ;;  %v1772_v14 = vpop.f32.mrf.mxu0 }
 0x3e5   :  { %v2108_v2 = vadd.f32 %v2107_v11, %v4193_v59  ;;  %2837 = vmatpush.bf16.xpose.msrb.mxu3 %v4299_v3  ;;  %v2276_v9 = vpop.f32.mrf.mxu3  ;;  %v1773_v54 = vadd.f32 %v1772_v14, %v4187_v39  ;;  %2825 = vmatpush.bf16.xpose.msrb.mxu2 %v4281_v58  ;;  %v1941_v20 = vpop.f32.mrf.mxu1 }
 0x3e7   :  { %v2277_v13 = vadd.f32 %v2276_v9, %v2108_v2  ;;  %v1942_v28 = vadd.f32 %v1941_v20, %v1773_v54  ;;  %1811 = vmatmul.bf16.gmra.mxu0 %v3691_v24 }
 0x3e8   :  { %1980 = vmatmul.bf16.gmra.mxu1 %v3692_v62 }
 0x3e9   :  { %v2495_v10 = vmax.f32 %v2277_v13, 0.0  ;;  %2149 = vmatmul.bf16.gmra.mxu2 %v3691_v24  ;;  %v2498_v36 = vmax.f32 %v1942_v28, 0.0 }
 0x3ea   :  { %2318 = vmatmul.bf16.gmra.mxu3 %v3692_v62 }
 0x3eb   :  { %v4382_v4 = vpack.c.bf16 %v2495_v10, %v2491_v57 }
 0x3ec   :  { %v2110_v3 = vpop.f32.mrf.mxu2  ;;  %v1774_v29 = vpop.f32.mrf.mxu0 }
 0x3ed   :  { %v2111_v50 = vadd.f32 %v2110_v3, %v4193_v59  ;;  %2838 = vmatpush.bf16.xpose.msrb.mxu3 %v4287_v16  ;;  %v2279_v58 = vpop.f32.mrf.mxu3  ;;  %v1775_v30 = vadd.f32 %v1774_v29, %v4187_v39  ;;  %2826 = vmatpush.bf16.xpose.msrb.mxu2 %v4271_v33  ;;  %v1943_v40 = vpop.f32.mrf.mxu1  ;;  %v3693_v33 = vld [vmem:[#allocation3 + $0xe0] sm:$0xff] }
 0x3ef   :  { %v2280_v46 = vadd.f32 %v2279_v58, %v2111_v50  ;;  %v1944_v34 = vadd.f32 %v1943_v40, %v1775_v30  ;;  %v3695_v50 = vld [vmem:[#allocation3 + $0xe8] sm:$0xff] }
 0x3f0   :  { %v3696_v30 = vld [vmem:[#allocation6 + $0xe8] sm:$0xff] }
 0x3f1   :  { %v2502_v37 = vmax.f32 %v1944_v34, 0.0  ;;  %v2499_v48 = vmax.f32 %v2280_v46, 0.0 }
 0x3f3   :  { %v4388_v23 = vpack.c.bf16 %v2502_v37, %v2498_v36 }
 0x3f4   :  { %v2112_v26 = vpop.f32.mrf.mxu2  ;;  %v1777_v45 = vpop.f32.mrf.mxu0 }
 0x3f5   :  { %v2113_v35 = vadd.f32 %v2112_v26, %v4193_v59  ;;  %2839 = vmatpush.bf16.xpose.msrb.mxu3 %v4276_v53  ;;  %v2281_v16 = vpop.f32.mrf.mxu3  ;;  %v1778_v17 = vadd.f32 %v1777_v45, %v4187_v39  ;;  %v1946_v38 = vpop.f32.mrf.mxu1  ;;  %v2600_v26 = vld [vmem:[#allocation9] sm:$0xf] }
 0x3f6   :  { %2732 = vst [vmem:[#allocation1] ss:$9 sm:$0xff] %v2600_v26 }
 0x3f7   :  { %v2282_v51 = vadd.f32 %v2281_v16, %v2113_v35  ;;  %v1947_v0 = vadd.f32 %v1946_v38, %v1778_v17  ;;  %1816 = vmatmul.bf16.gmra.mxu0 %v3693_v33  ;;  %v3697_v38 = vld [vmem:[#allocation3 + $0xf0] sm:$0xff] }
 0x3f8   :  { %1985 = vmatmul.bf16.gmra.mxu1 %v3694_v56 }
 0x3f9   :  { %v2503_v6 = vmax.f32 %v2282_v51, 0.0  ;;  %2154 = vmatmul.bf16.gmra.mxu2 %v3693_v33  ;;  %v2506_v54 = vmax.f32 %v1947_v0, 0.0  ;;  %v3698_v51 = vld [vmem:[#allocation6 + $0xf0] sm:$0xff] }
 0x3fa   :  { %2323 = vmatmul.bf16.gmra.mxu3 %v3694_v56 }
 0x3fb   :  { %v4393_v12 = vpack.c.bf16 %v2503_v6, %v2499_v48 }
 0x3fc   :  { %v2115_v19 = vpop.f32.mrf.mxu2  ;;  %v1779_v15 = vpop.f32.mrf.mxu0 }
 0x3fd   :  { %v2116_v53 = vadd.f32 %v2115_v19, %v4193_v59  ;;  %v2284_v60 = vpop.f32.mrf.mxu3  ;;  %v1780_v11 = vadd.f32 %v1779_v15, %v4187_v39  ;;  %v1948_v2 = vpop.f32.mrf.mxu1  ;;  %v4426_v7 = vld [vmem:[#allocation1 + $0x9] sm:$0xff] }
 0x3ff   :  { %v2285_v14 = vadd.f32 %v2284_v60, %v2116_v53  ;;  %v1949_v9 = vadd.f32 %v1948_v2, %v1780_v11  ;;  %v3699_v60 = vld [vmem:[#allocation3 + $0xf8] sm:$0xff] }
 0x400   :  { %v3700_v11 = vld [vmem:[#allocation6 + $0xf8] sm:$0xff] }
 0x401   :  { %v2510_v20 = vmax.f32 %v1949_v9, 0.0  ;;  %v2507_v29 = vmax.f32 %v2285_v14, 0.0 }
 0x403   :  { %v4397_v28 = vpack.c.bf16 %v2510_v20, %v2506_v54 }
 0x404   :  { %v2117_v13 = vpop.f32.mrf.mxu2  ;;  %v4400_v57 = vpop.f32.mrf.mxu0 }
 0x405   :  { %v2118_v24 = vadd.f32 %v2117_v13, %v4193_v59  ;;  %v2286_v10 = vpop.f32.mrf.mxu3  ;;  %v4402_v62 = vpop.f32.mrf.mxu1 }
 0x407   :  { %v2287_v3 = vadd.f32 %v2286_v10, %v2118_v24  ;;  %1821 = vmatmul.bf16.gmra.mxu0 %v3695_v50 }
 0x408   :  { %1990 = vmatmul.bf16.gmra.mxu1 %v3696_v30 }
 0x409   :  { %v2511_v58 = vmax.f32 %v2287_v3, 0.0  ;;  %2159 = vmatmul.bf16.gmra.mxu2 %v3695_v50 }
 0x40a   :  { %2328 = vmatmul.bf16.gmra.mxu3 %v3696_v30 }
 0x40b   :  { %v4404_v40 = vpack.c.bf16 %v2511_v58, %v2507_v29 }
 0x40c   :  { %v4406_v46 = vpop.f32.mrf.mxu2  ;;  %v4408_v34 = vpop.f32.mrf.mxu0 }
 0x40d   :  { %v4410_v36 = vpop.f32.mrf.mxu3  ;;  %v4412_v37 = vpop.f32.mrf.mxu1 }
 0x414   :  { %v4414_v35 = vpop.f32.mrf.mxu2  ;;  %v1787_v45 = vpop.f32.mrf.mxu0 }
 0x415   :  { %v4416_v16 = vpop.f32.mrf.mxu3  ;;  %v1956_v17 = vpop.f32.mrf.mxu1 }
 0x417   :  { %1826 = vmatmul.bf16.gmra.mxu0 %v3697_v38 }
 0x418   :  { %1995 = vmatmul.bf16.gmra.mxu1 %v3698_v51 }
 0x419   :  { %2164 = vmatmul.bf16.gmra.mxu2 %v3697_v38 }
 0x41a   :  { %2333 = vmatmul.bf16.gmra.mxu3 %v3698_v51 }
 0x41c   :  { %v2125_v0 = vpop.f32.mrf.mxu2  ;;  %v1789_v33 = vpop.f32.mrf.mxu0 }
 0x41d   :  { %v2294_v48 = vpop.f32.mrf.mxu3  ;;  %v1958_v6 = vpop.f32.mrf.mxu1  ;;  %v1790_v29 = vadd.f32 %v1789_v33, %v4187_v39 }
 0x424   :  { %v2127_v56 = vpop.f32.mrf.mxu2  ;;  %v1792_v19 = vpop.f32.mrf.mxu0 }
 0x425   :  { %v2296_v53 = vpop.f32.mrf.mxu3  ;;  %v1961_v15 = vpop.f32.mrf.mxu1  ;;  %v1793_v13 = vadd.f32 %v1792_v19, %v4187_v39  ;;  %v4428_v19 = vld [vmem:[#allocation1 + $0x12] sm:$0xff] }
 0x427   :  { %1831 = vmatmul.bf16.gmra.mxu0 %v3699_v60  ;;  %v1962_v3 = vadd.f32 %v1961_v15, %v1793_v13  ;;  %v1788_v15 = vadd.f32 %v1787_v45, %v4187_v39  ;;  %v4434_v13 = vld [vmem:[#allocation1 + $0x1b] sm:$0xff] }
 0x428   :  { %2000 = vmatmul.bf16.gmra.mxu1 %v3700_v11 }
 0x429   :  { %2169 = vmatmul.bf16.gmra.mxu2 %v3699_v60  ;;  %v4423_v60 = vld [vmem:[#allocation1] sm:$0xff]  ;;  %v2530_v33 = vmax.f32 %v1962_v3, 0.0  ;;  %v1957_v45 = vadd.f32 %v1956_v17, %v1788_v15 }
 0x42a   :  { %2338 = vmatmul.bf16.gmra.mxu3 %v3700_v11 }
 0x42c   :  { %v2130_v2 = vpop.f32.mrf.mxu2  ;;  %v1794_v14 = vpop.f32.mrf.mxu0 }
 0x42d   :  { %v2299_v9 = vpop.f32.mrf.mxu3  ;;  %v1795_v54 = vadd.f32 %v1794_v14, %v4187_v39  ;;  %v1963_v20 = vpop.f32.mrf.mxu1  ;;  %v2131_v24 = vadd.f32 %v2130_v2, %v4193_v59  ;;  %v2128_v2 = vadd.f32 %v2127_v56, %v4193_v59 }
 0x42f   :  { %v1964_v10 = vadd.f32 %v1963_v20, %v1795_v54  ;;  %v2300_v58 = vadd.f32 %v2299_v9, %v2131_v24  ;;  %v2126_v54 = vadd.f32 %v2125_v0, %v4193_v59  ;;  %v1959_v24 = vadd.f32 %v1958_v6, %v1790_v29 }
 0x430   :  { %v2297_v56 = vadd.f32 %v2296_v53, %v2128_v2  ;;  %v1785_v6 = vadd.f32 %v4408_v34, %v4187_v39  ;;  %v2123_v53 = vadd.f32 %v4414_v35, %v4193_v59 }
 0x431   :  { %v2534_v30 = vmax.f32 %v1964_v10, 0.0  ;;  %v2531_v10 = vmax.f32 %v2300_v58, 0.0  ;;  %v2295_v29 = vadd.f32 %v2294_v48, %v2126_v54  ;;  %v2526_v58 = vmax.f32 %v1959_v24, 0.0 }
 0x432   :  { %v2121_v48 = vadd.f32 %v4406_v46, %v4193_v59  ;;  %v1954_v2 = vadd.f32 %v4412_v37, %v1785_v6  ;;  %v2292_v35 = vadd.f32 %v4416_v16, %v2123_v53 }
 0x434   :  { %v2132_v50 = vpop.f32.mrf.mxu2  ;;  %v1797_v38 = vpop.f32.mrf.mxu0  ;;  %v2290_v46 = vadd.f32 %v4410_v36, %v2121_v48  ;;  %v2518_v37 = vmax.f32 %v1954_v2, 0.0 }
 0x435   :  { %v2133_v26 = vadd.f32 %v2132_v50, %v4193_v59  ;;  %v2301_v51 = vpop.f32.mrf.mxu3  ;;  %v1798_v11 = vadd.f32 %v1797_v38, %v4187_v39  ;;  %v1966_v14 = vpop.f32.mrf.mxu1  ;;  %v2695_v50 = vpack.c.bf16 %v2534_v30, %v2530_v33  ;;  %v2523_v33 = vmax.f32 %v2295_v29, 0.0 }
 0x436   :  { %v2515_v6 = vmax.f32 %v2290_v46, 0.0 }
 0x437   :  { %v2302_v9 = vadd.f32 %v2301_v51, %v2133_v26  ;;  %v1967_v20 = vadd.f32 %v1966_v14, %v1798_v11  ;;  %2749 = vmatmul.bf16.vlgmr.msra.gmra.mxu0 %v4423_v60  ;;  %v2522_v11 = vmax.f32 %v1957_v45, 0.0  ;;  %v2527_v14 = vmax.f32 %v2297_v56, 0.0 }
 0x438   :  { %2762 = vmatmul.bf16.vlgmr.msra.gmra.mxu1 %v4426_v7  ;;  %2845 = vmatpush.bf16.xpose.msra.mxu0 %v4104_v27  ;;  %v1783_v27 = vadd.f32 %v4400_v57, %v4187_v39 }
 0x439   :  { %v2535_v38 = vmax.f32 %v2302_v9, 0.0  ;;  %2775 = vmatmul.bf16.vlgmr.msra.gmra.mxu2 %v4428_v19  ;;  %2858 = vmatpush.bf16.xpose.msra.mxu1 %v4109_v49  ;;  %v2691_v9 = vpack.c.bf16 %v2526_v58, %v2522_v11  ;;  %v2538_v54 = vmax.f32 %v1967_v20, 0.0 }
 0x43a   :  { %2871 = vmatpush.bf16.xpose.msra.mxu2 %v2695_v50  ;;  %2788 = vmatmul.bf16.vlgmr.msra.gmra.mxu3 %v4434_v13  ;;  %v1952_v57 = vadd.f32 %v4402_v62, %v1783_v27  ;;  %v2519_v62 = vmax.f32 %v2292_v35, 0.0 }
 0x43b   :  { %v2696_v0 = vpack.c.bf16 %v2535_v38, %v2531_v10  ;;  %v2692_v10 = vpack.c.bf16 %v2527_v14, %v2523_v33 }
 0x43c   :  { %v2135_v3 = vpop.f32.mrf.mxu2  ;;  %v1799_v26 = vpop.f32.mrf.mxu0 }
 0x43d   :  { %v2136_v30 = vadd.f32 %v2135_v3, %v4193_v59  ;;  %2884 = vmatpush.bf16.xpose.msra.mxu3 %v2696_v0  ;;  %v2304_v51 = vpop.f32.mrf.mxu3  ;;  %v1800_v49 = vadd.f32 %v1799_v26, %v4187_v39  ;;  %v1968_v17 = vpop.f32.mrf.mxu1  ;;  %v2514_v0 = vmax.f32 %v1952_v57, 0.0  ;;  %v2688_v26 = vpack.c.bf16 %v2519_v62, %v2515_v6 }
 0x43f   :  { %v2305_v15 = vadd.f32 %v2304_v51, %v2136_v30  ;;  %v1969_v34 = vadd.f32 %v1968_v17, %v1800_v49  ;;  %v2687_v30 = vpack.c.bf16 %v2518_v37, %v2514_v0 }
 0x440   :  { %2846 = vmatpush.bf16.xpose.msra.mxu0 %v4096_v43 }
 0x441   :  { %v2542_v24 = vmax.f32 %v1969_v34, 0.0  ;;  %2859 = vmatpush.bf16.xpose.msra.mxu1 %v4100_v1  ;;  %v2539_v29 = vmax.f32 %v2305_v15, 0.0 }
 0x442   :  { %2872 = vmatpush.bf16.xpose.msra.mxu2 %v2691_v9 }
 0x443   :  { %v4456_v50 = vpack.c.bf16 %v2542_v24, %v2538_v54 }
 0x444   :  { %v2137_v38 = vpop.f32.mrf.mxu2  ;;  %v1802_v20 = vpop.f32.mrf.mxu0 }
 0x445   :  { %v2138_v45 = vadd.f32 %v2137_v38, %v4193_v59  ;;  %2885 = vmatpush.bf16.xpose.msra.mxu3 %v2692_v10  ;;  %v2306_v56 = vpop.f32.mrf.mxu3  ;;  %v1803_v43 = vadd.f32 %v1802_v20, %v4187_v39  ;;  %v1971_v1 = vpop.f32.mrf.mxu1 }
 0x447   :  { %v2307_v3 = vadd.f32 %v2306_v56, %v2138_v45  ;;  %v1972_v16 = vadd.f32 %v1971_v1, %v1803_v43  ;;  %2801 = vmatmul.bf16.vlgmr.msrb.gmra.mxu0 %v4423_v60 }
 0x448   :  { %2814 = vmatmul.bf16.vlgmr.msrb.gmra.mxu1 %v4426_v7  ;;  %2847 = vmatpush.bf16.xpose.msra.mxu0 %v4088_v63 }
 0x449   :  { %v2543_v58 = vmax.f32 %v2307_v3, 0.0  ;;  %2827 = vmatmul.bf16.vlgmr.msrb.gmra.mxu2 %v4428_v19  ;;  %2860 = vmatpush.bf16.xpose.msra.mxu1 %v4092_v25  ;;  %v2546_v63 = vmax.f32 %v1972_v16, 0.0 }
 0x44a   :  { %2873 = vmatpush.bf16.xpose.msra.mxu2 %v2687_v30  ;;  %2840 = vmatmul.bf16.vlgmr.msrb.gmra.mxu3 %v4434_v13 }
 0x44b   :  { %v4466_v36 = vpack.c.bf16 %v2543_v58, %v2539_v29 }
 0x44c   :  { %v2140_v51 = vpop.f32.mrf.mxu2  ;;  %v1804_v49 = vpop.f32.mrf.mxu0 }
 0x44d   :  { %v2141_v27 = vadd.f32 %v2140_v51, %v4193_v59  ;;  %2886 = vmatpush.bf16.xpose.msra.mxu3 %v2688_v26  ;;  %v2309_v17 = vpop.f32.mrf.mxu3  ;;  %v1805_v53 = vadd.f32 %v1804_v49, %v4187_v39  ;;  %v1973_v11 = vpop.f32.mrf.mxu1 }
 0x44f   :  { %v2310_v14 = vadd.f32 %v2309_v17, %v2141_v27  ;;  %v1974_v15 = vadd.f32 %v1973_v11, %v1805_v53 }
 0x450   :  { %2848 = vmatpush.bf16.xpose.msra.mxu0 %v4080_v5 }
 0x451   :  { %v2550_v34 = vmax.f32 %v1974_v15, 0.0  ;;  %2861 = vmatpush.bf16.xpose.msra.mxu1 %v4084_v52  ;;  %v2547_v10 = vmax.f32 %v2310_v14, 0.0  ;;  %v4610_v14 = vld [vmem:[#allocation32_spill] sm:$0xff] }
 0x452   :  { %2874 = vmatpush.bf16.xpose.msra.mxu2 %v4397_v28 }
 0x453   :  { %v4474_v25 = vpack.c.bf16 %v2550_v34, %v2546_v63 }
 0x454   :  { %v2142_v48 = vpop.f32.mrf.mxu2  ;;  %v1807_v33 = vpop.f32.mrf.mxu0 }
 0x455   :  { %v2143_v2 = vadd.f32 %v2142_v48, %v4193_v59  ;;  %2887 = vmatpush.bf16.xpose.msra.mxu3 %v4404_v40  ;;  %v2311_v9 = vpop.f32.mrf.mxu3  ;;  %v1808_v54 = vadd.f32 %v1807_v33, %v4187_v39  ;;  %v1976_v24 = vpop.f32.mrf.mxu1 }
 0x457   :  { %v2312_v57 = vadd.f32 %v2311_v9, %v2143_v2  ;;  %v1977_v35 = vadd.f32 %v1976_v24, %v1808_v54  ;;  %v4611_v9 = vld [vmem:[#allocation28_spill] sm:$0xff]  ;;  %v4612_v54 = vld [vmem:[#allocation29_spill] sm:$0xff] }
 0x458   :  { %2849 = vmatpush.bf16.xpose.msra.mxu0 %v4072_v32 }
 0x459   :  { %v2551_v5 = vmax.f32 %v2312_v57, 0.0  ;;  %2862 = vmatpush.bf16.xpose.msra.mxu1 %v4076_v18  ;;  %v2554_v43 = vmax.f32 %v1977_v35, 0.0 }
 0x45a   :  { %2875 = vmatpush.bf16.xpose.msra.mxu2 %v4388_v23 }
 0x45b   :  { %v4481_v52 = vpack.c.bf16 %v2551_v5, %v2547_v10 }
 0x45c   :  { %v2145_v28 = vpop.f32.mrf.mxu2  ;;  %v1809_v38 = vpop.f32.mrf.mxu0 }
 0x45d   :  { %v2146_v40 = vadd.f32 %v2145_v28, %v4193_v59  ;;  %2888 = vmatpush.bf16.xpose.msra.mxu3 %v4393_v12  ;;  %v2314_v46 = vpop.f32.mrf.mxu3  ;;  %v1810_v37 = vadd.f32 %v1809_v38, %v4187_v39  ;;  %v1978_v45 = vpop.f32.mrf.mxu1 }
 0x45f   :  { %v2315_v20 = vadd.f32 %v2314_v46, %v2146_v40  ;;  %v1979_v56 = vadd.f32 %v1978_v45, %v1810_v37  ;;  %v4613_v45 = vld [vmem:[#allocation26_spill] sm:$0xff] }
 0x460   :  { %2850 = vmatpush.bf16.xpose.msra.mxu0 %v4064_v47 }
 0x461   :  { %v2558_v32 = vmax.f32 %v1979_v56, 0.0  ;;  %2863 = vmatpush.bf16.xpose.msra.mxu1 %v4068_v41  ;;  %v2555_v29 = vmax.f32 %v2315_v20, 0.0  ;;  %v4614_v56 = vld [vmem:[#allocation27_spill] sm:$0xff] }
 0x462   :  { %2876 = vmatpush.bf16.xpose.msra.mxu2 %v4376_v22 }
 0x463   :  { %v4490_v18 = vpack.c.bf16 %v2558_v32, %v2554_v43 }
 0x464   :  { %v2147_v23 = vpop.f32.mrf.mxu2  ;;  %v1812_v1 = vpop.f32.mrf.mxu0 }
 0x465   :  { %v2148_v12 = vadd.f32 %v2147_v23, %v4193_v59  ;;  %2889 = vmatpush.bf16.xpose.msra.mxu3 %v4382_v4  ;;  %v2316_v0 = vpop.f32.mrf.mxu3  ;;  %v1813_v62 = vadd.f32 %v1812_v1, %v4187_v39  ;;  %v1981_v3 = vpop.f32.mrf.mxu1 }
 0x467   :  { %v2317_v16 = vadd.f32 %v2316_v0, %v2148_v12  ;;  %v1982_v6 = vadd.f32 %v1981_v3, %v1813_v62 }
 0x468   :  { %2851 = vmatpush.bf16.xpose.msra.mxu0 %v4056_v21 }
 0x469   :  { %v2559_v47 = vmax.f32 %v2317_v16, 0.0  ;;  %2864 = vmatpush.bf16.xpose.msra.mxu1 %v4060_v31  ;;  %v2562_v17 = vmax.f32 %v1982_v6, 0.0  ;;  %v4608_v31 = vld [vmem:[#allocation30_spill] sm:$0xff]  ;;  %v4615_v6 = vld [vmem:[#allocation24_spill] sm:$0xff] }
 0x46a   :  { %2877 = vmatpush.bf16.xpose.msra.mxu2 %v4364_v55 }
 0x46b   :  { %v4497_v41 = vpack.c.bf16 %v2559_v47, %v2555_v29  ;;  %v4616_v29 = vld [vmem:[#allocation25_spill] sm:$0xff] }
 0x46c   :  { %v2150_v22 = vpop.f32.mrf.mxu2  ;;  %v1814_v58 = vpop.f32.mrf.mxu0 }
 0x46d   :  { %v2151_v4 = vadd.f32 %v2150_v22, %v4193_v59  ;;  %2890 = vmatpush.bf16.xpose.msra.mxu3 %v4370_v42  ;;  %v2319_v30 = vpop.f32.mrf.mxu3  ;;  %v1815_v26 = vadd.f32 %v1814_v58, %v4187_v39  ;;  %v1983_v51 = vpop.f32.mrf.mxu1  ;;  %v4609_v42 = vld [vmem:[#allocation31_spill] sm:$0xff] }
 0x46f   :  { %v2320_v27 = vadd.f32 %v2319_v30, %v2151_v4  ;;  %v1984_v49 = vadd.f32 %v1983_v51, %v1815_v26  ;;  %v4617_v30 = vld [vmem:[#allocation22_spill] sm:$0xff]  ;;  %v4618_v26 = vld [vmem:[#allocation23_spill] sm:$0xff] }
 0x470   :  { %2852 = vmatpush.bf16.xpose.msra.mxu0 %v4048_v44 }
 0x471   :  { %v2566_v21 = vmax.f32 %v1984_v49, 0.0  ;;  %2865 = vmatpush.bf16.xpose.msra.mxu1 %v4052_v61  ;;  %v2563_v2 = vmax.f32 %v2320_v27, 0.0 }
 0x472   :  { %2878 = vmatpush.bf16.xpose.msra.mxu2 %v4354_v8 }
 0x473   :  { %v4507_v55 = vpack.c.bf16 %v2566_v21, %v2562_v17  ;;  %v4619_v21 = vld [vmem:[#allocation20_spill] sm:$0xff] }
 0x474   :  { %v2152_v53 = vpop.f32.mrf.mxu2  ;;  %v1817_v15 = vpop.f32.mrf.mxu0 }
 0x475   :  { %v2153_v11 = vadd.f32 %v2152_v53, %v4193_v59  ;;  %2891 = vmatpush.bf16.xpose.msra.mxu3 %v4610_v14  ;;  %v2321_v63 = vpop.f32.mrf.mxu3  ;;  %v1818_v34 = vadd.f32 %v1817_v15, %v4187_v39  ;;  %v1986_v44 = vpop.f32.mrf.mxu1  ;;  %v4621_v15 = vld [vmem:[#allocation18_spill] sm:$0xff] }
 0x477   :  { %v2322_v48 = vadd.f32 %v2321_v63, %v2153_v11  ;;  %v1987_v61 = vadd.f32 %v1986_v44, %v1818_v34  ;;  %2853 = vmatmul.bf16.vlgmr.msra.gmra.mxu0 %v4423_v60  ;;  %v4622_v63 = vld [vmem:[#allocation19_spill] sm:$0xff] }
 0x478   :  { %2897 = vmatpush.bf16.xpose.msrb.mxu0 %v4608_v31  ;;  %2866 = vmatmul.bf16.vlgmr.msra.gmra.mxu1 %v4426_v7  ;;  %v4620_v31 = vld [vmem:[#allocation21_spill] sm:$0xff] }
 0x479   :  { %2910 = vmatpush.bf16.xpose.msrb.mxu1 %v4609_v42  ;;  %v2567_v8 = vmax.f32 %v2322_v48, 0.0  ;;  %2879 = vmatmul.bf16.vlgmr.msra.gmra.mxu2 %v4428_v19  ;;  %v2570_v46 = vmax.f32 %v1987_v61, 0.0 }
 0x47b   :  { %v4516_v33 = vpack.c.bf16 %v2567_v8, %v2563_v2  ;;  %v4623_v8 = vld [vmem:[#allocation16_spill] sm:$0xff] }
 0x47c   :  { %v2155_v24 = vpop.f32.mrf.mxu2  ;;  %2892 = vmatmul.bf16.vlgmr.msra.gmra.mxu3 %v4434_v13  ;;  %v1819_v35 = vpop.f32.mrf.mxu0 }
 0x47d   :  { %v2156_v57 = vadd.f32 %v2155_v24, %v4193_v59  ;;  %v2324_v10 = vpop.f32.mrf.mxu3  ;;  %v1820_v5 = vadd.f32 %v1819_v35, %v4187_v39  ;;  %v1988_v28 = vpop.f32.mrf.mxu1 }
 0x47f   :  { %v2325_v40 = vadd.f32 %v2324_v10, %v2156_v57  ;;  %v1989_v38 = vadd.f32 %v1988_v28, %v1820_v5 }
 0x480   :  { %2898 = vmatpush.bf16.xpose.msrb.mxu0 %v4611_v9  ;;  %v4624_v9 = vld [vmem:[#allocation17_spill] sm:$0xff] }
 0x481   :  { %2911 = vmatpush.bf16.xpose.msrb.mxu1 %v4612_v54  ;;  %v2574_v37 = vmax.f32 %v1989_v38, 0.0  ;;  %v2571_v62 = vmax.f32 %v2325_v40, 0.0 }
 0x483   :  { %v4524_v20 = vpack.c.bf16 %v2574_v37, %v2570_v46 }
 0x484   :  { %v2157_v43 = vpop.f32.mrf.mxu2  ;;  %v4528_v23 = vpop.f32.mrf.mxu0 }
 0x485   :  { %v2158_v32 = vadd.f32 %v2157_v43, %v4193_v59  ;;  %v2326_v12 = vpop.f32.mrf.mxu3  ;;  %v4530_v1 = vpop.f32.mrf.mxu1 }
 0x487   :  { %v2327_v0 = vadd.f32 %v2326_v12, %v2158_v32 }
 0x488   :  { %2899 = vmatpush.bf16.xpose.msrb.mxu0 %v4613_v45 }
 0x489   :  { %2912 = vmatpush.bf16.xpose.msrb.mxu1 %v4614_v56  ;;  %v2575_v3 = vmax.f32 %v2327_v0, 0.0 }
 0x48b   :  { %v4532_v16 = vpack.c.bf16 %v2575_v3, %v2571_v62 }
 0x48c   :  { %v4536_v47 = vpop.f32.mrf.mxu2  ;;  %v1824_v22 = vpop.f32.mrf.mxu0 }
 0x48d   :  { %v4538_v4 = vpop.f32.mrf.mxu3  ;;  %v1993_v58 = vpop.f32.mrf.mxu1 }
 0x490   :  { %2900 = vmatpush.bf16.xpose.msrb.mxu0 %v4615_v6 }
 0x491   :  { %2913 = vmatpush.bf16.xpose.msrb.mxu1 %v4616_v29 }
 0x494   :  { %v2162_v51 = vpop.f32.mrf.mxu2  ;;  %v1827_v27 = vpop.f32.mrf.mxu0 }
 0x495   :  { %v2331_v49 = vpop.f32.mrf.mxu3  ;;  %v1996_v17 = vpop.f32.mrf.mxu1  ;;  %v1828_v46 = vadd.f32 %v1827_v27, %v4187_v39 }
 0x497   :  { %v1997_v62 = vadd.f32 %v1996_v17, %v1828_v46 }
 0x498   :  { %2901 = vmatpush.bf16.xpose.msrb.mxu0 %v4617_v30  ;;  %v1825_v30 = vadd.f32 %v1824_v22, %v4187_v39  ;;  %v2163_v22 = vadd.f32 %v2162_v51, %v4193_v59 }
 0x499   :  { %2914 = vmatpush.bf16.xpose.msrb.mxu1 %v4618_v26 }
 0x49c   :  { %v2165_v42 = vpop.f32.mrf.mxu2  ;;  %v1829_v53 = vpop.f32.mrf.mxu0 }
 0x49d   :  { %v2334_v11 = vpop.f32.mrf.mxu3  ;;  %v1998_v14 = vpop.f32.mrf.mxu1  ;;  %v1830_v28 = vadd.f32 %v1829_v53, %v4187_v39  ;;  %v2166_v27 = vadd.f32 %v2165_v42, %v4193_v59  ;;  %v2161_v42 = vadd.f32 %v4536_v47, %v4193_v59 }
 0x49f   :  { %v1999_v56 = vadd.f32 %v1998_v14, %v1830_v28 }
 0x4a0   :  { %2902 = vmatpush.bf16.xpose.msrb.mxu0 %v4619_v21 }
 0x4a1   :  { %2915 = vmatpush.bf16.xpose.msrb.mxu1 %v4620_v31  ;;  %v2590_v26 = vmax.f32 %v1999_v56, 0.0  ;;  %v2586_v31 = vmax.f32 %v1997_v62, 0.0 }
 0x4a3   :  { %v2723_v17 = vpack.c.bf16 %v2590_v26, %v2586_v31 }
 0x4a4   :  { %v2167_v34 = vpop.f32.mrf.mxu2  ;;  %v1832_v44 = vpop.f32.mrf.mxu0 }
 0x4a5   :  { %v2336_v48 = vpop.f32.mrf.mxu3  ;;  %v2001_v61 = vpop.f32.mrf.mxu1  ;;  %v1833_v2 = vadd.f32 %v1832_v44, %v4187_v39  ;;  %v2168_v6 = vadd.f32 %v2167_v34, %v4193_v59 }
 0x4a7   :  { %v2002_v35 = vadd.f32 %v2001_v61, %v1833_v2  ;;  %v2337_v53 = vadd.f32 %v2336_v48, %v2168_v6 }
 0x4a8   :  { %2903 = vmatpush.bf16.xpose.msrb.mxu0 %v4621_v15  ;;  %v1994_v15 = vadd.f32 %v1993_v58, %v1825_v30  ;;  %v2330_v58 = vadd.f32 %v4538_v4, %v2161_v42  ;;  %v2730_v4 = vstv %s4589_s5  ;;  %s3837_s5 = smov [#allocation11]  }
 0x4a9   :  { %2916 = vmatpush.bf16.xpose.msrb.mxu1 %v4622_v63  ;;  %v2594_v37 = vmax.f32 %v2002_v35, 0.0  ;;  %v2335_v63 = vadd.f32 %v2334_v11, %v2166_v27  ;;  %v2591_v44 = vmax.f32 %v2337_v53, 0.0  ;;  %s2973_s22 = sshll.u32 %s3837_s5, 4  ;;  %s2974_s22 = int_to_ptr.vmem [resolvable:$true] %s2973_s22 }
 0x4aa   :  { %v2582_v61 = vmax.f32 %v1994_v15, 0.0 }
 0x4ab   :  { %v2587_v2 = vmax.f32 %v2335_v63, 0.0  ;;  %v2963_v63 = vlaneseq }
 0x4ac   :  { %v2170_v54 = vpop.f32.mrf.mxu2  ;;  %v1834_v24 = vpop.f32.mrf.mxu0 }
 0x4ad   :  { %v2339_v57 = vpop.f32.mrf.mxu3  ;;  %v1835_v10 = vadd.f32 %v1834_v24, %v4187_v39  ;;  %v2003_v5 = vpop.f32.mrf.mxu1  ;;  %v2171_v38 = vadd.f32 %v2170_v54, %v4193_v59  ;;  %vm2965_vm3 = vcmp.lt.s32.totalorder %v2963_v63, 512 }
 0x4af   :  { %v2004_v40 = vadd.f32 %v2003_v5, %v1835_v10  ;;  %v2340_v12 = vadd.f32 %v2339_v57, %v2171_v38 }
 0x4b0   :  { %2904 = vmatpush.bf16.xpose.msrb.mxu0 %v4623_v8 }
 0x4b1   :  { %2917 = vmatpush.bf16.xpose.msrb.mxu1 %v4624_v9  ;;  %v2598_v45 = vmax.f32 %v2004_v40, 0.0  ;;  %v2579_v9 = vmax.f32 %v2330_v58, 0.0 }
 0x4b3   :  { %v2727_v43 = vpack.c.bf16 %v2598_v45, %v2594_v37 }
 0x4b4   :  { %v2172_v32 = vpop.f32.mrf.mxu2  ;;  %v2750_v51 = vpop.f32.mrf.mxu0 }
 0x4b5   :  { %v2173_v0 = vadd.f32 %v2172_v32, %v4193_v59  ;;  %v2341_v3 = vpop.f32.mrf.mxu3  ;;  %2923 = vmatpush.bf16.xpose.msrb.mxu2 %v2727_v43  ;;  %v2763_v54 = vpop.f32.mrf.mxu1  ;;  %v2751_v57 = vadd.f32 %v2750_v51, %v2730_v4 }
 0x4b7   :  { %2905 = vmatmul.bf16.vlgmr.msrb.gmra.mxu0 %v4423_v60  ;;  %v2342_v29 = vadd.f32 %v2341_v3, %v2173_v0  ;;  %v2595_v60 = vmax.f32 %v2340_v12, 0.0 }
 0x4b8   :  { %2918 = vmatmul.bf16.vlgmr.msrb.gmra.mxu1 %v4426_v7  ;;  %v1823_v7 = vadd.f32 %v4528_v23, %v4187_v39  ;;  %v2332_v39 = vadd.f32 %v2331_v49, %v2163_v22  ;;  %v2724_v23 = vpack.c.bf16 %v2591_v44, %v2587_v2 }
 0x4b9   :  { %v2599_v21 = vmax.f32 %v2342_v29, 0.0 }
 0x4ba   :  { %v1992_v34 = vadd.f32 %v4530_v1, %v1823_v7  ;;  %v2583_v11 = vmax.f32 %v2332_v39, 0.0 }
 0x4bb   :  { %v2728_v14 = vpack.c.bf16 %v2599_v21, %v2595_v60 }
 0x4bc   :  { %v2578_v8 = vmax.f32 %v1992_v34, 0.0  ;;  %v2720_v1 = vpack.c.bf16 %v2583_v11, %v2579_v9  ;;  %v2776_v59 = vpop.f32.mrf.mxu2  ;;  %v2752_v49 = vpop.f32.mrf.mxu0 }
 0x4bd   :  { %2936 = vmatpush.bf16.xpose.msrb.mxu3 %v2728_v14  ;;  %2924 = vmatpush.bf16.xpose.msrb.mxu2 %v2723_v17  ;;  %v2789_v47 = vpop.f32.mrf.mxu3  ;;  %v2765_v24 = vpop.f32.mrf.mxu1 }
 0x4be   :  { %v2719_v48 = vpack.c.bf16 %v2582_v61, %v2578_v8 }
 0x4c4   :  { %v2778_v35 = vpop.f32.mrf.mxu2 }
 0x4c5   :  { %2937 = vmatpush.bf16.xpose.msrb.mxu3 %v2724_v23  ;;  %2925 = vmatpush.bf16.xpose.msrb.mxu2 %v2719_v48  ;;  %v2791_v10 = vpop.f32.mrf.mxu3 }
 0x4cc   :  { %v2828_v46 = vpop.f32.mrf.mxu2 }
 0x4cd   :  { %2938 = vmatpush.bf16.xpose.msrb.mxu3 %v2720_v1  ;;  %2926 = vmatpush.bf16.xpose.msrb.mxu2 %v4524_v20  ;;  %v2764_v20 = vadd.f32 %v2763_v54, %v2751_v57  ;;  %v2841_v45 = vpop.f32.mrf.mxu3 }
 0x4cf   :  { %v2777_v5 = vadd.f32 %v2776_v59, %v2764_v20 }
 0x4d1   :  { %v2790_v40 = vadd.f32 %v2789_v47, %v2777_v5 }
 0x4d4   :  { %v2830_v12 = vpop.f32.mrf.mxu2 }
 0x4d5   :  { %2939 = vmatpush.bf16.xpose.msrb.mxu3 %v4532_v16  ;;  %2927 = vmatpush.bf16.xpose.msrb.mxu2 %v4507_v55  ;;  %v2802_v16 = vpop.f32.mrf.mxu0  ;;  %v2815_v55 = vpop.f32.mrf.mxu1 }
 0x4d6   :  { %v2803_v28 = vadd.f32 %v2802_v16, %v2730_v4  ;;  %v2843_v0 = vpop.f32.mrf.mxu3 }
 0x4d8   :  { %v2816_v38 = vadd.f32 %v2815_v55, %v2803_v28 }
 0x4da   :  { %v2829_v37 = vadd.f32 %v2828_v46, %v2816_v38 }
 0x4dd   :  { %2940 = vmatpush.bf16.xpose.msrb.mxu3 %v4516_v33  ;;  %2928 = vmatpush.bf16.xpose.msrb.mxu2 %v4490_v18  ;;  %v2842_v33 = vadd.f32 %v2841_v45, %v2829_v37  ;;  %v2804_v56 = vpop.f32.mrf.mxu0  ;;  %v2817_v18 = vpop.f32.mrf.mxu1 }
 0x4df   :  { %v2953_v43 = vrot.slane %v2842_v33, 7 }
 0x4e1   :  { %v2957_v32 = vsel %vm2956_vm0, %v2790_v40, %v2953_v43 }
 0x4e5   :  { %2941 = vmatpush.bf16.xpose.msrb.mxu3 %v4497_v41  ;;  %2929 = vmatpush.bf16.xpose.msrb.mxu2 %v4474_v25 }
 0x4ed   :  { %2942 = vmatpush.bf16.xpose.msrb.mxu3 %v4481_v52  ;;  %2930 = vmatpush.bf16.xpose.msrb.mxu2 %v4456_v50 }
 0x4f4   :  { %2931 = vmatmul.bf16.vlgmr.msrb.gmra.mxu2 %v4428_v19  ;;  %v2854_v41 = vpop.f32.mrf.mxu0 }
 0x4f5   :  { %2943 = vmatpush.bf16.xpose.msrb.mxu3 %v4466_v36  ;;  %v2867_v25 = vpop.f32.mrf.mxu1  ;;  %v2855_v62 = vadd.f32 %v2854_v41, %v2730_v4 }
 0x4f7   :  { %v2868_v3 = vadd.f32 %v2867_v25, %v2855_v62 }
 0x4fc   :  { %2944 = vmatmul.bf16.vlgmr.msrb.gmra.mxu3 %v4434_v13  ;;  %v2880_v6 = vpop.f32.mrf.mxu2  ;;  %v2856_v30 = vpop.f32.mrf.mxu0 }
 0x4fd   :  { %v2881_v29 = vadd.f32 %v2880_v6, %v2868_v3  ;;  %v2869_v26 = vpop.f32.mrf.mxu1 }
 0x4ff   :  { %v2893_v27 = vpop.f32.mrf.mxu3 }
 0x500   :  { %v2894_v52 = vadd.f32 %v2893_v27, %v2881_v29 }
 0x502   :  { %v2954_v22 = vrot.slane %v2894_v52, 6 }
 0x504   :  { %v2882_v60 = vpop.f32.mrf.mxu2 }
 0x507   :  { %v2895_v21 = vpop.f32.mrf.mxu3 }
 0x534   :  { %v2906_v50 = vpop.f32.mrf.mxu0 }
 0x535   :  { %v2907_v7 = vadd.f32 %v2906_v50, %v2730_v4  ;;  %v2919_v31 = vpop.f32.mrf.mxu1 }
 0x537   :  { %v2920_v36 = vadd.f32 %v2919_v31, %v2907_v7 }
 0x53c   :  { %v2908_v53 = vpop.f32.mrf.mxu0 }
 0x53d   :  { %v2921_v19 = vpop.f32.mrf.mxu1 }
 0x577   :  { %v2932_v14 = vpop.f32.mrf.mxu2 }
 0x578   :  { %v2933_v15 = vadd.f32 %v2932_v14, %v2920_v36 }
 0x57f   :  { %v2945_v17 = vpop.f32.mrf.mxu3  ;;  %v2934_v13 = vpop.f32.mrf.mxu2 }
 0x580   :  { %v2946_v34 = vadd.f32 %v2945_v17, %v2933_v15 }
 0x582   :  { %v2955_v44 = vrot.slane %v2946_v34, 5 }
 0x584   :  { %v2959_v61 = vsel %vm2958_vm1, %v2954_v22, %v2955_v44 }
 0x585   :  { %v2961_v42 = vsel %vm2960_vm2, %v2957_v32, %v2959_v61 }
 0x586   :  { %2967 = vst.msk [vmem:[#allocation11] sm:$0xf] %vm2965_vm3, %v2961_v42 }
 0x587   :  { %v2947_v2 = vpop.f32.mrf.mxu3  ;;  %2978 = dma.vmem_to_hbm [thread:$0]  %s2974_s22, 64, %s2976_s25, [#allocation5]  }
 0x588   :  { %3827 = dma.done.wait [#allocation5], 64  }
 0x589   :  { %3828 = vsyncadd [#allocation5], 4294967232 }
 0x58a   :  { %2983 = vsyncpa [#allocation4], 1 }
 0x58b   :  { %2984 = vsyncpa [#allocation7], 1 }
 0x58c   :  { %2985 = vsyncpa [#allocation10], 1 }
 0x58d   :  { %2986 = vsyncpa [#allocation5], 1 }

// kernel: tpu_custom_call.1
= control target key start
LH: loop header
LB: loop body
LE: loop exit
PB: predicated region body
PF: predicated region fallthrough
CT: control target
= control target key end

     0   :  { %12 = vsyncpa [#allocation4], 0  ;;  %s4584_s0 = inlined_call_operand.hbm [shape: bf16[512,128], index: 0, kind: input, shape index: {}]   ;;  %s4585_s1 = inlined_call_operand.hbm [shape: bf16[512,128], index: 1, kind: input, shape index: {}]   ;;  %s4586_s2 = inlined_call_operand.hbm [shape: bf16[256,512], index: 2, kind: input, shape index: {}]   ;;  %s4587_s3 = inlined_call_operand.vmem [shape: f32[1,512], index: 3, kind: input, shape index: {}]   ;;  %s4588_s4 = inlined_call_operand.hbm [shape: bf16[1,512], index: 4, kind: input, shape index: {}]   ;;  %s4589_s5 = inlined_call_operand.<no memory space> [shape: f32[1], index: 5, kind: input, shape index: {}]   ;;  %s4590_s6 = inlined_call_operand.hbm [shape: f32[1,1,512], index: 6, kind: output, shape index: {}]  }
   0x1   :  { %13 = vsyncpa [#allocation7], 0 }
   0x2   :  { %14 = vsyncpa [#allocation10], 0 }
   0x3   :  { %15 = vsyncpa [#allocation5], 0  ;;  %s33_s23 = sshll.u32 %s4585_s1, 4  ;;  %s3829_s24 = smov [#allocation6]   ;;  %s34_s23 = int_to_ptr.hbm [resolvable:$true] %s33_s23 }
   0x4   :  { %s35_s25 = sshll.u32 %s3829_s24, 4  ;;  %s20_s28 = sshll.u32 %s4584_s0, 4  ;;  %s36_s25 = int_to_ptr.vmem [resolvable:$true] %s35_s25  ;;  %s21_s28 = int_to_ptr.hbm [resolvable:$true] %s20_s28 }
   0x5   :  { %s3830_s29 = smov 64   ;;  %s3831_s30 = smov 4  }
   0x6   :  { %41 = dma.hbm_to_vmem [thread:$0]  %s34_s23, 4096, %s36_s25, [#allocation7], %s3830_s29, %s3830_s29, %s3831_s30  }
   0x7   :  { %s3832_s7 = smov [#allocation3]   ;;  %s46_s11 = sshll.u32 %s4586_s2, 4  ;;  %s47_s11 = int_to_ptr.hbm [resolvable:$true] %s46_s11 }
   0x8   :  { %s22_s8 = sshll.u32 %s3832_s7, 4  ;;  %s3833_s1 = smov [#allocation8]   ;;  %s23_s8 = int_to_ptr.vmem [resolvable:$true] %s22_s8 }
   0x9   :  { %28 = dma.hbm_to_vmem [thread:$0]  %s21_s28, 4096, %s23_s8, [#allocation4], %s3830_s29, %s3830_s29, %s3831_s30  }
   0xa   :  { %s48_s12 = sshll.u32 %s3833_s1, 4  ;;  %s62_s0 = sshll.u32 %s4588_s4, 4  ;;  %s49_s12 = int_to_ptr.vmem [resolvable:$true] %s48_s12  ;;  %s63_s0 = int_to_ptr.hbm [resolvable:$true] %s62_s0 }
   0xb   :  { %s3834_s15 = smov 256   ;;  %s3835_s16 = smov 16  }
   0xc   :  { %54 = dma.hbm_to_vmem [thread:$0]  %s47_s11, 8192, %s49_s12, [#allocation7], %s3834_s15, %s3834_s15, %s3835_s16  }
   0xd   :  { %s3836_s17 = smov [#allocation9]  }
   0xe   :  { %s64_s18 = sshll.u32 %s3836_s17, 4  ;;  %s65_s18 = int_to_ptr.vmem [resolvable:$true] %s64_s18 }
   0xf   :  { %67 = dma.hbm_to_vmem [thread:$0]  %s63_s0, 64, %s65_s18, [#allocation10]  }
  0x10   :  { %3821 = dma.done.wait [#allocation4], 4096  }
  0x11   :  { %3822 = vsyncadd [#allocation4], 4294963200 }
  0x12   :  { %3823 = dma.done.wait [#allocation7], 12288  }
  0x13   :  { %3824 = vsyncadd [#allocation7], 4294955008 }
  0x14   :  { %3825 = dma.done.wait [#allocation10], 64  }
  0x15   :  { %3826 = vsyncadd [#allocation10], 4294967232  ;;  %v3357_v0 = vld [vmem:[#allocation8 + $0xe0] sm:$0xf]  ;;  %v3593_v1 = vld [vmem:[#allocation8 + $0xec] sm:$0xf0] }
  0x16   :  { %v3485_v2 = vld [vmem:[#allocation8 + $0x1e0] sm:$0xf]  ;;  %v3358_v3 = vor.u32 %v3593_v1, %v3357_v0  ;;  %v3625_v4 = vld [vmem:[#allocation8 + $0x1ec] sm:$0xf0]  ;;  %v3591_v5 = vld [vmem:[#allocation8 + $0xe4] sm:$0xf] }
  0x17   :  { %v3359_v6 = vld [vmem:[#allocation8 + $0xf0] sm:$0xf0]  ;;  %v3486_v7 = vor.u32 %v3625_v4, %v3485_v2  ;;  %v3623_v9 = vld [vmem:[#allocation8 + $0x1e4] sm:$0xf]  ;;  %v3341_v11 = vld [vmem:[#allocation8 + $0xc0] sm:$0xf] }
  0x18   :  { %v3362_v8 = vor.u32 %v3591_v5, %v3359_v6  ;;  %v3487_v10 = vld [vmem:[#allocation8 + $0x1f0] sm:$0xf0]  ;;  %992 = vmatpush.bf16.msra.mxu0 %v3358_v3  ;;  %v3589_v13 = vld [vmem:[#allocation8 + $0xcc] sm:$0xf0]  ;;  %v3469_v14 = vld [vmem:[#allocation8 + $0x1c0] sm:$0xf] }
  0x19   :  { %v3490_v12 = vor.u32 %v3623_v9, %v3487_v10  ;;  %v3621_v15 = vld [vmem:[#allocation8 + $0x1cc] sm:$0xf0]  ;;  %1161 = vmatpush.bf16.msra.mxu1 %v3486_v7  ;;  %v3342_v16 = vor.u32 %v3589_v13, %v3341_v11  ;;  %v3587_v18 = vld [vmem:[#allocation8 + $0xc4] sm:$0xf]  ;;  %v3343_v19 = vld [vmem:[#allocation8 + $0xd0] sm:$0xf0] }
  0x1a   :  { %1330 = vmatpush.bf16.msra.mxu2 %v3362_v8  ;;  %v3470_v17 = vor.u32 %v3621_v15, %v3469_v14  ;;  %v3619_v20 = vld [vmem:[#allocation8 + $0x1c4] sm:$0xf]  ;;  %v3346_v21 = vor.u32 %v3587_v18, %v3343_v19  ;;  %v3471_v22 = vld [vmem:[#allocation8 + $0x1d0] sm:$0xf0]  ;;  %v3325_v23 = vld [vmem:[#allocation8 + $0xa0] sm:$0xf] }
  0x1b   :  { %1499 = vmatpush.bf16.msra.mxu3 %v3490_v12  ;;  %v3585_v24 = vld [vmem:[#allocation8 + $0xac] sm:$0xf0]  ;;  %v3474_v25 = vor.u32 %v3619_v20, %v3471_v22  ;;  %v3453_v26 = vld [vmem:[#allocation8 + $0x1a0] sm:$0xf]  ;;  %v3583_v28 = vld [vmem:[#allocation8 + $0xa4] sm:$0xf] }
  0x1c   :  { %v3617_v27 = vld [vmem:[#allocation8 + $0x1ac] sm:$0xf0]  ;;  %993 = vmatpush.bf16.msra.mxu0 %v3342_v16  ;;  %v3326_v29 = vor.u32 %v3585_v24, %v3325_v23  ;;  %v3327_v30 = vld [vmem:[#allocation8 + $0xb0] sm:$0xf0]  ;;  %v3615_v31 = vld [vmem:[#allocation8 + $0x1a4] sm:$0xf] }
  0x1d   :  { %v3455_v32 = vld [vmem:[#allocation8 + $0x1b0] sm:$0xf0]  ;;  %1162 = vmatpush.bf16.msra.mxu1 %v3470_v17  ;;  %v3454_v33 = vor.u32 %v3617_v27, %v3453_v26  ;;  %v3330_v34 = vor.u32 %v3583_v28, %v3327_v30  ;;  %v3309_v35 = vld [vmem:[#allocation8 + $0x80] sm:$0xf]  ;;  %v3581_v36 = vld [vmem:[#allocation8 + $0x8c] sm:$0xf0] }
  0x1e   :  { %1331 = vmatpush.bf16.msra.mxu2 %v3346_v21  ;;  %v3437_v37 = vld [vmem:[#allocation8 + $0x180] sm:$0xf]  ;;  %v3458_v38 = vor.u32 %v3615_v31, %v3455_v32  ;;  %v3613_v39 = vld [vmem:[#allocation8 + $0x18c] sm:$0xf0]  ;;  %v3579_v40 = vld [vmem:[#allocation8 + $0x84] sm:$0xf]  ;;  %v3310_v44 = vor.u32 %v3581_v36, %v3309_v35 }
  0x1f   :  { %1500 = vmatpush.bf16.msra.mxu3 %v3474_v25  ;;  %v3311_v41 = vld [vmem:[#allocation8 + $0x90] sm:$0xf0]  ;;  %v3611_v42 = vld [vmem:[#allocation8 + $0x184] sm:$0xf]  ;;  %v3438_v45 = vor.u32 %v3613_v39, %v3437_v37  ;;  %v3293_v47 = vld [vmem:[#allocation8 + $0x60] sm:$0xf] }
  0x20   :  { %v3439_v43 = vld [vmem:[#allocation8 + $0x190] sm:$0xf0]  ;;  %994 = vmatpush.bf16.msra.mxu0 %v3326_v29  ;;  %v3314_v46 = vor.u32 %v3579_v40, %v3311_v41  ;;  %v3577_v48 = vld [vmem:[#allocation8 + $0x6c] sm:$0xf0]  ;;  %v3421_v49 = vld [vmem:[#allocation8 + $0x160] sm:$0xf] }
  0x21   :  { %1163 = vmatpush.bf16.msra.mxu1 %v3454_v33  ;;  %v3442_v50 = vor.u32 %v3611_v42, %v3439_v43  ;;  %v3609_v51 = vld [vmem:[#allocation8 + $0x16c] sm:$0xf0]  ;;  %v3575_v52 = vld [vmem:[#allocation8 + $0x64] sm:$0xf]  ;;  %v3295_v53 = vld [vmem:[#allocation8 + $0x70] sm:$0xf0]  ;;  %v3294_v56 = vor.u32 %v3577_v48, %v3293_v47 }
  0x22   :  { %1332 = vmatpush.bf16.msra.mxu2 %v3330_v34  ;;  %v3607_v54 = vld [vmem:[#allocation8 + $0x164] sm:$0xf]  ;;  %v3423_v55 = vld [vmem:[#allocation8 + $0x170] sm:$0xf0]  ;;  %v3422_v57 = vor.u32 %v3609_v51, %v3421_v49  ;;  %v3298_v58 = vor.u32 %v3575_v52, %v3295_v53  ;;  %v3277_v59 = vld [vmem:[#allocation8 + $0x40] sm:$0xf] }
  0x23   :  { %1501 = vmatpush.bf16.msra.mxu3 %v3458_v38  ;;  %v3573_v60 = vld [vmem:[#allocation8 + $0x4c] sm:$0xf0]  ;;  %v3405_v61 = vld [vmem:[#allocation8 + $0x140] sm:$0xf]  ;;  %v3426_v62 = vor.u32 %v3607_v54, %v3423_v55  ;;  %v3571_v0 = vld [vmem:[#allocation8 + $0x44] sm:$0xf] }
  0x24   :  { %995 = vmatpush.bf16.msra.mxu0 %v3310_v44  ;;  %v3605_v63 = vld [vmem:[#allocation8 + $0x14c] sm:$0xf0]  ;;  %v3279_v1 = vld [vmem:[#allocation8 + $0x50] sm:$0xf0]  ;;  %v3603_v2 = vld [vmem:[#allocation8 + $0x144] sm:$0xf]  ;;  %v3278_v4 = vor.u32 %v3573_v60, %v3277_v59 }
  0x25   :  { %1164 = vmatpush.bf16.msra.mxu1 %v3438_v45  ;;  %v3407_v3 = vld [vmem:[#allocation8 + $0x150] sm:$0xf0]  ;;  %v3406_v5 = vor.u32 %v3605_v63, %v3405_v61  ;;  %v3282_v6 = vor.u32 %v3571_v0, %v3279_v1  ;;  %v3261_v7 = vld [vmem:[#allocation8 + $0x20] sm:$0xf]  ;;  %v3569_v8 = vld [vmem:[#allocation8 + $0x2c] sm:$0xf0] }
  0x26   :  { %1333 = vmatpush.bf16.msra.mxu2 %v3314_v46  ;;  %v3389_v9 = vld [vmem:[#allocation8 + $0x120] sm:$0xf]  ;;  %v3410_v10 = vor.u32 %v3603_v2, %v3407_v3  ;;  %v3601_v11 = vld [vmem:[#allocation8 + $0x12c] sm:$0xf0]  ;;  %v3567_v12 = vld [vmem:[#allocation8 + $0x24] sm:$0xf]  ;;  %v3262_v16 = vor.u32 %v3569_v8, %v3261_v7 }
  0x27   :  { %1502 = vmatpush.bf16.msra.mxu3 %v3442_v50  ;;  %v3263_v13 = vld [vmem:[#allocation8 + $0x30] sm:$0xf0]  ;;  %v3599_v14 = vld [vmem:[#allocation8 + $0x124] sm:$0xf]  ;;  %v3390_v17 = vor.u32 %v3601_v11, %v3389_v9  ;;  %v3245_v19 = vld [vmem:[#allocation8] sm:$0xf] }
  0x28   :  { %996 = vmatpush.bf16.msra.mxu0 %v3294_v56  ;;  %v3391_v15 = vld [vmem:[#allocation8 + $0x130] sm:$0xf0]  ;;  %v3266_v18 = vor.u32 %v3567_v12, %v3263_v13  ;;  %v3565_v20 = vld [vmem:[#allocation8 + $0xc] sm:$0xf0]  ;;  %v3373_v21 = vld [vmem:[#allocation8 + $0x100] sm:$0xf] }
  0x29   :  { %1165 = vmatpush.bf16.msra.mxu1 %v3422_v57  ;;  %v3394_v22 = vor.u32 %v3599_v14, %v3391_v15  ;;  %v3597_v23 = vld [vmem:[#allocation8 + $0x10c] sm:$0xf0]  ;;  %v3563_v24 = vld [vmem:[#allocation8 + $0x4] sm:$0xf]  ;;  %v3247_v25 = vld [vmem:[#allocation8 + $0x10] sm:$0xf0]  ;;  %v3246_v28 = vor.u32 %v3565_v20, %v3245_v19 }
  0x2a   :  { %1334 = vmatpush.bf16.msra.mxu2 %v3298_v58  ;;  %v3595_v26 = vld [vmem:[#allocation8 + $0x104] sm:$0xf]  ;;  %v3375_v27 = vld [vmem:[#allocation8 + $0x110] sm:$0xf0]  ;;  %v3374_v29 = vor.u32 %v3597_v23, %v3373_v21  ;;  %v3250_v30 = vor.u32 %v3563_v24, %v3247_v25  ;;  %v3500_v34 = vld [vmem:[#allocation3 + $0x8] sm:$0xff]  ;;  %vm2956_vm0 = vcmask 1040384  }
  0x2b   :  { %1503 = vmatpush.bf16.msra.mxu3 %v3426_v62  ;;  %v3378_v31 = vor.u32 %v3595_v26, %v3375_v27  ;;  %v3499_v32 = vld [vmem:[#allocation3] sm:$0xff]  ;;  %v3532_v35 = vld [vmem:[#allocation6 + $0x8] sm:$0xff]  ;;  %v3501_v36 = vld [vmem:[#allocation3 + $0x10] sm:$0xff]  ;;  %vm2958_vm1 = vcmask 1042434   ;;  %s2975_s25 = sshll.u32 %s4590_s6, 4  ;;  %vm2960_vm2 = vcmask 1041408   ;;  %s2976_s25 = int_to_ptr.hbm [resolvable:$true] %s2975_s25 }
  0x2c   :  { %997 = vmatpush.bf16.msra.mxu0 %v3278_v4  ;;  %v3531_v33 = vld [vmem:[#allocation6] sm:$0xff]  ;;  %v3533_v37 = vld [vmem:[#allocation6 + $0x10] sm:$0xff]  ;;  %v3502_v38 = vld [vmem:[#allocation3 + $0x18] sm:$0xff] }
  0x2d   :  { %1166 = vmatpush.bf16.msra.mxu1 %v3406_v5  ;;  %v3534_v39 = vld [vmem:[#allocation6 + $0x18] sm:$0xff]  ;;  %v3503_v40 = vld [vmem:[#allocation3 + $0x20] sm:$0xff]  ;;  %v3504_v42 = vld [vmem:[#allocation3 + $0x28] sm:$0xff] }
  0x2e   :  { %1335 = vmatpush.bf16.msra.mxu2 %v3282_v6  ;;  %v3535_v41 = vld [vmem:[#allocation6 + $0x20] sm:$0xff]  ;;  %v3536_v43 = vld [vmem:[#allocation6 + $0x28] sm:$0xff]  ;;  %v3505_v44 = vld [vmem:[#allocation3 + $0x30] sm:$0xff] }
  0x2f   :  { %1504 = vmatpush.bf16.msra.mxu3 %v3410_v10  ;;  %v3537_v45 = vld [vmem:[#allocation6 + $0x30] sm:$0xff]  ;;  %v3506_v46 = vld [vmem:[#allocation3 + $0x38] sm:$0xff]  ;;  %v3592_v48 = vld [vmem:[#allocation8 + $0xec] sm:$0xf] }
  0x30   :  { %998 = vmatpush.bf16.msra.mxu0 %v3262_v16  ;;  %v3538_v47 = vld [vmem:[#allocation6 + $0x38] sm:$0xff]  ;;  %v3624_v50 = vld [vmem:[#allocation8 + $0x1ec] sm:$0xf]  ;;  %v3365_v55 = vld [vmem:[#allocation8 + $0xe8] sm:$0xf] }
  0x31   :  { %1167 = vmatpush.bf16.msra.mxu1 %v3390_v17  ;;  %v3367_v49 = vld [vmem:[#allocation8 + $0xf8] sm:$0xf0]  ;;  %v662_v54 = vld [vmem:[%s4587_s3] sm:$0xf]  ;;  %v3493_v59 = vld [vmem:[#allocation8 + $0x1e8] sm:$0xf] }
  0x32   :  { %1336 = vmatpush.bf16.msra.mxu2 %v3266_v18  ;;  %v3370_v51 = vor.u32 %v3592_v48, %v3367_v49  ;;  %v3495_v52 = vld [vmem:[#allocation8 + $0x1f8] sm:$0xf0]  ;;  %v3594_v56 = vld [vmem:[#allocation8 + $0xf4] sm:$0xf0]  ;;  %v3888_v57 = vperm.slane %v662_v54, 0  ;;  %v3507_v62 = vld [vmem:[#allocation3 + $0x40] sm:$0xff] }
  0x33   :  { %1505 = vmatpush.bf16.msra.mxu3 %v3394_v22  ;;  %v3498_v53 = vor.u32 %v3624_v50, %v3495_v52  ;;  %v3366_v58 = vor.u32 %v3594_v56, %v3365_v55  ;;  %v3626_v60 = vld [vmem:[#allocation8 + $0x1f4] sm:$0xf0]  ;;  %v3539_v0 = vld [vmem:[#allocation6 + $0x40] sm:$0xff]  ;;  %v3891_v4 = vperm.slane %v662_v54, 1  ;;  %v3508_v16 = vld [vmem:[#allocation3 + $0x48] sm:$0xff] }
  0x34   :  { %999 = vmatpush.bf16.msra.mxu0 %v3246_v28  ;;  %v3494_v61 = vor.u32 %v3626_v60, %v3493_v59  ;;  %v3540_v21 = vld [vmem:[#allocation6 + $0x48] sm:$0xff] }
  0x35   :  { %1168 = vmatpush.bf16.msra.mxu1 %v3374_v29 }
  0x36   :  { %1337 = vmatpush.bf16.msra.mxu2 %v3250_v30 }
  0x37   :  { %1506 = vmatpush.bf16.msra.mxu3 %v3378_v31  ;;  %1000 = vmatmul.bf16.vlgmr.msra.gmra.mxu0 %v3499_v32 }
  0x38   :  { %1169 = vmatmul.bf16.vlgmr.msra.gmra.mxu1 %v3531_v33  ;;  %1668 = vmatpush.bf16.msrb.mxu0 %v3366_v58 }
  0x39   :  { %1338 = vmatmul.bf16.vlgmr.msra.gmra.mxu2 %v3499_v32  ;;  %1837 = vmatpush.bf16.msrb.mxu1 %v3494_v61 }
  0x3a   :  { %1507 = vmatmul.bf16.vlgmr.msra.gmra.mxu3 %v3531_v33  ;;  %2006 = vmatpush.bf16.msrb.mxu2 %v3370_v51 }
  0x3b   :  { %2175 = vmatpush.bf16.msrb.mxu3 %v3498_v53 }
  0x47   :  { %1005 = vmatmul.bf16.gmra.mxu0 %v3500_v34 }
  0x48   :  { %1174 = vmatmul.bf16.gmra.mxu1 %v3532_v35 }
  0x49   :  { %1343 = vmatmul.bf16.gmra.mxu2 %v3500_v34 }
  0x4a   :  { %1512 = vmatmul.bf16.gmra.mxu3 %v3532_v35 }
  0x57   :  { %1010 = vmatmul.bf16.gmra.mxu0 %v3501_v36 }
  0x58   :  { %1179 = vmatmul.bf16.gmra.mxu1 %v3533_v37 }
  0x59   :  { %1348 = vmatmul.bf16.gmra.mxu2 %v3501_v36 }
  0x5a   :  { %1517 = vmatmul.bf16.gmra.mxu3 %v3533_v37 }
  0x67   :  { %1015 = vmatmul.bf16.gmra.mxu0 %v3502_v38 }
  0x68   :  { %1184 = vmatmul.bf16.gmra.mxu1 %v3534_v39 }
  0x69   :  { %1353 = vmatmul.bf16.gmra.mxu2 %v3502_v38 }
  0x6a   :  { %1522 = vmatmul.bf16.gmra.mxu3 %v3534_v39 }
  0x77   :  { %1020 = vmatmul.bf16.gmra.mxu0 %v3503_v40 }
  0x78   :  { %1189 = vmatmul.bf16.gmra.mxu1 %v3535_v41 }
  0x79   :  { %1358 = vmatmul.bf16.gmra.mxu2 %v3503_v40  ;;  %v3509_v40 = vld [vmem:[#allocation3 + $0x50] sm:$0xff] }
  0x7a   :  { %1527 = vmatmul.bf16.gmra.mxu3 %v3535_v41 }
  0x87   :  { %1025 = vmatmul.bf16.gmra.mxu0 %v3504_v42 }
  0x88   :  { %1194 = vmatmul.bf16.gmra.mxu1 %v3536_v43 }
  0x89   :  { %1363 = vmatmul.bf16.gmra.mxu2 %v3504_v42 }
  0x8a   :  { %1532 = vmatmul.bf16.gmra.mxu3 %v3536_v43 }
  0x97   :  { %1030 = vmatmul.bf16.gmra.mxu0 %v3505_v44 }
  0x98   :  { %1199 = vmatmul.bf16.gmra.mxu1 %v3537_v45 }
  0x99   :  { %1368 = vmatmul.bf16.gmra.mxu2 %v3505_v44 }
  0x9a   :  { %1537 = vmatmul.bf16.gmra.mxu3 %v3537_v45  ;;  %v3541_v45 = vld [vmem:[#allocation6 + $0x50] sm:$0xff] }
  0xa7   :  { %1035 = vmatmul.bf16.gmra.mxu0 %v3506_v46 }
  0xa8   :  { %1204 = vmatmul.bf16.gmra.mxu1 %v3538_v47 }
  0xa9   :  { %1373 = vmatmul.bf16.gmra.mxu2 %v3506_v46 }
  0xaa   :  { %1542 = vmatmul.bf16.gmra.mxu3 %v3538_v47 }
  0xb4   :  { %v1001_v63 = vpop.f32.mrf.mxu0 }
  0xb5   :  { %v1002_v1 = vadd.f32 %v1001_v63, %v3888_v57  ;;  %v1170_v2 = vpop.f32.mrf.mxu1 }
  0xb7   :  { %v1171_v3 = vadd.f32 %v1170_v2, %v1002_v1  ;;  %1040 = vmatmul.bf16.gmra.mxu0 %v3507_v62  ;;  %v3510_v1 = vld [vmem:[#allocation3 + $0x58] sm:$0xff] }
  0xb8   :  { %1209 = vmatmul.bf16.gmra.mxu1 %v3539_v0 }
  0xb9   :  { %1378 = vmatmul.bf16.gmra.mxu2 %v3507_v62  ;;  %v2344_v13 = vmax.f32 %v1171_v3, 0.0 }
  0xba   :  { %1547 = vmatmul.bf16.gmra.mxu3 %v3539_v0 }
  0xbc   :  { %v1339_v5 = vpop.f32.mrf.mxu2  ;;  %v1003_v8 = vpop.f32.mrf.mxu0 }
  0xbd   :  { %v1340_v6 = vadd.f32 %v1339_v5, %v3891_v4  ;;  %v1508_v7 = vpop.f32.mrf.mxu3  ;;  %v1004_v9 = vadd.f32 %v1003_v8, %v3888_v57  ;;  %v1172_v10 = vpop.f32.mrf.mxu1 }
  0xbf   :  { %v1509_v11 = vadd.f32 %v1508_v7, %v1340_v6  ;;  %v1173_v12 = vadd.f32 %v1172_v10, %v1004_v9  ;;  %v3542_v7 = vld [vmem:[#allocation6 + $0x58] sm:$0xff] }
  0xc1   :  { %v2348_v14 = vmax.f32 %v1173_v12, 0.0  ;;  %v2345_v26 = vmax.f32 %v1509_v11, 0.0 }
  0xc3   :  { %v3895_v17 = vpack.c.bf16 %v2348_v14, %v2344_v13  ;;  %v3588_v14 = vld [vmem:[#allocation8 + $0xcc] sm:$0xf] }
  0xc4   :  { %v1341_v15 = vpop.f32.mrf.mxu2  ;;  %v1006_v20 = vpop.f32.mrf.mxu0 }
  0xc5   :  { %v1342_v18 = vadd.f32 %v1341_v15, %v3891_v4  ;;  %v1510_v19 = vpop.f32.mrf.mxu3  ;;  %v1007_v22 = vadd.f32 %v1006_v20, %v3888_v57  ;;  %v1175_v23 = vpop.f32.mrf.mxu1  ;;  %v3351_v15 = vld [vmem:[#allocation8 + $0xd8] sm:$0xf0] }
  0xc7   :  { %v1511_v24 = vadd.f32 %v1510_v19, %v1342_v18  ;;  %v1176_v25 = vadd.f32 %v1175_v23, %v1007_v22  ;;  %1045 = vmatmul.bf16.gmra.mxu0 %v3508_v16  ;;  %v3620_v18 = vld [vmem:[#allocation8 + $0x1cc] sm:$0xf]  ;;  %v3479_v19 = vld [vmem:[#allocation8 + $0x1d8] sm:$0xf0] }
  0xc8   :  { %1214 = vmatmul.bf16.gmra.mxu1 %v3540_v21  ;;  %v3482_v22 = vor.u32 %v3620_v18, %v3479_v19  ;;  %v3461_v19 = vld [vmem:[#allocation8 + $0x1a8] sm:$0xf] }
  0xc9   :  { %v2349_v27 = vmax.f32 %v1511_v24, 0.0  ;;  %1383 = vmatmul.bf16.gmra.mxu2 %v3508_v16  ;;  %v2352_v37 = vmax.f32 %v1176_v25, 0.0  ;;  %v3354_v16 = vor.u32 %v3588_v14, %v3351_v15  ;;  %v3544_v15 = vld [vmem:[#allocation6 + $0x68] sm:$0xff] }
  0xca   :  { %1552 = vmatmul.bf16.gmra.mxu3 %v3540_v21 }
  0xcb   :  { %v3899_v28 = vpack.c.bf16 %v2349_v27, %v2345_v26  ;;  %2007 = vmatpush.bf16.msrb.mxu2 %v3354_v16  ;;  %2176 = vmatpush.bf16.msrb.mxu3 %v3482_v22 }
  0xcc   :  { %v1344_v29 = vpop.f32.mrf.mxu2  ;;  %v1008_v32 = vpop.f32.mrf.mxu0 }
  0xcd   :  { %v1345_v30 = vadd.f32 %v1344_v29, %v3891_v4  ;;  %v1513_v31 = vpop.f32.mrf.mxu3  ;;  %v1009_v33 = vadd.f32 %v1008_v32, %v3888_v57  ;;  %v1177_v34 = vpop.f32.mrf.mxu1  ;;  %v3590_v32 = vld [vmem:[#allocation8 + $0xd4] sm:$0xf0] }
  0xcf   :  { %v1514_v35 = vadd.f32 %v1513_v31, %v1345_v30  ;;  %v1178_v36 = vadd.f32 %v1177_v34, %v1009_v33  ;;  %v3349_v31 = vld [vmem:[#allocation8 + $0xc8] sm:$0xf] }
  0xd1   :  { %v2356_v38 = vmax.f32 %v1178_v36, 0.0  ;;  %v2353_v50 = vmax.f32 %v1514_v35, 0.0  ;;  %v3350_v35 = vor.u32 %v3590_v32, %v3349_v31  ;;  %v3477_v36 = vld [vmem:[#allocation8 + $0x1c8] sm:$0xf]  ;;  %v3614_v31 = vld [vmem:[#allocation8 + $0x194] sm:$0xf0] }
  0xd3   :  { %v3903_v41 = vpack.c.bf16 %v2356_v38, %v2352_v37  ;;  %v3622_v37 = vld [vmem:[#allocation8 + $0x1d4] sm:$0xf0]  ;;  %1669 = vmatpush.bf16.msrb.mxu0 %v3350_v35  ;;  %v3285_v35 = vld [vmem:[#allocation8 + $0x48] sm:$0xf] }
  0xd4   :  { %v1346_v39 = vpop.f32.mrf.mxu2  ;;  %v1011_v44 = vpop.f32.mrf.mxu0  ;;  %v3478_v38 = vor.u32 %v3622_v37, %v3477_v36  ;;  %v3574_v36 = vld [vmem:[#allocation8 + $0x54] sm:$0xf0] }
  0xd5   :  { %v1347_v42 = vadd.f32 %v1346_v39, %v3891_v4  ;;  %v1515_v43 = vpop.f32.mrf.mxu3  ;;  %v1012_v46 = vadd.f32 %v1011_v44, %v3888_v57  ;;  %v1180_v47 = vpop.f32.mrf.mxu1 }
  0xd6   :  { %1838 = vmatpush.bf16.msrb.mxu1 %v3478_v38 }
  0xd7   :  { %v1516_v48 = vadd.f32 %v1515_v43, %v1347_v42  ;;  %v1181_v49 = vadd.f32 %v1180_v47, %v1012_v46  ;;  %1050 = vmatmul.bf16.gmra.mxu0 %v3509_v40  ;;  %v3543_v46 = vld [vmem:[#allocation6 + $0x60] sm:$0xff] }
  0xd8   :  { %1219 = vmatmul.bf16.gmra.mxu1 %v3541_v45 }
  0xd9   :  { %v2357_v51 = vmax.f32 %v1516_v48, 0.0  ;;  %1388 = vmatmul.bf16.gmra.mxu2 %v3509_v40  ;;  %v2360_v62 = vmax.f32 %v1181_v49, 0.0  ;;  %v3511_v40 = vld [vmem:[#allocation3 + $0x60] sm:$0xff] }
  0xda   :  { %1557 = vmatmul.bf16.gmra.mxu3 %v3541_v45 }
  0xdb   :  { %v3907_v52 = vpack.c.bf16 %v2357_v51, %v2353_v50 }
  0xdc   :  { %v1349_v53 = vpop.f32.mrf.mxu2  ;;  %v1013_v56 = vpop.f32.mrf.mxu0 }
  0xdd   :  { %v1350_v54 = vadd.f32 %v1349_v53, %v3891_v4  ;;  %v1518_v55 = vpop.f32.mrf.mxu3  ;;  %v1014_v58 = vadd.f32 %v1013_v56, %v3888_v57  ;;  %v1182_v59 = vpop.f32.mrf.mxu1 }
  0xdf   :  { %v1519_v60 = vadd.f32 %v1518_v55, %v1350_v54  ;;  %v1183_v61 = vadd.f32 %v1182_v59, %v1014_v58 }
  0xe1   :  { %v2364_v63 = vmax.f32 %v1183_v61, 0.0  ;;  %v2361_v12 = vmax.f32 %v1519_v60, 0.0 }
  0xe3   :  { %v3911_v2 = vpack.c.bf16 %v2364_v63, %v2360_v62 }
  0xe4   :  { %v1351_v0 = vpop.f32.mrf.mxu2  ;;  %v1016_v6 = vpop.f32.mrf.mxu0 }
  0xe5   :  { %v1352_v3 = vadd.f32 %v1351_v0, %v3891_v4  ;;  %v1520_v5 = vpop.f32.mrf.mxu3  ;;  %v1017_v8 = vadd.f32 %v1016_v6, %v3888_v57  ;;  %v1185_v9 = vpop.f32.mrf.mxu1  ;;  %v3333_v0 = vld [vmem:[#allocation8 + $0xa8] sm:$0xf] }
  0xe7   :  { %v1521_v10 = vadd.f32 %v1520_v5, %v1352_v3  ;;  %v1186_v11 = vadd.f32 %v1185_v9, %v1017_v8  ;;  %1055 = vmatmul.bf16.gmra.mxu0 %v3510_v1  ;;  %v3512_v8 = vld [vmem:[#allocation3 + $0x68] sm:$0xff] }
  0xe8   :  { %1224 = vmatmul.bf16.gmra.mxu1 %v3542_v7  ;;  %v3317_v9 = vld [vmem:[#allocation8 + $0x88] sm:$0xf] }
  0xe9   :  { %v2365_v13 = vmax.f32 %v1521_v10, 0.0  ;;  %1393 = vmatmul.bf16.gmra.mxu2 %v3510_v1  ;;  %v2368_v33 = vmax.f32 %v1186_v11, 0.0  ;;  %v3586_v1 = vld [vmem:[#allocation8 + $0xb4] sm:$0xf0] }
  0xea   :  { %1562 = vmatmul.bf16.gmra.mxu3 %v3542_v7  ;;  %v3334_v3 = vor.u32 %v3586_v1, %v3333_v0  ;;  %v3582_v10 = vld [vmem:[#allocation8 + $0x94] sm:$0xf0]  ;;  %v3397_v0 = vld [vmem:[#allocation8 + $0x128] sm:$0xf] }
  0xeb   :  { %v3915_v20 = vpack.c.bf16 %v2365_v13, %v2361_v12  ;;  %v3318_v16 = vor.u32 %v3582_v10, %v3317_v9  ;;  %v3602_v1 = vld [vmem:[#allocation8 + $0x134] sm:$0xf0] }
  0xec   :  { %v1354_v21 = vpop.f32.mrf.mxu2  ;;  %v1018_v25 = vpop.f32.mrf.mxu0  ;;  %1670 = vmatpush.bf16.msrb.mxu0 %v3334_v3  ;;  %v3398_v3 = vor.u32 %v3602_v1, %v3397_v0  ;;  %v3547_v1 = vld [vmem:[#allocation6 + $0x80] sm:$0xff] }
  0xed   :  { %v1355_v23 = vadd.f32 %v1354_v21, %v3891_v4  ;;  %v1523_v24 = vpop.f32.mrf.mxu3  ;;  %v1019_v26 = vadd.f32 %v1018_v25, %v3888_v57  ;;  %v1187_v27 = vpop.f32.mrf.mxu1  ;;  %v3618_v21 = vld [vmem:[#allocation8 + $0x1b4] sm:$0xf0] }
  0xef   :  { %v1524_v29 = vadd.f32 %v1523_v24, %v1355_v23  ;;  %v1188_v30 = vadd.f32 %v1187_v27, %v1019_v26  ;;  %v3462_v23 = vor.u32 %v3618_v21, %v3461_v19  ;;  %v3301_v24 = vld [vmem:[#allocation8 + $0x68] sm:$0xf]  ;;  %v3578_v27 = vld [vmem:[#allocation8 + $0x74] sm:$0xf0] }
  0xf0   :  { %1671 = vmatpush.bf16.msrb.mxu0 %v3318_v16  ;;  %v3546_v21 = vld [vmem:[#allocation6 + $0x78] sm:$0xff] }
  0xf1   :  { %v2372_v34 = vmax.f32 %v1188_v30, 0.0  ;;  %v2369_v51 = vmax.f32 %v1524_v29, 0.0  ;;  %1839 = vmatpush.bf16.msrb.mxu1 %v3462_v23  ;;  %v3302_v29 = vor.u32 %v3578_v27, %v3301_v24  ;;  %v3445_v30 = vld [vmem:[#allocation8 + $0x188] sm:$0xf]  ;;  %v3584_v24 = vld [vmem:[#allocation8 + $0xac] sm:$0xf] }
  0xf2   :  { %v3446_v32 = vor.u32 %v3614_v31, %v3445_v30  ;;  %v3616_v27 = vld [vmem:[#allocation8 + $0x1ac] sm:$0xf] }
  0xf3   :  { %v3919_v42 = vpack.c.bf16 %v2372_v34, %v2368_v33 }
  0xf4   :  { %v1356_v39 = vpop.f32.mrf.mxu2  ;;  %v1021_v45 = vpop.f32.mrf.mxu0  ;;  %1672 = vmatpush.bf16.msrb.mxu0 %v3302_v29  ;;  %v3463_v29 = vld [vmem:[#allocation8 + $0x1b8] sm:$0xf0] }
  0xf5   :  { %v1357_v43 = vadd.f32 %v1356_v39, %v3891_v4  ;;  %v1525_v44 = vpop.f32.mrf.mxu3  ;;  %v1022_v47 = vadd.f32 %v1021_v45, %v3888_v57  ;;  %v1190_v48 = vpop.f32.mrf.mxu1  ;;  %v3286_v39 = vor.u32 %v3574_v36, %v3285_v35  ;;  %1840 = vmatpush.bf16.msrb.mxu1 %v3446_v32  ;;  %v3466_v31 = vor.u32 %v3616_v27, %v3463_v29 }
  0xf7   :  { %v1526_v49 = vadd.f32 %v1525_v44, %v1357_v43  ;;  %v1191_v50 = vadd.f32 %v1190_v48, %v1022_v47  ;;  %1060 = vmatmul.bf16.gmra.mxu0 %v3511_v40  ;;  %v3429_v43 = vld [vmem:[#allocation8 + $0x168] sm:$0xf]  ;;  %v3610_v44 = vld [vmem:[#allocation8 + $0x174] sm:$0xf0]  ;;  %2177 = vmatpush.bf16.msrb.mxu3 %v3466_v31 }
  0xf8   :  { %1229 = vmatmul.bf16.gmra.mxu1 %v3543_v46  ;;  %v3430_v45 = vor.u32 %v3610_v44, %v3429_v43  ;;  %1673 = vmatpush.bf16.msrb.mxu0 %v3286_v39  ;;  %v3570_v47 = vld [vmem:[#allocation8 + $0x34] sm:$0xf0] }
  0xf9   :  { %v2373_v53 = vmax.f32 %v1526_v49, 0.0  ;;  %1398 = vmatmul.bf16.gmra.mxu2 %v3511_v40  ;;  %v2376_v5 = vmax.f32 %v1191_v50, 0.0  ;;  %v3413_v49 = vld [vmem:[#allocation8 + $0x148] sm:$0xf]  ;;  %v3606_v50 = vld [vmem:[#allocation8 + $0x154] sm:$0xf0] }
  0xfa   :  { %1567 = vmatmul.bf16.gmra.mxu3 %v3543_v46  ;;  %v3269_v46 = vld [vmem:[#allocation8 + $0x28] sm:$0xf]  ;;  %1841 = vmatpush.bf16.msrb.mxu1 %v3430_v45 }
  0xfb   :  { %v3923_v54 = vpack.c.bf16 %v2373_v53, %v2369_v51  ;;  %v3270_v48 = vor.u32 %v3570_v47, %v3269_v46  ;;  %v3414_v51 = vor.u32 %v3606_v50, %v3413_v49 }
  0xfc   :  { %v1359_v55 = vpop.f32.mrf.mxu2  ;;  %v1023_v59 = vpop.f32.mrf.mxu0 }
  0xfd   :  { %v1360_v56 = vadd.f32 %v1359_v55, %v3891_v4  ;;  %v1528_v58 = vpop.f32.mrf.mxu3  ;;  %v1024_v60 = vadd.f32 %v1023_v59, %v3888_v57  ;;  %v1192_v61 = vpop.f32.mrf.mxu1  ;;  %v3513_v55 = vld [vmem:[#allocation3 + $0x70] sm:$0xff]  ;;  %1674 = vmatpush.bf16.msrb.mxu0 %v3270_v48 }
  0xfe   :  { %1842 = vmatpush.bf16.msrb.mxu1 %v3414_v51 }
  0xff   :  { %v1529_v62 = vadd.f32 %v1528_v58, %v1360_v56  ;;  %v1193_v63 = vadd.f32 %v1192_v61, %v1024_v60  ;;  %v3253_v56 = vld [vmem:[#allocation8 + $0x8] sm:$0xf]  ;;  %v3566_v58 = vld [vmem:[#allocation8 + $0x14] sm:$0xf0]  ;;  %v3545_v61 = vld [vmem:[#allocation6 + $0x70] sm:$0xff] }
 0x101   :  { %v2380_v6 = vmax.f32 %v1193_v63, 0.0  ;;  %v2377_v25 = vmax.f32 %v1529_v62, 0.0  ;;  %v3254_v63 = vor.u32 %v3566_v58, %v3253_v56  ;;  %v3515_v56 = vld [vmem:[#allocation3 + $0x80] sm:$0xff] }
 0x102   :  { %1843 = vmatpush.bf16.msrb.mxu1 %v3398_v3 }
 0x103   :  { %v3927_v11 = vpack.c.bf16 %v2380_v6, %v2376_v5  ;;  %1675 = vmatpush.bf16.msrb.mxu0 %v3254_v63  ;;  %v3381_v5 = vld [vmem:[#allocation8 + $0x108] sm:$0xf]  ;;  %v3598_v6 = vld [vmem:[#allocation8 + $0x114] sm:$0xf0] }
 0x104   :  { %v1361_v7 = vpop.f32.mrf.mxu2  ;;  %v3930_v14 = vpop.f32.mrf.mxu0 }
 0x105   :  { %v1362_v12 = vadd.f32 %v1361_v7, %v3891_v4  ;;  %v1530_v13 = vpop.f32.mrf.mxu3  ;;  %v3932_v18 = vpop.f32.mrf.mxu1  ;;  %v3382_v7 = vor.u32 %v3598_v6, %v3381_v5 }
 0x107   :  { %v1531_v22 = vadd.f32 %v1530_v13, %v1362_v12  ;;  %1065 = vmatmul.bf16.gmra.mxu0 %v3512_v8  ;;  %1844 = vmatpush.bf16.msrb.mxu1 %v3382_v7 }
 0x108   :  { %1234 = vmatmul.bf16.gmra.mxu1 %v3544_v15 }
 0x109   :  { %v2381_v26 = vmax.f32 %v1531_v22, 0.0  ;;  %1403 = vmatmul.bf16.gmra.mxu2 %v3512_v8 }
 0x10a   :  { %1572 = vmatmul.bf16.gmra.mxu3 %v3544_v15  ;;  %v3514_v15 = vld [vmem:[#allocation3 + $0x78] sm:$0xff] }
 0x10b   :  { %v3934_v33 = vpack.c.bf16 %v2381_v26, %v2377_v25  ;;  %v3335_v25 = vld [vmem:[#allocation8 + $0xb8] sm:$0xf0] }
 0x10c   :  { %v3936_v34 = vpop.f32.mrf.mxu2  ;;  %v3940_v38 = vpop.f32.mrf.mxu0  ;;  %v3338_v26 = vor.u32 %v3584_v24, %v3335_v25 }
 0x10d   :  { %v3938_v37 = vpop.f32.mrf.mxu3  ;;  %v3942_v40 = vpop.f32.mrf.mxu1 }
 0x10e   :  { %2008 = vmatpush.bf16.msrb.mxu2 %v3338_v26 }
 0x114   :  { %v3944_v53 = vpop.f32.mrf.mxu2  ;;  %v1031_v60 = vpop.f32.mrf.mxu0 }
 0x115   :  { %v3946_v59 = vpop.f32.mrf.mxu3  ;;  %v1200_v62 = vpop.f32.mrf.mxu1  ;;  %v1032_v47 = vadd.f32 %v1031_v60, %v3888_v57 }
 0x117   :  { %1070 = vmatmul.bf16.gmra.mxu0 %v3513_v55  ;;  %v1201_v3 = vadd.f32 %v1200_v62, %v1032_v47  ;;  %v1027_v62 = vadd.f32 %v3930_v14, %v3888_v57 }
 0x118   :  { %1239 = vmatmul.bf16.gmra.mxu1 %v3545_v61 }
 0x119   :  { %1408 = vmatmul.bf16.gmra.mxu2 %v3513_v55  ;;  %v1196_v31 = vadd.f32 %v3932_v18, %v1027_v62 }
 0x11a   :  { %1577 = vmatmul.bf16.gmra.mxu3 %v3545_v61 }
 0x11c   :  { %v1369_v8 = vpop.f32.mrf.mxu2  ;;  %v1033_v10 = vpop.f32.mrf.mxu0 }
 0x11d   :  { %v3948_v9 = vpop.f32.mrf.mxu3  ;;  %v1202_v12 = vpop.f32.mrf.mxu1  ;;  %v1034_v44 = vadd.f32 %v1033_v10, %v3888_v57  ;;  %v1029_v10 = vadd.f32 %v3940_v38, %v3888_v57 }
 0x11f   :  { %v1203_v50 = vadd.f32 %v1202_v12, %v1034_v44  ;;  %v1198_v25 = vadd.f32 %v3942_v40, %v1029_v10  ;;  %v2384_v44 = vmax.f32 %v1196_v31, 0.0 }
 0x121   :  { %v2396_v12 = vmax.f32 %v1203_v50, 0.0  ;;  %v3516_v50 = vld [vmem:[#allocation3 + $0x88] sm:$0xff] }
 0x124   :  { %v1371_v13 = vpop.f32.mrf.mxu2  ;;  %v1036_v19 = vpop.f32.mrf.mxu0 }
 0x125   :  { %v1540_v16 = vpop.f32.mrf.mxu3  ;;  %v1205_v22 = vpop.f32.mrf.mxu1  ;;  %v1037_v23 = vadd.f32 %v1036_v19, %v3888_v57  ;;  %v1372_v7 = vadd.f32 %v1371_v13, %v3891_v4  ;;  %v1370_v19 = vadd.f32 %v1369_v8, %v3891_v4 }
 0x127   :  { %1075 = vmatmul.bf16.gmra.mxu0 %v3514_v15  ;;  %v1206_v36 = vadd.f32 %v1205_v22, %v1037_v23  ;;  %v2392_v23 = vmax.f32 %v1201_v3, 0.0  ;;  %v1541_v24 = vadd.f32 %v1540_v16, %v1372_v7  ;;  %v1539_v27 = vadd.f32 %v3948_v9, %v1370_v19 }
 0x128   :  { %1244 = vmatmul.bf16.gmra.mxu1 %v3546_v21  ;;  %v1367_v16 = vadd.f32 %v3944_v53, %v3891_v4  ;;  %v1365_v9 = vadd.f32 %v3936_v34, %v3891_v4  ;;  %v3548_v34 = vld [vmem:[#allocation6 + $0x88] sm:$0xff] }
 0x129   :  { %1413 = vmatmul.bf16.gmra.mxu2 %v3514_v15  ;;  %v2400_v48 = vmax.f32 %v1206_v36, 0.0  ;;  %v2625_v38 = vpack.c.bf16 %v2396_v12, %v2392_v23  ;;  %v2388_v36 = vmax.f32 %v1198_v25, 0.0  ;;  %v3517_v25 = vld [vmem:[#allocation3 + $0x90] sm:$0xff] }
 0x12a   :  { %1582 = vmatmul.bf16.gmra.mxu3 %v3546_v21  ;;  %v1536_v18 = vadd.f32 %v3946_v59, %v1367_v16  ;;  %v1534_v53 = vadd.f32 %v3938_v37, %v1365_v9 }
 0x12c   :  { %v1374_v30 = vpop.f32.mrf.mxu2  ;;  %v1038_v35 = vpop.f32.mrf.mxu0  ;;  %v2385_v3 = vmax.f32 %v1534_v53, 0.0  ;;  %v3550_v53 = vld [vmem:[#allocation6 + $0x98] sm:$0xff] }
 0x12d   :  { %v1543_v32 = vpop.f32.mrf.mxu3  ;;  %v1039_v39 = vadd.f32 %v1038_v35, %v3888_v57  ;;  %v1207_v43 = vpop.f32.mrf.mxu1  ;;  %v1375_v46 = vadd.f32 %v1374_v30, %v3891_v4  ;;  %v2397_v35 = vmax.f32 %v1541_v24, 0.0 }
 0x12f   :  { %v1208_v45 = vadd.f32 %v1207_v43, %v1039_v39  ;;  %v1544_v58 = vadd.f32 %v1543_v32, %v1375_v46  ;;  %v2393_v43 = vmax.f32 %v1539_v27, 0.0 }
 0x131   :  { %v2404_v49 = vmax.f32 %v1208_v45, 0.0  ;;  %v2401_v21 = vmax.f32 %v1544_v58, 0.0  ;;  %v2626_v47 = vpack.c.bf16 %v2397_v35, %v2393_v43 }
 0x133   :  { %v2629_v51 = vpack.c.bf16 %v2404_v49, %v2400_v48  ;;  %v2621_v49 = vpack.c.bf16 %v2388_v36, %v2384_v44 }
 0x134   :  { %v1376_v55 = vpop.f32.mrf.mxu2  ;;  %v1041_v0 = vpop.f32.mrf.mxu0 }
 0x135   :  { %v1377_v61 = vadd.f32 %v1376_v55, %v3891_v4  ;;  %v1545_v63 = vpop.f32.mrf.mxu3  ;;  %v1042_v5 = vadd.f32 %v1041_v0, %v3888_v57  ;;  %v1210_v6 = vpop.f32.mrf.mxu1  ;;  %2741 = vmatpush.bf16.xpose.msra.mxu0 %v2629_v51  ;;  %v2389_v0 = vmax.f32 %v1536_v18, 0.0 }
 0x137   :  { %v1546_v60 = vadd.f32 %v1545_v63, %v1377_v61  ;;  %v1211_v15 = vadd.f32 %v1210_v6, %v1042_v5  ;;  %1080 = vmatmul.bf16.gmra.mxu0 %v3515_v56  ;;  %v2622_v37 = vpack.c.bf16 %v2389_v0, %v2385_v3  ;;  %v3319_v0 = vld [vmem:[#allocation8 + $0x98] sm:$0xf0] }
 0x138   :  { %1249 = vmatmul.bf16.gmra.mxu1 %v3547_v1 }
 0x139   :  { %v2405_v22 = vmax.f32 %v1546_v60, 0.0  ;;  %1418 = vmatmul.bf16.gmra.mxu2 %v3515_v56  ;;  %v2408_v45 = vmax.f32 %v1211_v15, 0.0 }
 0x13a   :  { %1587 = vmatmul.bf16.gmra.mxu3 %v3547_v1 }
 0x13b   :  { %v2630_v13 = vpack.c.bf16 %v2405_v22, %v2401_v21 }
 0x13c   :  { %v1379_v26 = vpop.f32.mrf.mxu2  ;;  %v1043_v30 = vpop.f32.mrf.mxu0 }
 0x13d   :  { %v1380_v29 = vadd.f32 %v1379_v26, %v3891_v4  ;;  %v1548_v8 = vpop.f32.mrf.mxu3  ;;  %2754 = vmatpush.bf16.xpose.msra.mxu1 %v2630_v13  ;;  %v1044_v32 = vadd.f32 %v1043_v30, %v3888_v57  ;;  %v1212_v14 = vpop.f32.mrf.mxu1  ;;  %2742 = vmatpush.bf16.xpose.msra.mxu0 %v2625_v38 }
 0x13f   :  { %v1549_v40 = vadd.f32 %v1548_v8, %v1380_v29  ;;  %v1213_v39 = vadd.f32 %v1212_v14, %v1044_v32  ;;  %v3549_v8 = vld [vmem:[#allocation6 + $0x90] sm:$0xff] }
 0x141   :  { %v2412_v46 = vmax.f32 %v1213_v39, 0.0  ;;  %v2409_v5 = vmax.f32 %v1549_v40, 0.0 }
 0x143   :  { %v3973_v51 = vpack.c.bf16 %v2412_v46, %v2408_v45 }
 0x144   :  { %v1381_v48 = vpop.f32.mrf.mxu2  ;;  %v1046_v58 = vpop.f32.mrf.mxu0 }
 0x145   :  { %v1382_v55 = vadd.f32 %v1381_v48, %v3891_v4  ;;  %v1550_v56 = vpop.f32.mrf.mxu3  ;;  %2755 = vmatpush.bf16.xpose.msra.mxu1 %v2626_v47  ;;  %v1047_v61 = vadd.f32 %v1046_v58, %v3888_v57  ;;  %v1215_v63 = vpop.f32.mrf.mxu1  ;;  %2743 = vmatpush.bf16.xpose.msra.mxu0 %v2621_v49  ;;  %v3518_v47 = vld [vmem:[#allocation3 + $0x98] sm:$0xff] }
 0x147   :  { %v1551_v59 = vadd.f32 %v1550_v56, %v1382_v55  ;;  %v1216_v1 = vadd.f32 %v1215_v63, %v1047_v61  ;;  %1085 = vmatmul.bf16.gmra.mxu0 %v3516_v50  ;;  %v3580_v63 = vld [vmem:[#allocation8 + $0x8c] sm:$0xf] }
 0x148   :  { %1254 = vmatmul.bf16.gmra.mxu1 %v3548_v34 }
 0x149   :  { %v2413_v6 = vmax.f32 %v1551_v59, 0.0  ;;  %1423 = vmatmul.bf16.gmra.mxu2 %v3516_v50  ;;  %v2416_v23 = vmax.f32 %v1216_v1, 0.0  ;;  %v3322_v59 = vor.u32 %v3580_v63, %v3319_v0  ;;  %v3612_v1 = vld [vmem:[#allocation8 + $0x18c] sm:$0xf] }
 0x14a   :  { %1592 = vmatmul.bf16.gmra.mxu3 %v3548_v34 }
 0x14b   :  { %v3978_v7 = vpack.c.bf16 %v2413_v6, %v2409_v5  ;;  %2009 = vmatpush.bf16.msrb.mxu2 %v3322_v59 }
 0x14c   :  { %v1384_v60 = vpop.f32.mrf.mxu2  ;;  %v1048_v15 = vpop.f32.mrf.mxu0 }
 0x14d   :  { %v1385_v10 = vadd.f32 %v1384_v60, %v3891_v4  ;;  %v1553_v12 = vpop.f32.mrf.mxu3  ;;  %2756 = vmatpush.bf16.xpose.msra.mxu1 %v2622_v37  ;;  %v1049_v19 = vadd.f32 %v1048_v15, %v3888_v57  ;;  %v1217_v21 = vpop.f32.mrf.mxu1  ;;  %2744 = vmatpush.bf16.xpose.msra.mxu0 %v3927_v11 }
 0x14f   :  { %v1554_v22 = vadd.f32 %v1553_v12, %v1385_v10  ;;  %v1218_v62 = vadd.f32 %v1217_v21, %v1049_v19 }
 0x151   :  { %v2420_v24 = vmax.f32 %v1218_v62, 0.0  ;;  %v2417_v14 = vmax.f32 %v1554_v22, 0.0 }
 0x153   :  { %v3983_v26 = vpack.c.bf16 %v2420_v24, %v2416_v23  ;;  %v3519_v23 = vld [vmem:[#allocation3 + $0xa0] sm:$0xff] }
 0x154   :  { %v1386_v13 = vpop.f32.mrf.mxu2  ;;  %v1051_v29 = vpop.f32.mrf.mxu0 }
 0x155   :  { %v1387_v38 = vadd.f32 %v1386_v13, %v3891_v4  ;;  %v1555_v27 = vpop.f32.mrf.mxu3  ;;  %2757 = vmatpush.bf16.xpose.msra.mxu1 %v3934_v33  ;;  %v1052_v30 = vadd.f32 %v1051_v29, %v3888_v57  ;;  %v1220_v31 = vpop.f32.mrf.mxu1  ;;  %2745 = vmatpush.bf16.xpose.msra.mxu0 %v3919_v42 }
 0x157   :  { %v1556_v11 = vadd.f32 %v1555_v27, %v1387_v38  ;;  %v1221_v32 = vadd.f32 %v1220_v31, %v1052_v30  ;;  %1090 = vmatmul.bf16.gmra.mxu0 %v3517_v25  ;;  %v3551_v38 = vld [vmem:[#allocation6 + $0xa0] sm:$0xff] }
 0x158   :  { %1259 = vmatmul.bf16.gmra.mxu1 %v3549_v8 }
 0x159   :  { %v2421_v16 = vmax.f32 %v1556_v11, 0.0  ;;  %1428 = vmatmul.bf16.gmra.mxu2 %v3517_v25  ;;  %v2424_v45 = vmax.f32 %v1221_v32, 0.0 }
 0x15a   :  { %1597 = vmatmul.bf16.gmra.mxu3 %v3549_v8 }
 0x15b   :  { %v3989_v35 = vpack.c.bf16 %v2421_v16, %v2417_v14 }
 0x15c   :  { %v1389_v40 = vpop.f32.mrf.mxu2  ;;  %v1053_v39 = vpop.f32.mrf.mxu0 }
 0x15d   :  { %v1390_v33 = vadd.f32 %v1389_v40, %v3891_v4  ;;  %v1558_v36 = vpop.f32.mrf.mxu3  ;;  %2758 = vmatpush.bf16.xpose.msra.mxu1 %v3923_v54  ;;  %v1054_v9 = vadd.f32 %v1053_v39, %v3888_v57  ;;  %v1222_v42 = vpop.f32.mrf.mxu1  ;;  %2746 = vmatpush.bf16.xpose.msra.mxu0 %v3911_v2 }
 0x15f   :  { %v1559_v43 = vadd.f32 %v1558_v36, %v1390_v33  ;;  %v1223_v44 = vadd.f32 %v1222_v42, %v1054_v9 }
 0x161   :  { %v2428_v46 = vmax.f32 %v1223_v44, 0.0  ;;  %v2425_v34 = vmax.f32 %v1559_v43, 0.0  ;;  %v3520_v44 = vld [vmem:[#allocation3 + $0xa8] sm:$0xff] }
 0x163   :  { %v3995_v48 = vpack.c.bf16 %v2428_v46, %v2424_v45 }
 0x164   :  { %v1391_v18 = vpop.f32.mrf.mxu2  ;;  %v1056_v54 = vpop.f32.mrf.mxu0 }
 0x165   :  { %v1392_v49 = vadd.f32 %v1391_v18, %v3891_v4  ;;  %v1560_v50 = vpop.f32.mrf.mxu3  ;;  %2759 = vmatpush.bf16.xpose.msra.mxu1 %v3915_v20  ;;  %v1057_v55 = vadd.f32 %v1056_v54, %v3888_v57  ;;  %v1225_v56 = vpop.f32.mrf.mxu1  ;;  %2747 = vmatpush.bf16.xpose.msra.mxu0 %v3903_v41  ;;  %v3447_v20 = vld [vmem:[#allocation8 + $0x198] sm:$0xf0] }
 0x166   :  { %v3450_v6 = vor.u32 %v3612_v1, %v3447_v20 }
 0x167   :  { %v1561_v2 = vadd.f32 %v1560_v50, %v1392_v49  ;;  %v1226_v58 = vadd.f32 %v1225_v56, %v1057_v55  ;;  %1095 = vmatmul.bf16.gmra.mxu0 %v3518_v47  ;;  %v3552_v49 = vld [vmem:[#allocation6 + $0xa8] sm:$0xff] }
 0x168   :  { %1264 = vmatmul.bf16.gmra.mxu1 %v3550_v53  ;;  %2178 = vmatpush.bf16.msrb.mxu3 %v3450_v6 }
 0x169   :  { %v2429_v61 = vmax.f32 %v1561_v2, 0.0  ;;  %1433 = vmatmul.bf16.gmra.mxu2 %v3518_v47  ;;  %v2432_v21 = vmax.f32 %v1226_v58, 0.0 }
 0x16a   :  { %1602 = vmatmul.bf16.gmra.mxu3 %v3550_v53 }
 0x16b   :  { %v4001_v3 = vpack.c.bf16 %v2429_v61, %v2425_v34 }
 0x16c   :  { %v1394_v5 = vpop.f32.mrf.mxu2  ;;  %v1058_v60 = vpop.f32.mrf.mxu0 }
 0x16d   :  { %v1395_v37 = vadd.f32 %v1394_v5, %v3891_v4  ;;  %v1563_v41 = vpop.f32.mrf.mxu3  ;;  %2760 = vmatpush.bf16.xpose.msra.mxu1 %v3907_v52  ;;  %v1059_v10 = vadd.f32 %v1058_v60, %v3888_v57  ;;  %v1227_v12 = vpop.f32.mrf.mxu1  ;;  %2748 = vmatpush.bf16.xpose.msra.mxu0 %v3895_v17  ;;  %v3521_v60 = vld [vmem:[#allocation3 + $0xb0] sm:$0xff] }
 0x16f   :  { %v1564_v15 = vadd.f32 %v1563_v41, %v1395_v37  ;;  %v1228_v19 = vadd.f32 %v1227_v12, %v1059_v10 }
 0x171   :  { %v2436_v22 = vmax.f32 %v1228_v19, 0.0  ;;  %v2433_v30 = vmax.f32 %v1564_v15, 0.0 }
 0x173   :  { %v4007_v24 = vpack.c.bf16 %v2436_v22, %v2432_v21  ;;  %v3553_v21 = vld [vmem:[#allocation6 + $0xb0] sm:$0xff] }
 0x174   :  { %v1396_v62 = vpop.f32.mrf.mxu2  ;;  %v1061_v52 = vpop.f32.mrf.mxu0 }
 0x175   :  { %v1397_v13 = vadd.f32 %v1396_v62, %v3891_v4  ;;  %v1565_v25 = vpop.f32.mrf.mxu3  ;;  %2761 = vmatpush.bf16.xpose.msra.mxu1 %v3899_v28  ;;  %v1062_v27 = vadd.f32 %v1061_v52, %v3888_v57  ;;  %v1230_v29 = vpop.f32.mrf.mxu1 }
 0x177   :  { %v1566_v17 = vadd.f32 %v1565_v25, %v1397_v13  ;;  %v1231_v8 = vadd.f32 %v1230_v29, %v1062_v27  ;;  %1100 = vmatmul.bf16.gmra.mxu0 %v3519_v23 }
 0x178   :  { %1269 = vmatmul.bf16.gmra.mxu1 %v3551_v38 }
 0x179   :  { %v2437_v31 = vmax.f32 %v1566_v17, 0.0  ;;  %1438 = vmatmul.bf16.gmra.mxu2 %v3519_v23  ;;  %v2440_v9 = vmax.f32 %v1231_v8, 0.0 }
 0x17a   :  { %1607 = vmatmul.bf16.gmra.mxu3 %v3551_v38 }
 0x17b   :  { %v4012_v11 = vpack.c.bf16 %v2437_v31, %v2433_v30 }
 0x17c   :  { %v1399_v32 = vpop.f32.mrf.mxu2  ;;  %v1063_v28 = vpop.f32.mrf.mxu0 }
 0x17d   :  { %v1400_v14 = vadd.f32 %v1399_v32, %v3891_v4  ;;  %v1568_v16 = vpop.f32.mrf.mxu3  ;;  %v1064_v40 = vadd.f32 %v1063_v28, %v3888_v57  ;;  %v1232_v33 = vpop.f32.mrf.mxu1 }
 0x17f   :  { %v1569_v36 = vadd.f32 %v1568_v16, %v1400_v14  ;;  %v1233_v39 = vadd.f32 %v1232_v33, %v1064_v40  ;;  %v3522_v33 = vld [vmem:[#allocation3 + $0xb8] sm:$0xff] }
 0x181   :  { %v2444_v42 = vmax.f32 %v1233_v39, 0.0  ;;  %v2441_v56 = vmax.f32 %v1569_v36, 0.0 }
 0x183   :  { %v4016_v45 = vpack.c.bf16 %v2444_v42, %v2440_v9 }
 0x184   :  { %v1401_v43 = vpop.f32.mrf.mxu2  ;;  %v1066_v47 = vpop.f32.mrf.mxu0 }
 0x185   :  { %v1402_v46 = vadd.f32 %v1401_v43, %v3891_v4  ;;  %v1570_v18 = vpop.f32.mrf.mxu3  ;;  %v1067_v50 = vadd.f32 %v1066_v47, %v3888_v57  ;;  %v1235_v54 = vpop.f32.mrf.mxu1  ;;  %v3554_v43 = vld [vmem:[#allocation6 + $0xb8] sm:$0xff] }
 0x187   :  { %v1571_v53 = vadd.f32 %v1570_v18, %v1402_v46  ;;  %v1236_v55 = vadd.f32 %v1235_v54, %v1067_v50  ;;  %1105 = vmatmul.bf16.gmra.mxu0 %v3520_v44  ;;  %v3576_v54 = vld [vmem:[#allocation8 + $0x6c] sm:$0xf] }
 0x188   :  { %1274 = vmatmul.bf16.gmra.mxu1 %v3552_v49 }
 0x189   :  { %v2445_v2 = vmax.f32 %v1571_v53, 0.0  ;;  %1443 = vmatmul.bf16.gmra.mxu2 %v3520_v44  ;;  %v2448_v6 = vmax.f32 %v1236_v55, 0.0  ;;  %v3303_v53 = vld [vmem:[#allocation8 + $0x78] sm:$0xf0] }
 0x18a   :  { %1612 = vmatmul.bf16.gmra.mxu3 %v3552_v49  ;;  %v3306_v55 = vor.u32 %v3576_v54, %v3303_v53 }
 0x18b   :  { %v4020_v58 = vpack.c.bf16 %v2445_v2, %v2441_v56  ;;  %v3608_v56 = vld [vmem:[#allocation8 + $0x16c] sm:$0xf]  ;;  %v3431_v2 = vld [vmem:[#allocation8 + $0x178] sm:$0xf0] }
 0x18c   :  { %v1404_v34 = vpop.f32.mrf.mxu2  ;;  %v1068_v0 = vpop.f32.mrf.mxu0  ;;  %2010 = vmatpush.bf16.msrb.mxu2 %v3306_v55 }
 0x18d   :  { %v1405_v61 = vadd.f32 %v1404_v34, %v3891_v4  ;;  %v1573_v63 = vpop.f32.mrf.mxu3  ;;  %v1069_v59 = vadd.f32 %v1068_v0, %v3888_v57  ;;  %v1237_v1 = vpop.f32.mrf.mxu1 }
 0x18f   :  { %v1574_v20 = vadd.f32 %v1573_v63, %v1405_v61  ;;  %v1238_v5 = vadd.f32 %v1237_v1, %v1069_v59  ;;  %v3434_v63 = vor.u32 %v3608_v56, %v3431_v2 }
 0x191   :  { %v2452_v37 = vmax.f32 %v1238_v5, 0.0  ;;  %v2449_v25 = vmax.f32 %v1574_v20, 0.0  ;;  %2179 = vmatpush.bf16.msrb.mxu3 %v3434_v63 }
 0x193   :  { %v4024_v10 = vpack.c.bf16 %v2452_v37, %v2448_v6 }
 0x194   :  { %v1406_v41 = vpop.f32.mrf.mxu2  ;;  %v1071_v19 = vpop.f32.mrf.mxu0 }
 0x195   :  { %v1407_v12 = vadd.f32 %v1406_v41, %v3891_v4  ;;  %v1575_v15 = vpop.f32.mrf.mxu3  ;;  %v1072_v22 = vadd.f32 %v1071_v19, %v3888_v57  ;;  %v1240_v62 = vpop.f32.mrf.mxu1  ;;  %v3523_v19 = vld [vmem:[#allocation3 + $0xc0] sm:$0xff] }
 0x197   :  { %v1576_v23 = vadd.f32 %v1575_v15, %v1407_v12  ;;  %v1241_v13 = vadd.f32 %v1240_v62, %v1072_v22  ;;  %1110 = vmatmul.bf16.gmra.mxu0 %v3521_v60 }
 0x198   :  { %1279 = vmatmul.bf16.gmra.mxu1 %v3553_v21 }
 0x199   :  { %v2453_v52 = vmax.f32 %v1576_v23, 0.0  ;;  %1448 = vmatmul.bf16.gmra.mxu2 %v3521_v60  ;;  %v2456_v16 = vmax.f32 %v1241_v13, 0.0  ;;  %v3555_v23 = vld [vmem:[#allocation6 + $0xc0] sm:$0xff] }
 0x19a   :  { %1617 = vmatmul.bf16.gmra.mxu3 %v3553_v21 }
 0x19b   :  { %v4028_v38 = vpack.c.bf16 %v2453_v52, %v2449_v25 }
 0x19c   :  { %v1409_v27 = vpop.f32.mrf.mxu2  ;;  %v1073_v8 = vpop.f32.mrf.mxu0 }
 0x19d   :  { %v1410_v29 = vadd.f32 %v1409_v27, %v3891_v4  ;;  %v1578_v17 = vpop.f32.mrf.mxu3  ;;  %v1074_v30 = vadd.f32 %v1073_v8, %v3888_v57  ;;  %v1242_v31 = vpop.f32.mrf.mxu1 }
 0x19f   :  { %v1579_v32 = vadd.f32 %v1578_v17, %v1410_v29  ;;  %v1243_v14 = vadd.f32 %v1242_v31, %v1074_v30 }
 0x1a1   :  { %v2460_v28 = vmax.f32 %v1243_v14, 0.0  ;;  %v2457_v49 = vmax.f32 %v1579_v32, 0.0 }
 0x1a3   :  { %v4032_v36 = vpack.c.bf16 %v2460_v28, %v2456_v16 }
 0x1a4   :  { %v1411_v40 = vpop.f32.mrf.mxu2  ;;  %v1076_v42 = vpop.f32.mrf.mxu0 }
 0x1a5   :  { %v1412_v39 = vadd.f32 %v1411_v40, %v3891_v4  ;;  %v1580_v9 = vpop.f32.mrf.mxu3  ;;  %v1077_v44 = vadd.f32 %v1076_v42, %v3888_v57  ;;  %v1245_v46 = vpop.f32.mrf.mxu1 }
 0x1a7   :  { %v1581_v18 = vadd.f32 %v1580_v9, %v1412_v39  ;;  %v1246_v47 = vadd.f32 %v1245_v46, %v1077_v44  ;;  %1115 = vmatmul.bf16.gmra.mxu0 %v3522_v33 }
 0x1a8   :  { %1284 = vmatmul.bf16.gmra.mxu1 %v3554_v43 }
 0x1a9   :  { %v2461_v50 = vmax.f32 %v1581_v18, 0.0  ;;  %1453 = vmatmul.bf16.gmra.mxu2 %v3522_v33  ;;  %v2464_v41 = vmax.f32 %v1246_v47, 0.0 }
 0x1aa   :  { %1622 = vmatmul.bf16.gmra.mxu3 %v3554_v43  ;;  %v3524_v43 = vld [vmem:[#allocation3 + $0xc8] sm:$0xff] }
 0x1ab   :  { %v4036_v34 = vpack.c.bf16 %v2461_v50, %v2457_v49  ;;  %v3556_v49 = vld [vmem:[#allocation6 + $0xc8] sm:$0xff] }
 0x1ac   :  { %v1414_v61 = vpop.f32.mrf.mxu2  ;;  %v1078_v1 = vpop.f32.mrf.mxu0 }
 0x1ad   :  { %v1415_v0 = vadd.f32 %v1414_v61, %v3891_v4  ;;  %v1583_v59 = vpop.f32.mrf.mxu3  ;;  %v1079_v20 = vadd.f32 %v1078_v1, %v3888_v57  ;;  %v1247_v5 = vpop.f32.mrf.mxu1 }
 0x1af   :  { %v1584_v6 = vadd.f32 %v1583_v59, %v1415_v0  ;;  %v1248_v37 = vadd.f32 %v1247_v5, %v1079_v20 }
 0x1b1   :  { %v2468_v60 = vmax.f32 %v1248_v37, 0.0  ;;  %v2465_v29 = vmax.f32 %v1584_v6, 0.0 }
 0x1b3   :  { %v4040_v12 = vpack.c.bf16 %v2468_v60, %v2464_v41 }
 0x1b4   :  { %v1416_v15 = vpop.f32.mrf.mxu2  ;;  %v1081_v62 = vpop.f32.mrf.mxu0 }
 0x1b5   :  { %v1417_v21 = vadd.f32 %v1416_v15, %v3891_v4  ;;  %v1585_v22 = vpop.f32.mrf.mxu3  ;;  %v1082_v13 = vadd.f32 %v1081_v62, %v3888_v57  ;;  %v1250_v25 = vpop.f32.mrf.mxu1 }
 0x1b7   :  { %v1586_v52 = vadd.f32 %v1585_v22, %v1417_v21  ;;  %v1251_v27 = vadd.f32 %v1250_v25, %v1082_v13  ;;  %1120 = vmatmul.bf16.gmra.mxu0 %v3523_v19  ;;  %v3557_v13 = vld [vmem:[#allocation6 + $0xd0] sm:$0xff] }
 0x1b8   :  { %1289 = vmatmul.bf16.gmra.mxu1 %v3555_v23 }
 0x1b9   :  { %v2469_v17 = vmax.f32 %v1586_v52, 0.0  ;;  %1458 = vmatmul.bf16.gmra.mxu2 %v3523_v19  ;;  %v2472_v39 = vmax.f32 %v1251_v27, 0.0  ;;  %v3525_v19 = vld [vmem:[#allocation3 + $0xd0] sm:$0xff] }
 0x1ba   :  { %1627 = vmatmul.bf16.gmra.mxu3 %v3555_v23 }
 0x1bb   :  { %v4044_v8 = vpack.c.bf16 %v2469_v17, %v2465_v29 }
 0x1bc   :  { %v1419_v30 = vpop.f32.mrf.mxu2  ;;  %v1083_v14 = vpop.f32.mrf.mxu0 }
 0x1bd   :  { %v1420_v31 = vadd.f32 %v1419_v30, %v3891_v4  ;;  %v1588_v32 = vpop.f32.mrf.mxu3  ;;  %v1084_v16 = vadd.f32 %v1083_v14, %v3888_v57  ;;  %v1252_v28 = vpop.f32.mrf.mxu1 }
 0x1bf   :  { %v1589_v40 = vadd.f32 %v1588_v32, %v1420_v31  ;;  %v1253_v33 = vadd.f32 %v1252_v28, %v1084_v16 }
 0x1c1   :  { %v2476_v9 = vmax.f32 %v1253_v33, 0.0  ;;  %v2473_v56 = vmax.f32 %v1589_v40, 0.0 }
 0x1c3   :  { %v4048_v44 = vpack.c.bf16 %v2476_v9, %v2472_v39 }
 0x1c4   :  { %v1421_v42 = vpop.f32.mrf.mxu2  ;;  %v1086_v47 = vpop.f32.mrf.mxu0 }
 0x1c5   :  { %v1422_v46 = vadd.f32 %v1421_v42, %v3891_v4  ;;  %v1590_v18 = vpop.f32.mrf.mxu3  ;;  %v1087_v50 = vadd.f32 %v1086_v47, %v3888_v57  ;;  %v1255_v54 = vpop.f32.mrf.mxu1 }
 0x1c7   :  { %v1591_v53 = vadd.f32 %v1590_v18, %v1422_v46  ;;  %v1256_v55 = vadd.f32 %v1255_v54, %v1087_v50  ;;  %1125 = vmatmul.bf16.gmra.mxu0 %v3524_v43  ;;  %v3526_v18 = vld [vmem:[#allocation3 + $0xd8] sm:$0xff] }
 0x1c8   :  { %1294 = vmatmul.bf16.gmra.mxu1 %v3556_v49 }
 0x1c9   :  { %v2477_v2 = vmax.f32 %v1591_v53, 0.0  ;;  %1463 = vmatmul.bf16.gmra.mxu2 %v3524_v43  ;;  %v2480_v41 = vmax.f32 %v1256_v55, 0.0  ;;  %v3558_v53 = vld [vmem:[#allocation6 + $0xd8] sm:$0xff] }
 0x1ca   :  { %1632 = vmatmul.bf16.gmra.mxu3 %v3556_v49 }
 0x1cb   :  { %v4052_v61 = vpack.c.bf16 %v2477_v2, %v2473_v56 }
 0x1cc   :  { %v1424_v63 = vpop.f32.mrf.mxu2  ;;  %v1088_v1 = vpop.f32.mrf.mxu0 }
 0x1cd   :  { %v1425_v0 = vadd.f32 %v1424_v63, %v3891_v4  ;;  %v1593_v59 = vpop.f32.mrf.mxu3  ;;  %v1089_v20 = vadd.f32 %v1088_v1, %v3888_v57  ;;  %v1257_v5 = vpop.f32.mrf.mxu1  ;;  %v3572_v1 = vld [vmem:[#allocation8 + $0x4c] sm:$0xf] }
 0x1cf   :  { %v1594_v6 = vadd.f32 %v1593_v59, %v1425_v0  ;;  %v1258_v37 = vadd.f32 %v1257_v5, %v1089_v20  ;;  %v3287_v20 = vld [vmem:[#allocation8 + $0x58] sm:$0xf0] }
 0x1d0   :  { %v3290_v5 = vor.u32 %v3572_v1, %v3287_v20  ;;  %v3528_v20 = vld [vmem:[#allocation3 + $0xe8] sm:$0xff] }
 0x1d1   :  { %v2484_v60 = vmax.f32 %v1258_v37, 0.0  ;;  %v2481_v17 = vmax.f32 %v1594_v6, 0.0  ;;  %v3604_v6 = vld [vmem:[#allocation8 + $0x14c] sm:$0xf]  ;;  %v3415_v37 = vld [vmem:[#allocation8 + $0x158] sm:$0xf0] }
 0x1d2   :  { %2011 = vmatpush.bf16.msrb.mxu2 %v3290_v5 }
 0x1d3   :  { %v4056_v21 = vpack.c.bf16 %v2484_v60, %v2480_v41 }
 0x1d4   :  { %v1426_v15 = vpop.f32.mrf.mxu2  ;;  %v1091_v23 = vpop.f32.mrf.mxu0 }
 0x1d5   :  { %v1427_v22 = vadd.f32 %v1426_v15, %v3891_v4  ;;  %v1595_v62 = vpop.f32.mrf.mxu3  ;;  %v1092_v25 = vadd.f32 %v1091_v23, %v3888_v57  ;;  %v1260_v52 = vpop.f32.mrf.mxu1  ;;  %v3418_v15 = vor.u32 %v3604_v6, %v3415_v37 }
 0x1d7   :  { %v1596_v27 = vadd.f32 %v1595_v62, %v1427_v22  ;;  %v1261_v29 = vadd.f32 %v1260_v52, %v1092_v25  ;;  %1130 = vmatmul.bf16.gmra.mxu0 %v3525_v19  ;;  %2180 = vmatpush.bf16.msrb.mxu3 %v3418_v15  ;;  %v3560_v15 = vld [vmem:[#allocation6 + $0xe8] sm:$0xff] }
 0x1d8   :  { %1299 = vmatmul.bf16.gmra.mxu1 %v3557_v13 }
 0x1d9   :  { %v2485_v30 = vmax.f32 %v1596_v27, 0.0  ;;  %1468 = vmatmul.bf16.gmra.mxu2 %v3525_v19  ;;  %v2488_v42 = vmax.f32 %v1261_v29, 0.0 }
 0x1da   :  { %1637 = vmatmul.bf16.gmra.mxu3 %v3557_v13 }
 0x1db   :  { %v4060_v31 = vpack.c.bf16 %v2485_v30, %v2481_v17  ;;  %v3527_v30 = vld [vmem:[#allocation3 + $0xe0] sm:$0xff] }
 0x1dc   :  { %v1429_v32 = vpop.f32.mrf.mxu2  ;;  %v1093_v28 = vpop.f32.mrf.mxu0 }
 0x1dd   :  { %v1430_v14 = vadd.f32 %v1429_v32, %v3891_v4  ;;  %v1598_v16 = vpop.f32.mrf.mxu3  ;;  %v1094_v40 = vadd.f32 %v1093_v28, %v3888_v57  ;;  %v1262_v33 = vpop.f32.mrf.mxu1 }
 0x1df   :  { %v1599_v39 = vadd.f32 %v1598_v16, %v1430_v14  ;;  %v1263_v9 = vadd.f32 %v1262_v33, %v1094_v40  ;;  %v3559_v40 = vld [vmem:[#allocation6 + $0xe0] sm:$0xff] }
 0x1e1   :  { %v2492_v43 = vmax.f32 %v1263_v9, 0.0  ;;  %v2489_v0 = vmax.f32 %v1599_v39, 0.0 }
 0x1e3   :  { %v4064_v47 = vpack.c.bf16 %v2492_v43, %v2488_v42 }
 0x1e4   :  { %v1431_v46 = vpop.f32.mrf.mxu2  ;;  %v1096_v54 = vpop.f32.mrf.mxu0 }
 0x1e5   :  { %v1432_v49 = vadd.f32 %v1431_v46, %v3891_v4  ;;  %v1600_v50 = vpop.f32.mrf.mxu3  ;;  %v1097_v55 = vadd.f32 %v1096_v54, %v3888_v57  ;;  %v1265_v56 = vpop.f32.mrf.mxu1 }
 0x1e7   :  { %v1601_v2 = vadd.f32 %v1600_v50, %v1432_v49  ;;  %v1266_v63 = vadd.f32 %v1265_v56, %v1097_v55  ;;  %1135 = vmatmul.bf16.gmra.mxu0 %v3526_v18 }
 0x1e8   :  { %1304 = vmatmul.bf16.gmra.mxu1 %v3558_v53 }
 0x1e9   :  { %v2493_v59 = vmax.f32 %v1601_v2, 0.0  ;;  %1473 = vmatmul.bf16.gmra.mxu2 %v3526_v18  ;;  %v2496_v27 = vmax.f32 %v1266_v63, 0.0 }
 0x1ea   :  { %1642 = vmatmul.bf16.gmra.mxu3 %v3558_v53 }
 0x1eb   :  { %v4068_v41 = vpack.c.bf16 %v2493_v59, %v2489_v0 }
 0x1ec   :  { %v1434_v60 = vpop.f32.mrf.mxu2  ;;  %v1098_v62 = vpop.f32.mrf.mxu0 }
 0x1ed   :  { %v1435_v19 = vadd.f32 %v1434_v60, %v3891_v4  ;;  %v1603_v22 = vpop.f32.mrf.mxu3  ;;  %v1099_v23 = vadd.f32 %v1098_v62, %v3888_v57  ;;  %v1267_v13 = vpop.f32.mrf.mxu1 }
 0x1ef   :  { %v1604_v25 = vadd.f32 %v1603_v22, %v1435_v19  ;;  %v1268_v52 = vadd.f32 %v1267_v13, %v1099_v23 }
 0x1f1   :  { %v2500_v29 = vmax.f32 %v1268_v52, 0.0  ;;  %v2497_v43 = vmax.f32 %v1604_v25, 0.0 }
 0x1f3   :  { %v4072_v32 = vpack.c.bf16 %v2500_v29, %v2496_v27 }
 0x1f4   :  { %v1436_v17 = vpop.f32.mrf.mxu2  ;;  %v1101_v28 = vpop.f32.mrf.mxu0 }
 0x1f5   :  { %v1437_v14 = vadd.f32 %v1436_v17, %v3891_v4  ;;  %v1605_v16 = vpop.f32.mrf.mxu3  ;;  %v1102_v33 = vadd.f32 %v1101_v28, %v3888_v57  ;;  %v1270_v39 = vpop.f32.mrf.mxu1 }
 0x1f7   :  { %v1606_v9 = vadd.f32 %v1605_v16, %v1437_v14  ;;  %v1271_v42 = vadd.f32 %v1270_v39, %v1102_v33  ;;  %1140 = vmatmul.bf16.gmra.mxu0 %v3527_v30  ;;  %v3568_v33 = vld [vmem:[#allocation8 + $0x2c] sm:$0xf]  ;;  %v3271_v39 = vld [vmem:[#allocation8 + $0x38] sm:$0xf0] }
 0x1f8   :  { %1309 = vmatmul.bf16.gmra.mxu1 %v3559_v40 }
 0x1f9   :  { %v2501_v46 = vmax.f32 %v1606_v9, 0.0  ;;  %1478 = vmatmul.bf16.gmra.mxu2 %v3527_v30  ;;  %v2504_v0 = vmax.f32 %v1271_v42, 0.0  ;;  %v3600_v9 = vld [vmem:[#allocation8 + $0x12c] sm:$0xf]  ;;  %v3274_v42 = vor.u32 %v3568_v33, %v3271_v39 }
 0x1fa   :  { %1647 = vmatmul.bf16.gmra.mxu3 %v3559_v40 }
 0x1fb   :  { %v4076_v18 = vpack.c.bf16 %v2501_v46, %v2497_v43  ;;  %v3399_v43 = vld [vmem:[#allocation8 + $0x138] sm:$0xf0]  ;;  %2012 = vmatpush.bf16.msrb.mxu2 %v3274_v42 }
 0x1fc   :  { %v1439_v49 = vpop.f32.mrf.mxu2  ;;  %v1103_v53 = vpop.f32.mrf.mxu0 }
 0x1fd   :  { %v1440_v50 = vadd.f32 %v1439_v49, %v3891_v4  ;;  %v1608_v54 = vpop.f32.mrf.mxu3  ;;  %v1104_v55 = vadd.f32 %v1103_v53, %v3888_v57  ;;  %v1272_v56 = vpop.f32.mrf.mxu1 }
 0x1ff   :  { %v1609_v2 = vadd.f32 %v1608_v54, %v1440_v50  ;;  %v1273_v63 = vadd.f32 %v1272_v56, %v1104_v55  ;;  %v3402_v50 = vor.u32 %v3600_v9, %v3399_v43  ;;  %v3529_v54 = vld [vmem:[#allocation3 + $0xf0] sm:$0xff]  ;;  %v3564_v55 = vld [vmem:[#allocation8 + $0xc] sm:$0xf]  ;;  %v3255_v56 = vld [vmem:[#allocation8 + $0x18] sm:$0xf0] }
 0x201   :  { %v2508_v59 = vmax.f32 %v1273_v63, 0.0  ;;  %v2505_v13 = vmax.f32 %v1609_v2, 0.0  ;;  %2181 = vmatpush.bf16.msrb.mxu3 %v3402_v50  ;;  %v3596_v2 = vld [vmem:[#allocation8 + $0x10c] sm:$0xf] }
 0x203   :  { %v4080_v5 = vpack.c.bf16 %v2508_v59, %v2504_v0 }
 0x204   :  { %v1441_v1 = vpop.f32.mrf.mxu2  ;;  %v1106_v60 = vpop.f32.mrf.mxu0 }
 0x205   :  { %v1442_v6 = vadd.f32 %v1441_v1, %v3891_v4  ;;  %v1610_v37 = vpop.f32.mrf.mxu3  ;;  %v1107_v19 = vadd.f32 %v1106_v60, %v3888_v57  ;;  %v1275_v22 = vpop.f32.mrf.mxu1 }
 0x207   :  { %v1611_v62 = vadd.f32 %v1610_v37, %v1442_v6  ;;  %v1276_v23 = vadd.f32 %v1275_v22, %v1107_v19  ;;  %1145 = vmatmul.bf16.gmra.mxu0 %v3528_v20  ;;  %v3258_v6 = vor.u32 %v3564_v55, %v3255_v56  ;;  %v3383_v37 = vld [vmem:[#allocation8 + $0x118] sm:$0xf0] }
 0x208   :  { %1314 = vmatmul.bf16.gmra.mxu1 %v3560_v15  ;;  %v3386_v19 = vor.u32 %v3596_v2, %v3383_v37 }
 0x209   :  { %v2509_v25 = vmax.f32 %v1611_v62, 0.0  ;;  %1483 = vmatmul.bf16.gmra.mxu2 %v3528_v20  ;;  %v2512_v46 = vmax.f32 %v1276_v23, 0.0  ;;  %v3561_v20 = vld [vmem:[#allocation6 + $0xf0] sm:$0xff] }
 0x20a   :  { %1652 = vmatmul.bf16.gmra.mxu3 %v3560_v15  ;;  %2013 = vmatpush.bf16.msrb.mxu2 %v3258_v6 }
 0x20b   :  { %v4084_v52 = vpack.c.bf16 %v2509_v25, %v2505_v13  ;;  %2182 = vmatpush.bf16.msrb.mxu3 %v3386_v19 }
 0x20c   :  { %v1444_v27 = vpop.f32.mrf.mxu2  ;;  %v1108_v30 = vpop.f32.mrf.mxu0 }
 0x20d   :  { %v1445_v29 = vadd.f32 %v1444_v27, %v3891_v4  ;;  %v1613_v17 = vpop.f32.mrf.mxu3  ;;  %v1109_v14 = vadd.f32 %v1108_v30, %v3888_v57  ;;  %v1277_v16 = vpop.f32.mrf.mxu1 }
 0x20f   :  { %v1614_v28 = vadd.f32 %v1613_v17, %v1445_v29  ;;  %v1278_v40 = vadd.f32 %v1277_v16, %v1109_v14 }
 0x211   :  { %v2516_v49 = vmax.f32 %v1278_v40, 0.0  ;;  %v2513_v23 = vmax.f32 %v1614_v28, 0.0  ;;  %v3530_v28 = vld [vmem:[#allocation3 + $0xf8] sm:$0xff] }
 0x213   :  { %v4088_v63 = vpack.c.bf16 %v2516_v49, %v2512_v46 }
 0x214   :  { %v1446_v53 = vpop.f32.mrf.mxu2  ;;  %v1111_v1 = vpop.f32.mrf.mxu0 }
 0x215   :  { %v1447_v0 = vadd.f32 %v1446_v53, %v3891_v4  ;;  %v1615_v59 = vpop.f32.mrf.mxu3  ;;  %v1112_v60 = vadd.f32 %v1111_v1, %v3888_v57  ;;  %v1280_v15 = vpop.f32.mrf.mxu1 }
 0x217   :  { %v1616_v22 = vadd.f32 %v1615_v59, %v1447_v0  ;;  %v1281_v62 = vadd.f32 %v1280_v15, %v1112_v60  ;;  %1150 = vmatmul.bf16.gmra.mxu0 %v3529_v54 }
 0x218   :  { %1319 = vmatmul.bf16.gmra.mxu1 %v3561_v20 }
 0x219   :  { %v2517_v13 = vmax.f32 %v1616_v22, 0.0  ;;  %1488 = vmatmul.bf16.gmra.mxu2 %v3529_v54  ;;  %v2520_v39 = vmax.f32 %v1281_v62, 0.0  ;;  %v3562_v54 = vld [vmem:[#allocation6 + $0xf8] sm:$0xff] }
 0x21a   :  { %1657 = vmatmul.bf16.gmra.mxu3 %v3561_v20 }
 0x21b   :  { %v4092_v25 = vpack.c.bf16 %v2517_v13, %v2513_v23 }
 0x21c   :  { %v1449_v27 = vpop.f32.mrf.mxu2  ;;  %v1113_v30 = vpop.f32.mrf.mxu0 }
 0x21d   :  { %v1450_v29 = vadd.f32 %v1449_v27, %v3891_v4  ;;  %v1618_v17 = vpop.f32.mrf.mxu3  ;;  %v1114_v14 = vadd.f32 %v1113_v30, %v3888_v57  ;;  %v1282_v16 = vpop.f32.mrf.mxu1 }
 0x21f   :  { %v1619_v40 = vadd.f32 %v1618_v17, %v1450_v29  ;;  %v1283_v33 = vadd.f32 %v1282_v16, %v1114_v14 }
 0x221   :  { %v2524_v9 = vmax.f32 %v1283_v33, 0.0  ;;  %v2521_v0 = vmax.f32 %v1619_v40, 0.0 }
 0x223   :  { %v4096_v43 = vpack.c.bf16 %v2524_v9, %v2520_v39  ;;  %v3636_v9 = vld [vmem:[#allocation3] sm:$0xff] }
 0x224   :  { %v1451_v42 = vpop.f32.mrf.mxu2  ;;  %v1116_v50 = vpop.f32.mrf.mxu0 }
 0x225   :  { %v1452_v46 = vadd.f32 %v1451_v42, %v3891_v4  ;;  %v1620_v49 = vpop.f32.mrf.mxu3  ;;  %v1117_v53 = vadd.f32 %v1116_v50, %v3888_v57  ;;  %v1285_v55 = vpop.f32.mrf.mxu1 }
 0x227   :  { %v1621_v56 = vadd.f32 %v1620_v49, %v1452_v46  ;;  %v1286_v2 = vadd.f32 %v1285_v55, %v1117_v53  ;;  %1155 = vmatmul.bf16.gmra.mxu0 %v3530_v28  ;;  %v3637_v46 = vld [vmem:[#allocation6] sm:$0xff] }
 0x228   :  { %1324 = vmatmul.bf16.gmra.mxu1 %v3562_v54 }
 0x229   :  { %v2525_v59 = vmax.f32 %v1621_v56, 0.0  ;;  %1493 = vmatmul.bf16.gmra.mxu2 %v3530_v28  ;;  %v2528_v23 = vmax.f32 %v1286_v2, 0.0 }
 0x22a   :  { %1662 = vmatmul.bf16.gmra.mxu3 %v3562_v54 }
 0x22b   :  { %v4100_v1 = vpack.c.bf16 %v2525_v59, %v2521_v0 }
 0x22c   :  { %v1454_v20 = vpop.f32.mrf.mxu2  ;;  %v1118_v60 = vpop.f32.mrf.mxu0 }
 0x22d   :  { %v1455_v6 = vadd.f32 %v1454_v20, %v3891_v4  ;;  %v1623_v37 = vpop.f32.mrf.mxu3  ;;  %v1119_v15 = vadd.f32 %v1118_v60, %v3888_v57  ;;  %v1287_v19 = vpop.f32.mrf.mxu1 }
 0x22f   :  { %v1624_v22 = vadd.f32 %v1623_v37, %v1455_v6  ;;  %v1288_v62 = vadd.f32 %v1287_v19, %v1119_v15 }
 0x231   :  { %v2532_v13 = vmax.f32 %v1288_v62, 0.0  ;;  %v2529_v42 = vmax.f32 %v1624_v22, 0.0 }
 0x233   :  { %v4104_v27 = vpack.c.bf16 %v2532_v13, %v2528_v23  ;;  %v3638_v13 = vld [vmem:[#allocation3 + $0x8] sm:$0xff] }
 0x234   :  { %v1456_v29 = vpop.f32.mrf.mxu2  ;;  %v1121_v14 = vpop.f32.mrf.mxu0 }
 0x235   :  { %v1457_v17 = vadd.f32 %v1456_v29, %v3891_v4  ;;  %v1625_v30 = vpop.f32.mrf.mxu3  ;;  %v1122_v16 = vadd.f32 %v1121_v14, %v3888_v57  ;;  %v1290_v40 = vpop.f32.mrf.mxu1 }
 0x237   :  { %v1626_v33 = vadd.f32 %v1625_v30, %v1457_v17  ;;  %v1291_v39 = vadd.f32 %v1290_v40, %v1122_v16  ;;  %1676 = vmatmul.bf16.vlgmr.msrb.gmra.mxu0 %v3636_v9  ;;  %v3639_v30 = vld [vmem:[#allocation6 + $0x8] sm:$0xff] }
 0x238   :  { %1845 = vmatmul.bf16.vlgmr.msrb.gmra.mxu1 %v3637_v46  ;;  %2793 = vmatpush.bf16.xpose.msrb.mxu0 %v4040_v12 }
 0x239   :  { %v2533_v28 = vmax.f32 %v1626_v33, 0.0  ;;  %2014 = vmatmul.bf16.vlgmr.msrb.gmra.mxu2 %v3636_v9  ;;  %2806 = vmatpush.bf16.xpose.msrb.mxu1 %v4044_v8  ;;  %v2536_v20 = vmax.f32 %v1291_v39, 0.0 }
 0x23a   :  { %2183 = vmatmul.bf16.vlgmr.msrb.gmra.mxu3 %v3637_v46 }
 0x23b   :  { %v4109_v49 = vpack.c.bf16 %v2533_v28, %v2529_v42 }
 0x23c   :  { %v1459_v50 = vpop.f32.mrf.mxu2  ;;  %v1123_v55 = vpop.f32.mrf.mxu0 }
 0x23d   :  { %v1460_v54 = vadd.f32 %v1459_v50, %v3891_v4  ;;  %v1628_v53 = vpop.f32.mrf.mxu3  ;;  %v1124_v56 = vadd.f32 %v1123_v55, %v3888_v57  ;;  %v1292_v2 = vpop.f32.mrf.mxu1 }
 0x23f   :  { %v1629_v0 = vadd.f32 %v1628_v53, %v1460_v54  ;;  %v1293_v59 = vadd.f32 %v1292_v2, %v1124_v56 }
 0x240   :  { %2794 = vmatpush.bf16.xpose.msrb.mxu0 %v4032_v36 }
 0x241   :  { %v2540_v6 = vmax.f32 %v1293_v59, 0.0  ;;  %2807 = vmatpush.bf16.xpose.msrb.mxu1 %v4036_v34  ;;  %v2537_v29 = vmax.f32 %v1629_v0, 0.0  ;;  %v3640_v59 = vld [vmem:[#allocation3 + $0x10] sm:$0xff] }
 0x243   :  { %v4116_v37 = vpack.c.bf16 %v2540_v6, %v2536_v20 }
 0x244   :  { %v1461_v12 = vpop.f32.mrf.mxu2  ;;  %v1126_v15 = vpop.f32.mrf.mxu0 }
 0x245   :  { %4591 = vst [vmem:[#allocation16_spill] sm:$0xff] %v4116_v37  ;;  %v1462_v8 = vadd.f32 %v1461_v12, %v3891_v4  ;;  %v1630_v60 = vpop.f32.mrf.mxu3  ;;  %v1127_v19 = vadd.f32 %v1126_v15, %v3888_v57  ;;  %v1295_v22 = vpop.f32.mrf.mxu1  ;;  %v3641_v12 = vld [vmem:[#allocation6 + $0x10] sm:$0xff]  ;;  %v3668_v37 = vld [vmem:[#allocation6 + $0x78] sm:$0xff] }
 0x247   :  { %v1631_v62 = vadd.f32 %v1630_v60, %v1462_v8  ;;  %v1296_v23 = vadd.f32 %v1295_v22, %v1127_v19  ;;  %1681 = vmatmul.bf16.gmra.mxu0 %v3638_v13 }
 0x248   :  { %1850 = vmatmul.bf16.gmra.mxu1 %v3639_v30  ;;  %2795 = vmatpush.bf16.xpose.msrb.mxu0 %v4024_v10 }
 0x249   :  { %v2541_v17 = vmax.f32 %v1631_v62, 0.0  ;;  %2019 = vmatmul.bf16.gmra.mxu2 %v3638_v13  ;;  %2808 = vmatpush.bf16.xpose.msrb.mxu1 %v4028_v38  ;;  %v2544_v28 = vmax.f32 %v1296_v23, 0.0 }
 0x24a   :  { %2188 = vmatmul.bf16.gmra.mxu3 %v3639_v30 }
 0x24b   :  { %v4122_v36 = vpack.c.bf16 %v2541_v17, %v2537_v29 }
 0x24c   :  { %v1464_v34 = vpop.f32.mrf.mxu2  ;;  %v1128_v40 = vpop.f32.mrf.mxu0 }
 0x24d   :  { %4592 = vst [vmem:[#allocation17_spill] sm:$0xff] %v4122_v36  ;;  %v1465_v14 = vadd.f32 %v1464_v34, %v3891_v4  ;;  %v1633_v16 = vpop.f32.mrf.mxu3  ;;  %v1129_v33 = vadd.f32 %v1128_v40, %v3888_v57  ;;  %v1297_v39 = vpop.f32.mrf.mxu1  ;;  %v3667_v36 = vld [vmem:[#allocation3 + $0x78] sm:$0xff] }
 0x24f   :  { %v1634_v9 = vadd.f32 %v1633_v16, %v1465_v14  ;;  %v1298_v42 = vadd.f32 %v1297_v39, %v1129_v33  ;;  %v3642_v39 = vld [vmem:[#allocation3 + $0x18] sm:$0xff] }
 0x250   :  { %2796 = vmatpush.bf16.xpose.msrb.mxu0 %v4016_v45 }
 0x251   :  { %v2548_v46 = vmax.f32 %v1298_v42, 0.0  ;;  %2809 = vmatpush.bf16.xpose.msrb.mxu1 %v4020_v58  ;;  %v2545_v20 = vmax.f32 %v1634_v9, 0.0 }
 0x253   :  { %v4128_v38 = vpack.c.bf16 %v2548_v46, %v2544_v28  ;;  %v3643_v28 = vld [vmem:[#allocation6 + $0x18] sm:$0xff] }
 0x254   :  { %v1466_v10 = vpop.f32.mrf.mxu2  ;;  %v1131_v53 = vpop.f32.mrf.mxu0 }
 0x255   :  { %4593 = vst [vmem:[#allocation18_spill] sm:$0xff] %v4128_v38  ;;  %v1467_v50 = vadd.f32 %v1466_v10, %v3891_v4  ;;  %v1635_v54 = vpop.f32.mrf.mxu3  ;;  %v1132_v55 = vadd.f32 %v1131_v53, %v3888_v57  ;;  %v1300_v56 = vpop.f32.mrf.mxu1 }
 0x257   :  { %v1636_v2 = vadd.f32 %v1635_v54, %v1467_v50  ;;  %v1301_v0 = vadd.f32 %v1300_v56, %v1132_v55  ;;  %1686 = vmatmul.bf16.gmra.mxu0 %v3640_v59 }
 0x258   :  { %1855 = vmatmul.bf16.gmra.mxu1 %v3641_v12  ;;  %2797 = vmatpush.bf16.xpose.msrb.mxu0 %v4007_v24 }
 0x259   :  { %v2549_v6 = vmax.f32 %v1636_v2, 0.0  ;;  %2024 = vmatmul.bf16.gmra.mxu2 %v3640_v59  ;;  %2810 = vmatpush.bf16.xpose.msrb.mxu1 %v4012_v11  ;;  %v2552_v13 = vmax.f32 %v1301_v0, 0.0 }
 0x25a   :  { %2193 = vmatmul.bf16.gmra.mxu3 %v3641_v12 }
 0x25b   :  { %v4134_v45 = vpack.c.bf16 %v2549_v6, %v2545_v20 }
 0x25c   :  { %v1469_v58 = vpop.f32.mrf.mxu2  ;;  %v1133_v15 = vpop.f32.mrf.mxu0 }
 0x25d   :  { %4594 = vst [vmem:[#allocation19_spill] sm:$0xff] %v4134_v45  ;;  %v1470_v8 = vadd.f32 %v1469_v58, %v3891_v4  ;;  %v1638_v60 = vpop.f32.mrf.mxu3  ;;  %v1134_v19 = vadd.f32 %v1133_v15, %v3888_v57  ;;  %v1302_v22 = vpop.f32.mrf.mxu1  ;;  %v3644_v15 = vld [vmem:[#allocation3 + $0x20] sm:$0xff] }
 0x25f   :  { %v1639_v62 = vadd.f32 %v1638_v60, %v1470_v8  ;;  %v1303_v23 = vadd.f32 %v1302_v22, %v1134_v19 }
 0x260   :  { %2798 = vmatpush.bf16.xpose.msrb.mxu0 %v3995_v48 }
 0x261   :  { %v2556_v29 = vmax.f32 %v1303_v23, 0.0  ;;  %2811 = vmatpush.bf16.xpose.msrb.mxu1 %v4001_v3  ;;  %v2553_v9 = vmax.f32 %v1639_v62, 0.0  ;;  %v3645_v62 = vld [vmem:[#allocation6 + $0x20] sm:$0xff] }
 0x263   :  { %v4140_v11 = vpack.c.bf16 %v2556_v29, %v2552_v13 }
 0x264   :  { %v1471_v24 = vpop.f32.mrf.mxu2  ;;  %v1136_v34 = vpop.f32.mrf.mxu0 }
 0x265   :  { %4595 = vst [vmem:[#allocation20_spill] sm:$0xff] %v4140_v11  ;;  %v1472_v17 = vadd.f32 %v1471_v24, %v3891_v4  ;;  %v1640_v30 = vpop.f32.mrf.mxu3  ;;  %v1137_v14 = vadd.f32 %v1136_v34, %v3888_v57  ;;  %v1305_v16 = vpop.f32.mrf.mxu1 }
 0x267   :  { %v1641_v40 = vadd.f32 %v1640_v30, %v1472_v17  ;;  %v1306_v33 = vadd.f32 %v1305_v16, %v1137_v14  ;;  %1691 = vmatmul.bf16.gmra.mxu0 %v3642_v39 }
 0x268   :  { %1860 = vmatmul.bf16.gmra.mxu1 %v3643_v28  ;;  %2799 = vmatpush.bf16.xpose.msrb.mxu0 %v3983_v26 }
 0x269   :  { %v2557_v42 = vmax.f32 %v1641_v40, 0.0  ;;  %2029 = vmatmul.bf16.gmra.mxu2 %v3642_v39  ;;  %2812 = vmatpush.bf16.xpose.msrb.mxu1 %v3989_v35  ;;  %v2560_v2 = vmax.f32 %v1306_v33, 0.0 }
 0x26a   :  { %2198 = vmatmul.bf16.gmra.mxu3 %v3643_v28 }
 0x26b   :  { %v4146_v48 = vpack.c.bf16 %v2557_v42, %v2553_v9 }
 0x26c   :  { %v1474_v3 = vpop.f32.mrf.mxu2  ;;  %v1138_v50 = vpop.f32.mrf.mxu0 }
 0x26d   :  { %4596 = vst [vmem:[#allocation21_spill] sm:$0xff] %v4146_v48  ;;  %v1475_v46 = vadd.f32 %v1474_v3, %v3891_v4  ;;  %v1643_v10 = vpop.f32.mrf.mxu3  ;;  %v1139_v54 = vadd.f32 %v1138_v50, %v3888_v57  ;;  %v1307_v53 = vpop.f32.mrf.mxu1  ;;  %v3646_v50 = vld [vmem:[#allocation3 + $0x28] sm:$0xff] }
 0x26f   :  { %v1644_v55 = vadd.f32 %v1643_v10, %v1475_v46  ;;  %v1308_v56 = vadd.f32 %v1307_v53, %v1139_v54 }
 0x270   :  { %2800 = vmatpush.bf16.xpose.msrb.mxu0 %v3973_v51 }
 0x271   :  { %v2564_v0 = vmax.f32 %v1308_v56, 0.0  ;;  %2813 = vmatpush.bf16.xpose.msrb.mxu1 %v3978_v7  ;;  %v2561_v19 = vmax.f32 %v1644_v55, 0.0  ;;  %v3647_v55 = vld [vmem:[#allocation6 + $0x28] sm:$0xff] }
 0x273   :  { %v4152_v35 = vpack.c.bf16 %v2564_v0, %v2560_v2 }
 0x274   :  { %v1476_v26 = vpop.f32.mrf.mxu2  ;;  %v1141_v6 = vpop.f32.mrf.mxu0 }
 0x275   :  { %4597 = vst [vmem:[#allocation22_spill] sm:$0xff] %v4152_v35  ;;  %v1477_v59 = vadd.f32 %v1476_v26, %v3891_v4  ;;  %v1645_v20 = vpop.f32.mrf.mxu3  ;;  %v1142_v12 = vadd.f32 %v1141_v6, %v3888_v57  ;;  %v1310_v58 = vpop.f32.mrf.mxu1 }
 0x277   :  { %v1646_v8 = vadd.f32 %v1645_v20, %v1477_v59  ;;  %v1311_v60 = vadd.f32 %v1310_v58, %v1142_v12  ;;  %1696 = vmatmul.bf16.gmra.mxu0 %v3644_v15 }
 0x278   :  { %1865 = vmatmul.bf16.gmra.mxu1 %v3645_v62 }
 0x279   :  { %v2565_v22 = vmax.f32 %v1646_v8, 0.0  ;;  %2034 = vmatmul.bf16.gmra.mxu2 %v3644_v15  ;;  %v2568_v14 = vmax.f32 %v1311_v60, 0.0 }
 0x27a   :  { %2203 = vmatmul.bf16.gmra.mxu3 %v3645_v62 }
 0x27b   :  { %v4156_v51 = vpack.c.bf16 %v2565_v22, %v2561_v19 }
 0x27c   :  { %v1479_v7 = vpop.f32.mrf.mxu2  ;;  %v1143_v29 = vpop.f32.mrf.mxu0 }
 0x27d   :  { %4598 = vst [vmem:[#allocation23_spill] sm:$0xff] %v4156_v51  ;;  %v1480_v23 = vadd.f32 %v1479_v7, %v3891_v4  ;;  %v1648_v13 = vpop.f32.mrf.mxu3  ;;  %v1144_v24 = vadd.f32 %v1143_v29, %v3888_v57  ;;  %v1312_v17 = vpop.f32.mrf.mxu1 }
 0x27f   :  { %v1649_v30 = vadd.f32 %v1648_v13, %v1480_v23  ;;  %v1313_v34 = vadd.f32 %v1312_v17, %v1144_v24  ;;  %v3648_v17 = vld [vmem:[#allocation3 + $0x30] sm:$0xff] }
 0x281   :  { %v2572_v16 = vmax.f32 %v1313_v34, 0.0  ;;  %v2569_v54 = vmax.f32 %v1649_v30, 0.0 }
 0x283   :  { %v4160_v33 = vpack.c.bf16 %v2572_v16, %v2568_v14  ;;  %v3649_v14 = vld [vmem:[#allocation6 + $0x30] sm:$0xff] }
 0x284   :  { %v1481_v40 = vpop.f32.mrf.mxu2  ;;  %v1146_v42 = vpop.f32.mrf.mxu0 }
 0x285   :  { %4599 = vst [vmem:[#allocation24_spill] sm:$0xff] %v4160_v33  ;;  %v1482_v39 = vadd.f32 %v1481_v40, %v3891_v4  ;;  %v1650_v9 = vpop.f32.mrf.mxu3  ;;  %v1147_v28 = vadd.f32 %v1146_v42, %v3888_v57  ;;  %v1315_v3 = vpop.f32.mrf.mxu1 }
 0x287   :  { %v1651_v46 = vadd.f32 %v1650_v9, %v1482_v39  ;;  %v1316_v10 = vadd.f32 %v1315_v3, %v1147_v28  ;;  %1701 = vmatmul.bf16.gmra.mxu0 %v3646_v50 }
 0x288   :  { %1870 = vmatmul.bf16.gmra.mxu1 %v3647_v55 }
 0x289   :  { %v2573_v53 = vmax.f32 %v1651_v46, 0.0  ;;  %2039 = vmatmul.bf16.gmra.mxu2 %v3646_v50  ;;  %v2576_v8 = vmax.f32 %v1316_v10, 0.0 }
 0x28a   :  { %2208 = vmatmul.bf16.gmra.mxu3 %v3647_v55 }
 0x28b   :  { %v4164_v56 = vpack.c.bf16 %v2573_v53, %v2569_v54 }
 0x28c   :  { %v1484_v2 = vpop.f32.mrf.mxu2  ;;  %v1148_v59 = vpop.f32.mrf.mxu0 }
 0x28d   :  { %4600 = vst [vmem:[#allocation25_spill] sm:$0xff] %v4164_v56  ;;  %v1485_v0 = vadd.f32 %v1484_v2, %v3891_v4  ;;  %v1653_v26 = vpop.f32.mrf.mxu3  ;;  %v1149_v20 = vadd.f32 %v1148_v59, %v3888_v57  ;;  %v1317_v6 = vpop.f32.mrf.mxu1 }
 0x28f   :  { %v1654_v12 = vadd.f32 %v1653_v26, %v1485_v0  ;;  %v1318_v58 = vadd.f32 %v1317_v6, %v1149_v20 }
 0x291   :  { %v2580_v60 = vmax.f32 %v1318_v58, 0.0  ;;  %v2577_v30 = vmax.f32 %v1654_v12, 0.0  ;;  %v3650_v58 = vld [vmem:[#allocation3 + $0x38] sm:$0xff] }
 0x293   :  { %v4168_v19 = vpack.c.bf16 %v2580_v60, %v2576_v8 }
 0x294   :  { %v1486_v15 = vpop.f32.mrf.mxu2  ;;  %v1151_v7 = vpop.f32.mrf.mxu0 }
 0x295   :  { %4601 = vst [vmem:[#allocation26_spill] sm:$0xff] %v4168_v19  ;;  %v1487_v22 = vadd.f32 %v1486_v15, %v3891_v4  ;;  %v1655_v62 = vpop.f32.mrf.mxu3  ;;  %v1152_v23 = vadd.f32 %v1151_v7, %v3888_v57  ;;  %v1320_v13 = vpop.f32.mrf.mxu1  ;;  %v3651_v15 = vld [vmem:[#allocation6 + $0x38] sm:$0xff] }
 0x297   :  { %v1656_v29 = vadd.f32 %v1655_v62, %v1487_v22  ;;  %v1321_v24 = vadd.f32 %v1320_v13, %v1152_v23  ;;  %1706 = vmatmul.bf16.gmra.mxu0 %v3648_v17 }
 0x298   :  { %1875 = vmatmul.bf16.gmra.mxu1 %v3649_v14 }
 0x299   :  { %v2581_v34 = vmax.f32 %v1656_v29, 0.0  ;;  %2044 = vmatmul.bf16.gmra.mxu2 %v3648_v17  ;;  %v2584_v50 = vmax.f32 %v1321_v24, 0.0 }
 0x29a   :  { %2213 = vmatmul.bf16.gmra.mxu3 %v3649_v14 }
 0x29b   :  { %v4172_v16 = vpack.c.bf16 %v2581_v34, %v2577_v30 }
 0x29c   :  { %v1489_v40 = vpop.f32.mrf.mxu2  ;;  %v1153_v42 = vpop.f32.mrf.mxu0 }
 0x29d   :  { %4602 = vst [vmem:[#allocation27_spill] sm:$0xff] %v4172_v16  ;;  %v1490_v39 = vadd.f32 %v1489_v40, %v3891_v4  ;;  %v1658_v9 = vpop.f32.mrf.mxu3  ;;  %v1154_v28 = vadd.f32 %v1153_v42, %v3888_v57  ;;  %v1322_v3 = vpop.f32.mrf.mxu1  ;;  %v3652_v40 = vld [vmem:[%s4587_s3] sm:$0xf] }
 0x29f   :  { %v1659_v46 = vadd.f32 %v1658_v9, %v1490_v39  ;;  %v1323_v10 = vadd.f32 %v1322_v3, %v1154_v28  ;;  %v4187_v39 = vperm.slane %v3652_v40, 2 }
 0x2a1   :  { %v2588_v54 = vmax.f32 %v1323_v10, 0.0  ;;  %v2585_v8 = vmax.f32 %v1659_v46, 0.0 }
 0x2a3   :  { %v4176_v55 = vpack.c.bf16 %v2588_v54, %v2584_v50 }
 0x2a4   :  { %v1491_v53 = vpop.f32.mrf.mxu2  ;;  %v1156_v26 = vpop.f32.mrf.mxu0 }
 0x2a5   :  { %4603 = vst [vmem:[#allocation28_spill] sm:$0xff] %v4176_v55  ;;  %v1492_v2 = vadd.f32 %v1491_v53, %v3891_v4  ;;  %v1660_v0 = vpop.f32.mrf.mxu3  ;;  %v1157_v59 = vadd.f32 %v1156_v26, %v3888_v57  ;;  %v1325_v20 = vpop.f32.mrf.mxu1  ;;  %v3653_v53 = vld [vmem:[#allocation3 + $0x40] sm:$0xff] }
 0x2a6   :  { %v3654_v26 = vld [vmem:[#allocation6 + $0x40] sm:$0xff] }
 0x2a7   :  { %v1661_v6 = vadd.f32 %v1660_v0, %v1492_v2  ;;  %v1326_v12 = vadd.f32 %v1325_v20, %v1157_v59  ;;  %1711 = vmatmul.bf16.gmra.mxu0 %v3650_v58  ;;  %v4193_v59 = vperm.slane %v3652_v40, 3 }
 0x2a8   :  { %1880 = vmatmul.bf16.gmra.mxu1 %v3651_v15 }
 0x2a9   :  { %v2589_v60 = vmax.f32 %v1661_v6, 0.0  ;;  %2049 = vmatmul.bf16.gmra.mxu2 %v3650_v58  ;;  %v2592_v34 = vmax.f32 %v1326_v12, 0.0 }
 0x2aa   :  { %2218 = vmatmul.bf16.gmra.mxu3 %v3651_v15 }
 0x2ab   :  { %v4180_v22 = vpack.c.bf16 %v2589_v60, %v2585_v8 }
 0x2ac   :  { %v1494_v62 = vpop.f32.mrf.mxu2  ;;  %v1158_v13 = vpop.f32.mrf.mxu0 }
 0x2ad   :  { %4604 = vst [vmem:[#allocation29_spill] sm:$0xff] %v4180_v22  ;;  %v1495_v7 = vadd.f32 %v1494_v62, %v3891_v4  ;;  %v1663_v23 = vpop.f32.mrf.mxu3  ;;  %v1159_v29 = vadd.f32 %v1158_v13, %v3888_v57  ;;  %v1327_v24 = vpop.f32.mrf.mxu1 }
 0x2af   :  { %v1664_v17 = vadd.f32 %v1663_v23, %v1495_v7  ;;  %v1328_v30 = vadd.f32 %v1327_v24, %v1159_v29 }
 0x2b1   :  { %v2596_v14 = vmax.f32 %v1328_v30, 0.0  ;;  %v2593_v2 = vmax.f32 %v1664_v17, 0.0 }
 0x2b3   :  { %v4189_v9 = vpack.c.bf16 %v2596_v14, %v2592_v34 }
 0x2b4   :  { %v1496_v42 = vpop.f32.mrf.mxu2  ;;  %v1677_v46 = vpop.f32.mrf.mxu0 }
 0x2b5   :  { %4605 = vst [vmem:[#allocation30_spill] sm:$0xff] %v4189_v9  ;;  %v1497_v28 = vadd.f32 %v1496_v42, %v3891_v4  ;;  %v1665_v3 = vpop.f32.mrf.mxu3  ;;  %v1678_v57 = vadd.f32 %v1677_v46, %v4187_v39  ;;  %v1846_v10 = vpop.f32.mrf.mxu1 }
 0x2b7   :  { %v1666_v50 = vadd.f32 %v1665_v3, %v1497_v28  ;;  %v1847_v54 = vadd.f32 %v1846_v10, %v1678_v57  ;;  %1716 = vmatmul.bf16.gmra.mxu0 %v3653_v53  ;;  %v3655_v28 = vld [vmem:[#allocation3 + $0x48] sm:$0xff] }
 0x2b8   :  { %1885 = vmatmul.bf16.gmra.mxu1 %v3654_v26  ;;  %v3656_v57 = vld [vmem:[#allocation6 + $0x48] sm:$0xff] }
 0x2b9   :  { %v2597_v0 = vmax.f32 %v1666_v50, 0.0  ;;  %2054 = vmatmul.bf16.gmra.mxu2 %v3653_v53  ;;  %v2346_v7 = vmax.f32 %v1847_v54, 0.0 }
 0x2ba   :  { %2223 = vmatmul.bf16.gmra.mxu3 %v3654_v26 }
 0x2bb   :  { %v4195_v20 = vpack.c.bf16 %v2597_v0, %v2593_v2 }
 0x2bc   :  { %v2015_v4 = vpop.f32.mrf.mxu2  ;;  %v1679_v58 = vpop.f32.mrf.mxu0 }
 0x2bd   :  { %4606 = vst [vmem:[#allocation31_spill] sm:$0xff] %v4195_v20  ;;  %v2016_v6 = vadd.f32 %v2015_v4, %v4193_v59  ;;  %v2184_v12 = vpop.f32.mrf.mxu3  ;;  %v1680_v8 = vadd.f32 %v1679_v58, %v4187_v39  ;;  %v1848_v60 = vpop.f32.mrf.mxu1 }
 0x2bf   :  { %v2185_v15 = vadd.f32 %v2184_v12, %v2016_v6  ;;  %v1849_v62 = vadd.f32 %v1848_v60, %v1680_v8 }
 0x2c1   :  { %v2350_v23 = vmax.f32 %v1849_v62, 0.0  ;;  %v2347_v3 = vmax.f32 %v2185_v15, 0.0 }
 0x2c3   :  { %v4199_v29 = vpack.c.bf16 %v2350_v23, %v2346_v7 }
 0x2c4   :  { %v2017_v13 = vpop.f32.mrf.mxu2  ;;  %v1682_v30 = vpop.f32.mrf.mxu0 }
 0x2c5   :  { %v2018_v24 = vadd.f32 %v2017_v13, %v4193_v59  ;;  %v2186_v17 = vpop.f32.mrf.mxu3  ;;  %v1683_v34 = vadd.f32 %v1682_v30, %v4187_v39  ;;  %v1851_v14 = vpop.f32.mrf.mxu1  ;;  %v3657_v30 = vld [vmem:[#allocation3 + $0x50] sm:$0xff] }
 0x2c7   :  { %v2187_v40 = vadd.f32 %v2186_v17, %v2018_v24  ;;  %v1852_v42 = vadd.f32 %v1851_v14, %v1683_v34  ;;  %1721 = vmatmul.bf16.gmra.mxu0 %v3655_v28 }
 0x2c8   :  { %1890 = vmatmul.bf16.gmra.mxu1 %v3656_v57 }
 0x2c9   :  { %v2351_v46 = vmax.f32 %v2187_v40, 0.0  ;;  %2059 = vmatmul.bf16.gmra.mxu2 %v3655_v28  ;;  %v2354_v12 = vmax.f32 %v1852_v42, 0.0  ;;  %v3658_v40 = vld [vmem:[#allocation6 + $0x50] sm:$0xff] }
 0x2ca   :  { %2228 = vmatmul.bf16.gmra.mxu3 %v3656_v57 }
 0x2cb   :  { %v4203_v10 = vpack.c.bf16 %v2351_v46, %v2347_v3 }
 0x2cc   :  { %v2020_v50 = vpop.f32.mrf.mxu2  ;;  %v1684_v2 = vpop.f32.mrf.mxu0 }
 0x2cd   :  { %v2021_v54 = vadd.f32 %v2020_v50, %v4193_v59  ;;  %v2189_v53 = vpop.f32.mrf.mxu3  ;;  %v1685_v0 = vadd.f32 %v1684_v2, %v4187_v39  ;;  %v1853_v26 = vpop.f32.mrf.mxu1 }
 0x2cf   :  { %v2190_v4 = vadd.f32 %v2189_v53, %v2021_v54  ;;  %v1854_v6 = vadd.f32 %v1853_v26, %v1685_v0 }
 0x2d1   :  { %v2358_v58 = vmax.f32 %v1854_v6, 0.0  ;;  %v2355_v34 = vmax.f32 %v2190_v4, 0.0 }
 0x2d3   :  { %v4207_v60 = vpack.c.bf16 %v2358_v58, %v2354_v12 }
 0x2d4   :  { %v2022_v8 = vpop.f32.mrf.mxu2  ;;  %v1687_v7 = vpop.f32.mrf.mxu0 }
 0x2d5   :  { %v2023_v15 = vadd.f32 %v2022_v8, %v4193_v59  ;;  %v2191_v62 = vpop.f32.mrf.mxu3  ;;  %v1688_v23 = vadd.f32 %v1687_v7, %v4187_v39  ;;  %v1856_v13 = vpop.f32.mrf.mxu1 }
 0x2d7   :  { %v2192_v24 = vadd.f32 %v2191_v62, %v2023_v15  ;;  %v1857_v17 = vadd.f32 %v1856_v13, %v1688_v23  ;;  %1726 = vmatmul.bf16.gmra.mxu0 %v3657_v30  ;;  %v3659_v13 = vld [vmem:[#allocation3 + $0x58] sm:$0xff] }
 0x2d8   :  { %1895 = vmatmul.bf16.gmra.mxu1 %v3658_v40 }
 0x2d9   :  { %v2359_v14 = vmax.f32 %v2192_v24, 0.0  ;;  %2064 = vmatmul.bf16.gmra.mxu2 %v3657_v30  ;;  %v2362_v0 = vmax.f32 %v1857_v17, 0.0 }
 0x2da   :  { %2233 = vmatmul.bf16.gmra.mxu3 %v3658_v40 }
 0x2db   :  { %v4211_v42 = vpack.c.bf16 %v2359_v14, %v2355_v34  ;;  %v3660_v34 = vld [vmem:[#allocation6 + $0x58] sm:$0xff] }
 0x2dc   :  { %v2025_v28 = vpop.f32.mrf.mxu2  ;;  %v1689_v57 = vpop.f32.mrf.mxu0 }
 0x2dd   :  { %v2026_v3 = vadd.f32 %v2025_v28, %v4193_v59  ;;  %v2194_v46 = vpop.f32.mrf.mxu3  ;;  %v1690_v50 = vadd.f32 %v1689_v57, %v4187_v39  ;;  %v1858_v54 = vpop.f32.mrf.mxu1 }
 0x2df   :  { %v2195_v53 = vadd.f32 %v2194_v46, %v2026_v3  ;;  %v1859_v2 = vadd.f32 %v1858_v54, %v1690_v50 }
 0x2e1   :  { %v2366_v26 = vmax.f32 %v1859_v2, 0.0  ;;  %v2363_v24 = vmax.f32 %v2195_v53, 0.0 }
 0x2e3   :  { %v4215_v6 = vpack.c.bf16 %v2366_v26, %v2362_v0 }
 0x2e4   :  { %v2027_v4 = vpop.f32.mrf.mxu2  ;;  %v1692_v8 = vpop.f32.mrf.mxu0 }
 0x2e5   :  { %v2028_v12 = vadd.f32 %v2027_v4, %v4193_v59  ;;  %v2196_v58 = vpop.f32.mrf.mxu3  ;;  %v1693_v15 = vadd.f32 %v1692_v8, %v4187_v39  ;;  %v1861_v62 = vpop.f32.mrf.mxu1 }
 0x2e7   :  { %v2197_v7 = vadd.f32 %v2196_v58, %v2028_v12  ;;  %v1862_v23 = vadd.f32 %v1861_v62, %v1693_v15  ;;  %1731 = vmatmul.bf16.gmra.mxu0 %v3659_v13 }
 0x2e8   :  { %1900 = vmatmul.bf16.gmra.mxu1 %v3660_v34 }
 0x2e9   :  { %v2367_v30 = vmax.f32 %v2197_v7, 0.0  ;;  %2069 = vmatmul.bf16.gmra.mxu2 %v3659_v13  ;;  %v2370_v2 = vmax.f32 %v1862_v23, 0.0  ;;  %v3661_v13 = vld [vmem:[#allocation3 + $0x60] sm:$0xff] }
 0x2ea   :  { %2238 = vmatmul.bf16.gmra.mxu3 %v3660_v34  ;;  %v3662_v34 = vld [vmem:[#allocation6 + $0x60] sm:$0xff] }
 0x2eb   :  { %v4219_v17 = vpack.c.bf16 %v2367_v30, %v2363_v24 }
 0x2ec   :  { %v2030_v14 = vpop.f32.mrf.mxu2  ;;  %v1694_v3 = vpop.f32.mrf.mxu0 }
 0x2ed   :  { %v2031_v40 = vadd.f32 %v2030_v14, %v4193_v59  ;;  %v2199_v28 = vpop.f32.mrf.mxu3  ;;  %v1695_v46 = vadd.f32 %v1694_v3, %v4187_v39  ;;  %v1863_v57 = vpop.f32.mrf.mxu1 }
 0x2ef   :  { %v2200_v50 = vadd.f32 %v2199_v28, %v2031_v40  ;;  %v1864_v54 = vadd.f32 %v1863_v57, %v1695_v46 }
 0x2f1   :  { %v2374_v0 = vmax.f32 %v1864_v54, 0.0  ;;  %v2371_v24 = vmax.f32 %v2200_v50, 0.0 }
 0x2f3   :  { %v4223_v26 = vpack.c.bf16 %v2374_v0, %v2370_v2 }
 0x2f4   :  { %v2032_v53 = vpop.f32.mrf.mxu2  ;;  %v1697_v58 = vpop.f32.mrf.mxu0 }
 0x2f5   :  { %v2033_v4 = vadd.f32 %v2032_v53, %v4193_v59  ;;  %v2201_v12 = vpop.f32.mrf.mxu3  ;;  %v1698_v8 = vadd.f32 %v1697_v58, %v4187_v39  ;;  %v1866_v15 = vpop.f32.mrf.mxu1 }
 0x2f7   :  { %v2202_v62 = vadd.f32 %v2201_v12, %v2033_v4  ;;  %v1867_v7 = vadd.f32 %v1866_v15, %v1698_v8  ;;  %1736 = vmatmul.bf16.gmra.mxu0 %v3661_v13 }
 0x2f8   :  { %1905 = vmatmul.bf16.gmra.mxu1 %v3662_v34 }
 0x2f9   :  { %v2375_v30 = vmax.f32 %v2202_v62, 0.0  ;;  %2074 = vmatmul.bf16.gmra.mxu2 %v3661_v13  ;;  %v2378_v0 = vmax.f32 %v1867_v7, 0.0  ;;  %v3663_v13 = vld [vmem:[#allocation3 + $0x68] sm:$0xff] }
 0x2fa   :  { %2243 = vmatmul.bf16.gmra.mxu3 %v3662_v34  ;;  %v3664_v34 = vld [vmem:[#allocation6 + $0x68] sm:$0xff] }
 0x2fb   :  { %v4227_v23 = vpack.c.bf16 %v2375_v30, %v2371_v24 }
 0x2fc   :  { %v2035_v14 = vpop.f32.mrf.mxu2  ;;  %v1699_v3 = vpop.f32.mrf.mxu0 }
 0x2fd   :  { %v2036_v40 = vadd.f32 %v2035_v14, %v4193_v59  ;;  %v2204_v28 = vpop.f32.mrf.mxu3  ;;  %v1700_v46 = vadd.f32 %v1699_v3, %v4187_v39  ;;  %v1868_v57 = vpop.f32.mrf.mxu1 }
 0x2ff   :  { %v2205_v54 = vadd.f32 %v2204_v28, %v2036_v40  ;;  %v1869_v2 = vadd.f32 %v1868_v57, %v1700_v46 }
 0x301   :  { %v2382_v53 = vmax.f32 %v1869_v2, 0.0  ;;  %v2379_v24 = vmax.f32 %v2205_v54, 0.0 }
 0x303   :  { %v4231_v4 = vpack.c.bf16 %v2382_v53, %v2378_v0  ;;  %v3665_v0 = vld [vmem:[#allocation3 + $0x70] sm:$0xff] }
 0x304   :  { %v2037_v50 = vpop.f32.mrf.mxu2  ;;  %v4234_v8 = vpop.f32.mrf.mxu0  ;;  %v3666_v53 = vld [vmem:[#allocation6 + $0x70] sm:$0xff] }
 0x305   :  { %v2038_v12 = vadd.f32 %v2037_v50, %v4193_v59  ;;  %v2206_v58 = vpop.f32.mrf.mxu3  ;;  %v4236_v15 = vpop.f32.mrf.mxu1 }
 0x307   :  { %v2207_v62 = vadd.f32 %v2206_v58, %v2038_v12  ;;  %1741 = vmatmul.bf16.gmra.mxu0 %v3663_v13 }
 0x308   :  { %1910 = vmatmul.bf16.gmra.mxu1 %v3664_v34 }
 0x309   :  { %v2383_v30 = vmax.f32 %v2207_v62, 0.0  ;;  %2079 = vmatmul.bf16.gmra.mxu2 %v3663_v13 }
 0x30a   :  { %2248 = vmatmul.bf16.gmra.mxu3 %v3664_v34 }
 0x30b   :  { %v4238_v7 = vpack.c.bf16 %v2383_v30, %v2379_v24 }
 0x30c   :  { %v4240_v14 = vpop.f32.mrf.mxu2  ;;  %v1704_v28 = vpop.f32.mrf.mxu0 }
 0x30d   :  { %v4242_v40 = vpop.f32.mrf.mxu3  ;;  %v4244_v3 = vpop.f32.mrf.mxu1 }
 0x314   :  { %v4246_v46 = vpop.f32.mrf.mxu2  ;;  %v1707_v2 = vpop.f32.mrf.mxu0 }
 0x315   :  { %v4248_v57 = vpop.f32.mrf.mxu3  ;;  %v1876_v54 = vpop.f32.mrf.mxu1  ;;  %v1708_v16 = vadd.f32 %v1707_v2, %v4187_v39 }
 0x317   :  { %1746 = vmatmul.bf16.gmra.mxu0 %v3665_v0 }
 0x318   :  { %1915 = vmatmul.bf16.gmra.mxu1 %v3666_v53 }
 0x319   :  { %2084 = vmatmul.bf16.gmra.mxu2 %v3665_v0 }
 0x31a   :  { %2253 = vmatmul.bf16.gmra.mxu3 %v3666_v53 }
 0x31c   :  { %v2045_v50 = vpop.f32.mrf.mxu2  ;;  %v1709_v58 = vpop.f32.mrf.mxu0 }
 0x31d   :  { %v2214_v12 = vpop.f32.mrf.mxu3  ;;  %v1878_v62 = vpop.f32.mrf.mxu1  ;;  %v1710_v35 = vadd.f32 %v1709_v58, %v4187_v39 }
 0x324   :  { %v2047_v13 = vpop.f32.mrf.mxu2  ;;  %v1712_v30 = vpop.f32.mrf.mxu0 }
 0x325   :  { %v2216_v24 = vpop.f32.mrf.mxu3  ;;  %v1881_v34 = vpop.f32.mrf.mxu1  ;;  %v1713_v45 = vadd.f32 %v1712_v30, %v4187_v39 }
 0x327   :  { %1751 = vmatmul.bf16.gmra.mxu0 %v3667_v36  ;;  %v1882_v53 = vadd.f32 %v1881_v34, %v1713_v45  ;;  %v1877_v34 = vadd.f32 %v1876_v54, %v1708_v16  ;;  %v1703_v16 = vadd.f32 %v4234_v8, %v4187_v39 }
 0x328   :  { %1920 = vmatmul.bf16.gmra.mxu1 %v3668_v37 }
 0x329   :  { %2089 = vmatmul.bf16.gmra.mxu2 %v3667_v36  ;;  %v2402_v19 = vmax.f32 %v1882_v53, 0.0  ;;  %v1879_v36 = vadd.f32 %v1878_v62, %v1710_v35  ;;  %v3669_v35 = vld [vmem:[#allocation3 + $0x80] sm:$0xff] }
 0x32a   :  { %2258 = vmatmul.bf16.gmra.mxu3 %v3668_v37 }
 0x32b   :  { %v2398_v2 = vmax.f32 %v1879_v36, 0.0 }
 0x32c   :  { %v2050_v38 = vpop.f32.mrf.mxu2  ;;  %v1714_v0 = vpop.f32.mrf.mxu0 }
 0x32d   :  { %v2219_v48 = vpop.f32.mrf.mxu3  ;;  %v1715_v11 = vadd.f32 %v1714_v0, %v4187_v39  ;;  %v1883_v51 = vpop.f32.mrf.mxu1  ;;  %v2051_v33 = vadd.f32 %v2050_v38, %v4193_v59 }
 0x32f   :  { %v1884_v56 = vadd.f32 %v1883_v51, %v1715_v11  ;;  %v2220_v37 = vadd.f32 %v2219_v48, %v2051_v33  ;;  %v2048_v11 = vadd.f32 %v2047_v13, %v4193_v59  ;;  %v1705_v51 = vadd.f32 %v1704_v28, %v4187_v39 }
 0x330   :  { %v2046_v48 = vadd.f32 %v2045_v50, %v4193_v59 }
 0x331   :  { %v2406_v22 = vmax.f32 %v1884_v56, 0.0  ;;  %v2403_v33 = vmax.f32 %v2220_v37, 0.0  ;;  %v2217_v54 = vadd.f32 %v2216_v24, %v2048_v11  ;;  %v2043_v24 = vadd.f32 %v4246_v46, %v4193_v59 }
 0x332   :  { %v2215_v13 = vadd.f32 %v2214_v12, %v2046_v48  ;;  %v2041_v12 = vadd.f32 %v4240_v14, %v4193_v59 }
 0x333   :  { %v2631_v55 = vpack.c.bf16 %v2406_v22, %v2402_v19  ;;  %v3670_v22 = vld [vmem:[#allocation6 + $0x80] sm:$0xff] }
 0x334   :  { %v2052_v30 = vpop.f32.mrf.mxu2  ;;  %v1717_v45 = vpop.f32.mrf.mxu0  ;;  %v2210_v46 = vadd.f32 %v4242_v40, %v2041_v12 }
 0x335   :  { %v2053_v20 = vadd.f32 %v2052_v30, %v4193_v59  ;;  %v2221_v9 = vpop.f32.mrf.mxu3  ;;  %v1718_v0 = vadd.f32 %v1717_v45, %v4187_v39  ;;  %2767 = vmatpush.bf16.xpose.msra.mxu2 %v2631_v55  ;;  %v1886_v58 = vpop.f32.mrf.mxu1  ;;  %v2394_v55 = vmax.f32 %v1877_v34, 0.0  ;;  %v1872_v30 = vadd.f32 %v4236_v15, %v1703_v16 }
 0x336   :  { %v2399_v45 = vmax.f32 %v2217_v54, 0.0  ;;  %v2212_v15 = vadd.f32 %v4248_v57, %v2043_v24  ;;  %v3671_v57 = vld [vmem:[#allocation3 + $0x88] sm:$0xff] }
 0x337   :  { %v2222_v38 = vadd.f32 %v2221_v9, %v2053_v20  ;;  %v1887_v56 = vadd.f32 %v1886_v58, %v1718_v0  ;;  %1756 = vmatmul.bf16.gmra.mxu0 %v3669_v35  ;;  %v1874_v20 = vadd.f32 %v4244_v3, %v1705_v51  ;;  %v2627_v62 = vpack.c.bf16 %v2398_v2, %v2394_v55 }
 0x338   :  { %1925 = vmatmul.bf16.gmra.mxu1 %v3670_v22  ;;  %v2395_v58 = vmax.f32 %v2215_v13, 0.0  ;;  %v2386_v11 = vmax.f32 %v1872_v30, 0.0  ;;  %v3672_v13 = vld [vmem:[#allocation6 + $0x88] sm:$0xff] }
 0x339   :  { %v2407_v19 = vmax.f32 %v2222_v38, 0.0  ;;  %2094 = vmatmul.bf16.gmra.mxu2 %v3669_v35  ;;  %v2390_v3 = vmax.f32 %v1874_v20, 0.0  ;;  %v2410_v38 = vmax.f32 %v1887_v56, 0.0  ;;  %v2391_v56 = vmax.f32 %v2212_v15, 0.0 }
 0x33a   :  { %2263 = vmatmul.bf16.gmra.mxu3 %v3670_v22  ;;  %v2628_v2 = vpack.c.bf16 %v2399_v45, %v2395_v58  ;;  %v2387_v20 = vmax.f32 %v2210_v46, 0.0 }
 0x33b   :  { %v2632_v9 = vpack.c.bf16 %v2407_v19, %v2403_v33  ;;  %v2623_v48 = vpack.c.bf16 %v2390_v3, %v2386_v11 }
 0x33c   :  { %v2055_v28 = vpop.f32.mrf.mxu2  ;;  %v1719_v50 = vpop.f32.mrf.mxu0  ;;  %v2624_v40 = vpack.c.bf16 %v2391_v56, %v2387_v20 }
 0x33d   :  { %v2056_v53 = vadd.f32 %v2055_v28, %v4193_v59  ;;  %2780 = vmatpush.bf16.xpose.msra.mxu3 %v2632_v9  ;;  %v2224_v36 = vpop.f32.mrf.mxu3  ;;  %v1720_v37 = vadd.f32 %v1719_v50, %v4187_v39  ;;  %2768 = vmatpush.bf16.xpose.msra.mxu2 %v2627_v62  ;;  %v1888_v8 = vpop.f32.mrf.mxu1 }
 0x33f   :  { %v2225_v34 = vadd.f32 %v2224_v36, %v2056_v53  ;;  %v1889_v0 = vadd.f32 %v1888_v8, %v1720_v37 }
 0x341   :  { %v2414_v51 = vmax.f32 %v1889_v0, 0.0  ;;  %v2411_v28 = vmax.f32 %v2225_v34, 0.0 }
 0x343   :  { %v4271_v33 = vpack.c.bf16 %v2414_v51, %v2410_v38 }
 0x344   :  { %v2057_v35 = vpop.f32.mrf.mxu2  ;;  %v1722_v22 = vpop.f32.mrf.mxu0 }
 0x345   :  { %v2058_v19 = vadd.f32 %v2057_v35, %v4193_v59  ;;  %2781 = vmatpush.bf16.xpose.msra.mxu3 %v2628_v2  ;;  %v2226_v16 = vpop.f32.mrf.mxu3  ;;  %v1723_v14 = vadd.f32 %v1722_v22, %v4187_v39  ;;  %2769 = vmatpush.bf16.xpose.msra.mxu2 %v2623_v48  ;;  %v1891_v55 = vpop.f32.mrf.mxu1  ;;  %v3673_v48 = vld [vmem:[#allocation3 + $0x90] sm:$0xff] }
 0x346   :  { %v3674_v22 = vld [vmem:[#allocation6 + $0x90] sm:$0xff] }
 0x347   :  { %v2227_v54 = vadd.f32 %v2226_v16, %v2058_v19  ;;  %v1892_v9 = vadd.f32 %v1891_v55, %v1723_v14  ;;  %1761 = vmatmul.bf16.gmra.mxu0 %v3671_v57 }
 0x348   :  { %1930 = vmatmul.bf16.gmra.mxu1 %v3672_v13 }
 0x349   :  { %v2415_v62 = vmax.f32 %v2227_v54, 0.0  ;;  %2099 = vmatmul.bf16.gmra.mxu2 %v3671_v57  ;;  %v2418_v3 = vmax.f32 %v1892_v9, 0.0 }
 0x34a   :  { %2268 = vmatmul.bf16.gmra.mxu3 %v3672_v13 }
 0x34b   :  { %v4276_v53 = vpack.c.bf16 %v2415_v62, %v2411_v28 }
 0x34c   :  { %v2060_v50 = vpop.f32.mrf.mxu2  ;;  %v1724_v30 = vpop.f32.mrf.mxu0 }
 0x34d   :  { %v2061_v36 = vadd.f32 %v2060_v50, %v4193_v59  ;;  %2782 = vmatpush.bf16.xpose.msra.mxu3 %v2624_v40  ;;  %v2229_v37 = vpop.f32.mrf.mxu3  ;;  %v1725_v8 = vadd.f32 %v1724_v30, %v4187_v39  ;;  %2770 = vmatpush.bf16.xpose.msra.mxu2 %v4231_v4  ;;  %v1893_v24 = vpop.f32.mrf.mxu1 }
 0x34f   :  { %v2230_v45 = vadd.f32 %v2229_v37, %v2061_v36  ;;  %v1894_v34 = vadd.f32 %v1893_v24, %v1725_v8  ;;  %v3675_v8 = vld [vmem:[#allocation3 + $0x98] sm:$0xff] }
 0x351   :  { %v2422_v0 = vmax.f32 %v1894_v34, 0.0  ;;  %v2419_v46 = vmax.f32 %v2230_v45, 0.0  ;;  %v3676_v34 = vld [vmem:[#allocation6 + $0x98] sm:$0xff] }
 0x353   :  { %v4281_v58 = vpack.c.bf16 %v2422_v0, %v2418_v3 }
 0x354   :  { %v2062_v12 = vpop.f32.mrf.mxu2  ;;  %v1727_v38 = vpop.f32.mrf.mxu0 }
 0x355   :  { %v2063_v11 = vadd.f32 %v2062_v12, %v4193_v59  ;;  %2783 = vmatpush.bf16.xpose.msra.mxu3 %v4238_v7  ;;  %v2231_v51 = vpop.f32.mrf.mxu3  ;;  %v1728_v15 = vadd.f32 %v1727_v38, %v4187_v39  ;;  %2771 = vmatpush.bf16.xpose.msra.mxu2 %v4223_v26  ;;  %v1896_v2 = vpop.f32.mrf.mxu1 }
 0x357   :  { %v2232_v4 = vadd.f32 %v2231_v51, %v2063_v11  ;;  %v1897_v35 = vadd.f32 %v1896_v2, %v1728_v15  ;;  %1766 = vmatmul.bf16.gmra.mxu0 %v3673_v48 }
 0x358   :  { %1935 = vmatmul.bf16.gmra.mxu1 %v3674_v22 }
 0x359   :  { %v2423_v19 = vmax.f32 %v2232_v4, 0.0  ;;  %2104 = vmatmul.bf16.gmra.mxu2 %v3673_v48  ;;  %v2426_v20 = vmax.f32 %v1897_v35, 0.0 }
 0x35a   :  { %2273 = vmatmul.bf16.gmra.mxu3 %v3674_v22 }
 0x35b   :  { %v4287_v16 = vpack.c.bf16 %v2423_v19, %v2419_v46 }
 0x35c   :  { %v2065_v7 = vpop.f32.mrf.mxu2  ;;  %v1729_v55 = vpop.f32.mrf.mxu0 }
 0x35d   :  { %v2066_v14 = vadd.f32 %v2065_v7, %v4193_v59  ;;  %2784 = vmatpush.bf16.xpose.msra.mxu3 %v4227_v23  ;;  %v2234_v26 = vpop.f32.mrf.mxu3  ;;  %v1730_v56 = vadd.f32 %v1729_v55, %v4187_v39  ;;  %2772 = vmatpush.bf16.xpose.msra.mxu2 %v4215_v6  ;;  %v1898_v54 = vpop.f32.mrf.mxu1 }
 0x35f   :  { %v2235_v9 = vadd.f32 %v2234_v26, %v2066_v14  ;;  %v1899_v57 = vadd.f32 %v1898_v54, %v1730_v56  ;;  %v3678_v54 = vld [vmem:[#allocation6 + $0xa0] sm:$0xff] }
 0x361   :  { %v2430_v28 = vmax.f32 %v1899_v57, 0.0  ;;  %v2427_v24 = vmax.f32 %v2235_v9, 0.0 }
 0x363   :  { %v4293_v13 = vpack.c.bf16 %v2430_v28, %v2426_v20 }
 0x364   :  { %v2067_v62 = vpop.f32.mrf.mxu2  ;;  %v1732_v50 = vpop.f32.mrf.mxu0 }
 0x365   :  { %v2068_v40 = vadd.f32 %v2067_v62, %v4193_v59  ;;  %2785 = vmatpush.bf16.xpose.msra.mxu3 %v4219_v17  ;;  %v2236_v23 = vpop.f32.mrf.mxu3  ;;  %v1733_v36 = vadd.f32 %v1732_v50, %v4187_v39  ;;  %2773 = vmatpush.bf16.xpose.msra.mxu2 %v4207_v60  ;;  %v1901_v30 = vpop.f32.mrf.mxu1 }
 0x367   :  { %v2237_v6 = vadd.f32 %v2236_v23, %v2068_v40  ;;  %v1902_v37 = vadd.f32 %v1901_v30, %v1733_v36  ;;  %1771 = vmatmul.bf16.gmra.mxu0 %v3675_v8 }
 0x368   :  { %1940 = vmatmul.bf16.gmra.mxu1 %v3676_v34 }
 0x369   :  { %v2431_v45 = vmax.f32 %v2237_v6, 0.0  ;;  %2109 = vmatmul.bf16.gmra.mxu2 %v3675_v8  ;;  %v2434_v2 = vmax.f32 %v1902_v37, 0.0 }
 0x36a   :  { %2278 = vmatmul.bf16.gmra.mxu3 %v3676_v34 }
 0x36b   :  { %v4299_v3 = vpack.c.bf16 %v2431_v45, %v2427_v24 }
 0x36c   :  { %v2070_v17 = vpop.f32.mrf.mxu2  ;;  %v1734_v12 = vpop.f32.mrf.mxu0 }
 0x36d   :  { %v2071_v0 = vadd.f32 %v2070_v17, %v4193_v59  ;;  %2786 = vmatpush.bf16.xpose.msra.mxu3 %v4211_v42  ;;  %v2239_v60 = vpop.f32.mrf.mxu3  ;;  %v1735_v11 = vadd.f32 %v1734_v12, %v4187_v39  ;;  %2774 = vmatpush.bf16.xpose.msra.mxu2 %v4199_v29  ;;  %v1903_v38 = vpop.f32.mrf.mxu1  ;;  %v3677_v29 = vld [vmem:[#allocation3 + $0xa0] sm:$0xff] }
 0x36f   :  { %v2240_v51 = vadd.f32 %v2239_v60, %v2071_v0  ;;  %v1904_v15 = vadd.f32 %v1903_v38, %v1735_v11  ;;  %v3679_v0 = vld [vmem:[#allocation3 + $0xa8] sm:$0xff] }
 0x370   :  { %v3680_v11 = vld [vmem:[#allocation6 + $0xa8] sm:$0xff] }
 0x371   :  { %v2438_v4 = vmax.f32 %v1904_v15, 0.0  ;;  %v2435_v26 = vmax.f32 %v2240_v51, 0.0 }
 0x373   :  { %v4305_v48 = vpack.c.bf16 %v2438_v4, %v2434_v2 }
 0x374   :  { %v2072_v35 = vpop.f32.mrf.mxu2  ;;  %v1737_v19 = vpop.f32.mrf.mxu0 }
 0x375   :  { %v2073_v46 = vadd.f32 %v2072_v35, %v4193_v59  ;;  %2787 = vmatpush.bf16.xpose.msra.mxu3 %v4203_v10  ;;  %v2241_v42 = vpop.f32.mrf.mxu3  ;;  %v1738_v22 = vadd.f32 %v1737_v19, %v4187_v39  ;;  %v1906_v7 = vpop.f32.mrf.mxu1 }
 0x377   :  { %v2242_v14 = vadd.f32 %v2241_v42, %v2073_v46  ;;  %v1907_v55 = vadd.f32 %v1906_v7, %v1738_v22  ;;  %1776 = vmatmul.bf16.gmra.mxu0 %v3677_v29  ;;  %v3681_v22 = vld [vmem:[#allocation3 + $0xb0] sm:$0xff] }
 0x378   :  { %1945 = vmatmul.bf16.gmra.mxu1 %v3678_v54  ;;  %v3682_v7 = vld [vmem:[#allocation6 + $0xb0] sm:$0xff] }
 0x379   :  { %v2439_v56 = vmax.f32 %v2242_v14, 0.0  ;;  %2114 = vmatmul.bf16.gmra.mxu2 %v3677_v29  ;;  %v2442_v36 = vmax.f32 %v1907_v55, 0.0 }
 0x37a   :  { %2283 = vmatmul.bf16.gmra.mxu3 %v3678_v54 }
 0x37b   :  { %v4310_v9 = vpack.c.bf16 %v2439_v56, %v2435_v26 }
 0x37c   :  { %v2075_v57 = vpop.f32.mrf.mxu2  ;;  %v1739_v20 = vpop.f32.mrf.mxu0 }
 0x37d   :  { %v2076_v10 = vadd.f32 %v2075_v57, %v4193_v59  ;;  %v2244_v28 = vpop.f32.mrf.mxu3  ;;  %v1740_v62 = vadd.f32 %v1739_v20, %v4187_v39  ;;  %v1908_v40 = vpop.f32.mrf.mxu1  ;;  %v3683_v20 = vld [vmem:[#allocation3 + $0xb8] sm:$0xff] }
 0x37f   :  { %v2245_v50 = vadd.f32 %v2244_v28, %v2076_v10  ;;  %v1909_v23 = vadd.f32 %v1908_v40, %v1740_v62  ;;  %v3684_v28 = vld [vmem:[#allocation6 + $0xb8] sm:$0xff] }
 0x381   :  { %v2446_v30 = vmax.f32 %v1909_v23, 0.0  ;;  %v2443_v12 = vmax.f32 %v2245_v50, 0.0 }
 0x383   :  { %v4314_v37 = vpack.c.bf16 %v2446_v30, %v2442_v36 }
 0x384   :  { %v2077_v6 = vpop.f32.mrf.mxu2  ;;  %v4317_v24 = vpop.f32.mrf.mxu0 }
 0x385   :  { %v2078_v8 = vadd.f32 %v2077_v6, %v4193_v59  ;;  %v2246_v45 = vpop.f32.mrf.mxu3  ;;  %v4319_v34 = vpop.f32.mrf.mxu1 }
 0x387   :  { %v2247_v17 = vadd.f32 %v2246_v45, %v2078_v8  ;;  %1781 = vmatmul.bf16.gmra.mxu0 %v3679_v0 }
 0x388   :  { %1950 = vmatmul.bf16.gmra.mxu1 %v3680_v11 }
 0x389   :  { %v2447_v60 = vmax.f32 %v2247_v17, 0.0  ;;  %2119 = vmatmul.bf16.gmra.mxu2 %v3679_v0 }
 0x38a   :  { %2288 = vmatmul.bf16.gmra.mxu3 %v3680_v11 }
 0x38b   :  { %v4321_v38 = vpack.c.bf16 %v2447_v60, %v2443_v12 }
 0x38c   :  { %v4323_v51 = vpop.f32.mrf.mxu2  ;;  %v1744_v15 = vpop.f32.mrf.mxu0 }
 0x38d   :  { %v4325_v2 = vpop.f32.mrf.mxu3  ;;  %v4327_v4 = vpop.f32.mrf.mxu1 }
 0x394   :  { %v4329_v35 = vpop.f32.mrf.mxu2  ;;  %v1747_v46 = vpop.f32.mrf.mxu0 }
 0x395   :  { %v4331_v19 = vpop.f32.mrf.mxu3  ;;  %v1916_v42 = vpop.f32.mrf.mxu1  ;;  %v1748_v0 = vadd.f32 %v1747_v46, %v4187_v39  ;;  %v1745_v46 = vadd.f32 %v1744_v15, %v4187_v39 }
 0x397   :  { %1786 = vmatmul.bf16.gmra.mxu0 %v3681_v22  ;;  %v1914_v15 = vadd.f32 %v4327_v4, %v1745_v46 }
 0x398   :  { %1955 = vmatmul.bf16.gmra.mxu1 %v3682_v7 }
 0x399   :  { %2124 = vmatmul.bf16.gmra.mxu2 %v3681_v22  ;;  %v2454_v4 = vmax.f32 %v1914_v15, 0.0 }
 0x39a   :  { %2293 = vmatmul.bf16.gmra.mxu3 %v3682_v7 }
 0x39c   :  { %v2085_v14 = vpop.f32.mrf.mxu2  ;;  %v1749_v55 = vpop.f32.mrf.mxu0 }
 0x39d   :  { %v2254_v29 = vpop.f32.mrf.mxu3  ;;  %v1918_v26 = vpop.f32.mrf.mxu1  ;;  %v1750_v8 = vadd.f32 %v1749_v55, %v4187_v39 }
 0x39f   :  { %v1919_v11 = vadd.f32 %v1918_v26, %v1750_v8  ;;  %v3685_v26 = vld [vmem:[#allocation3 + $0xc0] sm:$0xff] }
 0x3a4   :  { %v2087_v56 = vpop.f32.mrf.mxu2  ;;  %v1752_v54 = vpop.f32.mrf.mxu0 }
 0x3a5   :  { %v2256_v57 = vpop.f32.mrf.mxu3  ;;  %v1921_v10 = vpop.f32.mrf.mxu1  ;;  %v1753_v62 = vadd.f32 %v1752_v54, %v4187_v39 }
 0x3a7   :  { %1791 = vmatmul.bf16.gmra.mxu0 %v3683_v20  ;;  %v1922_v36 = vadd.f32 %v1921_v10, %v1753_v62  ;;  %v1917_v62 = vadd.f32 %v1916_v42, %v1748_v0  ;;  %v1743_v42 = vadd.f32 %v4317_v24, %v4187_v39 }
 0x3a8   :  { %1960 = vmatmul.bf16.gmra.mxu1 %v3684_v28 }
 0x3a9   :  { %2129 = vmatmul.bf16.gmra.mxu2 %v3683_v20  ;;  %v2466_v12 = vmax.f32 %v1922_v36, 0.0  ;;  %v2462_v36 = vmax.f32 %v1919_v11, 0.0  ;;  %v2458_v0 = vmax.f32 %v1917_v62, 0.0 }
 0x3aa   :  { %2298 = vmatmul.bf16.gmra.mxu3 %v3684_v28 }
 0x3ab   :  { %v2659_v11 = vpack.c.bf16 %v2462_v36, %v2458_v0 }
 0x3ac   :  { %v2090_v40 = vpop.f32.mrf.mxu2  ;;  %v1754_v50 = vpop.f32.mrf.mxu0 }
 0x3ad   :  { %v2259_v23 = vpop.f32.mrf.mxu3  ;;  %v1755_v30 = vadd.f32 %v1754_v50, %v4187_v39  ;;  %v1923_v6 = vpop.f32.mrf.mxu1  ;;  %v2091_v17 = vadd.f32 %v2090_v40, %v4193_v59 }
 0x3af   :  { %v1924_v45 = vadd.f32 %v1923_v6, %v1755_v30  ;;  %v2260_v54 = vadd.f32 %v2259_v23, %v2091_v17  ;;  %v2088_v30 = vadd.f32 %v2087_v56, %v4193_v59  ;;  %v2086_v23 = vadd.f32 %v2085_v14, %v4193_v59  ;;  %v3686_v17 = vld [vmem:[#allocation6 + $0xc0] sm:$0xff] }
 0x3b1   :  { %v2470_v60 = vmax.f32 %v1924_v45, 0.0  ;;  %v2467_v8 = vmax.f32 %v2260_v54, 0.0  ;;  %v2257_v56 = vadd.f32 %v2256_v57, %v2088_v30  ;;  %v2083_v57 = vadd.f32 %v4329_v35, %v4193_v59 }
 0x3b3   :  { %v2663_v22 = vpack.c.bf16 %v2470_v60, %v2466_v12 }
 0x3b4   :  { %v2092_v7 = vpop.f32.mrf.mxu2  ;;  %v1757_v28 = vpop.f32.mrf.mxu0 }
 0x3b5   :  { %v2093_v20 = vadd.f32 %v2092_v7, %v4193_v59  ;;  %v2261_v10 = vpop.f32.mrf.mxu3  ;;  %v1758_v50 = vadd.f32 %v1757_v28, %v4187_v39  ;;  %2819 = vmatpush.bf16.xpose.msrb.mxu2 %v2663_v22  ;;  %v1926_v55 = vpop.f32.mrf.mxu1  ;;  %v2255_v22 = vadd.f32 %v2254_v29, %v2086_v23  ;;  %v2081_v29 = vadd.f32 %v4323_v51, %v4193_v59 }
 0x3b7   :  { %v2262_v40 = vadd.f32 %v2261_v10, %v2093_v20  ;;  %v1927_v6 = vadd.f32 %v1926_v55, %v1758_v50  ;;  %1796 = vmatmul.bf16.gmra.mxu0 %v3685_v26  ;;  %v1912_v20 = vadd.f32 %v4319_v34, %v1743_v42  ;;  %v2463_v10 = vmax.f32 %v2257_v56, 0.0 }
 0x3b8   :  { %1965 = vmatmul.bf16.gmra.mxu1 %v3686_v17  ;;  %v2459_v55 = vmax.f32 %v2255_v22, 0.0  ;;  %v2252_v34 = vadd.f32 %v4331_v19, %v2083_v57  ;;  %v2250_v35 = vadd.f32 %v4325_v2, %v2081_v29  ;;  %v3687_v19 = vld [vmem:[#allocation3 + $0xc8] sm:$0xff] }
 0x3b9   :  { %v2471_v45 = vmax.f32 %v2262_v40, 0.0  ;;  %2134 = vmatmul.bf16.gmra.mxu2 %v3685_v26  ;;  %v2450_v30 = vmax.f32 %v1912_v20, 0.0  ;;  %v2474_v40 = vmax.f32 %v1927_v6, 0.0  ;;  %v3688_v22 = vld [vmem:[#allocation6 + $0xc8] sm:$0xff] }
 0x3ba   :  { %2303 = vmatmul.bf16.gmra.mxu3 %v3686_v17  ;;  %v2660_v36 = vpack.c.bf16 %v2463_v10, %v2459_v55  ;;  %v2455_v6 = vmax.f32 %v2252_v34, 0.0  ;;  %v2451_v15 = vmax.f32 %v2250_v35, 0.0 }
 0x3bb   :  { %v2664_v12 = vpack.c.bf16 %v2471_v45, %v2467_v8  ;;  %v2655_v23 = vpack.c.bf16 %v2454_v4, %v2450_v30 }
 0x3bc   :  { %v2095_v60 = vpop.f32.mrf.mxu2  ;;  %v1759_v14 = vpop.f32.mrf.mxu0  ;;  %v2656_v2 = vpack.c.bf16 %v2455_v6, %v2451_v15 }
 0x3bd   :  { %v2096_v7 = vadd.f32 %v2095_v60, %v4193_v59  ;;  %2832 = vmatpush.bf16.xpose.msrb.mxu3 %v2664_v12  ;;  %v2264_v54 = vpop.f32.mrf.mxu3  ;;  %v1760_v28 = vadd.f32 %v1759_v14, %v4187_v39  ;;  %2820 = vmatpush.bf16.xpose.msrb.mxu2 %v2659_v11  ;;  %v1928_v24 = vpop.f32.mrf.mxu1 }
 0x3bf   :  { %v2265_v62 = vadd.f32 %v2264_v54, %v2096_v7  ;;  %v1929_v50 = vadd.f32 %v1928_v24, %v1760_v28 }
 0x3c1   :  { %v2478_v46 = vmax.f32 %v1929_v50, 0.0  ;;  %v2475_v60 = vmax.f32 %v2265_v62, 0.0 }
 0x3c3   :  { %v4354_v8 = vpack.c.bf16 %v2478_v46, %v2474_v40 }
 0x3c4   :  { %v2097_v26 = vpop.f32.mrf.mxu2  ;;  %v1762_v17 = vpop.f32.mrf.mxu0 }
 0x3c5   :  { %v2098_v45 = vadd.f32 %v2097_v26, %v4193_v59  ;;  %2833 = vmatpush.bf16.xpose.msrb.mxu3 %v2660_v36  ;;  %v2266_v42 = vpop.f32.mrf.mxu3  ;;  %v1763_v51 = vadd.f32 %v1762_v17, %v4187_v39  ;;  %2821 = vmatpush.bf16.xpose.msrb.mxu2 %v2655_v23  ;;  %v1931_v0 = vpop.f32.mrf.mxu1  ;;  %v3689_v23 = vld [vmem:[#allocation3 + $0xd0] sm:$0xff] }
 0x3c6   :  { %v3690_v17 = vld [vmem:[#allocation6 + $0xd0] sm:$0xff] }
 0x3c7   :  { %v2267_v56 = vadd.f32 %v2266_v42, %v2098_v45  ;;  %v1932_v12 = vadd.f32 %v1931_v0, %v1763_v51  ;;  %1801 = vmatmul.bf16.gmra.mxu0 %v3687_v19 }
 0x3c8   :  { %1970 = vmatmul.bf16.gmra.mxu1 %v3688_v22 }
 0x3c9   :  { %v2479_v11 = vmax.f32 %v2267_v56, 0.0  ;;  %2139 = vmatmul.bf16.gmra.mxu2 %v3687_v19  ;;  %v2482_v4 = vmax.f32 %v1932_v12, 0.0 }
 0x3ca   :  { %2308 = vmatmul.bf16.gmra.mxu3 %v3688_v22 }
 0x3cb   :  { %v4359_v7 = vpack.c.bf16 %v2479_v11, %v2475_v60 }
 0x3cc   :  { %v2100_v14 = vpop.f32.mrf.mxu2  ;;  %v1764_v20 = vpop.f32.mrf.mxu0 }
 0x3cd   :  { %4607 = vst [vmem:[#allocation32_spill] sm:$0xff] %v4359_v7  ;;  %v2101_v54 = vadd.f32 %v2100_v14, %v4193_v59  ;;  %2834 = vmatpush.bf16.xpose.msrb.mxu3 %v2656_v2  ;;  %v2269_v28 = vpop.f32.mrf.mxu3  ;;  %v1765_v24 = vadd.f32 %v1764_v20, %v4187_v39  ;;  %2822 = vmatpush.bf16.xpose.msrb.mxu2 %v4314_v37  ;;  %v1933_v57 = vpop.f32.mrf.mxu1 }
 0x3cf   :  { %v2270_v10 = vadd.f32 %v2269_v28, %v2101_v54  ;;  %v1934_v62 = vadd.f32 %v1933_v57, %v1765_v24  ;;  %v3691_v24 = vld [vmem:[#allocation3 + $0xd8] sm:$0xff] }
 0x3d1   :  { %v2486_v50 = vmax.f32 %v1934_v62, 0.0  ;;  %v2483_v35 = vmax.f32 %v2270_v10, 0.0  ;;  %v3692_v62 = vld [vmem:[#allocation6 + $0xd8] sm:$0xff] }
 0x3d3   :  { %v4364_v55 = vpack.c.bf16 %v2486_v50, %v2482_v4 }
 0x3d4   :  { %v2102_v29 = vpop.f32.mrf.mxu2  ;;  %v1767_v40 = vpop.f32.mrf.mxu0 }
 0x3d5   :  { %v2103_v30 = vadd.f32 %v2102_v29, %v4193_v59  ;;  %2835 = vmatpush.bf16.xpose.msrb.mxu3 %v4321_v38  ;;  %v2271_v46 = vpop.f32.mrf.mxu3  ;;  %v1768_v34 = vadd.f32 %v1767_v40, %v4187_v39  ;;  %2823 = vmatpush.bf16.xpose.msrb.mxu2 %v4305_v48  ;;  %v1936_v36 = vpop.f32.mrf.mxu1 }
 0x3d7   :  { %v2272_v37 = vadd.f32 %v2271_v46, %v2103_v30  ;;  %v1937_v26 = vadd.f32 %v1936_v36, %v1768_v34  ;;  %1806 = vmatmul.bf16.gmra.mxu0 %v3689_v23 }
 0x3d8   :  { %1975 = vmatmul.bf16.gmra.mxu1 %v3690_v17 }
 0x3d9   :  { %v2487_v45 = vmax.f32 %v2272_v37, 0.0  ;;  %2144 = vmatmul.bf16.gmra.mxu2 %v3689_v23  ;;  %v2490_v15 = vmax.f32 %v1937_v26, 0.0 }
 0x3da   :  { %2313 = vmatmul.bf16.gmra.mxu3 %v3690_v17 }
 0x3db   :  { %v4370_v42 = vpack.c.bf16 %v2487_v45, %v2483_v35 }
 0x3dc   :  { %v2105_v38 = vpop.f32.mrf.mxu2  ;;  %v1769_v0 = vpop.f32.mrf.mxu0 }
 0x3dd   :  { %v2106_v51 = vadd.f32 %v2105_v38, %v4193_v59  ;;  %2836 = vmatpush.bf16.xpose.msrb.mxu3 %v4310_v9  ;;  %v2274_v48 = vpop.f32.mrf.mxu3  ;;  %v1770_v6 = vadd.f32 %v1769_v0, %v4187_v39  ;;  %2824 = vmatpush.bf16.xpose.msrb.mxu2 %v4293_v13  ;;  %v1938_v56 = vpop.f32.mrf.mxu1 }
 0x3df   :  { %v2275_v12 = vadd.f32 %v2274_v48, %v2106_v51  ;;  %v1939_v19 = vadd.f32 %v1938_v56, %v1770_v6  ;;  %v3694_v56 = vld [vmem:[#allocation6 + $0xe0] sm:$0xff] }
 0x3e1   :  { %v2494_v60 = vmax.f32 %v1939_v19, 0.0  ;;  %v2491_v57 = vmax.f32 %v2275_v12, 0.0 }
 0x3e3   :  { %v4376_v22 = vpack.c.bf16 %v2494_v60, %v2490_v15 }
 0x3e4   :  { %v2107_v11 = vpop.f32.mrf.mxu2  ;;  %v1772_v14 = vpop.f32.mrf.mxu0 }
 0x3e5   :  { %v2108_v2 = vadd.f32 %v2107_v11, %v4193_v59  ;;  %2837 = vmatpush.bf16.xpose.msrb.mxu3 %v4299_v3  ;;  %v2276_v9 = vpop.f32.mrf.mxu3  ;;  %v1773_v54 = vadd.f32 %v1772_v14, %v4187_v39  ;;  %2825 = vmatpush.bf16.xpose.msrb.mxu2 %v4281_v58  ;;  %v1941_v20 = vpop.f32.mrf.mxu1 }
 0x3e7   :  { %v2277_v13 = vadd.f32 %v2276_v9, %v2108_v2  ;;  %v1942_v28 = vadd.f32 %v1941_v20, %v1773_v54  ;;  %1811 = vmatmul.bf16.gmra.mxu0 %v3691_v24 }
 0x3e8   :  { %1980 = vmatmul.bf16.gmra.mxu1 %v3692_v62 }
 0x3e9   :  { %v2495_v10 = vmax.f32 %v2277_v13, 0.0  ;;  %2149 = vmatmul.bf16.gmra.mxu2 %v3691_v24  ;;  %v2498_v36 = vmax.f32 %v1942_v28, 0.0 }
 0x3ea   :  { %2318 = vmatmul.bf16.gmra.mxu3 %v3692_v62 }
 0x3eb   :  { %v4382_v4 = vpack.c.bf16 %v2495_v10, %v2491_v57 }
 0x3ec   :  { %v2110_v3 = vpop.f32.mrf.mxu2  ;;  %v1774_v29 = vpop.f32.mrf.mxu0 }
 0x3ed   :  { %v2111_v50 = vadd.f32 %v2110_v3, %v4193_v59  ;;  %2838 = vmatpush.bf16.xpose.msrb.mxu3 %v4287_v16  ;;  %v2279_v58 = vpop.f32.mrf.mxu3  ;;  %v1775_v30 = vadd.f32 %v1774_v29, %v4187_v39  ;;  %2826 = vmatpush.bf16.xpose.msrb.mxu2 %v4271_v33  ;;  %v1943_v40 = vpop.f32.mrf.mxu1  ;;  %v3693_v33 = vld [vmem:[#allocation3 + $0xe0] sm:$0xff] }
 0x3ef   :  { %v2280_v46 = vadd.f32 %v2279_v58, %v2111_v50  ;;  %v1944_v34 = vadd.f32 %v1943_v40, %v1775_v30  ;;  %v3695_v50 = vld [vmem:[#allocation3 + $0xe8] sm:$0xff] }
 0x3f0   :  { %v3696_v30 = vld [vmem:[#allocation6 + $0xe8] sm:$0xff] }
 0x3f1   :  { %v2502_v37 = vmax.f32 %v1944_v34, 0.0  ;;  %v2499_v48 = vmax.f32 %v2280_v46, 0.0 }
 0x3f3   :  { %v4388_v23 = vpack.c.bf16 %v2502_v37, %v2498_v36 }
 0x3f4   :  { %v2112_v26 = vpop.f32.mrf.mxu2  ;;  %v1777_v45 = vpop.f32.mrf.mxu0 }
 0x3f5   :  { %v2113_v35 = vadd.f32 %v2112_v26, %v4193_v59  ;;  %2839 = vmatpush.bf16.xpose.msrb.mxu3 %v4276_v53  ;;  %v2281_v16 = vpop.f32.mrf.mxu3  ;;  %v1778_v17 = vadd.f32 %v1777_v45, %v4187_v39  ;;  %v1946_v38 = vpop.f32.mrf.mxu1  ;;  %v2600_v26 = vld [vmem:[#allocation9] sm:$0xf] }
 0x3f6   :  { %2732 = vst [vmem:[#allocation1] ss:$9 sm:$0xff] %v2600_v26 }
 0x3f7   :  { %v2282_v51 = vadd.f32 %v2281_v16, %v2113_v35  ;;  %v1947_v0 = vadd.f32 %v1946_v38, %v1778_v17  ;;  %1816 = vmatmul.bf16.gmra.mxu0 %v3693_v33  ;;  %v3697_v38 = vld [vmem:[#allocation3 + $0xf0] sm:$0xff] }
 0x3f8   :  { %1985 = vmatmul.bf16.gmra.mxu1 %v3694_v56 }
 0x3f9   :  { %v2503_v6 = vmax.f32 %v2282_v51, 0.0  ;;  %2154 = vmatmul.bf16.gmra.mxu2 %v3693_v33  ;;  %v2506_v54 = vmax.f32 %v1947_v0, 0.0  ;;  %v3698_v51 = vld [vmem:[#allocation6 + $0xf0] sm:$0xff] }
 0x3fa   :  { %2323 = vmatmul.bf16.gmra.mxu3 %v3694_v56 }
 0x3fb   :  { %v4393_v12 = vpack.c.bf16 %v2503_v6, %v2499_v48 }
 0x3fc   :  { %v2115_v19 = vpop.f32.mrf.mxu2  ;;  %v1779_v15 = vpop.f32.mrf.mxu0 }
 0x3fd   :  { %v2116_v53 = vadd.f32 %v2115_v19, %v4193_v59  ;;  %v2284_v60 = vpop.f32.mrf.mxu3  ;;  %v1780_v11 = vadd.f32 %v1779_v15, %v4187_v39  ;;  %v1948_v2 = vpop.f32.mrf.mxu1  ;;  %v4426_v7 = vld [vmem:[#allocation1 + $0x9] sm:$0xff] }
 0x3ff   :  { %v2285_v14 = vadd.f32 %v2284_v60, %v2116_v53  ;;  %v1949_v9 = vadd.f32 %v1948_v2, %v1780_v11  ;;  %v3699_v60 = vld [vmem:[#allocation3 + $0xf8] sm:$0xff] }
 0x400   :  { %v3700_v11 = vld [vmem:[#allocation6 + $0xf8] sm:$0xff] }
 0x401   :  { %v2510_v20 = vmax.f32 %v1949_v9, 0.0  ;;  %v2507_v29 = vmax.f32 %v2285_v14, 0.0 }
 0x403   :  { %v4397_v28 = vpack.c.bf16 %v2510_v20, %v2506_v54 }
 0x404   :  { %v2117_v13 = vpop.f32.mrf.mxu2  ;;  %v4400_v57 = vpop.f32.mrf.mxu0 }
 0x405   :  { %v2118_v24 = vadd.f32 %v2117_v13, %v4193_v59  ;;  %v2286_v10 = vpop.f32.mrf.mxu3  ;;  %v4402_v62 = vpop.f32.mrf.mxu1 }
 0x407   :  { %v2287_v3 = vadd.f32 %v2286_v10, %v2118_v24  ;;  %1821 = vmatmul.bf16.gmra.mxu0 %v3695_v50 }
 0x408   :  { %1990 = vmatmul.bf16.gmra.mxu1 %v3696_v30 }
 0x409   :  { %v2511_v58 = vmax.f32 %v2287_v3, 0.0  ;;  %2159 = vmatmul.bf16.gmra.mxu2 %v3695_v50 }
 0x40a   :  { %2328 = vmatmul.bf16.gmra.mxu3 %v3696_v30 }
 0x40b   :  { %v4404_v40 = vpack.c.bf16 %v2511_v58, %v2507_v29 }
 0x40c   :  { %v4406_v46 = vpop.f32.mrf.mxu2  ;;  %v4408_v34 = vpop.f32.mrf.mxu0 }
 0x40d   :  { %v4410_v36 = vpop.f32.mrf.mxu3  ;;  %v4412_v37 = vpop.f32.mrf.mxu1 }
 0x414   :  { %v4414_v35 = vpop.f32.mrf.mxu2  ;;  %v1787_v45 = vpop.f32.mrf.mxu0 }
 0x415   :  { %v4416_v16 = vpop.f32.mrf.mxu3  ;;  %v1956_v17 = vpop.f32.mrf.mxu1 }
 0x417   :  { %1826 = vmatmul.bf16.gmra.mxu0 %v3697_v38 }
 0x418   :  { %1995 = vmatmul.bf16.gmra.mxu1 %v3698_v51 }
 0x419   :  { %2164 = vmatmul.bf16.gmra.mxu2 %v3697_v38 }
 0x41a   :  { %2333 = vmatmul.bf16.gmra.mxu3 %v3698_v51 }
 0x41c   :  { %v2125_v0 = vpop.f32.mrf.mxu2  ;;  %v1789_v33 = vpop.f32.mrf.mxu0 }
 0x41d   :  { %v2294_v48 = vpop.f32.mrf.mxu3  ;;  %v1958_v6 = vpop.f32.mrf.mxu1  ;;  %v1790_v29 = vadd.f32 %v1789_v33, %v4187_v39 }
 0x424   :  { %v2127_v56 = vpop.f32.mrf.mxu2  ;;  %v1792_v19 = vpop.f32.mrf.mxu0 }
 0x425   :  { %v2296_v53 = vpop.f32.mrf.mxu3  ;;  %v1961_v15 = vpop.f32.mrf.mxu1  ;;  %v1793_v13 = vadd.f32 %v1792_v19, %v4187_v39  ;;  %v4428_v19 = vld [vmem:[#allocation1 + $0x12] sm:$0xff] }
 0x427   :  { %1831 = vmatmul.bf16.gmra.mxu0 %v3699_v60  ;;  %v1962_v3 = vadd.f32 %v1961_v15, %v1793_v13  ;;  %v1788_v15 = vadd.f32 %v1787_v45, %v4187_v39  ;;  %v4434_v13 = vld [vmem:[#allocation1 + $0x1b] sm:$0xff] }
 0x428   :  { %2000 = vmatmul.bf16.gmra.mxu1 %v3700_v11 }
 0x429   :  { %2169 = vmatmul.bf16.gmra.mxu2 %v3699_v60  ;;  %v4423_v60 = vld [vmem:[#allocation1] sm:$0xff]  ;;  %v2530_v33 = vmax.f32 %v1962_v3, 0.0  ;;  %v1957_v45 = vadd.f32 %v1956_v17, %v1788_v15 }
 0x42a   :  { %2338 = vmatmul.bf16.gmra.mxu3 %v3700_v11 }
 0x42c   :  { %v2130_v2 = vpop.f32.mrf.mxu2  ;;  %v1794_v14 = vpop.f32.mrf.mxu0 }
 0x42d   :  { %v2299_v9 = vpop.f32.mrf.mxu3  ;;  %v1795_v54 = vadd.f32 %v1794_v14, %v4187_v39  ;;  %v1963_v20 = vpop.f32.mrf.mxu1  ;;  %v2131_v24 = vadd.f32 %v2130_v2, %v4193_v59  ;;  %v2128_v2 = vadd.f32 %v2127_v56, %v4193_v59 }
 0x42f   :  { %v1964_v10 = vadd.f32 %v1963_v20, %v1795_v54  ;;  %v2300_v58 = vadd.f32 %v2299_v9, %v2131_v24  ;;  %v2126_v54 = vadd.f32 %v2125_v0, %v4193_v59  ;;  %v1959_v24 = vadd.f32 %v1958_v6, %v1790_v29 }
 0x430   :  { %v2297_v56 = vadd.f32 %v2296_v53, %v2128_v2  ;;  %v1785_v6 = vadd.f32 %v4408_v34, %v4187_v39  ;;  %v2123_v53 = vadd.f32 %v4414_v35, %v4193_v59 }
 0x431   :  { %v2534_v30 = vmax.f32 %v1964_v10, 0.0  ;;  %v2531_v10 = vmax.f32 %v2300_v58, 0.0  ;;  %v2295_v29 = vadd.f32 %v2294_v48, %v2126_v54  ;;  %v2526_v58 = vmax.f32 %v1959_v24, 0.0 }
 0x432   :  { %v2121_v48 = vadd.f32 %v4406_v46, %v4193_v59  ;;  %v1954_v2 = vadd.f32 %v4412_v37, %v1785_v6  ;;  %v2292_v35 = vadd.f32 %v4416_v16, %v2123_v53 }
 0x434   :  { %v2132_v50 = vpop.f32.mrf.mxu2  ;;  %v1797_v38 = vpop.f32.mrf.mxu0  ;;  %v2290_v46 = vadd.f32 %v4410_v36, %v2121_v48  ;;  %v2518_v37 = vmax.f32 %v1954_v2, 0.0 }
 0x435   :  { %v2133_v26 = vadd.f32 %v2132_v50, %v4193_v59  ;;  %v2301_v51 = vpop.f32.mrf.mxu3  ;;  %v1798_v11 = vadd.f32 %v1797_v38, %v4187_v39  ;;  %v1966_v14 = vpop.f32.mrf.mxu1  ;;  %v2695_v50 = vpack.c.bf16 %v2534_v30, %v2530_v33  ;;  %v2523_v33 = vmax.f32 %v2295_v29, 0.0 }
 0x436   :  { %v2515_v6 = vmax.f32 %v2290_v46, 0.0 }
 0x437   :  { %v2302_v9 = vadd.f32 %v2301_v51, %v2133_v26  ;;  %v1967_v20 = vadd.f32 %v1966_v14, %v1798_v11  ;;  %2749 = vmatmul.bf16.vlgmr.msra.gmra.mxu0 %v4423_v60  ;;  %v2522_v11 = vmax.f32 %v1957_v45, 0.0  ;;  %v2527_v14 = vmax.f32 %v2297_v56, 0.0 }
 0x438   :  { %2762 = vmatmul.bf16.vlgmr.msra.gmra.mxu1 %v4426_v7  ;;  %2845 = vmatpush.bf16.xpose.msra.mxu0 %v4104_v27  ;;  %v1783_v27 = vadd.f32 %v4400_v57, %v4187_v39 }
 0x439   :  { %v2535_v38 = vmax.f32 %v2302_v9, 0.0  ;;  %2775 = vmatmul.bf16.vlgmr.msra.gmra.mxu2 %v4428_v19  ;;  %2858 = vmatpush.bf16.xpose.msra.mxu1 %v4109_v49  ;;  %v2691_v9 = vpack.c.bf16 %v2526_v58, %v2522_v11  ;;  %v2538_v54 = vmax.f32 %v1967_v20, 0.0 }
 0x43a   :  { %2871 = vmatpush.bf16.xpose.msra.mxu2 %v2695_v50  ;;  %2788 = vmatmul.bf16.vlgmr.msra.gmra.mxu3 %v4434_v13  ;;  %v1952_v57 = vadd.f32 %v4402_v62, %v1783_v27  ;;  %v2519_v62 = vmax.f32 %v2292_v35, 0.0 }
 0x43b   :  { %v2696_v0 = vpack.c.bf16 %v2535_v38, %v2531_v10  ;;  %v2692_v10 = vpack.c.bf16 %v2527_v14, %v2523_v33 }
 0x43c   :  { %v2135_v3 = vpop.f32.mrf.mxu2  ;;  %v1799_v26 = vpop.f32.mrf.mxu0 }
 0x43d   :  { %v2136_v30 = vadd.f32 %v2135_v3, %v4193_v59  ;;  %2884 = vmatpush.bf16.xpose.msra.mxu3 %v2696_v0  ;;  %v2304_v51 = vpop.f32.mrf.mxu3  ;;  %v1800_v49 = vadd.f32 %v1799_v26, %v4187_v39  ;;  %v1968_v17 = vpop.f32.mrf.mxu1  ;;  %v2514_v0 = vmax.f32 %v1952_v57, 0.0  ;;  %v2688_v26 = vpack.c.bf16 %v2519_v62, %v2515_v6 }
 0x43f   :  { %v2305_v15 = vadd.f32 %v2304_v51, %v2136_v30  ;;  %v1969_v34 = vadd.f32 %v1968_v17, %v1800_v49  ;;  %v2687_v30 = vpack.c.bf16 %v2518_v37, %v2514_v0 }
 0x440   :  { %2846 = vmatpush.bf16.xpose.msra.mxu0 %v4096_v43 }
 0x441   :  { %v2542_v24 = vmax.f32 %v1969_v34, 0.0  ;;  %2859 = vmatpush.bf16.xpose.msra.mxu1 %v4100_v1  ;;  %v2539_v29 = vmax.f32 %v2305_v15, 0.0 }
 0x442   :  { %2872 = vmatpush.bf16.xpose.msra.mxu2 %v2691_v9 }
 0x443   :  { %v4456_v50 = vpack.c.bf16 %v2542_v24, %v2538_v54 }
 0x444   :  { %v2137_v38 = vpop.f32.mrf.mxu2  ;;  %v1802_v20 = vpop.f32.mrf.mxu0 }
 0x445   :  { %v2138_v45 = vadd.f32 %v2137_v38, %v4193_v59  ;;  %2885 = vmatpush.bf16.xpose.msra.mxu3 %v2692_v10  ;;  %v2306_v56 = vpop.f32.mrf.mxu3  ;;  %v1803_v43 = vadd.f32 %v1802_v20, %v4187_v39  ;;  %v1971_v1 = vpop.f32.mrf.mxu1 }
 0x447   :  { %v2307_v3 = vadd.f32 %v2306_v56, %v2138_v45  ;;  %v1972_v16 = vadd.f32 %v1971_v1, %v1803_v43  ;;  %2801 = vmatmul.bf16.vlgmr.msrb.gmra.mxu0 %v4423_v60 }
 0x448   :  { %2814 = vmatmul.bf16.vlgmr.msrb.gmra.mxu1 %v4426_v7  ;;  %2847 = vmatpush.bf16.xpose.msra.mxu0 %v4088_v63 }
 0x449   :  { %v2543_v58 = vmax.f32 %v2307_v3, 0.0  ;;  %2827 = vmatmul.bf16.vlgmr.msrb.gmra.mxu2 %v4428_v19  ;;  %2860 = vmatpush.bf16.xpose.msra.mxu1 %v4092_v25  ;;  %v2546_v63 = vmax.f32 %v1972_v16, 0.0 }
 0x44a   :  { %2873 = vmatpush.bf16.xpose.msra.mxu2 %v2687_v30  ;;  %2840 = vmatmul.bf16.vlgmr.msrb.gmra.mxu3 %v4434_v13 }
 0x44b   :  { %v4466_v36 = vpack.c.bf16 %v2543_v58, %v2539_v29 }
 0x44c   :  { %v2140_v51 = vpop.f32.mrf.mxu2  ;;  %v1804_v49 = vpop.f32.mrf.mxu0 }
 0x44d   :  { %v2141_v27 = vadd.f32 %v2140_v51, %v4193_v59  ;;  %2886 = vmatpush.bf16.xpose.msra.mxu3 %v2688_v26  ;;  %v2309_v17 = vpop.f32.mrf.mxu3  ;;  %v1805_v53 = vadd.f32 %v1804_v49, %v4187_v39  ;;  %v1973_v11 = vpop.f32.mrf.mxu1 }
 0x44f   :  { %v2310_v14 = vadd.f32 %v2309_v17, %v2141_v27  ;;  %v1974_v15 = vadd.f32 %v1973_v11, %v1805_v53 }
 0x450   :  { %2848 = vmatpush.bf16.xpose.msra.mxu0 %v4080_v5 }
 0x451   :  { %v2550_v34 = vmax.f32 %v1974_v15, 0.0  ;;  %2861 = vmatpush.bf16.xpose.msra.mxu1 %v4084_v52  ;;  %v2547_v10 = vmax.f32 %v2310_v14, 0.0  ;;  %v4610_v14 = vld [vmem:[#allocation32_spill] sm:$0xff] }
 0x452   :  { %2874 = vmatpush.bf16.xpose.msra.mxu2 %v4397_v28 }
 0x453   :  { %v4474_v25 = vpack.c.bf16 %v2550_v34, %v2546_v63 }
 0x454   :  { %v2142_v48 = vpop.f32.mrf.mxu2  ;;  %v1807_v33 = vpop.f32.mrf.mxu0 }
 0x455   :  { %v2143_v2 = vadd.f32 %v2142_v48, %v4193_v59  ;;  %2887 = vmatpush.bf16.xpose.msra.mxu3 %v4404_v40  ;;  %v2311_v9 = vpop.f32.mrf.mxu3  ;;  %v1808_v54 = vadd.f32 %v1807_v33, %v4187_v39  ;;  %v1976_v24 = vpop.f32.mrf.mxu1 }
 0x457   :  { %v2312_v57 = vadd.f32 %v2311_v9, %v2143_v2  ;;  %v1977_v35 = vadd.f32 %v1976_v24, %v1808_v54  ;;  %v4611_v9 = vld [vmem:[#allocation28_spill] sm:$0xff]  ;;  %v4612_v54 = vld [vmem:[#allocation29_spill] sm:$0xff] }
 0x458   :  { %2849 = vmatpush.bf16.xpose.msra.mxu0 %v4072_v32 }
 0x459   :  { %v2551_v5 = vmax.f32 %v2312_v57, 0.0  ;;  %2862 = vmatpush.bf16.xpose.msra.mxu1 %v4076_v18  ;;  %v2554_v43 = vmax.f32 %v1977_v35, 0.0 }
 0x45a   :  { %2875 = vmatpush.bf16.xpose.msra.mxu2 %v4388_v23 }
 0x45b   :  { %v4481_v52 = vpack.c.bf16 %v2551_v5, %v2547_v10 }
 0x45c   :  { %v2145_v28 = vpop.f32.mrf.mxu2  ;;  %v1809_v38 = vpop.f32.mrf.mxu0 }
 0x45d   :  { %v2146_v40 = vadd.f32 %v2145_v28, %v4193_v59  ;;  %2888 = vmatpush.bf16.xpose.msra.mxu3 %v4393_v12  ;;  %v2314_v46 = vpop.f32.mrf.mxu3  ;;  %v1810_v37 = vadd.f32 %v1809_v38, %v4187_v39  ;;  %v1978_v45 = vpop.f32.mrf.mxu1 }
 0x45f   :  { %v2315_v20 = vadd.f32 %v2314_v46, %v2146_v40  ;;  %v1979_v56 = vadd.f32 %v1978_v45, %v1810_v37  ;;  %v4613_v45 = vld [vmem:[#allocation26_spill] sm:$0xff] }
 0x460   :  { %2850 = vmatpush.bf16.xpose.msra.mxu0 %v4064_v47 }
 0x461   :  { %v2558_v32 = vmax.f32 %v1979_v56, 0.0  ;;  %2863 = vmatpush.bf16.xpose.msra.mxu1 %v4068_v41  ;;  %v2555_v29 = vmax.f32 %v2315_v20, 0.0  ;;  %v4614_v56 = vld [vmem:[#allocation27_spill] sm:$0xff] }
 0x462   :  { %2876 = vmatpush.bf16.xpose.msra.mxu2 %v4376_v22 }
 0x463   :  { %v4490_v18 = vpack.c.bf16 %v2558_v32, %v2554_v43 }
 0x464   :  { %v2147_v23 = vpop.f32.mrf.mxu2  ;;  %v1812_v1 = vpop.f32.mrf.mxu0 }
 0x465   :  { %v2148_v12 = vadd.f32 %v2147_v23, %v4193_v59  ;;  %2889 = vmatpush.bf16.xpose.msra.mxu3 %v4382_v4  ;;  %v2316_v0 = vpop.f32.mrf.mxu3  ;;  %v1813_v62 = vadd.f32 %v1812_v1, %v4187_v39  ;;  %v1981_v3 = vpop.f32.mrf.mxu1 }
 0x467   :  { %v2317_v16 = vadd.f32 %v2316_v0, %v2148_v12  ;;  %v1982_v6 = vadd.f32 %v1981_v3, %v1813_v62 }
 0x468   :  { %2851 = vmatpush.bf16.xpose.msra.mxu0 %v4056_v21 }
 0x469   :  { %v2559_v47 = vmax.f32 %v2317_v16, 0.0  ;;  %2864 = vmatpush.bf16.xpose.msra.mxu1 %v4060_v31  ;;  %v2562_v17 = vmax.f32 %v1982_v6, 0.0  ;;  %v4608_v31 = vld [vmem:[#allocation30_spill] sm:$0xff]  ;;  %v4615_v6 = vld [vmem:[#allocation24_spill] sm:$0xff] }
 0x46a   :  { %2877 = vmatpush.bf16.xpose.msra.mxu2 %v4364_v55 }
 0x46b   :  { %v4497_v41 = vpack.c.bf16 %v2559_v47, %v2555_v29  ;;  %v4616_v29 = vld [vmem:[#allocation25_spill] sm:$0xff] }
 0x46c   :  { %v2150_v22 = vpop.f32.mrf.mxu2  ;;  %v1814_v58 = vpop.f32.mrf.mxu0 }
 0x46d   :  { %v2151_v4 = vadd.f32 %v2150_v22, %v4193_v59  ;;  %2890 = vmatpush.bf16.xpose.msra.mxu3 %v4370_v42  ;;  %v2319_v30 = vpop.f32.mrf.mxu3  ;;  %v1815_v26 = vadd.f32 %v1814_v58, %v4187_v39  ;;  %v1983_v51 = vpop.f32.mrf.mxu1  ;;  %v4609_v42 = vld [vmem:[#allocation31_spill] sm:$0xff] }
 0x46f   :  { %v2320_v27 = vadd.f32 %v2319_v30, %v2151_v4  ;;  %v1984_v49 = vadd.f32 %v1983_v51, %v1815_v26  ;;  %v4617_v30 = vld [vmem:[#allocation22_spill] sm:$0xff]  ;;  %v4618_v26 = vld [vmem:[#allocation23_spill] sm:$0xff] }
 0x470   :  { %2852 = vmatpush.bf16.xpose.msra.mxu0 %v4048_v44 }
 0x471   :  { %v2566_v21 = vmax.f32 %v1984_v49, 0.0  ;;  %2865 = vmatpush.bf16.xpose.msra.mxu1 %v4052_v61  ;;  %v2563_v2 = vmax.f32 %v2320_v27, 0.0 }
 0x472   :  { %2878 = vmatpush.bf16.xpose.msra.mxu2 %v4354_v8 }
 0x473   :  { %v4507_v55 = vpack.c.bf16 %v2566_v21, %v2562_v17  ;;  %v4619_v21 = vld [vmem:[#allocation20_spill] sm:$0xff] }
 0x474   :  { %v2152_v53 = vpop.f32.mrf.mxu2  ;;  %v1817_v15 = vpop.f32.mrf.mxu0 }
 0x475   :  { %v2153_v11 = vadd.f32 %v2152_v53, %v4193_v59  ;;  %2891 = vmatpush.bf16.xpose.msra.mxu3 %v4610_v14  ;;  %v2321_v63 = vpop.f32.mrf.mxu3  ;;  %v1818_v34 = vadd.f32 %v1817_v15, %v4187_v39  ;;  %v1986_v44 = vpop.f32.mrf.mxu1  ;;  %v4621_v15 = vld [vmem:[#allocation18_spill] sm:$0xff] }
 0x477   :  { %v2322_v48 = vadd.f32 %v2321_v63, %v2153_v11  ;;  %v1987_v61 = vadd.f32 %v1986_v44, %v1818_v34  ;;  %2853 = vmatmul.bf16.vlgmr.msra.gmra.mxu0 %v4423_v60  ;;  %v4622_v63 = vld [vmem:[#allocation19_spill] sm:$0xff] }
 0x478   :  { %2897 = vmatpush.bf16.xpose.msrb.mxu0 %v4608_v31  ;;  %2866 = vmatmul.bf16.vlgmr.msra.gmra.mxu1 %v4426_v7  ;;  %v4620_v31 = vld [vmem:[#allocation21_spill] sm:$0xff] }
 0x479   :  { %2910 = vmatpush.bf16.xpose.msrb.mxu1 %v4609_v42  ;;  %v2567_v8 = vmax.f32 %v2322_v48, 0.0  ;;  %2879 = vmatmul.bf16.vlgmr.msra.gmra.mxu2 %v4428_v19  ;;  %v2570_v46 = vmax.f32 %v1987_v61, 0.0 }
 0x47b   :  { %v4516_v33 = vpack.c.bf16 %v2567_v8, %v2563_v2  ;;  %v4623_v8 = vld [vmem:[#allocation16_spill] sm:$0xff] }
 0x47c   :  { %v2155_v24 = vpop.f32.mrf.mxu2  ;;  %2892 = vmatmul.bf16.vlgmr.msra.gmra.mxu3 %v4434_v13  ;;  %v1819_v35 = vpop.f32.mrf.mxu0 }
 0x47d   :  { %v2156_v57 = vadd.f32 %v2155_v24, %v4193_v59  ;;  %v2324_v10 = vpop.f32.mrf.mxu3  ;;  %v1820_v5 = vadd.f32 %v1819_v35, %v4187_v39  ;;  %v1988_v28 = vpop.f32.mrf.mxu1 }
 0x47f   :  { %v2325_v40 = vadd.f32 %v2324_v10, %v2156_v57  ;;  %v1989_v38 = vadd.f32 %v1988_v28, %v1820_v5 }
 0x480   :  { %2898 = vmatpush.bf16.xpose.msrb.mxu0 %v4611_v9  ;;  %v4624_v9 = vld [vmem:[#allocation17_spill] sm:$0xff] }
 0x481   :  { %2911 = vmatpush.bf16.xpose.msrb.mxu1 %v4612_v54  ;;  %v2574_v37 = vmax.f32 %v1989_v38, 0.0  ;;  %v2571_v62 = vmax.f32 %v2325_v40, 0.0 }
 0x483   :  { %v4524_v20 = vpack.c.bf16 %v2574_v37, %v2570_v46 }
 0x484   :  { %v2157_v43 = vpop.f32.mrf.mxu2  ;;  %v4528_v23 = vpop.f32.mrf.mxu0 }
 0x485   :  { %v2158_v32 = vadd.f32 %v2157_v43, %v4193_v59  ;;  %v2326_v12 = vpop.f32.mrf.mxu3  ;;  %v4530_v1 = vpop.f32.mrf.mxu1 }
 0x487   :  { %v2327_v0 = vadd.f32 %v2326_v12, %v2158_v32 }
 0x488   :  { %2899 = vmatpush.bf16.xpose.msrb.mxu0 %v4613_v45 }
 0x489   :  { %2912 = vmatpush.bf16.xpose.msrb.mxu1 %v4614_v56  ;;  %v2575_v3 = vmax.f32 %v2327_v0, 0.0 }
 0x48b   :  { %v4532_v16 = vpack.c.bf16 %v2575_v3, %v2571_v62 }
 0x48c   :  { %v4536_v47 = vpop.f32.mrf.mxu2  ;;  %v1824_v22 = vpop.f32.mrf.mxu0 }
 0x48d   :  { %v4538_v4 = vpop.f32.mrf.mxu3  ;;  %v1993_v58 = vpop.f32.mrf.mxu1 }
 0x490   :  { %2900 = vmatpush.bf16.xpose.msrb.mxu0 %v4615_v6 }
 0x491   :  { %2913 = vmatpush.bf16.xpose.msrb.mxu1 %v4616_v29 }
 0x494   :  { %v2162_v51 = vpop.f32.mrf.mxu2  ;;  %v1827_v27 = vpop.f32.mrf.mxu0 }
 0x495   :  { %v2331_v49 = vpop.f32.mrf.mxu3  ;;  %v1996_v17 = vpop.f32.mrf.mxu1  ;;  %v1828_v46 = vadd.f32 %v1827_v27, %v4187_v39 }
 0x497   :  { %v1997_v62 = vadd.f32 %v1996_v17, %v1828_v46 }
 0x498   :  { %2901 = vmatpush.bf16.xpose.msrb.mxu0 %v4617_v30  ;;  %v1825_v30 = vadd.f32 %v1824_v22, %v4187_v39  ;;  %v2163_v22 = vadd.f32 %v2162_v51, %v4193_v59 }
 0x499   :  { %2914 = vmatpush.bf16.xpose.msrb.mxu1 %v4618_v26 }
 0x49c   :  { %v2165_v42 = vpop.f32.mrf.mxu2  ;;  %v1829_v53 = vpop.f32.mrf.mxu0 }
 0x49d   :  { %v2334_v11 = vpop.f32.mrf.mxu3  ;;  %v1998_v14 = vpop.f32.mrf.mxu1  ;;  %v1830_v28 = vadd.f32 %v1829_v53, %v4187_v39  ;;  %v2166_v27 = vadd.f32 %v2165_v42, %v4193_v59  ;;  %v2161_v42 = vadd.f32 %v4536_v47, %v4193_v59 }
 0x49f   :  { %v1999_v56 = vadd.f32 %v1998_v14, %v1830_v28 }
 0x4a0   :  { %2902 = vmatpush.bf16.xpose.msrb.mxu0 %v4619_v21 }
 0x4a1   :  { %2915 = vmatpush.bf16.xpose.msrb.mxu1 %v4620_v31  ;;  %v2590_v26 = vmax.f32 %v1999_v56, 0.0  ;;  %v2586_v31 = vmax.f32 %v1997_v62, 0.0 }
 0x4a3   :  { %v2723_v17 = vpack.c.bf16 %v2590_v26, %v2586_v31 }
 0x4a4   :  { %v2167_v34 = vpop.f32.mrf.mxu2  ;;  %v1832_v44 = vpop.f32.mrf.mxu0 }
 0x4a5   :  { %v2336_v48 = vpop.f32.mrf.mxu3  ;;  %v2001_v61 = vpop.f32.mrf.mxu1  ;;  %v1833_v2 = vadd.f32 %v1832_v44, %v4187_v39  ;;  %v2168_v6 = vadd.f32 %v2167_v34, %v4193_v59 }
 0x4a7   :  { %v2002_v35 = vadd.f32 %v2001_v61, %v1833_v2  ;;  %v2337_v53 = vadd.f32 %v2336_v48, %v2168_v6 }
 0x4a8   :  { %2903 = vmatpush.bf16.xpose.msrb.mxu0 %v4621_v15  ;;  %v1994_v15 = vadd.f32 %v1993_v58, %v1825_v30  ;;  %v2330_v58 = vadd.f32 %v4538_v4, %v2161_v42  ;;  %v2730_v4 = vstv %s4589_s5  ;;  %s3837_s5 = smov [#allocation11]  }
 0x4a9   :  { %2916 = vmatpush.bf16.xpose.msrb.mxu1 %v4622_v63  ;;  %v2594_v37 = vmax.f32 %v2002_v35, 0.0  ;;  %v2335_v63 = vadd.f32 %v2334_v11, %v2166_v27  ;;  %v2591_v44 = vmax.f32 %v2337_v53, 0.0  ;;  %s2973_s22 = sshll.u32 %s3837_s5, 4  ;;  %s2974_s22 = int_to_ptr.vmem [resolvable:$true] %s2973_s22 }
 0x4aa   :  { %v2582_v61 = vmax.f32 %v1994_v15, 0.0 }
 0x4ab   :  { %v2587_v2 = vmax.f32 %v2335_v63, 0.0  ;;  %v2963_v63 = vlaneseq }
 0x4ac   :  { %v2170_v54 = vpop.f32.mrf.mxu2  ;;  %v1834_v24 = vpop.f32.mrf.mxu0 }
 0x4ad   :  { %v2339_v57 = vpop.f32.mrf.mxu3  ;;  %v1835_v10 = vadd.f32 %v1834_v24, %v4187_v39  ;;  %v2003_v5 = vpop.f32.mrf.mxu1  ;;  %v2171_v38 = vadd.f32 %v2170_v54, %v4193_v59  ;;  %vm2965_vm3 = vcmp.lt.s32.totalorder %v2963_v63, 512 }
 0x4af   :  { %v2004_v40 = vadd.f32 %v2003_v5, %v1835_v10  ;;  %v2340_v12 = vadd.f32 %v2339_v57, %v2171_v38 }
 0x4b0   :  { %2904 = vmatpush.bf16.xpose.msrb.mxu0 %v4623_v8 }
 0x4b1   :  { %2917 = vmatpush.bf16.xpose.msrb.mxu1 %v4624_v9  ;;  %v2598_v45 = vmax.f32 %v2004_v40, 0.0  ;;  %v2579_v9 = vmax.f32 %v2330_v58, 0.0 }
 0x4b3   :  { %v2727_v43 = vpack.c.bf16 %v2598_v45, %v2594_v37 }
 0x4b4   :  { %v2172_v32 = vpop.f32.mrf.mxu2  ;;  %v2750_v51 = vpop.f32.mrf.mxu0 }
 0x4b5   :  { %v2173_v0 = vadd.f32 %v2172_v32, %v4193_v59  ;;  %v2341_v3 = vpop.f32.mrf.mxu3  ;;  %2923 = vmatpush.bf16.xpose.msrb.mxu2 %v2727_v43  ;;  %v2763_v54 = vpop.f32.mrf.mxu1  ;;  %v2751_v57 = vadd.f32 %v2750_v51, %v2730_v4 }
 0x4b7   :  { %2905 = vmatmul.bf16.vlgmr.msrb.gmra.mxu0 %v4423_v60  ;;  %v2342_v29 = vadd.f32 %v2341_v3, %v2173_v0  ;;  %v2595_v60 = vmax.f32 %v2340_v12, 0.0 }
 0x4b8   :  { %2918 = vmatmul.bf16.vlgmr.msrb.gmra.mxu1 %v4426_v7  ;;  %v1823_v7 = vadd.f32 %v4528_v23, %v4187_v39  ;;  %v2332_v39 = vadd.f32 %v2331_v49, %v2163_v22  ;;  %v2724_v23 = vpack.c.bf16 %v2591_v44, %v2587_v2 }
 0x4b9   :  { %v2599_v21 = vmax.f32 %v2342_v29, 0.0 }
 0x4ba   :  { %v1992_v34 = vadd.f32 %v4530_v1, %v1823_v7  ;;  %v2583_v11 = vmax.f32 %v2332_v39, 0.0 }
 0x4bb   :  { %v2728_v14 = vpack.c.bf16 %v2599_v21, %v2595_v60 }
 0x4bc   :  { %v2578_v8 = vmax.f32 %v1992_v34, 0.0  ;;  %v2720_v1 = vpack.c.bf16 %v2583_v11, %v2579_v9  ;;  %v2776_v59 = vpop.f32.mrf.mxu2  ;;  %v2752_v49 = vpop.f32.mrf.mxu0 }
 0x4bd   :  { %2936 = vmatpush.bf16.xpose.msrb.mxu3 %v2728_v14  ;;  %2924 = vmatpush.bf16.xpose.msrb.mxu2 %v2723_v17  ;;  %v2789_v47 = vpop.f32.mrf.mxu3  ;;  %v2765_v24 = vpop.f32.mrf.mxu1 }
 0x4be   :  { %v2719_v48 = vpack.c.bf16 %v2582_v61, %v2578_v8 }
 0x4c4   :  { %v2778_v35 = vpop.f32.mrf.mxu2 }
 0x4c5   :  { %2937 = vmatpush.bf16.xpose.msrb.mxu3 %v2724_v23  ;;  %2925 = vmatpush.bf16.xpose.msrb.mxu2 %v2719_v48  ;;  %v2791_v10 = vpop.f32.mrf.mxu3 }
 0x4cc   :  { %v2828_v46 = vpop.f32.mrf.mxu2 }
 0x4cd   :  { %2938 = vmatpush.bf16.xpose.msrb.mxu3 %v2720_v1  ;;  %2926 = vmatpush.bf16.xpose.msrb.mxu2 %v4524_v20  ;;  %v2764_v20 = vadd.f32 %v2763_v54, %v2751_v57  ;;  %v2841_v45 = vpop.f32.mrf.mxu3 }
 0x4cf   :  { %v2777_v5 = vadd.f32 %v2776_v59, %v2764_v20 }
 0x4d1   :  { %v2790_v40 = vadd.f32 %v2789_v47, %v2777_v5 }
 0x4d4   :  { %v2830_v12 = vpop.f32.mrf.mxu2 }
 0x4d5   :  { %2939 = vmatpush.bf16.xpose.msrb.mxu3 %v4532_v16  ;;  %2927 = vmatpush.bf16.xpose.msrb.mxu2 %v4507_v55  ;;  %v2802_v16 = vpop.f32.mrf.mxu0  ;;  %v2815_v55 = vpop.f32.mrf.mxu1 }
 0x4d6   :  { %v2803_v28 = vadd.f32 %v2802_v16, %v2730_v4  ;;  %v2843_v0 = vpop.f32.mrf.mxu3 }
 0x4d8   :  { %v2816_v38 = vadd.f32 %v2815_v55, %v2803_v28 }
 0x4da   :  { %v2829_v37 = vadd.f32 %v2828_v46, %v2816_v38 }
 0x4dd   :  { %2940 = vmatpush.bf16.xpose.msrb.mxu3 %v4516_v33  ;;  %2928 = vmatpush.bf16.xpose.msrb.mxu2 %v4490_v18  ;;  %v2842_v33 = vadd.f32 %v2841_v45, %v2829_v37  ;;  %v2804_v56 = vpop.f32.mrf.mxu0  ;;  %v2817_v18 = vpop.f32.mrf.mxu1 }
 0x4df   :  { %v2953_v43 = vrot.slane %v2842_v33, 7 }
 0x4e1   :  { %v2957_v32 = vsel %vm2956_vm0, %v2790_v40, %v2953_v43 }
 0x4e5   :  { %2941 = vmatpush.bf16.xpose.msrb.mxu3 %v4497_v41  ;;  %2929 = vmatpush.bf16.xpose.msrb.mxu2 %v4474_v25 }
 0x4ed   :  { %2942 = vmatpush.bf16.xpose.msrb.mxu3 %v4481_v52  ;;  %2930 = vmatpush.bf16.xpose.msrb.mxu2 %v4456_v50 }
 0x4f4   :  { %2931 = vmatmul.bf16.vlgmr.msrb.gmra.mxu2 %v4428_v19  ;;  %v2854_v41 = vpop.f32.mrf.mxu0 }
 0x4f5   :  { %2943 = vmatpush.bf16.xpose.msrb.mxu3 %v4466_v36  ;;  %v2867_v25 = vpop.f32.mrf.mxu1  ;;  %v2855_v62 = vadd.f32 %v2854_v41, %v2730_v4 }
 0x4f7   :  { %v2868_v3 = vadd.f32 %v2867_v25, %v2855_v62 }
 0x4fc   :  { %2944 = vmatmul.bf16.vlgmr.msrb.gmra.mxu3 %v4434_v13  ;;  %v2880_v6 = vpop.f32.mrf.mxu2  ;;  %v2856_v30 = vpop.f32.mrf.mxu0 }
 0x4fd   :  { %v2881_v29 = vadd.f32 %v2880_v6, %v2868_v3  ;;  %v2869_v26 = vpop.f32.mrf.mxu1 }
 0x4ff   :  { %v2893_v27 = vpop.f32.mrf.mxu3 }
 0x500   :  { %v2894_v52 = vadd.f32 %v2893_v27, %v2881_v29 }
 0x502   :  { %v2954_v22 = vrot.slane %v2894_v52, 6 }
 0x504   :  { %v2882_v60 = vpop.f32.mrf.mxu2 }
 0x507   :  { %v2895_v21 = vpop.f32.mrf.mxu3 }
 0x534   :  { %v2906_v50 = vpop.f32.mrf.mxu0 }
 0x535   :  { %v2907_v7 = vadd.f32 %v2906_v50, %v2730_v4  ;;  %v2919_v31 = vpop.f32.mrf.mxu1 }
 0x537   :  { %v2920_v36 = vadd.f32 %v2919_v31, %v2907_v7 }
 0x53c   :  { %v2908_v53 = vpop.f32.mrf.mxu0 }
 0x53d   :  { %v2921_v19 = vpop.f32.mrf.mxu1 }
 0x577   :  { %v2932_v14 = vpop.f32.mrf.mxu2 }
 0x578   :  { %v2933_v15 = vadd.f32 %v2932_v14, %v2920_v36 }
 0x57f   :  { %v2945_v17 = vpop.f32.mrf.mxu3  ;;  %v2934_v13 = vpop.f32.mrf.mxu2 }
 0x580   :  { %v2946_v34 = vadd.f32 %v2945_v17, %v2933_v15 }
 0x582   :  { %v2955_v44 = vrot.slane %v2946_v34, 5 }
 0x584   :  { %v2959_v61 = vsel %vm2958_vm1, %v2954_v22, %v2955_v44 }
 0x585   :  { %v2961_v42 = vsel %vm2960_vm2, %v2957_v32, %v2959_v61 }
 0x586   :  { %2967 = vst.msk [vmem:[#allocation11] sm:$0xf] %vm2965_vm3, %v2961_v42 }
 0x587   :  { %v2947_v2 = vpop.f32.mrf.mxu3  ;;  %2978 = dma.vmem_to_hbm [thread:$0]  %s2974_s22, 64, %s2976_s25, [#allocation5]  }
 0x588   :  { %3827 = dma.done.wait [#allocation5], 64  }
 0x589   :  { %3828 = vsyncadd [#allocation5], 4294967232 }
 0x58a   :  { %2983 = vsyncpa [#allocation4], 1 }
 0x58b   :  { %2984 = vsyncpa [#allocation7], 1 }
 0x58c   :  { %2985 = vsyncpa [#allocation10], 1 }
 0x58d   :  { %2986 = vsyncpa [#allocation5], 1 }

</bundles_post_ra>
